<compile_context>
chip_gen: v7x
topology: tpu7x:2x2x1
jax: 0.10.0
libtpu: 0.0.40
codegen_flags: <defaults>
</compile_context>

<pallas_src>
import functools

import jax
import jax.numpy as jnp
import numpy as np
from jax import lax
from jax.experimental import pallas as pl
from jax.experimental.pallas import tpu as pltpu

_COP = 128  # every channel / lane dimension is padded to 128


def _round_up(v, m):
    return (v + m - 1) // m * m


# ----------------------------- Pallas kernels ------------------------------

def _conv_kernel(x_ref, w_ref, b_ref, o_ref):
    """Stride-2 7x7 valid conv expressed as 16 shifted matmuls on s2d input.

    x_ref: (1, Ho+3, Wo+3, Kt)  bf16  space-to-depth input (stride baked in)
    w_ref: (16, Kt, Cop)        bf16  repacked taps (tap = 4*ah + aw)
    b_ref: (1, Cop)             f32
    o_ref: (1, Ho, Wo, Cop)     bf16
    """
    _, ho_n, wo_n, cop = o_ref.shape
    bias = b_ref[...]  # (1, Cop) f32

    def compute_row(ho, carry):
        acc = jnp.zeros((wo_n, cop), jnp.float32)
        for ah in range(4):
            for aw in range(4):
                tap = x_ref[0, pl.ds(ho + ah, 1), aw:aw + wo_n, :][0]  # (Wo, Kt)
                acc = acc + jnp.dot(tap, w_ref[4 * ah + aw],
                                    preferred_element_type=jnp.float32)
        o_ref[0, pl.ds(ho, 1)] = ((acc + bias)[None]).astype(o_ref.dtype)
        return carry

    lax.fori_loop(0, ho_n, compute_row, 0)


def _conv_head_kernel(x_ref, w_ref, b_ref, wfc_ref, bfc_ref, o_ref):
    """conv3 + fused head: ReLU -> MaxPool(3,2,1) -> AvgPool(1,1) -> Linear.

    x_ref:   (1, Ho+3, Wo+3, Kt) bf16
    w_ref:   (16, Kt, Cop)       bf16
    b_ref:   (1, Cop)            f32
    wfc_ref: (Cop, NCp)          bf16
    bfc_ref: (1, NCp)            f32
    o_ref:   (1, 1, NCp)         f32
    """
    _, hs, ws, _ = x_ref.shape
    ho_n, wo_n = hs - 3, ws - 3
    cop = w_ref.shape[2]
    bias = b_ref[...]  # (1, Cop)

    # conv3 rows (small static spatial extent), ReLU fused.
    rows = []
    for ho in range(ho_n):
        acc = jnp.zeros((wo_n, cop), jnp.float32)
        for ah in range(4):
            for aw in range(4):
                tap = x_ref[0, ho + ah, aw:aw + wo_n, :]  # (Wo, Kt), static slice
                acc = acc + jnp.dot(tap, w_ref[4 * ah + aw],
                                    preferred_element_type=jnp.float32)
        rows.append(jnp.maximum(acc + bias, 0.0))  # (Wo, Cop) f32

    # MaxPool2d(kernel=3, stride=2, padding=1); skipping out-of-range taps
    # matches PyTorch's -inf padding.  Then AdaptiveAvgPool2d((1,1)).
    hp = (ho_n + 2 - 3) // 2 + 1
    wp = (wo_n + 2 - 3) // 2 + 1
    pooled_sum = jnp.zeros((1, cop), jnp.float32)
    for po in range(hp):
        for qo in range(wp):
            window = []
            for dr in range(3):
                r = 2 * po - 1 + dr
                if r < 0 or r >= ho_n:
                    continue
                for dc in range(3):
                    c = 2 * qo - 1 + dc
                    if c < 0 or c >= wo_n:
                        continue
                    window.append(rows[r][c:c + 1, :])  # (1, Cop)
            m = window[0]
            for v in window[1:]:
                m = jnp.maximum(m, v)
            pooled_sum = pooled_sum + m
    avg = pooled_sum * (1.0 / float(hp * wp))  # (1, Cop) f32

    logits = jnp.dot(avg.astype(jnp.bfloat16), wfc_ref[...],
                     preferred_element_type=jnp.float32) + bfc_ref[...]
    o_ref[...] = logits[None]


# ------------------------------ JAX wrappers --------------------------------

def _space_to_depth(x, ho, wo):
    """(N, H, W, C) -> (N, Ho+3, Wo+3, round_up(4C, 128)) bf16 s2d layout."""
    n, h, w, c = x.shape
    hs, ws = ho + 3, wo + 3
    kt = _round_up(4 * c, 128)
    x = jnp.pad(x, ((0, 0), (0, 2 * hs - h), (0, 2 * ws - w), (0, 0)))
    x = x.reshape(n, hs, 2, ws, 2, c).transpose(0, 1, 3, 2, 4, 5)
    x = x.reshape(n, hs, ws, 4 * c)
    if kt > 4 * c:
        x = jnp.pad(x, ((0, 0), (0, 0), (0, 0), (0, kt - 4 * c)))
    return x.astype(jnp.bfloat16)


def _repack_conv_weights(w_hwio, cop=_COP):
    """(7,7,Cin,Cout) HWIO -> (16, round_up(4*Cin,128), Cop) bf16 s2d taps."""
    _, _, cin, cout = w_hwio.shape
    kt = _round_up(4 * cin, 128)
    w = jnp.pad(w_hwio, ((0, 1), (0, 1), (0, 0), (0, 0)))          # (8,8,Cin,Cout)
    w = w.reshape(4, 2, 4, 2, cin, cout).transpose(0, 2, 1, 3, 4, 5)
    w = w.reshape(16, 4 * cin, cout)                               # (ah,aw)x(hp,wp,ci)
    w = jnp.pad(w, ((0, 0), (0, kt - 4 * cin), (0, cop - cout)))
    return w.astype(jnp.bfloat16)


def _pad_bias(b, width=_COP):
    return jnp.pad(b, (0, width - b.shape[0])).reshape(1, width).astype(jnp.float32)


def pack_params(params):
    ncls = params["wfc"].shape[1]
    ncp = _round_up(ncls, 128)
    return {
        "w1": _repack_conv_weights(params["w1"]), "b1": _pad_bias(params["b1"]),
        "w2": _repack_conv_weights(params["w2"]), "b2": _pad_bias(params["b2"]),
        "w3": _repack_conv_weights(params["w3"]), "b3": _pad_bias(params["b3"]),
        "wfc": jnp.pad(params["wfc"],
                       ((0, _COP - params["wfc"].shape[0]), (0, ncp - ncls))
                       ).astype(jnp.bfloat16),
        "bfc": jnp.pad(params["bfc"], (0, ncp - ncls)).reshape(1, ncp)
                  .astype(jnp.float32),
    }


def _compiler_params():
    return pltpu.CompilerParams(
        dimension_semantics=("parallel",),
        vmem_limit_bytes=32 * 1024 * 1024,
    )


def _conv_pallas(x_s2d, w_taps, b, out_hw):
    n, hs, ws, kt = x_s2d.shape
    cop = w_taps.shape[-1]
    ho, wo = out_hw
    return pl.pallas_call(
        _conv_kernel,
        out_shape=jax.ShapeDtypeStruct((n, ho, wo, cop), jnp.bfloat16),
        grid=(n,),
        in_specs=[
            pl.BlockSpec((1, hs, ws, kt), lambda i: (i, 0, 0, 0)),
            pl.BlockSpec((16, kt, cop), lambda i: (0, 0, 0)),
            pl.BlockSpec((1, cop), lambda i: (0, 0)),
        ],
        out_specs=pl.BlockSpec((1, ho, wo, cop), lambda i: (i, 0, 0, 0)),
        compiler_params=_compiler_params(),
    )(x_s2d, w_taps, b)


def _conv_head_pallas(x_s2d, w_taps, b, wfc, bfc):
    n, hs, ws, kt = x_s2d.shape
    cop = w_taps.shape[-1]
    ncp = wfc.shape[-1]
    return pl.pallas_call(
        _conv_head_kernel,
        out_shape=jax.ShapeDtypeStruct((n, 1, ncp), jnp.float32),
        grid=(n,),
        in_specs=[
            pl.BlockSpec((1, hs, ws, kt), lambda i: (i, 0, 0, 0)),
            pl.BlockSpec((16, kt, cop), lambda i: (0, 0, 0)),
            pl.BlockSpec((1, cop), lambda i: (0, 0)),
            pl.BlockSpec((cop, ncp), lambda i: (0, 0)),
            pl.BlockSpec((1, ncp), lambda i: (0, 0)),
        ],
        out_specs=pl.BlockSpec((1, 1, ncp), lambda i: (i, 0, 0)),
        compiler_params=_compiler_params(),
    )(x_s2d, w_taps, b, wfc, bfc)


@functools.partial(jax.jit, static_argnames=("num_classes",))
def cnn_3layers_forward(packed, x_nchw, num_classes):
    # x.float(); NCHW -> NHWC (fuses with the first s2d reorder inside XLA).
    x = jnp.transpose(x_nchw.astype(jnp.float32), (0, 2, 3, 1))
    h, w = x.shape[1], x.shape[2]
    h1, w1 = (h - 7) // 2 + 1, (w - 7) // 2 + 1
    h2, w2 = (h1 - 7) // 2 + 1, (w1 - 7) // 2 + 1
    h3, w3 = (h2 - 7) // 2 + 1, (w2 - 7) // 2 + 1

    y1 = _conv_pallas(_space_to_depth(x, h1, w1),
                      packed["w1"], packed["b1"], (h1, w1))
    y2 = _conv_pallas(_space_to_depth(y1[..., :64], h2, w2),
                      packed["w2"], packed["b2"], (h2, w2))
    logits = _conv_head_pallas(_space_to_depth(y2[..., :32], h3, w3),
                               packed["w3"], packed["b3"],
                               packed["wfc"], packed["bfc"])
    return logits[:, 0, :num_classes]


def init_params(key, image_channels, num_classes):
    ks = jax.random.split(key, 8)

    def init(k, shape, fan_in):
        return jax.random.normal(k, shape, jnp.float32) / np.sqrt(fan_in)

    return {
        "w1": init(ks[0], (7, 7, image_channels, 64), 7 * 7 * image_channels),
        "b1": init(ks[1], (64,), 7 * 7 * image_channels),
        "w2": init(ks[2], (7, 7, 64, 32), 7 * 7 * 64),
        "b2": init(ks[3], (32,), 7 * 7 * 64),
        "w3": init(ks[4], (7, 7, 32, 16), 7 * 7 * 32),
        "b3": init(ks[5], (16,), 7 * 7 * 32),
        "wfc": init(ks[6], (16, num_classes), 16),
        "bfc": init(ks[7], (num_classes,), 16),
    }


# ---------------------- pure-JAX reference (for check) ----------------------

def reference_forward(params, x_nchw):
    x = x_nchw.astype(jnp.float32)

    def conv(x, w_hwio, b):
        w_oihw = jnp.transpose(w_hwio, (3, 2, 0, 1))
        y = lax.conv_general_dilated(
            x, w_oihw, (2, 2), "VALID",
            dimension_numbers=("NCHW", "OIHW", "NCHW"),
            precision=lax.Precision.HIGHEST)
        return y + b.reshape(1, -1, 1, 1)

    x = conv(x, params["w1"], params["b1"])
    x = conv(x, params["w2"], params["b2"])
    x = conv(x, params["w3"], params["b3"])
    x = jnp.maximum(x, 0.0)
    x = lax.reduce_window(x, -jnp.inf, lax.max, (1, 1, 3, 3), (1, 1, 2, 2),
                          ((0, 0), (0, 0), (1, 1), (1, 1)))
    x = jnp.mean(x, axis=(2, 3))
    return jnp.dot(x, params["wfc"],
                   precision=lax.Precision.HIGHEST) + params["bfc"]


if __name__ == "__main__":
    key = jax.random.PRNGKey(0)
    pkey, xkey = jax.random.split(key)

    image_channels, num_classes = 3, 10
    # Spatial size must be >= 43 for three valid 7x7/stride-2 convs; use 63.
    x = jax.random.normal(xkey, (2, image_channels, 63, 63), jnp.float32)
    params = init_params(pkey, image_channels, num_classes)
    packed = pack_params(params)

    out = cnn_3layers_forward(packed, x, num_classes)
    out = jax.block_until_ready(out)
    assert out.shape == (2, num_classes)

    # Kernel uses single-pass bf16 MXU matmuls (per perf guidance); compare to
    # the f32 HIGHEST reference with a correspondingly relaxed tolerance.
    ref = reference_forward(params, x)
    np.testing.assert_allclose(np.asarray(out), np.asarray(ref),
                               rtol=2e-2, atol=2e-2)
    print("KERNEL_OK")
</pallas_src>

<mosaic_0001>
module attributes {stable_mosaic.version = 11 : i64} {
  func.func @_conv_kernel(%arg0: i32, %arg1: memref<1x32x32x128xbf16, #tpu.memory_space<vmem>>, %arg2: memref<16x128x128xbf16, #tpu.memory_space<vmem>>, %arg3: memref<1x128xf32, #tpu.memory_space<vmem>>, %arg4: memref<1x29x29x128xbf16, #tpu.memory_space<vmem>>) attributes {dimension_semantics = [#tpu.dimension_semantics<parallel>], iteration_bounds = array<i64: 2>, scalar_prefetch = 0 : i64, scratch_operands = 0 : i64, tpu.core_type = #tpu.core_type<tc>, window_params = [{transform_indices = @transform_0, window_bounds = array<i64: 1, 32, 32, 128>}, {pipeline_mode = #tpu.pipeline_mode<synchronous>, transform_indices = @transform_1, window_bounds = array<i64: 16, 128, 128>}, {pipeline_mode = #tpu.pipeline_mode<synchronous>, transform_indices = @transform_2, window_bounds = array<i64: 1, 128>}, {transform_indices = @transform_3, window_bounds = array<i64: 1, 29, 29, 128>}]} {
    %c0 = arith.constant 0 : index
    %c0_0 = arith.constant 0 : index
    %0 = vector.load %arg3[%c0, %c0_0] : memref<1x128xf32, #tpu.memory_space<vmem>>, vector<1x128xf32>
    %c0_i32 = arith.constant 0 : i32
    %c29_i32 = arith.constant 29 : i32
    %1 = arith.addi %c0_i32, %c29_i32 : i32
    %c1_i32 = arith.constant 1 : i32
    scf.for %arg5 = %c0_i32 to %1 step %c1_i32  : i32 {
      %cst = arith.constant 0.000000e+00 : f32
      %2 = vector.broadcast %cst : f32 to vector<29x128xf32>
      %c0_i32_2 = arith.constant 0 : i32
      %3 = arith.addi %arg5, %c0_i32_2 : i32
      %c0_3 = arith.constant 0 : index
      %4 = arith.index_cast %3 : i32 to index
      %c0_4 = arith.constant 0 : index
      %c0_5 = arith.constant 0 : index
      %5 = vector.load %arg1[%c0_3, %4, %c0_4, %c0_5] : memref<1x32x32x128xbf16, #tpu.memory_space<vmem>>, vector<1x1x29x128xbf16>
      %6 = vector.shape_cast %5 : vector<1x1x29x128xbf16> to vector<1x29x128xbf16>
      %7 = vector.shape_cast %6 : vector<1x29x128xbf16> to vector<29x128xbf16>
      %c0_6 = arith.constant 0 : index
      %c0_7 = arith.constant 0 : index
      %c0_8 = arith.constant 0 : index
      %8 = vector.load %arg2[%c0_6, %c0_7, %c0_8] : memref<16x128x128xbf16, #tpu.memory_space<vmem>>, vector<1x128x128xbf16>
      %9 = vector.shape_cast %8 : vector<1x128x128xbf16> to vector<128x128xbf16>
      %cst_9 = arith.constant dense<0.000000e+00> : vector<29x128xf32>
      %10 = tpu.matmul %7, %9, %cst_9 {dimension_numbers = #tpu.dot_dimension_numbers<[1], [0], [0], [1], [0, 0, 1, 1], [], []>} : vector<29x128xbf16>, vector<128x128xbf16>, vector<29x128xf32> -> vector<29x128xf32>
      %11 = arith.addf %2, %10 : vector<29x128xf32>
      %c0_i32_10 = arith.constant 0 : i32
      %12 = arith.addi %arg5, %c0_i32_10 : i32
      %c0_11 = arith.constant 0 : index
      %13 = arith.index_cast %12 : i32 to index
      %c1 = arith.constant 1 : index
      %c0_12 = arith.constant 0 : index
      %14 = vector.load %arg1[%c0_11, %13, %c1, %c0_12] : memref<1x32x32x128xbf16, #tpu.memory_space<vmem>>, vector<1x1x29x128xbf16>
      %15 = vector.shape_cast %14 : vector<1x1x29x128xbf16> to vector<1x29x128xbf16>
      %16 = vector.shape_cast %15 : vector<1x29x128xbf16> to vector<29x128xbf16>
      %c1_13 = arith.constant 1 : index
      %c0_14 = arith.constant 0 : index
      %c0_15 = arith.constant 0 : index
      %17 = vector.load %arg2[%c1_13, %c0_14, %c0_15] : memref<16x128x128xbf16, #tpu.memory_space<vmem>>, vector<1x128x128xbf16>
      %18 = vector.shape_cast %17 : vector<1x128x128xbf16> to vector<128x128xbf16>
      %cst_16 = arith.constant dense<0.000000e+00> : vector<29x128xf32>
      %19 = tpu.matmul %16, %18, %cst_16 {dimension_numbers = #tpu.dot_dimension_numbers<[1], [0], [0], [1], [0, 0, 1, 1], [], []>} : vector<29x128xbf16>, vector<128x128xbf16>, vector<29x128xf32> -> vector<29x128xf32>
      %20 = arith.addf %11, %19 : vector<29x128xf32>
      %c0_i32_17 = arith.constant 0 : i32
      %21 = arith.addi %arg5, %c0_i32_17 : i32
      %c0_18 = arith.constant 0 : index
      %22 = arith.index_cast %21 : i32 to index
      %c2 = arith.constant 2 : index
      %c0_19 = arith.constant 0 : index
      %23 = vector.load %arg1[%c0_18, %22, %c2, %c0_19] : memref<1x32x32x128xbf16, #tpu.memory_space<vmem>>, vector<1x1x29x128xbf16>
      %24 = vector.shape_cast %23 : vector<1x1x29x128xbf16> to vector<1x29x128xbf16>
      %25 = vector.shape_cast %24 : vector<1x29x128xbf16> to vector<29x128xbf16>
      %c2_20 = arith.constant 2 : index
      %c0_21 = arith.constant 0 : index
      %c0_22 = arith.constant 0 : index
      %26 = vector.load %arg2[%c2_20, %c0_21, %c0_22] : memref<16x128x128xbf16, #tpu.memory_space<vmem>>, vector<1x128x128xbf16>
      %27 = vector.shape_cast %26 : vector<1x128x128xbf16> to vector<128x128xbf16>
      %cst_23 = arith.constant dense<0.000000e+00> : vector<29x128xf32>
      %28 = tpu.matmul %25, %27, %cst_23 {dimension_numbers = #tpu.dot_dimension_numbers<[1], [0], [0], [1], [0, 0, 1, 1], [], []>} : vector<29x128xbf16>, vector<128x128xbf16>, vector<29x128xf32> -> vector<29x128xf32>
      %29 = arith.addf %20, %28 : vector<29x128xf32>
      %c0_i32_24 = arith.constant 0 : i32
      %30 = arith.addi %arg5, %c0_i32_24 : i32
      %c0_25 = arith.constant 0 : index
      %31 = arith.index_cast %30 : i32 to index
      %c3 = arith.constant 3 : index
      %c0_26 = arith.constant 0 : index
      %32 = vector.load %arg1[%c0_25, %31, %c3, %c0_26] : memref<1x32x32x128xbf16, #tpu.memory_space<vmem>>, vector<1x1x29x128xbf16>
      %33 = vector.shape_cast %32 : vector<1x1x29x128xbf16> to vector<1x29x128xbf16>
      %34 = vector.shape_cast %33 : vector<1x29x128xbf16> to vector<29x128xbf16>
      %c3_27 = arith.constant 3 : index
      %c0_28 = arith.constant 0 : index
      %c0_29 = arith.constant 0 : index
      %35 = vector.load %arg2[%c3_27, %c0_28, %c0_29] : memref<16x128x128xbf16, #tpu.memory_space<vmem>>, vector<1x128x128xbf16>
      %36 = vector.shape_cast %35 : vector<1x128x128xbf16> to vector<128x128xbf16>
      %cst_30 = arith.constant dense<0.000000e+00> : vector<29x128xf32>
      %37 = tpu.matmul %34, %36, %cst_30 {dimension_numbers = #tpu.dot_dimension_numbers<[1], [0], [0], [1], [0, 0, 1, 1], [], []>} : vector<29x128xbf16>, vector<128x128xbf16>, vector<29x128xf32> -> vector<29x128xf32>
      %38 = arith.addf %29, %37 : vector<29x128xf32>
      %c1_i32_31 = arith.constant 1 : i32
      %39 = arith.addi %arg5, %c1_i32_31 : i32
      %c0_32 = arith.constant 0 : index
      %40 = arith.index_cast %39 : i32 to index
      %c0_33 = arith.constant 0 : index
      %c0_34 = arith.constant 0 : index
      %41 = vector.load %arg1[%c0_32, %40, %c0_33, %c0_34] : memref<1x32x32x128xbf16, #tpu.memory_space<vmem>>, vector<1x1x29x128xbf16>
      %42 = vector.shape_cast %41 : vector<1x1x29x128xbf16> to vector<1x29x128xbf16>
      %43 = vector.shape_cast %42 : vector<1x29x128xbf16> to vector<29x128xbf16>
      %c4 = arith.constant 4 : index
      %c0_35 = arith.constant 0 : index
      %c0_36 = arith.constant 0 : index
      %44 = vector.load %arg2[%c4, %c0_35, %c0_36] : memref<16x128x128xbf16, #tpu.memory_space<vmem>>, vector<1x128x128xbf16>
      %45 = vector.shape_cast %44 : vector<1x128x128xbf16> to vector<128x128xbf16>
      %cst_37 = arith.constant dense<0.000000e+00> : vector<29x128xf32>
      %46 = tpu.matmul %43, %45, %cst_37 {dimension_numbers = #tpu.dot_dimension_numbers<[1], [0], [0], [1], [0, 0, 1, 1], [], []>} : vector<29x128xbf16>, vector<128x128xbf16>, vector<29x128xf32> -> vector<29x128xf32>
      %47 = arith.addf %38, %46 : vector<29x128xf32>
      %c1_i32_38 = arith.constant 1 : i32
      %48 = arith.addi %arg5, %c1_i32_38 : i32
      %c0_39 = arith.constant 0 : index
      %49 = arith.index_cast %48 : i32 to index
      %c1_40 = arith.constant 1 : index
      %c0_41 = arith.constant 0 : index
      %50 = vector.load %arg1[%c0_39, %49, %c1_40, %c0_41] : memref<1x32x32x128xbf16, #tpu.memory_space<vmem>>, vector<1x1x29x128xbf16>
      %51 = vector.shape_cast %50 : vector<1x1x29x128xbf16> to vector<1x29x128xbf16>
      %52 = vector.shape_cast %51 : vector<1x29x128xbf16> to vector<29x128xbf16>
      %c5 = arith.constant 5 : index
      %c0_42 = arith.constant 0 : index
      %c0_43 = arith.constant 0 : index
      %53 = vector.load %arg2[%c5, %c0_42, %c0_43] : memref<16x128x128xbf16, #tpu.memory_space<vmem>>, vector<1x128x128xbf16>
      %54 = vector.shape_cast %53 : vector<1x128x128xbf16> to vector<128x128xbf16>
      %cst_44 = arith.constant dense<0.000000e+00> : vector<29x128xf32>
      %55 = tpu.matmul %52, %54, %cst_44 {dimension_numbers = #tpu.dot_dimension_numbers<[1], [0], [0], [1], [0, 0, 1, 1], [], []>} : vector<29x128xbf16>, vector<128x128xbf16>, vector<29x128xf32> -> vector<29x128xf32>
      %56 = arith.addf %47, %55 : vector<29x128xf32>
      %c1_i32_45 = arith.constant 1 : i32
      %57 = arith.addi %arg5, %c1_i32_45 : i32
      %c0_46 = arith.constant 0 : index
      %58 = arith.index_cast %57 : i32 to index
      %c2_47 = arith.constant 2 : index
      %c0_48 = arith.constant 0 : index
      %59 = vector.load %arg1[%c0_46, %58, %c2_47, %c0_48] : memref<1x32x32x128xbf16, #tpu.memory_space<vmem>>, vector<1x1x29x128xbf16>
      %60 = vector.shape_cast %59 : vector<1x1x29x128xbf16> to vector<1x29x128xbf16>
      %61 = vector.shape_cast %60 : vector<1x29x128xbf16> to vector<29x128xbf16>
      %c6 = arith.constant 6 : index
      %c0_49 = arith.constant 0 : index
      %c0_50 = arith.constant 0 : index
      %62 = vector.load %arg2[%c6, %c0_49, %c0_50] : memref<16x128x128xbf16, #tpu.memory_space<vmem>>, vector<1x128x128xbf16>
      %63 = vector.shape_cast %62 : vector<1x128x128xbf16> to vector<128x128xbf16>
      %cst_51 = arith.constant dense<0.000000e+00> : vector<29x128xf32>
      %64 = tpu.matmul %61, %63, %cst_51 {dimension_numbers = #tpu.dot_dimension_numbers<[1], [0], [0], [1], [0, 0, 1, 1], [], []>} : vector<29x128xbf16>, vector<128x128xbf16>, vector<29x128xf32> -> vector<29x128xf32>
      %65 = arith.addf %56, %64 : vector<29x128xf32>
      %c1_i32_52 = arith.constant 1 : i32
      %66 = arith.addi %arg5, %c1_i32_52 : i32
      %c0_53 = arith.constant 0 : index
      %67 = arith.index_cast %66 : i32 to index
      %c3_54 = arith.constant 3 : index
      %c0_55 = arith.constant 0 : index
      %68 = vector.load %arg1[%c0_53, %67, %c3_54, %c0_55] : memref<1x32x32x128xbf16, #tpu.memory_space<vmem>>, vector<1x1x29x128xbf16>
      %69 = vector.shape_cast %68 : vector<1x1x29x128xbf16> to vector<1x29x128xbf16>
      %70 = vector.shape_cast %69 : vector<1x29x128xbf16> to vector<29x128xbf16>
      %c7 = arith.constant 7 : index
      %c0_56 = arith.constant 0 : index
      %c0_57 = arith.constant 0 : index
      %71 = vector.load %arg2[%c7, %c0_56, %c0_57] : memref<16x128x128xbf16, #tpu.memory_space<vmem>>, vector<1x128x128xbf16>
      %72 = vector.shape_cast %71 : vector<1x128x128xbf16> to vector<128x128xbf16>
      %cst_58 = arith.constant dense<0.000000e+00> : vector<29x128xf32>
      %73 = tpu.matmul %70, %72, %cst_58 {dimension_numbers = #tpu.dot_dimension_numbers<[1], [0], [0], [1], [0, 0, 1, 1], [], []>} : vector<29x128xbf16>, vector<128x128xbf16>, vector<29x128xf32> -> vector<29x128xf32>
      %74 = arith.addf %65, %73 : vector<29x128xf32>
      %c2_i32 = arith.constant 2 : i32
      %75 = arith.addi %arg5, %c2_i32 : i32
      %c0_59 = arith.constant 0 : index
      %76 = arith.index_cast %75 : i32 to index
      %c0_60 = arith.constant 0 : index
      %c0_61 = arith.constant 0 : index
      %77 = vector.load %arg1[%c0_59, %76, %c0_60, %c0_61] : memref<1x32x32x128xbf16, #tpu.memory_space<vmem>>, vector<1x1x29x128xbf16>
      %78 = vector.shape_cast %77 : vector<1x1x29x128xbf16> to vector<1x29x128xbf16>
      %79 = vector.shape_cast %78 : vector<1x29x128xbf16> to vector<29x128xbf16>
      %c8 = arith.constant 8 : index
      %c0_62 = arith.constant 0 : index
      %c0_63 = arith.constant 0 : index
      %80 = vector.load %arg2[%c8, %c0_62, %c0_63] : memref<16x128x128xbf16, #tpu.memory_space<vmem>>, vector<1x128x128xbf16>
      %81 = vector.shape_cast %80 : vector<1x128x128xbf16> to vector<128x128xbf16>
      %cst_64 = arith.constant dense<0.000000e+00> : vector<29x128xf32>
      %82 = tpu.matmul %79, %81, %cst_64 {dimension_numbers = #tpu.dot_dimension_numbers<[1], [0], [0], [1], [0, 0, 1, 1], [], []>} : vector<29x128xbf16>, vector<128x128xbf16>, vector<29x128xf32> -> vector<29x128xf32>
      %83 = arith.addf %74, %82 : vector<29x128xf32>
      %c2_i32_65 = arith.constant 2 : i32
      %84 = arith.addi %arg5, %c2_i32_65 : i32
      %c0_66 = arith.constant 0 : index
      %85 = arith.index_cast %84 : i32 to index
      %c1_67 = arith.constant 1 : index
      %c0_68 = arith.constant 0 : index
      %86 = vector.load %arg1[%c0_66, %85, %c1_67, %c0_68] : memref<1x32x32x128xbf16, #tpu.memory_space<vmem>>, vector<1x1x29x128xbf16>
      %87 = vector.shape_cast %86 : vector<1x1x29x128xbf16> to vector<1x29x128xbf16>
      %88 = vector.shape_cast %87 : vector<1x29x128xbf16> to vector<29x128xbf16>
      %c9 = arith.constant 9 : index
      %c0_69 = arith.constant 0 : index
      %c0_70 = arith.constant 0 : index
      %89 = vector.load %arg2[%c9, %c0_69, %c0_70] : memref<16x128x128xbf16, #tpu.memory_space<vmem>>, vector<1x128x128xbf16>
      %90 = vector.shape_cast %89 : vector<1x128x128xbf16> to vector<128x128xbf16>
      %cst_71 = arith.constant dense<0.000000e+00> : vector<29x128xf32>
      %91 = tpu.matmul %88, %90, %cst_71 {dimension_numbers = #tpu.dot_dimension_numbers<[1], [0], [0], [1], [0, 0, 1, 1], [], []>} : vector<29x128xbf16>, vector<128x128xbf16>, vector<29x128xf32> -> vector<29x128xf32>
      %92 = arith.addf %83, %91 : vector<29x128xf32>
      %c2_i32_72 = arith.constant 2 : i32
      %93 = arith.addi %arg5, %c2_i32_72 : i32
      %c0_73 = arith.constant 0 : index
      %94 = arith.index_cast %93 : i32 to index
      %c2_74 = arith.constant 2 : index
      %c0_75 = arith.constant 0 : index
      %95 = vector.load %arg1[%c0_73, %94, %c2_74, %c0_75] : memref<1x32x32x128xbf16, #tpu.memory_space<vmem>>, vector<1x1x29x128xbf16>
      %96 = vector.shape_cast %95 : vector<1x1x29x128xbf16> to vector<1x29x128xbf16>
      %97 = vector.shape_cast %96 : vector<1x29x128xbf16> to vector<29x128xbf16>
      %c10 = arith.constant 10 : index
      %c0_76 = arith.constant 0 : index
      %c0_77 = arith.constant 0 : index
      %98 = vector.load %arg2[%c10, %c0_76, %c0_77] : memref<16x128x128xbf16, #tpu.memory_space<vmem>>, vector<1x128x128xbf16>
      %99 = vector.shape_cast %98 : vector<1x128x128xbf16> to vector<128x128xbf16>
      %cst_78 = arith.constant dense<0.000000e+00> : vector<29x128xf32>
      %100 = tpu.matmul %97, %99, %cst_78 {dimension_numbers = #tpu.dot_dimension_numbers<[1], [0], [0], [1], [0, 0, 1, 1], [], []>} : vector<29x128xbf16>, vector<128x128xbf16>, vector<29x128xf32> -> vector<29x128xf32>
      %101 = arith.addf %92, %100 : vector<29x128xf32>
      %c2_i32_79 = arith.constant 2 : i32
      %102 = arith.addi %arg5, %c2_i32_79 : i32
      %c0_80 = arith.constant 0 : index
      %103 = arith.index_cast %102 : i32 to index
      %c3_81 = arith.constant 3 : index
      %c0_82 = arith.constant 0 : index
      %104 = vector.load %arg1[%c0_80, %103, %c3_81, %c0_82] : memref<1x32x32x128xbf16, #tpu.memory_space<vmem>>, vector<1x1x29x128xbf16>
      %105 = vector.shape_cast %104 : vector<1x1x29x128xbf16> to vector<1x29x128xbf16>
      %106 = vector.shape_cast %105 : vector<1x29x128xbf16> to vector<29x128xbf16>
      %c11 = arith.constant 11 : index
      %c0_83 = arith.constant 0 : index
      %c0_84 = arith.constant 0 : index
      %107 = vector.load %arg2[%c11, %c0_83, %c0_84] : memref<16x128x128xbf16, #tpu.memory_space<vmem>>, vector<1x128x128xbf16>
      %108 = vector.shape_cast %107 : vector<1x128x128xbf16> to vector<128x128xbf16>
      %cst_85 = arith.constant dense<0.000000e+00> : vector<29x128xf32>
      %109 = tpu.matmul %106, %108, %cst_85 {dimension_numbers = #tpu.dot_dimension_numbers<[1], [0], [0], [1], [0, 0, 1, 1], [], []>} : vector<29x128xbf16>, vector<128x128xbf16>, vector<29x128xf32> -> vector<29x128xf32>
      %110 = arith.addf %101, %109 : vector<29x128xf32>
      %c3_i32 = arith.constant 3 : i32
      %111 = arith.addi %arg5, %c3_i32 : i32
      %c0_86 = arith.constant 0 : index
      %112 = arith.index_cast %111 : i32 to index
      %c0_87 = arith.constant 0 : index
      %c0_88 = arith.constant 0 : index
      %113 = vector.load %arg1[%c0_86, %112, %c0_87, %c0_88] : memref<1x32x32x128xbf16, #tpu.memory_space<vmem>>, vector<1x1x29x128xbf16>
      %114 = vector.shape_cast %113 : vector<1x1x29x128xbf16> to vector<1x29x128xbf16>
      %115 = vector.shape_cast %114 : vector<1x29x128xbf16> to vector<29x128xbf16>
      %c12 = arith.constant 12 : index
      %c0_89 = arith.constant 0 : index
      %c0_90 = arith.constant 0 : index
      %116 = vector.load %arg2[%c12, %c0_89, %c0_90] : memref<16x128x128xbf16, #tpu.memory_space<vmem>>, vector<1x128x128xbf16>
      %117 = vector.shape_cast %116 : vector<1x128x128xbf16> to vector<128x128xbf16>
      %cst_91 = arith.constant dense<0.000000e+00> : vector<29x128xf32>
      %118 = tpu.matmul %115, %117, %cst_91 {dimension_numbers = #tpu.dot_dimension_numbers<[1], [0], [0], [1], [0, 0, 1, 1], [], []>} : vector<29x128xbf16>, vector<128x128xbf16>, vector<29x128xf32> -> vector<29x128xf32>
      %119 = arith.addf %110, %118 : vector<29x128xf32>
      %c3_i32_92 = arith.constant 3 : i32
      %120 = arith.addi %arg5, %c3_i32_92 : i32
      %c0_93 = arith.constant 0 : index
      %121 = arith.index_cast %120 : i32 to index
      %c1_94 = arith.constant 1 : index
      %c0_95 = arith.constant 0 : index
      %122 = vector.load %arg1[%c0_93, %121, %c1_94, %c0_95] : memref<1x32x32x128xbf16, #tpu.memory_space<vmem>>, vector<1x1x29x128xbf16>
      %123 = vector.shape_cast %122 : vector<1x1x29x128xbf16> to vector<1x29x128xbf16>
      %124 = vector.shape_cast %123 : vector<1x29x128xbf16> to vector<29x128xbf16>
      %c13 = arith.constant 13 : index
      %c0_96 = arith.constant 0 : index
      %c0_97 = arith.constant 0 : index
      %125 = vector.load %arg2[%c13, %c0_96, %c0_97] : memref<16x128x128xbf16, #tpu.memory_space<vmem>>, vector<1x128x128xbf16>
      %126 = vector.shape_cast %125 : vector<1x128x128xbf16> to vector<128x128xbf16>
      %cst_98 = arith.constant dense<0.000000e+00> : vector<29x128xf32>
      %127 = tpu.matmul %124, %126, %cst_98 {dimension_numbers = #tpu.dot_dimension_numbers<[1], [0], [0], [1], [0, 0, 1, 1], [], []>} : vector<29x128xbf16>, vector<128x128xbf16>, vector<29x128xf32> -> vector<29x128xf32>
      %128 = arith.addf %119, %127 : vector<29x128xf32>
      %c3_i32_99 = arith.constant 3 : i32
      %129 = arith.addi %arg5, %c3_i32_99 : i32
      %c0_100 = arith.constant 0 : index
      %130 = arith.index_cast %129 : i32 to index
      %c2_101 = arith.constant 2 : index
      %c0_102 = arith.constant 0 : index
      %131 = vector.load %arg1[%c0_100, %130, %c2_101, %c0_102] : memref<1x32x32x128xbf16, #tpu.memory_space<vmem>>, vector<1x1x29x128xbf16>
      %132 = vector.shape_cast %131 : vector<1x1x29x128xbf16> to vector<1x29x128xbf16>
      %133 = vector.shape_cast %132 : vector<1x29x128xbf16> to vector<29x128xbf16>
      %c14 = arith.constant 14 : index
      %c0_103 = arith.constant 0 : index
      %c0_104 = arith.constant 0 : index
      %134 = vector.load %arg2[%c14, %c0_103, %c0_104] : memref<16x128x128xbf16, #tpu.memory_space<vmem>>, vector<1x128x128xbf16>
      %135 = vector.shape_cast %134 : vector<1x128x128xbf16> to vector<128x128xbf16>
      %cst_105 = arith.constant dense<0.000000e+00> : vector<29x128xf32>
      %136 = tpu.matmul %133, %135, %cst_105 {dimension_numbers = #tpu.dot_dimension_numbers<[1], [0], [0], [1], [0, 0, 1, 1], [], []>} : vector<29x128xbf16>, vector<128x128xbf16>, vector<29x128xf32> -> vector<29x128xf32>
      %137 = arith.addf %128, %136 : vector<29x128xf32>
      %c3_i32_106 = arith.constant 3 : i32
      %138 = arith.addi %arg5, %c3_i32_106 : i32
      %c0_107 = arith.constant 0 : index
      %139 = arith.index_cast %138 : i32 to index
      %c3_108 = arith.constant 3 : index
      %c0_109 = arith.constant 0 : index
      %140 = vector.load %arg1[%c0_107, %139, %c3_108, %c0_109] : memref<1x32x32x128xbf16, #tpu.memory_space<vmem>>, vector<1x1x29x128xbf16>
      %141 = vector.shape_cast %140 : vector<1x1x29x128xbf16> to vector<1x29x128xbf16>
      %142 = vector.shape_cast %141 : vector<1x29x128xbf16> to vector<29x128xbf16>
      %c15 = arith.constant 15 : index
      %c0_110 = arith.constant 0 : index
      %c0_111 = arith.constant 0 : index
      %143 = vector.load %arg2[%c15, %c0_110, %c0_111] : memref<16x128x128xbf16, #tpu.memory_space<vmem>>, vector<1x128x128xbf16>
      %144 = vector.shape_cast %143 : vector<1x128x128xbf16> to vector<128x128xbf16>
      %cst_112 = arith.constant dense<0.000000e+00> : vector<29x128xf32>
      %145 = tpu.matmul %142, %144, %cst_112 {dimension_numbers = #tpu.dot_dimension_numbers<[1], [0], [0], [1], [0, 0, 1, 1], [], []>} : vector<29x128xbf16>, vector<128x128xbf16>, vector<29x128xf32> -> vector<29x128xf32>
      %146 = arith.addf %137, %145 : vector<29x128xf32>
      %147 = vector.broadcast %0 : vector<1x128xf32> to vector<29x128xf32>
      %148 = arith.addf %146, %147 : vector<29x128xf32>
      %149 = vector.shape_cast %148 : vector<29x128xf32> to vector<1x29x128xf32>
      %150 = arith.truncf %149 : vector<1x29x128xf32> to vector<1x29x128xbf16>
      %c0_113 = arith.constant 0 : index
      %151 = arith.index_cast %arg5 : i32 to index
      %c0_114 = arith.constant 0 : index
      %c0_115 = arith.constant 0 : index
      %152 = vector.load %arg4[%c0_113, %151, %c0_114, %c0_115] : memref<1x29x29x128xbf16, #tpu.memory_space<vmem>>, vector<1x1x29x128xbf16>
      %153 = vector.shape_cast %152 : vector<1x1x29x128xbf16> to vector<1x29x128xbf16>
      %154 = vector.shape_cast %150 : vector<1x29x128xbf16> to vector<1x1x29x128xbf16>
      tpu.vector_store %arg4[%c0_113, %151, %c0_114, %c0_115], %154 {strides = array<i32>} : memref<1x29x29x128xbf16, #tpu.memory_space<vmem>>, vector<1x1x29x128xbf16>,
    }
    %c29_i32_1 = arith.constant 29 : i32
    return
  }
  func.func @transform_0(%arg0: i32) -> (i32, i32, i32, i32) {
    %c0_i32 = arith.constant 0 : i32
    %c0_i32_0 = arith.constant 0 : i32
    %c0_i32_1 = arith.constant 0 : i32
    %c0_i32_2 = arith.constant 0 : i32
    return %arg0, %c0_i32, %c0_i32_0, %c0_i32_1 : i32, i32, i32, i32
  }
  func.func @transform_1(%arg0: i32) -> (i32, i32, i32) {
    %c0_i32 = arith.constant 0 : i32
    %c0_i32_0 = arith.constant 0 : i32
    %c0_i32_1 = arith.constant 0 : i32
    %c0_i32_2 = arith.constant 0 : i32
    return %c0_i32, %c0_i32_0, %c0_i32_1 : i32, i32, i32
  }
  func.func @transform_2(%arg0: i32) -> (i32, i32) {
    %c0_i32 = arith.constant 0 : i32
    %c0_i32_0 = arith.constant 0 : i32
    %c0_i32_1 = arith.constant 0 : i32
    return %c0_i32, %c0_i32_0 : i32, i32
  }
  func.func @transform_3(%arg0: i32) -> (i32, i32, i32, i32) {
    %c0_i32 = arith.constant 0 : i32
    %c0_i32_0 = arith.constant 0 : i32
    %c0_i32_1 = arith.constant 0 : i32
    %c0_i32_2 = arith.constant 0 : i32
    return %arg0, %c0_i32, %c0_i32_0, %c0_i32_1 : i32, i32, i32, i32
  }
}

module attributes {stable_mosaic.version = 11 : i64} {
  func.func @_conv_kernel(%arg0: i32, %arg1: memref<1x15x15x256xbf16, #tpu.memory_space<vmem>>, %arg2: memref<16x256x128xbf16, #tpu.memory_space<vmem>>, %arg3: memref<1x128xf32, #tpu.memory_space<vmem>>, %arg4: memref<1x12x12x128xbf16, #tpu.memory_space<vmem>>) attributes {dimension_semantics = [#tpu.dimension_semantics<parallel>], iteration_bounds = array<i64: 2>, scalar_prefetch = 0 : i64, scratch_operands = 0 : i64, tpu.core_type = #tpu.core_type<tc>, window_params = [{transform_indices = @transform_0, window_bounds = array<i64: 1, 15, 15, 256>}, {pipeline_mode = #tpu.pipeline_mode<synchronous>, transform_indices = @transform_1, window_bounds = array<i64: 16, 256, 128>}, {pipeline_mode = #tpu.pipeline_mode<synchronous>, transform_indices = @transform_2, window_bounds = array<i64: 1, 128>}, {transform_indices = @transform_3, window_bounds = array<i64: 1, 12, 12, 128>}]} {
    %c0 = arith.constant 0 : index
    %c0_0 = arith.constant 0 : index
    %0 = vector.load %arg3[%c0, %c0_0] : memref<1x128xf32, #tpu.memory_space<vmem>>, vector<1x128xf32>
    %c0_i32 = arith.constant 0 : i32
    %c12_i32 = arith.constant 12 : i32
    %1 = arith.addi %c0_i32, %c12_i32 : i32
    %c1_i32 = arith.constant 1 : i32
    scf.for %arg5 = %c0_i32 to %1 step %c1_i32  : i32 {
      %cst = arith.constant 0.000000e+00 : f32
      %2 = vector.broadcast %cst : f32 to vector<12x128xf32>
      %c0_i32_2 = arith.constant 0 : i32
      %3 = arith.addi %arg5, %c0_i32_2 : i32
      %c0_3 = arith.constant 0 : index
      %4 = arith.index_cast %3 : i32 to index
      %c0_4 = arith.constant 0 : index
      %c0_5 = arith.constant 0 : index
      %5 = vector.load %arg1[%c0_3, %4, %c0_4, %c0_5] : memref<1x15x15x256xbf16, #tpu.memory_space<vmem>>, vector<1x1x12x256xbf16>
      %6 = vector.shape_cast %5 : vector<1x1x12x256xbf16> to vector<1x12x256xbf16>
      %7 = vector.shape_cast %6 : vector<1x12x256xbf16> to vector<12x256xbf16>
      %c0_6 = arith.constant 0 : index
      %c0_7 = arith.constant 0 : index
      %c0_8 = arith.constant 0 : index
      %8 = vector.load %arg2[%c0_6, %c0_7, %c0_8] : memref<16x256x128xbf16, #tpu.memory_space<vmem>>, vector<1x256x128xbf16>
      %9 = vector.shape_cast %8 : vector<1x256x128xbf16> to vector<256x128xbf16>
      %cst_9 = arith.constant dense<0.000000e+00> : vector<12x128xf32>
      %10 = tpu.matmul %7, %9, %cst_9 {dimension_numbers = #tpu.dot_dimension_numbers<[1], [0], [0], [1], [0, 0, 1, 1], [], []>} : vector<12x256xbf16>, vector<256x128xbf16>, vector<12x128xf32> -> vector<12x128xf32>
      %11 = arith.addf %2, %10 : vector<12x128xf32>
      %c0_i32_10 = arith.constant 0 : i32
      %12 = arith.addi %arg5, %c0_i32_10 : i32
      %c0_11 = arith.constant 0 : index
      %13 = arith.index_cast %12 : i32 to index
      %c1 = arith.constant 1 : index
      %c0_12 = arith.constant 0 : index
      %14 = vector.load %arg1[%c0_11, %13, %c1, %c0_12] : memref<1x15x15x256xbf16, #tpu.memory_space<vmem>>, vector<1x1x12x256xbf16>
      %15 = vector.shape_cast %14 : vector<1x1x12x256xbf16> to vector<1x12x256xbf16>
      %16 = vector.shape_cast %15 : vector<1x12x256xbf16> to vector<12x256xbf16>
      %c1_13 = arith.constant 1 : index
      %c0_14 = arith.constant 0 : index
      %c0_15 = arith.constant 0 : index
      %17 = vector.load %arg2[%c1_13, %c0_14, %c0_15] : memref<16x256x128xbf16, #tpu.memory_space<vmem>>, vector<1x256x128xbf16>
      %18 = vector.shape_cast %17 : vector<1x256x128xbf16> to vector<256x128xbf16>
      %cst_16 = arith.constant dense<0.000000e+00> : vector<12x128xf32>
      %19 = tpu.matmul %16, %18, %cst_16 {dimension_numbers = #tpu.dot_dimension_numbers<[1], [0], [0], [1], [0, 0, 1, 1], [], []>} : vector<12x256xbf16>, vector<256x128xbf16>, vector<12x128xf32> -> vector<12x128xf32>
      %20 = arith.addf %11, %19 : vector<12x128xf32>
      %c0_i32_17 = arith.constant 0 : i32
      %21 = arith.addi %arg5, %c0_i32_17 : i32
      %c0_18 = arith.constant 0 : index
      %22 = arith.index_cast %21 : i32 to index
      %c2 = arith.constant 2 : index
      %c0_19 = arith.constant 0 : index
      %23 = vector.load %arg1[%c0_18, %22, %c2, %c0_19] : memref<1x15x15x256xbf16, #tpu.memory_space<vmem>>, vector<1x1x12x256xbf16>
      %24 = vector.shape_cast %23 : vector<1x1x12x256xbf16> to vector<1x12x256xbf16>
      %25 = vector.shape_cast %24 : vector<1x12x256xbf16> to vector<12x256xbf16>
      %c2_20 = arith.constant 2 : index
      %c0_21 = arith.constant 0 : index
      %c0_22 = arith.constant 0 : index
      %26 = vector.load %arg2[%c2_20, %c0_21, %c0_22] : memref<16x256x128xbf16, #tpu.memory_space<vmem>>, vector<1x256x128xbf16>
      %27 = vector.shape_cast %26 : vector<1x256x128xbf16> to vector<256x128xbf16>
      %cst_23 = arith.constant dense<0.000000e+00> : vector<12x128xf32>
      %28 = tpu.matmul %25, %27, %cst_23 {dimension_numbers = #tpu.dot_dimension_numbers<[1], [0], [0], [1], [0, 0, 1, 1], [], []>} : vector<12x256xbf16>, vector<256x128xbf16>, vector<12x128xf32> -> vector<12x128xf32>
      %29 = arith.addf %20, %28 : vector<12x128xf32>
      %c0_i32_24 = arith.constant 0 : i32
      %30 = arith.addi %arg5, %c0_i32_24 : i32
      %c0_25 = arith.constant 0 : index
      %31 = arith.index_cast %30 : i32 to index
      %c3 = arith.constant 3 : index
      %c0_26 = arith.constant 0 : index
      %32 = vector.load %arg1[%c0_25, %31, %c3, %c0_26] : memref<1x15x15x256xbf16, #tpu.memory_space<vmem>>, vector<1x1x12x256xbf16>
      %33 = vector.shape_cast %32 : vector<1x1x12x256xbf16> to vector<1x12x256xbf16>
      %34 = vector.shape_cast %33 : vector<1x12x256xbf16> to vector<12x256xbf16>
      %c3_27 = arith.constant 3 : index
      %c0_28 = arith.constant 0 : index
      %c0_29 = arith.constant 0 : index
      %35 = vector.load %arg2[%c3_27, %c0_28, %c0_29] : memref<16x256x128xbf16, #tpu.memory_space<vmem>>, vector<1x256x128xbf16>
      %36 = vector.shape_cast %35 : vector<1x256x128xbf16> to vector<256x128xbf16>
      %cst_30 = arith.constant dense<0.000000e+00> : vector<12x128xf32>
      %37 = tpu.matmul %34, %36, %cst_30 {dimension_numbers = #tpu.dot_dimension_numbers<[1], [0], [0], [1], [0, 0, 1, 1], [], []>} : vector<12x256xbf16>, vector<256x128xbf16>, vector<12x128xf32> -> vector<12x128xf32>
      %38 = arith.addf %29, %37 : vector<12x128xf32>
      %c1_i32_31 = arith.constant 1 : i32
      %39 = arith.addi %arg5, %c1_i32_31 : i32
      %c0_32 = arith.constant 0 : index
      %40 = arith.index_cast %39 : i32 to index
      %c0_33 = arith.constant 0 : index
      %c0_34 = arith.constant 0 : index
      %41 = vector.load %arg1[%c0_32, %40, %c0_33, %c0_34] : memref<1x15x15x256xbf16, #tpu.memory_space<vmem>>, vector<1x1x12x256xbf16>
      %42 = vector.shape_cast %41 : vector<1x1x12x256xbf16> to vector<1x12x256xbf16>
      %43 = vector.shape_cast %42 : vector<1x12x256xbf16> to vector<12x256xbf16>
      %c4 = arith.constant 4 : index
      %c0_35 = arith.constant 0 : index
      %c0_36 = arith.constant 0 : index
      %44 = vector.load %arg2[%c4, %c0_35, %c0_36] : memref<16x256x128xbf16, #tpu.memory_space<vmem>>, vector<1x256x128xbf16>
      %45 = vector.shape_cast %44 : vector<1x256x128xbf16> to vector<256x128xbf16>
      %cst_37 = arith.constant dense<0.000000e+00> : vector<12x128xf32>
      %46 = tpu.matmul %43, %45, %cst_37 {dimension_numbers = #tpu.dot_dimension_numbers<[1], [0], [0], [1], [0, 0, 1, 1], [], []>} : vector<12x256xbf16>, vector<256x128xbf16>, vector<12x128xf32> -> vector<12x128xf32>
      %47 = arith.addf %38, %46 : vector<12x128xf32>
      %c1_i32_38 = arith.constant 1 : i32
      %48 = arith.addi %arg5, %c1_i32_38 : i32
      %c0_39 = arith.constant 0 : index
      %49 = arith.index_cast %48 : i32 to index
      %c1_40 = arith.constant 1 : index
      %c0_41 = arith.constant 0 : index
      %50 = vector.load %arg1[%c0_39, %49, %c1_40, %c0_41] : memref<1x15x15x256xbf16, #tpu.memory_space<vmem>>, vector<1x1x12x256xbf16>
      %51 = vector.shape_cast %50 : vector<1x1x12x256xbf16> to vector<1x12x256xbf16>
      %52 = vector.shape_cast %51 : vector<1x12x256xbf16> to vector<12x256xbf16>
      %c5 = arith.constant 5 : index
      %c0_42 = arith.constant 0 : index
      %c0_43 = arith.constant 0 : index
      %53 = vector.load %arg2[%c5, %c0_42, %c0_43] : memref<16x256x128xbf16, #tpu.memory_space<vmem>>, vector<1x256x128xbf16>
      %54 = vector.shape_cast %53 : vector<1x256x128xbf16> to vector<256x128xbf16>
      %cst_44 = arith.constant dense<0.000000e+00> : vector<12x128xf32>
      %55 = tpu.matmul %52, %54, %cst_44 {dimension_numbers = #tpu.dot_dimension_numbers<[1], [0], [0], [1], [0, 0, 1, 1], [], []>} : vector<12x256xbf16>, vector<256x128xbf16>, vector<12x128xf32> -> vector<12x128xf32>
      %56 = arith.addf %47, %55 : vector<12x128xf32>
      %c1_i32_45 = arith.constant 1 : i32
      %57 = arith.addi %arg5, %c1_i32_45 : i32
      %c0_46 = arith.constant 0 : index
      %58 = arith.index_cast %57 : i32 to index
      %c2_47 = arith.constant 2 : index
      %c0_48 = arith.constant 0 : index
      %59 = vector.load %arg1[%c0_46, %58, %c2_47, %c0_48] : memref<1x15x15x256xbf16, #tpu.memory_space<vmem>>, vector<1x1x12x256xbf16>
      %60 = vector.shape_cast %59 : vector<1x1x12x256xbf16> to vector<1x12x256xbf16>
      %61 = vector.shape_cast %60 : vector<1x12x256xbf16> to vector<12x256xbf16>
      %c6 = arith.constant 6 : index
      %c0_49 = arith.constant 0 : index
      %c0_50 = arith.constant 0 : index
      %62 = vector.load %arg2[%c6, %c0_49, %c0_50] : memref<16x256x128xbf16, #tpu.memory_space<vmem>>, vector<1x256x128xbf16>
      %63 = vector.shape_cast %62 : vector<1x256x128xbf16> to vector<256x128xbf16>
      %cst_51 = arith.constant dense<0.000000e+00> : vector<12x128xf32>
      %64 = tpu.matmul %61, %63, %cst_51 {dimension_numbers = #tpu.dot_dimension_numbers<[1], [0], [0], [1], [0, 0, 1, 1], [], []>} : vector<12x256xbf16>, vector<256x128xbf16>, vector<12x128xf32> -> vector<12x128xf32>
      %65 = arith.addf %56, %64 : vector<12x128xf32>
      %c1_i32_52 = arith.constant 1 : i32
      %66 = arith.addi %arg5, %c1_i32_52 : i32
      %c0_53 = arith.constant 0 : index
      %67 = arith.index_cast %66 : i32 to index
      %c3_54 = arith.constant 3 : index
      %c0_55 = arith.constant 0 : index
      %68 = vector.load %arg1[%c0_53, %67, %c3_54, %c0_55] : memref<1x15x15x256xbf16, #tpu.memory_space<vmem>>, vector<1x1x12x256xbf16>
      %69 = vector.shape_cast %68 : vector<1x1x12x256xbf16> to vector<1x12x256xbf16>
      %70 = vector.shape_cast %69 : vector<1x12x256xbf16> to vector<12x256xbf16>
      %c7 = arith.constant 7 : index
      %c0_56 = arith.constant 0 : index
      %c0_57 = arith.constant 0 : index
      %71 = vector.load %arg2[%c7, %c0_56, %c0_57] : memref<16x256x128xbf16, #tpu.memory_space<vmem>>, vector<1x256x128xbf16>
      %72 = vector.shape_cast %71 : vector<1x256x128xbf16> to vector<256x128xbf16>
      %cst_58 = arith.constant dense<0.000000e+00> : vector<12x128xf32>
      %73 = tpu.matmul %70, %72, %cst_58 {dimension_numbers = #tpu.dot_dimension_numbers<[1], [0], [0], [1], [0, 0, 1, 1], [], []>} : vector<12x256xbf16>, vector<256x128xbf16>, vector<12x128xf32> -> vector<12x128xf32>
      %74 = arith.addf %65, %73 : vector<12x128xf32>
      %c2_i32 = arith.constant 2 : i32
      %75 = arith.addi %arg5, %c2_i32 : i32
      %c0_59 = arith.constant 0 : index
      %76 = arith.index_cast %75 : i32 to index
      %c0_60 = arith.constant 0 : index
      %c0_61 = arith.constant 0 : index
      %77 = vector.load %arg1[%c0_59, %76, %c0_60, %c0_61] : memref<1x15x15x256xbf16, #tpu.memory_space<vmem>>, vector<1x1x12x256xbf16>
      %78 = vector.shape_cast %77 : vector<1x1x12x256xbf16> to vector<1x12x256xbf16>
      %79 = vector.shape_cast %78 : vector<1x12x256xbf16> to vector<12x256xbf16>
      %c8 = arith.constant 8 : index
      %c0_62 = arith.constant 0 : index
      %c0_63 = arith.constant 0 : index
      %80 = vector.load %arg2[%c8, %c0_62, %c0_63] : memref<16x256x128xbf16, #tpu.memory_space<vmem>>, vector<1x256x128xbf16>
      %81 = vector.shape_cast %80 : vector<1x256x128xbf16> to vector<256x128xbf16>
      %cst_64 = arith.constant dense<0.000000e+00> : vector<12x128xf32>
      %82 = tpu.matmul %79, %81, %cst_64 {dimension_numbers = #tpu.dot_dimension_numbers<[1], [0], [0], [1], [0, 0, 1, 1], [], []>} : vector<12x256xbf16>, vector<256x128xbf16>, vector<12x128xf32> -> vector<12x128xf32>
      %83 = arith.addf %74, %82 : vector<12x128xf32>
      %c2_i32_65 = arith.constant 2 : i32
      %84 = arith.addi %arg5, %c2_i32_65 : i32
      %c0_66 = arith.constant 0 : index
      %85 = arith.index_cast %84 : i32 to index
      %c1_67 = arith.constant 1 : index
      %c0_68 = arith.constant 0 : index
      %86 = vector.load %arg1[%c0_66, %85, %c1_67, %c0_68] : memref<1x15x15x256xbf16, #tpu.memory_space<vmem>>, vector<1x1x12x256xbf16>
      %87 = vector.shape_cast %86 : vector<1x1x12x256xbf16> to vector<1x12x256xbf16>
      %88 = vector.shape_cast %87 : vector<1x12x256xbf16> to vector<12x256xbf16>
      %c9 = arith.constant 9 : index
      %c0_69 = arith.constant 0 : index
      %c0_70 = arith.constant 0 : index
      %89 = vector.load %arg2[%c9, %c0_69, %c0_70] : memref<16x256x128xbf16, #tpu.memory_space<vmem>>, vector<1x256x128xbf16>
      %90 = vector.shape_cast %89 : vector<1x256x128xbf16> to vector<256x128xbf16>
      %cst_71 = arith.constant dense<0.000000e+00> : vector<12x128xf32>
      %91 = tpu.matmul %88, %90, %cst_71 {dimension_numbers = #tpu.dot_dimension_numbers<[1], [0], [0], [1], [0, 0, 1, 1], [], []>} : vector<12x256xbf16>, vector<256x128xbf16>, vector<12x128xf32> -> vector<12x128xf32>
      %92 = arith.addf %83, %91 : vector<12x128xf32>
      %c2_i32_72 = arith.constant 2 : i32
      %93 = arith.addi %arg5, %c2_i32_72 : i32
      %c0_73 = arith.constant 0 : index
      %94 = arith.index_cast %93 : i32 to index
      %c2_74 = arith.constant 2 : index
      %c0_75 = arith.constant 0 : index
      %95 = vector.load %arg1[%c0_73, %94, %c2_74, %c0_75] : memref<1x15x15x256xbf16, #tpu.memory_space<vmem>>, vector<1x1x12x256xbf16>
      %96 = vector.shape_cast %95 : vector<1x1x12x256xbf16> to vector<1x12x256xbf16>
      %97 = vector.shape_cast %96 : vector<1x12x256xbf16> to vector<12x256xbf16>
      %c10 = arith.constant 10 : index
      %c0_76 = arith.constant 0 : index
      %c0_77 = arith.constant 0 : index
      %98 = vector.load %arg2[%c10, %c0_76, %c0_77] : memref<16x256x128xbf16, #tpu.memory_space<vmem>>, vector<1x256x128xbf16>
      %99 = vector.shape_cast %98 : vector<1x256x128xbf16> to vector<256x128xbf16>
      %cst_78 = arith.constant dense<0.000000e+00> : vector<12x128xf32>
      %100 = tpu.matmul %97, %99, %cst_78 {dimension_numbers = #tpu.dot_dimension_numbers<[1], [0], [0], [1], [0, 0, 1, 1], [], []>} : vector<12x256xbf16>, vector<256x128xbf16>, vector<12x128xf32> -> vector<12x128xf32>
      %101 = arith.addf %92, %100 : vector<12x128xf32>
      %c2_i32_79 = arith.constant 2 : i32
      %102 = arith.addi %arg5, %c2_i32_79 : i32
      %c0_80 = arith.constant 0 : index
      %103 = arith.index_cast %102 : i32 to index
      %c3_81 = arith.constant 3 : index
      %c0_82 = arith.constant 0 : index
      %104 = vector.load %arg1[%c0_80, %103, %c3_81, %c0_82] : memref<1x15x15x256xbf16, #tpu.memory_space<vmem>>, vector<1x1x12x256xbf16>
      %105 = vector.shape_cast %104 : vector<1x1x12x256xbf16> to vector<1x12x256xbf16>
      %106 = vector.shape_cast %105 : vector<1x12x256xbf16> to vector<12x256xbf16>
      %c11 = arith.constant 11 : index
      %c0_83 = arith.constant 0 : index
      %c0_84 = arith.constant 0 : index
      %107 = vector.load %arg2[%c11, %c0_83, %c0_84] : memref<16x256x128xbf16, #tpu.memory_space<vmem>>, vector<1x256x128xbf16>
      %108 = vector.shape_cast %107 : vector<1x256x128xbf16> to vector<256x128xbf16>
      %cst_85 = arith.constant dense<0.000000e+00> : vector<12x128xf32>
      %109 = tpu.matmul %106, %108, %cst_85 {dimension_numbers = #tpu.dot_dimension_numbers<[1], [0], [0], [1], [0, 0, 1, 1], [], []>} : vector<12x256xbf16>, vector<256x128xbf16>, vector<12x128xf32> -> vector<12x128xf32>
      %110 = arith.addf %101, %109 : vector<12x128xf32>
      %c3_i32 = arith.constant 3 : i32
      %111 = arith.addi %arg5, %c3_i32 : i32
      %c0_86 = arith.constant 0 : index
      %112 = arith.index_cast %111 : i32 to index
      %c0_87 = arith.constant 0 : index
      %c0_88 = arith.constant 0 : index
      %113 = vector.load %arg1[%c0_86, %112, %c0_87, %c0_88] : memref<1x15x15x256xbf16, #tpu.memory_space<vmem>>, vector<1x1x12x256xbf16>
      %114 = vector.shape_cast %113 : vector<1x1x12x256xbf16> to vector<1x12x256xbf16>
      %115 = vector.shape_cast %114 : vector<1x12x256xbf16> to vector<12x256xbf16>
      %c12 = arith.constant 12 : index
      %c0_89 = arith.constant 0 : index
      %c0_90 = arith.constant 0 : index
      %116 = vector.load %arg2[%c12, %c0_89, %c0_90] : memref<16x256x128xbf16, #tpu.memory_space<vmem>>, vector<1x256x128xbf16>
      %117 = vector.shape_cast %116 : vector<1x256x128xbf16> to vector<256x128xbf16>
      %cst_91 = arith.constant dense<0.000000e+00> : vector<12x128xf32>
      %118 = tpu.matmul %115, %117, %cst_91 {dimension_numbers = #tpu.dot_dimension_numbers<[1], [0], [0], [1], [0, 0, 1, 1], [], []>} : vector<12x256xbf16>, vector<256x128xbf16>, vector<12x128xf32> -> vector<12x128xf32>
      %119 = arith.addf %110, %118 : vector<12x128xf32>
      %c3_i32_92 = arith.constant 3 : i32
      %120 = arith.addi %arg5, %c3_i32_92 : i32
      %c0_93 = arith.constant 0 : index
      %121 = arith.index_cast %120 : i32 to index
      %c1_94 = arith.constant 1 : index
      %c0_95 = arith.constant 0 : index
      %122 = vector.load %arg1[%c0_93, %121, %c1_94, %c0_95] : memref<1x15x15x256xbf16, #tpu.memory_space<vmem>>, vector<1x1x12x256xbf16>
      %123 = vector.shape_cast %122 : vector<1x1x12x256xbf16> to vector<1x12x256xbf16>
      %124 = vector.shape_cast %123 : vector<1x12x256xbf16> to vector<12x256xbf16>
      %c13 = arith.constant 13 : index
      %c0_96 = arith.constant 0 : index
      %c0_97 = arith.constant 0 : index
      %125 = vector.load %arg2[%c13, %c0_96, %c0_97] : memref<16x256x128xbf16, #tpu.memory_space<vmem>>, vector<1x256x128xbf16>
      %126 = vector.shape_cast %125 : vector<1x256x128xbf16> to vector<256x128xbf16>
      %cst_98 = arith.constant dense<0.000000e+00> : vector<12x128xf32>
      %127 = tpu.matmul %124, %126, %cst_98 {dimension_numbers = #tpu.dot_dimension_numbers<[1], [0], [0], [1], [0, 0, 1, 1], [], []>} : vector<12x256xbf16>, vector<256x128xbf16>, vector<12x128xf32> -> vector<12x128xf32>
      %128 = arith.addf %119, %127 : vector<12x128xf32>
      %c3_i32_99 = arith.constant 3 : i32
      %129 = arith.addi %arg5, %c3_i32_99 : i32
      %c0_100 = arith.constant 0 : index
      %130 = arith.index_cast %129 : i32 to index
      %c2_101 = arith.constant 2 : index
      %c0_102 = arith.constant 0 : index
      %131 = vector.load %arg1[%c0_100, %130, %c2_101, %c0_102] : memref<1x15x15x256xbf16, #tpu.memory_space<vmem>>, vector<1x1x12x256xbf16>
      %132 = vector.shape_cast %131 : vector<1x1x12x256xbf16> to vector<1x12x256xbf16>
      %133 = vector.shape_cast %132 : vector<1x12x256xbf16> to vector<12x256xbf16>
      %c14 = arith.constant 14 : index
      %c0_103 = arith.constant 0 : index
      %c0_104 = arith.constant 0 : index
      %134 = vector.load %arg2[%c14, %c0_103, %c0_104] : memref<16x256x128xbf16, #tpu.memory_space<vmem>>, vector<1x256x128xbf16>
      %135 = vector.shape_cast %134 : vector<1x256x128xbf16> to vector<256x128xbf16>
      %cst_105 = arith.constant dense<0.000000e+00> : vector<12x128xf32>
      %136 = tpu.matmul %133, %135, %cst_105 {dimension_numbers = #tpu.dot_dimension_numbers<[1], [0], [0], [1], [0, 0, 1, 1], [], []>} : vector<12x256xbf16>, vector<256x128xbf16>, vector<12x128xf32> -> vector<12x128xf32>
      %137 = arith.addf %128, %136 : vector<12x128xf32>
      %c3_i32_106 = arith.constant 3 : i32
      %138 = arith.addi %arg5, %c3_i32_106 : i32
      %c0_107 = arith.constant 0 : index
      %139 = arith.index_cast %138 : i32 to index
      %c3_108 = arith.constant 3 : index
      %c0_109 = arith.constant 0 : index
      %140 = vector.load %arg1[%c0_107, %139, %c3_108, %c0_109] : memref<1x15x15x256xbf16, #tpu.memory_space<vmem>>, vector<1x1x12x256xbf16>
      %141 = vector.shape_cast %140 : vector<1x1x12x256xbf16> to vector<1x12x256xbf16>
      %142 = vector.shape_cast %141 : vector<1x12x256xbf16> to vector<12x256xbf16>
      %c15 = arith.constant 15 : index
      %c0_110 = arith.constant 0 : index
      %c0_111 = arith.constant 0 : index
      %143 = vector.load %arg2[%c15, %c0_110, %c0_111] : memref<16x256x128xbf16, #tpu.memory_space<vmem>>, vector<1x256x128xbf16>
      %144 = vector.shape_cast %143 : vector<1x256x128xbf16> to vector<256x128xbf16>
      %cst_112 = arith.constant dense<0.000000e+00> : vector<12x128xf32>
      %145 = tpu.matmul %142, %144, %cst_112 {dimension_numbers = #tpu.dot_dimension_numbers<[1], [0], [0], [1], [0, 0, 1, 1], [], []>} : vector<12x256xbf16>, vector<256x128xbf16>, vector<12x128xf32> -> vector<12x128xf32>
      %146 = arith.addf %137, %145 : vector<12x128xf32>
      %147 = vector.broadcast %0 : vector<1x128xf32> to vector<12x128xf32>
      %148 = arith.addf %146, %147 : vector<12x128xf32>
      %149 = vector.shape_cast %148 : vector<12x128xf32> to vector<1x12x128xf32>
      %150 = arith.truncf %149 : vector<1x12x128xf32> to vector<1x12x128xbf16>
      %c0_113 = arith.constant 0 : index
      %151 = arith.index_cast %arg5 : i32 to index
      %c0_114 = arith.constant 0 : index
      %c0_115 = arith.constant 0 : index
      %152 = vector.load %arg4[%c0_113, %151, %c0_114, %c0_115] : memref<1x12x12x128xbf16, #tpu.memory_space<vmem>>, vector<1x1x12x128xbf16>
      %153 = vector.shape_cast %152 : vector<1x1x12x128xbf16> to vector<1x12x128xbf16>
      %154 = vector.shape_cast %150 : vector<1x12x128xbf16> to vector<1x1x12x128xbf16>
      tpu.vector_store %arg4[%c0_113, %151, %c0_114, %c0_115], %154 {strides = array<i32>} : memref<1x12x12x128xbf16, #tpu.memory_space<vmem>>, vector<1x1x12x128xbf16>,
    }
    %c12_i32_1 = arith.constant 12 : i32
    return
  }
  func.func @transform_0(%arg0: i32) -> (i32, i32, i32, i32) {
    %c0_i32 = arith.constant 0 : i32
    %c0_i32_0 = arith.constant 0 : i32
    %c0_i32_1 = arith.constant 0 : i32
    %c0_i32_2 = arith.constant 0 : i32
    return %arg0, %c0_i32, %c0_i32_0, %c0_i32_1 : i32, i32, i32, i32
  }
  func.func @transform_1(%arg0: i32) -> (i32, i32, i32) {
    %c0_i32 = arith.constant 0 : i32
    %c0_i32_0 = arith.constant 0 : i32
    %c0_i32_1 = arith.constant 0 : i32
    %c0_i32_2 = arith.constant 0 : i32
    return %c0_i32, %c0_i32_0, %c0_i32_1 : i32, i32, i32
  }
  func.func @transform_2(%arg0: i32) -> (i32, i32) {
    %c0_i32 = arith.constant 0 : i32
    %c0_i32_0 = arith.constant 0 : i32
    %c0_i32_1 = arith.constant 0 : i32
    return %c0_i32, %c0_i32_0 : i32, i32
  }
  func.func @transform_3(%arg0: i32) -> (i32, i32, i32, i32) {
    %c0_i32 = arith.constant 0 : i32
    %c0_i32_0 = arith.constant 0 : i32
    %c0_i32_1 = arith.constant 0 : i32
    %c0_i32_2 = arith.constant 0 : i32
    return %arg0, %c0_i32, %c0_i32_0, %c0_i32_1 : i32, i32, i32, i32
  }
}

module attributes {stable_mosaic.version = 11 : i64} {
  func.func @_conv_head_kernel(%arg0: i32, %arg1: memref<1x6x6x128xbf16, #tpu.memory_space<vmem>>, %arg2: memref<16x128x128xbf16, #tpu.memory_space<vmem>>, %arg3: memref<1x128xf32, #tpu.memory_space<vmem>>, %arg4: memref<128x128xbf16, #tpu.memory_space<vmem>>, %arg5: memref<1x128xf32, #tpu.memory_space<vmem>>, %arg6: memref<1x1x128xf32, #tpu.memory_space<vmem>>) attributes {dimension_semantics = [#tpu.dimension_semantics<parallel>], iteration_bounds = array<i64: 2>, scalar_prefetch = 0 : i64, scratch_operands = 0 : i64, tpu.core_type = #tpu.core_type<tc>, window_params = [{transform_indices = @transform_0, window_bounds = array<i64: 1, 6, 6, 128>}, {pipeline_mode = #tpu.pipeline_mode<synchronous>, transform_indices = @transform_1, window_bounds = array<i64: 16, 128, 128>}, {pipeline_mode = #tpu.pipeline_mode<synchronous>, transform_indices = @transform_2, window_bounds = array<i64: 1, 128>}, {pipeline_mode = #tpu.pipeline_mode<synchronous>, transform_indices = @transform_3, window_bounds = array<i64: 128, 128>}, {pipeline_mode = #tpu.pipeline_mode<synchronous>, transform_indices = @transform_4, window_bounds = array<i64: 1, 128>}, {transform_indices = @transform_5, window_bounds = array<i64: 1, 1, 128>}]} {
    %c0 = arith.constant 0 : index
    %c0_0 = arith.constant 0 : index
    %0 = vector.load %arg3[%c0, %c0_0] : memref<1x128xf32, #tpu.memory_space<vmem>>, vector<1x128xf32>
    %cst = arith.constant 0.000000e+00 : f32
    %1 = vector.broadcast %cst : f32 to vector<3x128xf32>
    %c0_1 = arith.constant 0 : index
    %c0_2 = arith.constant 0 : index
    %c0_3 = arith.constant 0 : index
    %c0_4 = arith.constant 0 : index
    %2 = vector.load %arg1[%c0_1, %c0_2, %c0_3, %c0_4] : memref<1x6x6x128xbf16, #tpu.memory_space<vmem>>, vector<1x1x3x128xbf16>
    %3 = vector.shape_cast %2 : vector<1x1x3x128xbf16> to vector<3x128xbf16>
    %c0_5 = arith.constant 0 : index
    %c0_6 = arith.constant 0 : index
    %c0_7 = arith.constant 0 : index
    %4 = vector.load %arg2[%c0_5, %c0_6, %c0_7] : memref<16x128x128xbf16, #tpu.memory_space<vmem>>, vector<1x128x128xbf16>
    %5 = vector.shape_cast %4 : vector<1x128x128xbf16> to vector<128x128xbf16>
    %cst_8 = arith.constant dense<0.000000e+00> : vector<3x128xf32>
    %6 = tpu.matmul %3, %5, %cst_8 {dimension_numbers = #tpu.dot_dimension_numbers<[1], [0], [0], [1], [0, 0, 1, 1], [], []>} : vector<3x128xbf16>, vector<128x128xbf16>, vector<3x128xf32> -> vector<3x128xf32>
    %7 = arith.addf %1, %6 : vector<3x128xf32>
    %c0_9 = arith.constant 0 : index
    %c0_10 = arith.constant 0 : index
    %c1 = arith.constant 1 : index
    %c0_11 = arith.constant 0 : index
    %8 = vector.load %arg1[%c0_9, %c0_10, %c1, %c0_11] : memref<1x6x6x128xbf16, #tpu.memory_space<vmem>>, vector<1x1x3x128xbf16>
    %9 = vector.shape_cast %8 : vector<1x1x3x128xbf16> to vector<3x128xbf16>
    %c1_12 = arith.constant 1 : index
    %c0_13 = arith.constant 0 : index
    %c0_14 = arith.constant 0 : index
    %10 = vector.load %arg2[%c1_12, %c0_13, %c0_14] : memref<16x128x128xbf16, #tpu.memory_space<vmem>>, vector<1x128x128xbf16>
    %11 = vector.shape_cast %10 : vector<1x128x128xbf16> to vector<128x128xbf16>
    %cst_15 = arith.constant dense<0.000000e+00> : vector<3x128xf32>
    %12 = tpu.matmul %9, %11, %cst_15 {dimension_numbers = #tpu.dot_dimension_numbers<[1], [0], [0], [1], [0, 0, 1, 1], [], []>} : vector<3x128xbf16>, vector<128x128xbf16>, vector<3x128xf32> -> vector<3x128xf32>
    %13 = arith.addf %7, %12 : vector<3x128xf32>
    %c0_16 = arith.constant 0 : index
    %c0_17 = arith.constant 0 : index
    %c2 = arith.constant 2 : index
    %c0_18 = arith.constant 0 : index
    %14 = vector.load %arg1[%c0_16, %c0_17, %c2, %c0_18] : memref<1x6x6x128xbf16, #tpu.memory_space<vmem>>, vector<1x1x3x128xbf16>
    %15 = vector.shape_cast %14 : vector<1x1x3x128xbf16> to vector<3x128xbf16>
    %c2_19 = arith.constant 2 : index
    %c0_20 = arith.constant 0 : index
    %c0_21 = arith.constant 0 : index
    %16 = vector.load %arg2[%c2_19, %c0_20, %c0_21] : memref<16x128x128xbf16, #tpu.memory_space<vmem>>, vector<1x128x128xbf16>
    %17 = vector.shape_cast %16 : vector<1x128x128xbf16> to vector<128x128xbf16>
    %cst_22 = arith.constant dense<0.000000e+00> : vector<3x128xf32>
    %18 = tpu.matmul %15, %17, %cst_22 {dimension_numbers = #tpu.dot_dimension_numbers<[1], [0], [0], [1], [0, 0, 1, 1], [], []>} : vector<3x128xbf16>, vector<128x128xbf16>, vector<3x128xf32> -> vector<3x128xf32>
    %19 = arith.addf %13, %18 : vector<3x128xf32>
    %c0_23 = arith.constant 0 : index
    %c0_24 = arith.constant 0 : index
    %c3 = arith.constant 3 : index
    %c0_25 = arith.constant 0 : index
    %20 = vector.load %arg1[%c0_23, %c0_24, %c3, %c0_25] : memref<1x6x6x128xbf16, #tpu.memory_space<vmem>>, vector<1x1x3x128xbf16>
    %21 = vector.shape_cast %20 : vector<1x1x3x128xbf16> to vector<3x128xbf16>
    %c3_26 = arith.constant 3 : index
    %c0_27 = arith.constant 0 : index
    %c0_28 = arith.constant 0 : index
    %22 = vector.load %arg2[%c3_26, %c0_27, %c0_28] : memref<16x128x128xbf16, #tpu.memory_space<vmem>>, vector<1x128x128xbf16>
    %23 = vector.shape_cast %22 : vector<1x128x128xbf16> to vector<128x128xbf16>
    %cst_29 = arith.constant dense<0.000000e+00> : vector<3x128xf32>
    %24 = tpu.matmul %21, %23, %cst_29 {dimension_numbers = #tpu.dot_dimension_numbers<[1], [0], [0], [1], [0, 0, 1, 1], [], []>} : vector<3x128xbf16>, vector<128x128xbf16>, vector<3x128xf32> -> vector<3x128xf32>
    %25 = arith.addf %19, %24 : vector<3x128xf32>
    %c0_30 = arith.constant 0 : index
    %c1_31 = arith.constant 1 : index
    %c0_32 = arith.constant 0 : index
    %c0_33 = arith.constant 0 : index
    %26 = vector.load %arg1[%c0_30, %c1_31, %c0_32, %c0_33] : memref<1x6x6x128xbf16, #tpu.memory_space<vmem>>, vector<1x1x3x128xbf16>
    %27 = vector.shape_cast %26 : vector<1x1x3x128xbf16> to vector<3x128xbf16>
    %c4 = arith.constant 4 : index
    %c0_34 = arith.constant 0 : index
    %c0_35 = arith.constant 0 : index
    %28 = vector.load %arg2[%c4, %c0_34, %c0_35] : memref<16x128x128xbf16, #tpu.memory_space<vmem>>, vector<1x128x128xbf16>
    %29 = vector.shape_cast %28 : vector<1x128x128xbf16> to vector<128x128xbf16>
    %cst_36 = arith.constant dense<0.000000e+00> : vector<3x128xf32>
    %30 = tpu.matmul %27, %29, %cst_36 {dimension_numbers = #tpu.dot_dimension_numbers<[1], [0], [0], [1], [0, 0, 1, 1], [], []>} : vector<3x128xbf16>, vector<128x128xbf16>, vector<3x128xf32> -> vector<3x128xf32>
    %31 = arith.addf %25, %30 : vector<3x128xf32>
    %c0_37 = arith.constant 0 : index
    %c1_38 = arith.constant 1 : index
    %c1_39 = arith.constant 1 : index
    %c0_40 = arith.constant 0 : index
    %32 = vector.load %arg1[%c0_37, %c1_38, %c1_39, %c0_40] : memref<1x6x6x128xbf16, #tpu.memory_space<vmem>>, vector<1x1x3x128xbf16>
    %33 = vector.shape_cast %32 : vector<1x1x3x128xbf16> to vector<3x128xbf16>
    %c5 = arith.constant 5 : index
    %c0_41 = arith.constant 0 : index
    %c0_42 = arith.constant 0 : index
    %34 = vector.load %arg2[%c5, %c0_41, %c0_42] : memref<16x128x128xbf16, #tpu.memory_space<vmem>>, vector<1x128x128xbf16>
    %35 = vector.shape_cast %34 : vector<1x128x128xbf16> to vector<128x128xbf16>
    %cst_43 = arith.constant dense<0.000000e+00> : vector<3x128xf32>
    %36 = tpu.matmul %33, %35, %cst_43 {dimension_numbers = #tpu.dot_dimension_numbers<[1], [0], [0], [1], [0, 0, 1, 1], [], []>} : vector<3x128xbf16>, vector<128x128xbf16>, vector<3x128xf32> -> vector<3x128xf32>
    %37 = arith.addf %31, %36 : vector<3x128xf32>
    %c0_44 = arith.constant 0 : index
    %c1_45 = arith.constant 1 : index
    %c2_46 = arith.constant 2 : index
    %c0_47 = arith.constant 0 : index
    %38 = vector.load %arg1[%c0_44, %c1_45, %c2_46, %c0_47] : memref<1x6x6x128xbf16, #tpu.memory_space<vmem>>, vector<1x1x3x128xbf16>
    %39 = vector.shape_cast %38 : vector<1x1x3x128xbf16> to vector<3x128xbf16>
    %c6 = arith.constant 6 : index
    %c0_48 = arith.constant 0 : index
    %c0_49 = arith.constant 0 : index
    %40 = vector.load %arg2[%c6, %c0_48, %c0_49] : memref<16x128x128xbf16, #tpu.memory_space<vmem>>, vector<1x128x128xbf16>
    %41 = vector.shape_cast %40 : vector<1x128x128xbf16> to vector<128x128xbf16>
    %cst_50 = arith.constant dense<0.000000e+00> : vector<3x128xf32>
    %42 = tpu.matmul %39, %41, %cst_50 {dimension_numbers = #tpu.dot_dimension_numbers<[1], [0], [0], [1], [0, 0, 1, 1], [], []>} : vector<3x128xbf16>, vector<128x128xbf16>, vector<3x128xf32> -> vector<3x128xf32>
    %43 = arith.addf %37, %42 : vector<3x128xf32>
    %c0_51 = arith.constant 0 : index
    %c1_52 = arith.constant 1 : index
    %c3_53 = arith.constant 3 : index
    %c0_54 = arith.constant 0 : index
    %44 = vector.load %arg1[%c0_51, %c1_52, %c3_53, %c0_54] : memref<1x6x6x128xbf16, #tpu.memory_space<vmem>>, vector<1x1x3x128xbf16>
    %45 = vector.shape_cast %44 : vector<1x1x3x128xbf16> to vector<3x128xbf16>
    %c7 = arith.constant 7 : index
    %c0_55 = arith.constant 0 : index
    %c0_56 = arith.constant 0 : index
    %46 = vector.load %arg2[%c7, %c0_55, %c0_56] : memref<16x128x128xbf16, #tpu.memory_space<vmem>>, vector<1x128x128xbf16>
    %47 = vector.shape_cast %46 : vector<1x128x128xbf16> to vector<128x128xbf16>
    %cst_57 = arith.constant dense<0.000000e+00> : vector<3x128xf32>
    %48 = tpu.matmul %45, %47, %cst_57 {dimension_numbers = #tpu.dot_dimension_numbers<[1], [0], [0], [1], [0, 0, 1, 1], [], []>} : vector<3x128xbf16>, vector<128x128xbf16>, vector<3x128xf32> -> vector<3x128xf32>
    %49 = arith.addf %43, %48 : vector<3x128xf32>
    %c0_58 = arith.constant 0 : index
    %c2_59 = arith.constant 2 : index
    %c0_60 = arith.constant 0 : index
    %c0_61 = arith.constant 0 : index
    %50 = vector.load %arg1[%c0_58, %c2_59, %c0_60, %c0_61] : memref<1x6x6x128xbf16, #tpu.memory_space<vmem>>, vector<1x1x3x128xbf16>
    %51 = vector.shape_cast %50 : vector<1x1x3x128xbf16> to vector<3x128xbf16>
    %c8 = arith.constant 8 : index
    %c0_62 = arith.constant 0 : index
    %c0_63 = arith.constant 0 : index
    %52 = vector.load %arg2[%c8, %c0_62, %c0_63] : memref<16x128x128xbf16, #tpu.memory_space<vmem>>, vector<1x128x128xbf16>
    %53 = vector.shape_cast %52 : vector<1x128x128xbf16> to vector<128x128xbf16>
    %cst_64 = arith.constant dense<0.000000e+00> : vector<3x128xf32>
    %54 = tpu.matmul %51, %53, %cst_64 {dimension_numbers = #tpu.dot_dimension_numbers<[1], [0], [0], [1], [0, 0, 1, 1], [], []>} : vector<3x128xbf16>, vector<128x128xbf16>, vector<3x128xf32> -> vector<3x128xf32>
    %55 = arith.addf %49, %54 : vector<3x128xf32>
    %c0_65 = arith.constant 0 : index
    %c2_66 = arith.constant 2 : index
    %c1_67 = arith.constant 1 : index
    %c0_68 = arith.constant 0 : index
    %56 = vector.load %arg1[%c0_65, %c2_66, %c1_67, %c0_68] : memref<1x6x6x128xbf16, #tpu.memory_space<vmem>>, vector<1x1x3x128xbf16>
    %57 = vector.shape_cast %56 : vector<1x1x3x128xbf16> to vector<3x128xbf16>
    %c9 = arith.constant 9 : index
    %c0_69 = arith.constant 0 : index
    %c0_70 = arith.constant 0 : index
    %58 = vector.load %arg2[%c9, %c0_69, %c0_70] : memref<16x128x128xbf16, #tpu.memory_space<vmem>>, vector<1x128x128xbf16>
    %59 = vector.shape_cast %58 : vector<1x128x128xbf16> to vector<128x128xbf16>
    %cst_71 = arith.constant dense<0.000000e+00> : vector<3x128xf32>
    %60 = tpu.matmul %57, %59, %cst_71 {dimension_numbers = #tpu.dot_dimension_numbers<[1], [0], [0], [1], [0, 0, 1, 1], [], []>} : vector<3x128xbf16>, vector<128x128xbf16>, vector<3x128xf32> -> vector<3x128xf32>
    %61 = arith.addf %55, %60 : vector<3x128xf32>
    %c0_72 = arith.constant 0 : index
    %c2_73 = arith.constant 2 : index
    %c2_74 = arith.constant 2 : index
    %c0_75 = arith.constant 0 : index
    %62 = vector.load %arg1[%c0_72, %c2_73, %c2_74, %c0_75] : memref<1x6x6x128xbf16, #tpu.memory_space<vmem>>, vector<1x1x3x128xbf16>
    %63 = vector.shape_cast %62 : vector<1x1x3x128xbf16> to vector<3x128xbf16>
    %c10 = arith.constant 10 : index
    %c0_76 = arith.constant 0 : index
    %c0_77 = arith.constant 0 : index
    %64 = vector.load %arg2[%c10, %c0_76, %c0_77] : memref<16x128x128xbf16, #tpu.memory_space<vmem>>, vector<1x128x128xbf16>
    %65 = vector.shape_cast %64 : vector<1x128x128xbf16> to vector<128x128xbf16>
    %cst_78 = arith.constant dense<0.000000e+00> : vector<3x128xf32>
    %66 = tpu.matmul %63, %65, %cst_78 {dimension_numbers = #tpu.dot_dimension_numbers<[1], [0], [0], [1], [0, 0, 1, 1], [], []>} : vector<3x128xbf16>, vector<128x128xbf16>, vector<3x128xf32> -> vector<3x128xf32>
    %67 = arith.addf %61, %66 : vector<3x128xf32>
    %c0_79 = arith.constant 0 : index
    %c2_80 = arith.constant 2 : index
    %c3_81 = arith.constant 3 : index
    %c0_82 = arith.constant 0 : index
    %68 = vector.load %arg1[%c0_79, %c2_80, %c3_81, %c0_82] : memref<1x6x6x128xbf16, #tpu.memory_space<vmem>>, vector<1x1x3x128xbf16>
    %69 = vector.shape_cast %68 : vector<1x1x3x128xbf16> to vector<3x128xbf16>
    %c11 = arith.constant 11 : index
    %c0_83 = arith.constant 0 : index
    %c0_84 = arith.constant 0 : index
    %70 = vector.load %arg2[%c11, %c0_83, %c0_84] : memref<16x128x128xbf16, #tpu.memory_space<vmem>>, vector<1x128x128xbf16>
    %71 = vector.shape_cast %70 : vector<1x128x128xbf16> to vector<128x128xbf16>
    %cst_85 = arith.constant dense<0.000000e+00> : vector<3x128xf32>
    %72 = tpu.matmul %69, %71, %cst_85 {dimension_numbers = #tpu.dot_dimension_numbers<[1], [0], [0], [1], [0, 0, 1, 1], [], []>} : vector<3x128xbf16>, vector<128x128xbf16>, vector<3x128xf32> -> vector<3x128xf32>
    %73 = arith.addf %67, %72 : vector<3x128xf32>
    %c0_86 = arith.constant 0 : index
    %c3_87 = arith.constant 3 : index
    %c0_88 = arith.constant 0 : index
    %c0_89 = arith.constant 0 : index
    %74 = vector.load %arg1[%c0_86, %c3_87, %c0_88, %c0_89] : memref<1x6x6x128xbf16, #tpu.memory_space<vmem>>, vector<1x1x3x128xbf16>
    %75 = vector.shape_cast %74 : vector<1x1x3x128xbf16> to vector<3x128xbf16>
    %c12 = arith.constant 12 : index
    %c0_90 = arith.constant 0 : index
    %c0_91 = arith.constant 0 : index
    %76 = vector.load %arg2[%c12, %c0_90, %c0_91] : memref<16x128x128xbf16, #tpu.memory_space<vmem>>, vector<1x128x128xbf16>
    %77 = vector.shape_cast %76 : vector<1x128x128xbf16> to vector<128x128xbf16>
    %cst_92 = arith.constant dense<0.000000e+00> : vector<3x128xf32>
    %78 = tpu.matmul %75, %77, %cst_92 {dimension_numbers = #tpu.dot_dimension_numbers<[1], [0], [0], [1], [0, 0, 1, 1], [], []>} : vector<3x128xbf16>, vector<128x128xbf16>, vector<3x128xf32> -> vector<3x128xf32>
    %79 = arith.addf %73, %78 : vector<3x128xf32>
    %c0_93 = arith.constant 0 : index
    %c3_94 = arith.constant 3 : index
    %c1_95 = arith.constant 1 : index
    %c0_96 = arith.constant 0 : index
    %80 = vector.load %arg1[%c0_93, %c3_94, %c1_95, %c0_96] : memref<1x6x6x128xbf16, #tpu.memory_space<vmem>>, vector<1x1x3x128xbf16>
    %81 = vector.shape_cast %80 : vector<1x1x3x128xbf16> to vector<3x128xbf16>
    %c13 = arith.constant 13 : index
    %c0_97 = arith.constant 0 : index
    %c0_98 = arith.constant 0 : index
    %82 = vector.load %arg2[%c13, %c0_97, %c0_98] : memref<16x128x128xbf16, #tpu.memory_space<vmem>>, vector<1x128x128xbf16>
    %83 = vector.shape_cast %82 : vector<1x128x128xbf16> to vector<128x128xbf16>
    %cst_99 = arith.constant dense<0.000000e+00> : vector<3x128xf32>
    %84 = tpu.matmul %81, %83, %cst_99 {dimension_numbers = #tpu.dot_dimension_numbers<[1], [0], [0], [1], [0, 0, 1, 1], [], []>} : vector<3x128xbf16>, vector<128x128xbf16>, vector<3x128xf32> -> vector<3x128xf32>
    %85 = arith.addf %79, %84 : vector<3x128xf32>
    %c0_100 = arith.constant 0 : index
    %c3_101 = arith.constant 3 : index
    %c2_102 = arith.constant 2 : index
    %c0_103 = arith.constant 0 : index
    %86 = vector.load %arg1[%c0_100, %c3_101, %c2_102, %c0_103] : memref<1x6x6x128xbf16, #tpu.memory_space<vmem>>, vector<1x1x3x128xbf16>
    %87 = vector.shape_cast %86 : vector<1x1x3x128xbf16> to vector<3x128xbf16>
    %c14 = arith.constant 14 : index
    %c0_104 = arith.constant 0 : index
    %c0_105 = arith.constant 0 : index
    %88 = vector.load %arg2[%c14, %c0_104, %c0_105] : memref<16x128x128xbf16, #tpu.memory_space<vmem>>, vector<1x128x128xbf16>
    %89 = vector.shape_cast %88 : vector<1x128x128xbf16> to vector<128x128xbf16>
    %cst_106 = arith.constant dense<0.000000e+00> : vector<3x128xf32>
    %90 = tpu.matmul %87, %89, %cst_106 {dimension_numbers = #tpu.dot_dimension_numbers<[1], [0], [0], [1], [0, 0, 1, 1], [], []>} : vector<3x128xbf16>, vector<128x128xbf16>, vector<3x128xf32> -> vector<3x128xf32>
    %91 = arith.addf %85, %90 : vector<3x128xf32>
    %c0_107 = arith.constant 0 : index
    %c3_108 = arith.constant 3 : index
    %c3_109 = arith.constant 3 : index
    %c0_110 = arith.constant 0 : index
    %92 = vector.load %arg1[%c0_107, %c3_108, %c3_109, %c0_110] : memref<1x6x6x128xbf16, #tpu.memory_space<vmem>>, vector<1x1x3x128xbf16>
    %93 = vector.shape_cast %92 : vector<1x1x3x128xbf16> to vector<3x128xbf16>
    %c15 = arith.constant 15 : index
    %c0_111 = arith.constant 0 : index
    %c0_112 = arith.constant 0 : index
    %94 = vector.load %arg2[%c15, %c0_111, %c0_112] : memref<16x128x128xbf16, #tpu.memory_space<vmem>>, vector<1x128x128xbf16>
    %95 = vector.shape_cast %94 : vector<1x128x128xbf16> to vector<128x128xbf16>
    %cst_113 = arith.constant dense<0.000000e+00> : vector<3x128xf32>
    %96 = tpu.matmul %93, %95, %cst_113 {dimension_numbers = #tpu.dot_dimension_numbers<[1], [0], [0], [1], [0, 0, 1, 1], [], []>} : vector<3x128xbf16>, vector<128x128xbf16>, vector<3x128xf32> -> vector<3x128xf32>
    %97 = arith.addf %91, %96 : vector<3x128xf32>
    %98 = vector.broadcast %0 : vector<1x128xf32> to vector<3x128xf32>
    %99 = arith.addf %97, %98 : vector<3x128xf32>
    %cst_114 = arith.constant 0.000000e+00 : f32
    %100 = vector.broadcast %cst_114 : f32 to vector<3x128xf32>
    %101 = arith.maximumf %99, %100 : vector<3x128xf32>
    %cst_115 = arith.constant 0.000000e+00 : f32
    %102 = vector.broadcast %cst_115 : f32 to vector<3x128xf32>
    %c0_116 = arith.constant 0 : index
    %c1_117 = arith.constant 1 : index
    %c0_118 = arith.constant 0 : index
    %c0_119 = arith.constant 0 : index
    %103 = vector.load %arg1[%c0_116, %c1_117, %c0_118, %c0_119] : memref<1x6x6x128xbf16, #tpu.memory_space<vmem>>, vector<1x1x3x128xbf16>
    %104 = vector.shape_cast %103 : vector<1x1x3x128xbf16> to vector<3x128xbf16>
    %c0_120 = arith.constant 0 : index
    %c0_121 = arith.constant 0 : index
    %c0_122 = arith.constant 0 : index
    %105 = vector.load %arg2[%c0_120, %c0_121, %c0_122] : memref<16x128x128xbf16, #tpu.memory_space<vmem>>, vector<1x128x128xbf16>
    %106 = vector.shape_cast %105 : vector<1x128x128xbf16> to vector<128x128xbf16>
    %cst_123 = arith.constant dense<0.000000e+00> : vector<3x128xf32>
    %107 = tpu.matmul %104, %106, %cst_123 {dimension_numbers = #tpu.dot_dimension_numbers<[1], [0], [0], [1], [0, 0, 1, 1], [], []>} : vector<3x128xbf16>, vector<128x128xbf16>, vector<3x128xf32> -> vector<3x128xf32>
    %108 = arith.addf %102, %107 : vector<3x128xf32>
    %c0_124 = arith.constant 0 : index
    %c1_125 = arith.constant 1 : index
    %c1_126 = arith.constant 1 : index
    %c0_127 = arith.constant 0 : index
    %109 = vector.load %arg1[%c0_124, %c1_125, %c1_126, %c0_127] : memref<1x6x6x128xbf16, #tpu.memory_space<vmem>>, vector<1x1x3x128xbf16>
    %110 = vector.shape_cast %109 : vector<1x1x3x128xbf16> to vector<3x128xbf16>
    %c1_128 = arith.constant 1 : index
    %c0_129 = arith.constant 0 : index
    %c0_130 = arith.constant 0 : index
    %111 = vector.load %arg2[%c1_128, %c0_129, %c0_130] : memref<16x128x128xbf16, #tpu.memory_space<vmem>>, vector<1x128x128xbf16>
    %112 = vector.shape_cast %111 : vector<1x128x128xbf16> to vector<128x128xbf16>
    %cst_131 = arith.constant dense<0.000000e+00> : vector<3x128xf32>
    %113 = tpu.matmul %110, %112, %cst_131 {dimension_numbers = #tpu.dot_dimension_numbers<[1], [0], [0], [1], [0, 0, 1, 1], [], []>} : vector<3x128xbf16>, vector<128x128xbf16>, vector<3x128xf32> -> vector<3x128xf32>
    %114 = arith.addf %108, %113 : vector<3x128xf32>
    %c0_132 = arith.constant 0 : index
    %c1_133 = arith.constant 1 : index
    %c2_134 = arith.constant 2 : index
    %c0_135 = arith.constant 0 : index
    %115 = vector.load %arg1[%c0_132, %c1_133, %c2_134, %c0_135] : memref<1x6x6x128xbf16, #tpu.memory_space<vmem>>, vector<1x1x3x128xbf16>
    %116 = vector.shape_cast %115 : vector<1x1x3x128xbf16> to vector<3x128xbf16>
    %c2_136 = arith.constant 2 : index
    %c0_137 = arith.constant 0 : index
    %c0_138 = arith.constant 0 : index
    %117 = vector.load %arg2[%c2_136, %c0_137, %c0_138] : memref<16x128x128xbf16, #tpu.memory_space<vmem>>, vector<1x128x128xbf16>
    %118 = vector.shape_cast %117 : vector<1x128x128xbf16> to vector<128x128xbf16>
    %cst_139 = arith.constant dense<0.000000e+00> : vector<3x128xf32>
    %119 = tpu.matmul %116, %118, %cst_139 {dimension_numbers = #tpu.dot_dimension_numbers<[1], [0], [0], [1], [0, 0, 1, 1], [], []>} : vector<3x128xbf16>, vector<128x128xbf16>, vector<3x128xf32> -> vector<3x128xf32>
    %120 = arith.addf %114, %119 : vector<3x128xf32>
    %c0_140 = arith.constant 0 : index
    %c1_141 = arith.constant 1 : index
    %c3_142 = arith.constant 3 : index
    %c0_143 = arith.constant 0 : index
    %121 = vector.load %arg1[%c0_140, %c1_141, %c3_142, %c0_143] : memref<1x6x6x128xbf16, #tpu.memory_space<vmem>>, vector<1x1x3x128xbf16>
    %122 = vector.shape_cast %121 : vector<1x1x3x128xbf16> to vector<3x128xbf16>
    %c3_144 = arith.constant 3 : index
    %c0_145 = arith.constant 0 : index
    %c0_146 = arith.constant 0 : index
    %123 = vector.load %arg2[%c3_144, %c0_145, %c0_146] : memref<16x128x128xbf16, #tpu.memory_space<vmem>>, vector<1x128x128xbf16>
    %124 = vector.shape_cast %123 : vector<1x128x128xbf16> to vector<128x128xbf16>
    %cst_147 = arith.constant dense<0.000000e+00> : vector<3x128xf32>
    %125 = tpu.matmul %122, %124, %cst_147 {dimension_numbers = #tpu.dot_dimension_numbers<[1], [0], [0], [1], [0, 0, 1, 1], [], []>} : vector<3x128xbf16>, vector<128x128xbf16>, vector<3x128xf32> -> vector<3x128xf32>
    %126 = arith.addf %120, %125 : vector<3x128xf32>
    %c0_148 = arith.constant 0 : index
    %c2_149 = arith.constant 2 : index
    %c0_150 = arith.constant 0 : index
    %c0_151 = arith.constant 0 : index
    %127 = vector.load %arg1[%c0_148, %c2_149, %c0_150, %c0_151] : memref<1x6x6x128xbf16, #tpu.memory_space<vmem>>, vector<1x1x3x128xbf16>
    %128 = vector.shape_cast %127 : vector<1x1x3x128xbf16> to vector<3x128xbf16>
    %c4_152 = arith.constant 4 : index
    %c0_153 = arith.constant 0 : index
    %c0_154 = arith.constant 0 : index
    %129 = vector.load %arg2[%c4_152, %c0_153, %c0_154] : memref<16x128x128xbf16, #tpu.memory_space<vmem>>, vector<1x128x128xbf16>
    %130 = vector.shape_cast %129 : vector<1x128x128xbf16> to vector<128x128xbf16>
    %cst_155 = arith.constant dense<0.000000e+00> : vector<3x128xf32>
    %131 = tpu.matmul %128, %130, %cst_155 {dimension_numbers = #tpu.dot_dimension_numbers<[1], [0], [0], [1], [0, 0, 1, 1], [], []>} : vector<3x128xbf16>, vector<128x128xbf16>, vector<3x128xf32> -> vector<3x128xf32>
    %132 = arith.addf %126, %131 : vector<3x128xf32>
    %c0_156 = arith.constant 0 : index
    %c2_157 = arith.constant 2 : index
    %c1_158 = arith.constant 1 : index
    %c0_159 = arith.constant 0 : index
    %133 = vector.load %arg1[%c0_156, %c2_157, %c1_158, %c0_159] : memref<1x6x6x128xbf16, #tpu.memory_space<vmem>>, vector<1x1x3x128xbf16>
    %134 = vector.shape_cast %133 : vector<1x1x3x128xbf16> to vector<3x128xbf16>
    %c5_160 = arith.constant 5 : index
    %c0_161 = arith.constant 0 : index
    %c0_162 = arith.constant 0 : index
    %135 = vector.load %arg2[%c5_160, %c0_161, %c0_162] : memref<16x128x128xbf16, #tpu.memory_space<vmem>>, vector<1x128x128xbf16>
    %136 = vector.shape_cast %135 : vector<1x128x128xbf16> to vector<128x128xbf16>
    %cst_163 = arith.constant dense<0.000000e+00> : vector<3x128xf32>
    %137 = tpu.matmul %134, %136, %cst_163 {dimension_numbers = #tpu.dot_dimension_numbers<[1], [0], [0], [1], [0, 0, 1, 1], [], []>} : vector<3x128xbf16>, vector<128x128xbf16>, vector<3x128xf32> -> vector<3x128xf32>
    %138 = arith.addf %132, %137 : vector<3x128xf32>
    %c0_164 = arith.constant 0 : index
    %c2_165 = arith.constant 2 : index
    %c2_166 = arith.constant 2 : index
    %c0_167 = arith.constant 0 : index
    %139 = vector.load %arg1[%c0_164, %c2_165, %c2_166, %c0_167] : memref<1x6x6x128xbf16, #tpu.memory_space<vmem>>, vector<1x1x3x128xbf16>
    %140 = vector.shape_cast %139 : vector<1x1x3x128xbf16> to vector<3x128xbf16>
    %c6_168 = arith.constant 6 : index
    %c0_169 = arith.constant 0 : index
    %c0_170 = arith.constant 0 : index
    %141 = vector.load %arg2[%c6_168, %c0_169, %c0_170] : memref<16x128x128xbf16, #tpu.memory_space<vmem>>, vector<1x128x128xbf16>
    %142 = vector.shape_cast %141 : vector<1x128x128xbf16> to vector<128x128xbf16>
    %cst_171 = arith.constant dense<0.000000e+00> : vector<3x128xf32>
    %143 = tpu.matmul %140, %142, %cst_171 {dimension_numbers = #tpu.dot_dimension_numbers<[1], [0], [0], [1], [0, 0, 1, 1], [], []>} : vector<3x128xbf16>, vector<128x128xbf16>, vector<3x128xf32> -> vector<3x128xf32>
    %144 = arith.addf %138, %143 : vector<3x128xf32>
    %c0_172 = arith.constant 0 : index
    %c2_173 = arith.constant 2 : index
    %c3_174 = arith.constant 3 : index
    %c0_175 = arith.constant 0 : index
    %145 = vector.load %arg1[%c0_172, %c2_173, %c3_174, %c0_175] : memref<1x6x6x128xbf16, #tpu.memory_space<vmem>>, vector<1x1x3x128xbf16>
    %146 = vector.shape_cast %145 : vector<1x1x3x128xbf16> to vector<3x128xbf16>
    %c7_176 = arith.constant 7 : index
    %c0_177 = arith.constant 0 : index
    %c0_178 = arith.constant 0 : index
    %147 = vector.load %arg2[%c7_176, %c0_177, %c0_178] : memref<16x128x128xbf16, #tpu.memory_space<vmem>>, vector<1x128x128xbf16>
    %148 = vector.shape_cast %147 : vector<1x128x128xbf16> to vector<128x128xbf16>
    %cst_179 = arith.constant dense<0.000000e+00> : vector<3x128xf32>
    %149 = tpu.matmul %146, %148, %cst_179 {dimension_numbers = #tpu.dot_dimension_numbers<[1], [0], [0], [1], [0, 0, 1, 1], [], []>} : vector<3x128xbf16>, vector<128x128xbf16>, vector<3x128xf32> -> vector<3x128xf32>
    %150 = arith.addf %144, %149 : vector<3x128xf32>
    %c0_180 = arith.constant 0 : index
    %c3_181 = arith.constant 3 : index
    %c0_182 = arith.constant 0 : index
    %c0_183 = arith.constant 0 : index
    %151 = vector.load %arg1[%c0_180, %c3_181, %c0_182, %c0_183] : memref<1x6x6x128xbf16, #tpu.memory_space<vmem>>, vector<1x1x3x128xbf16>
    %152 = vector.shape_cast %151 : vector<1x1x3x128xbf16> to vector<3x128xbf16>
    %c8_184 = arith.constant 8 : index
    %c0_185 = arith.constant 0 : index
    %c0_186 = arith.constant 0 : index
    %153 = vector.load %arg2[%c8_184, %c0_185, %c0_186] : memref<16x128x128xbf16, #tpu.memory_space<vmem>>, vector<1x128x128xbf16>
    %154 = vector.shape_cast %153 : vector<1x128x128xbf16> to vector<128x128xbf16>
    %cst_187 = arith.constant dense<0.000000e+00> : vector<3x128xf32>
    %155 = tpu.matmul %152, %154, %cst_187 {dimension_numbers = #tpu.dot_dimension_numbers<[1], [0], [0], [1], [0, 0, 1, 1], [], []>} : vector<3x128xbf16>, vector<128x128xbf16>, vector<3x128xf32> -> vector<3x128xf32>
    %156 = arith.addf %150, %155 : vector<3x128xf32>
    %c0_188 = arith.constant 0 : index
    %c3_189 = arith.constant 3 : index
    %c1_190 = arith.constant 1 : index
    %c0_191 = arith.constant 0 : index
    %157 = vector.load %arg1[%c0_188, %c3_189, %c1_190, %c0_191] : memref<1x6x6x128xbf16, #tpu.memory_space<vmem>>, vector<1x1x3x128xbf16>
    %158 = vector.shape_cast %157 : vector<1x1x3x128xbf16> to vector<3x128xbf16>
    %c9_192 = arith.constant 9 : index
    %c0_193 = arith.constant 0 : index
    %c0_194 = arith.constant 0 : index
    %159 = vector.load %arg2[%c9_192, %c0_193, %c0_194] : memref<16x128x128xbf16, #tpu.memory_space<vmem>>, vector<1x128x128xbf16>
    %160 = vector.shape_cast %159 : vector<1x128x128xbf16> to vector<128x128xbf16>
    %cst_195 = arith.constant dense<0.000000e+00> : vector<3x128xf32>
    %161 = tpu.matmul %158, %160, %cst_195 {dimension_numbers = #tpu.dot_dimension_numbers<[1], [0], [0], [1], [0, 0, 1, 1], [], []>} : vector<3x128xbf16>, vector<128x128xbf16>, vector<3x128xf32> -> vector<3x128xf32>
    %162 = arith.addf %156, %161 : vector<3x128xf32>
    %c0_196 = arith.constant 0 : index
    %c3_197 = arith.constant 3 : index
    %c2_198 = arith.constant 2 : index
    %c0_199 = arith.constant 0 : index
    %163 = vector.load %arg1[%c0_196, %c3_197, %c2_198, %c0_199] : memref<1x6x6x128xbf16, #tpu.memory_space<vmem>>, vector<1x1x3x128xbf16>
    %164 = vector.shape_cast %163 : vector<1x1x3x128xbf16> to vector<3x128xbf16>
    %c10_200 = arith.constant 10 : index
    %c0_201 = arith.constant 0 : index
    %c0_202 = arith.constant 0 : index
    %165 = vector.load %arg2[%c10_200, %c0_201, %c0_202] : memref<16x128x128xbf16, #tpu.memory_space<vmem>>, vector<1x128x128xbf16>
    %166 = vector.shape_cast %165 : vector<1x128x128xbf16> to vector<128x128xbf16>
    %cst_203 = arith.constant dense<0.000000e+00> : vector<3x128xf32>
    %167 = tpu.matmul %164, %166, %cst_203 {dimension_numbers = #tpu.dot_dimension_numbers<[1], [0], [0], [1], [0, 0, 1, 1], [], []>} : vector<3x128xbf16>, vector<128x128xbf16>, vector<3x128xf32> -> vector<3x128xf32>
    %168 = arith.addf %162, %167 : vector<3x128xf32>
    %c0_204 = arith.constant 0 : index
    %c3_205 = arith.constant 3 : index
    %c3_206 = arith.constant 3 : index
    %c0_207 = arith.constant 0 : index
    %169 = vector.load %arg1[%c0_204, %c3_205, %c3_206, %c0_207] : memref<1x6x6x128xbf16, #tpu.memory_space<vmem>>, vector<1x1x3x128xbf16>
    %170 = vector.shape_cast %169 : vector<1x1x3x128xbf16> to vector<3x128xbf16>
    %c11_208 = arith.constant 11 : index
    %c0_209 = arith.constant 0 : index
    %c0_210 = arith.constant 0 : index
    %171 = vector.load %arg2[%c11_208, %c0_209, %c0_210] : memref<16x128x128xbf16, #tpu.memory_space<vmem>>, vector<1x128x128xbf16>
    %172 = vector.shape_cast %171 : vector<1x128x128xbf16> to vector<128x128xbf16>
    %cst_211 = arith.constant dense<0.000000e+00> : vector<3x128xf32>
    %173 = tpu.matmul %170, %172, %cst_211 {dimension_numbers = #tpu.dot_dimension_numbers<[1], [0], [0], [1], [0, 0, 1, 1], [], []>} : vector<3x128xbf16>, vector<128x128xbf16>, vector<3x128xf32> -> vector<3x128xf32>
    %174 = arith.addf %168, %173 : vector<3x128xf32>
    %c0_212 = arith.constant 0 : index
    %c4_213 = arith.constant 4 : index
    %c0_214 = arith.constant 0 : index
    %c0_215 = arith.constant 0 : index
    %175 = vector.load %arg1[%c0_212, %c4_213, %c0_214, %c0_215] : memref<1x6x6x128xbf16, #tpu.memory_space<vmem>>, vector<1x1x3x128xbf16>
    %176 = vector.shape_cast %175 : vector<1x1x3x128xbf16> to vector<3x128xbf16>
    %c12_216 = arith.constant 12 : index
    %c0_217 = arith.constant 0 : index
    %c0_218 = arith.constant 0 : index
    %177 = vector.load %arg2[%c12_216, %c0_217, %c0_218] : memref<16x128x128xbf16, #tpu.memory_space<vmem>>, vector<1x128x128xbf16>
    %178 = vector.shape_cast %177 : vector<1x128x128xbf16> to vector<128x128xbf16>
    %cst_219 = arith.constant dense<0.000000e+00> : vector<3x128xf32>
    %179 = tpu.matmul %176, %178, %cst_219 {dimension_numbers = #tpu.dot_dimension_numbers<[1], [0], [0], [1], [0, 0, 1, 1], [], []>} : vector<3x128xbf16>, vector<128x128xbf16>, vector<3x128xf32> -> vector<3x128xf32>
    %180 = arith.addf %174, %179 : vector<3x128xf32>
    %c0_220 = arith.constant 0 : index
    %c4_221 = arith.constant 4 : index
    %c1_222 = arith.constant 1 : index
    %c0_223 = arith.constant 0 : index
    %181 = vector.load %arg1[%c0_220, %c4_221, %c1_222, %c0_223] : memref<1x6x6x128xbf16, #tpu.memory_space<vmem>>, vector<1x1x3x128xbf16>
    %182 = vector.shape_cast %181 : vector<1x1x3x128xbf16> to vector<3x128xbf16>
    %c13_224 = arith.constant 13 : index
    %c0_225 = arith.constant 0 : index
    %c0_226 = arith.constant 0 : index
    %183 = vector.load %arg2[%c13_224, %c0_225, %c0_226] : memref<16x128x128xbf16, #tpu.memory_space<vmem>>, vector<1x128x128xbf16>
    %184 = vector.shape_cast %183 : vector<1x128x128xbf16> to vector<128x128xbf16>
    %cst_227 = arith.constant dense<0.000000e+00> : vector<3x128xf32>
    %185 = tpu.matmul %182, %184, %cst_227 {dimension_numbers = #tpu.dot_dimension_numbers<[1], [0], [0], [1], [0, 0, 1, 1], [], []>} : vector<3x128xbf16>, vector<128x128xbf16>, vector<3x128xf32> -> vector<3x128xf32>
    %186 = arith.addf %180, %185 : vector<3x128xf32>
    %c0_228 = arith.constant 0 : index
    %c4_229 = arith.constant 4 : index
    %c2_230 = arith.constant 2 : index
    %c0_231 = arith.constant 0 : index
    %187 = vector.load %arg1[%c0_228, %c4_229, %c2_230, %c0_231] : memref<1x6x6x128xbf16, #tpu.memory_space<vmem>>, vector<1x1x3x128xbf16>
    %188 = vector.shape_cast %187 : vector<1x1x3x128xbf16> to vector<3x128xbf16>
    %c14_232 = arith.constant 14 : index
    %c0_233 = arith.constant 0 : index
    %c0_234 = arith.constant 0 : index
    %189 = vector.load %arg2[%c14_232, %c0_233, %c0_234] : memref<16x128x128xbf16, #tpu.memory_space<vmem>>, vector<1x128x128xbf16>
    %190 = vector.shape_cast %189 : vector<1x128x128xbf16> to vector<128x128xbf16>
    %cst_235 = arith.constant dense<0.000000e+00> : vector<3x128xf32>
    %191 = tpu.matmul %188, %190, %cst_235 {dimension_numbers = #tpu.dot_dimension_numbers<[1], [0], [0], [1], [0, 0, 1, 1], [], []>} : vector<3x128xbf16>, vector<128x128xbf16>, vector<3x128xf32> -> vector<3x128xf32>
    %192 = arith.addf %186, %191 : vector<3x128xf32>
    %c0_236 = arith.constant 0 : index
    %c4_237 = arith.constant 4 : index
    %c3_238 = arith.constant 3 : index
    %c0_239 = arith.constant 0 : index
    %193 = vector.load %arg1[%c0_236, %c4_237, %c3_238, %c0_239] : memref<1x6x6x128xbf16, #tpu.memory_space<vmem>>, vector<1x1x3x128xbf16>
    %194 = vector.shape_cast %193 : vector<1x1x3x128xbf16> to vector<3x128xbf16>
    %c15_240 = arith.constant 15 : index
    %c0_241 = arith.constant 0 : index
    %c0_242 = arith.constant 0 : index
    %195 = vector.load %arg2[%c15_240, %c0_241, %c0_242] : memref<16x128x128xbf16, #tpu.memory_space<vmem>>, vector<1x128x128xbf16>
    %196 = vector.shape_cast %195 : vector<1x128x128xbf16> to vector<128x128xbf16>
    %cst_243 = arith.constant dense<0.000000e+00> : vector<3x128xf32>
    %197 = tpu.matmul %194, %196, %cst_243 {dimension_numbers = #tpu.dot_dimension_numbers<[1], [0], [0], [1], [0, 0, 1, 1], [], []>} : vector<3x128xbf16>, vector<128x128xbf16>, vector<3x128xf32> -> vector<3x128xf32>
    %198 = arith.addf %192, %197 : vector<3x128xf32>
    %199 = vector.broadcast %0 : vector<1x128xf32> to vector<3x128xf32>
    %200 = arith.addf %198, %199 : vector<3x128xf32>
    %cst_244 = arith.constant 0.000000e+00 : f32
    %201 = vector.broadcast %cst_244 : f32 to vector<3x128xf32>
    %202 = arith.maximumf %200, %201 : vector<3x128xf32>
    %cst_245 = arith.constant 0.000000e+00 : f32
    %203 = vector.broadcast %cst_245 : f32 to vector<3x128xf32>
    %c0_246 = arith.constant 0 : index
    %c2_247 = arith.constant 2 : index
    %c0_248 = arith.constant 0 : index
    %c0_249 = arith.constant 0 : index
    %204 = vector.load %arg1[%c0_246, %c2_247, %c0_248, %c0_249] : memref<1x6x6x128xbf16, #tpu.memory_space<vmem>>, vector<1x1x3x128xbf16>
    %205 = vector.shape_cast %204 : vector<1x1x3x128xbf16> to vector<3x128xbf16>
    %c0_250 = arith.constant 0 : index
    %c0_251 = arith.constant 0 : index
    %c0_252 = arith.constant 0 : index
    %206 = vector.load %arg2[%c0_250, %c0_251, %c0_252] : memref<16x128x128xbf16, #tpu.memory_space<vmem>>, vector<1x128x128xbf16>
    %207 = vector.shape_cast %206 : vector<1x128x128xbf16> to vector<128x128xbf16>
    %cst_253 = arith.constant dense<0.000000e+00> : vector<3x128xf32>
    %208 = tpu.matmul %205, %207, %cst_253 {dimension_numbers = #tpu.dot_dimension_numbers<[1], [0], [0], [1], [0, 0, 1, 1], [], []>} : vector<3x128xbf16>, vector<128x128xbf16>, vector<3x128xf32> -> vector<3x128xf32>
    %209 = arith.addf %203, %208 : vector<3x128xf32>
    %c0_254 = arith.constant 0 : index
    %c2_255 = arith.constant 2 : index
    %c1_256 = arith.constant 1 : index
    %c0_257 = arith.constant 0 : index
    %210 = vector.load %arg1[%c0_254, %c2_255, %c1_256, %c0_257] : memref<1x6x6x128xbf16, #tpu.memory_space<vmem>>, vector<1x1x3x128xbf16>
    %211 = vector.shape_cast %210 : vector<1x1x3x128xbf16> to vector<3x128xbf16>
    %c1_258 = arith.constant 1 : index
    %c0_259 = arith.constant 0 : index
    %c0_260 = arith.constant 0 : index
    %212 = vector.load %arg2[%c1_258, %c0_259, %c0_260] : memref<16x128x128xbf16, #tpu.memory_space<vmem>>, vector<1x128x128xbf16>
    %213 = vector.shape_cast %212 : vector<1x128x128xbf16> to vector<128x128xbf16>
    %cst_261 = arith.constant dense<0.000000e+00> : vector<3x128xf32>
    %214 = tpu.matmul %211, %213, %cst_261 {dimension_numbers = #tpu.dot_dimension_numbers<[1], [0], [0], [1], [0, 0, 1, 1], [], []>} : vector<3x128xbf16>, vector<128x128xbf16>, vector<3x128xf32> -> vector<3x128xf32>
    %215 = arith.addf %209, %214 : vector<3x128xf32>
    %c0_262 = arith.constant 0 : index
    %c2_263 = arith.constant 2 : index
    %c2_264 = arith.constant 2 : index
    %c0_265 = arith.constant 0 : index
    %216 = vector.load %arg1[%c0_262, %c2_263, %c2_264, %c0_265] : memref<1x6x6x128xbf16, #tpu.memory_space<vmem>>, vector<1x1x3x128xbf16>
    %217 = vector.shape_cast %216 : vector<1x1x3x128xbf16> to vector<3x128xbf16>
    %c2_266 = arith.constant 2 : index
    %c0_267 = arith.constant 0 : index
    %c0_268 = arith.constant 0 : index
    %218 = vector.load %arg2[%c2_266, %c0_267, %c0_268] : memref<16x128x128xbf16, #tpu.memory_space<vmem>>, vector<1x128x128xbf16>
    %219 = vector.shape_cast %218 : vector<1x128x128xbf16> to vector<128x128xbf16>
    %cst_269 = arith.constant dense<0.000000e+00> : vector<3x128xf32>
    %220 = tpu.matmul %217, %219, %cst_269 {dimension_numbers = #tpu.dot_dimension_numbers<[1], [0], [0], [1], [0, 0, 1, 1], [], []>} : vector<3x128xbf16>, vector<128x128xbf16>, vector<3x128xf32> -> vector<3x128xf32>
    %221 = arith.addf %215, %220 : vector<3x128xf32>
    %c0_270 = arith.constant 0 : index
    %c2_271 = arith.constant 2 : index
    %c3_272 = arith.constant 3 : index
    %c0_273 = arith.constant 0 : index
    %222 = vector.load %arg1[%c0_270, %c2_271, %c3_272, %c0_273] : memref<1x6x6x128xbf16, #tpu.memory_space<vmem>>, vector<1x1x3x128xbf16>
    %223 = vector.shape_cast %222 : vector<1x1x3x128xbf16> to vector<3x128xbf16>
    %c3_274 = arith.constant 3 : index
    %c0_275 = arith.constant 0 : index
    %c0_276 = arith.constant 0 : index
    %224 = vector.load %arg2[%c3_274, %c0_275, %c0_276] : memref<16x128x128xbf16, #tpu.memory_space<vmem>>, vector<1x128x128xbf16>
    %225 = vector.shape_cast %224 : vector<1x128x128xbf16> to vector<128x128xbf16>
    %cst_277 = arith.constant dense<0.000000e+00> : vector<3x128xf32>
    %226 = tpu.matmul %223, %225, %cst_277 {dimension_numbers = #tpu.dot_dimension_numbers<[1], [0], [0], [1], [0, 0, 1, 1], [], []>} : vector<3x128xbf16>, vector<128x128xbf16>, vector<3x128xf32> -> vector<3x128xf32>
    %227 = arith.addf %221, %226 : vector<3x128xf32>
    %c0_278 = arith.constant 0 : index
    %c3_279 = arith.constant 3 : index
    %c0_280 = arith.constant 0 : index
    %c0_281 = arith.constant 0 : index
    %228 = vector.load %arg1[%c0_278, %c3_279, %c0_280, %c0_281] : memref<1x6x6x128xbf16, #tpu.memory_space<vmem>>, vector<1x1x3x128xbf16>
    %229 = vector.shape_cast %228 : vector<1x1x3x128xbf16> to vector<3x128xbf16>
    %c4_282 = arith.constant 4 : index
    %c0_283 = arith.constant 0 : index
    %c0_284 = arith.constant 0 : index
    %230 = vector.load %arg2[%c4_282, %c0_283, %c0_284] : memref<16x128x128xbf16, #tpu.memory_space<vmem>>, vector<1x128x128xbf16>
    %231 = vector.shape_cast %230 : vector<1x128x128xbf16> to vector<128x128xbf16>
    %cst_285 = arith.constant dense<0.000000e+00> : vector<3x128xf32>
    %232 = tpu.matmul %229, %231, %cst_285 {dimension_numbers = #tpu.dot_dimension_numbers<[1], [0], [0], [1], [0, 0, 1, 1], [], []>} : vector<3x128xbf16>, vector<128x128xbf16>, vector<3x128xf32> -> vector<3x128xf32>
    %233 = arith.addf %227, %232 : vector<3x128xf32>
    %c0_286 = arith.constant 0 : index
    %c3_287 = arith.constant 3 : index
    %c1_288 = arith.constant 1 : index
    %c0_289 = arith.constant 0 : index
    %234 = vector.load %arg1[%c0_286, %c3_287, %c1_288, %c0_289] : memref<1x6x6x128xbf16, #tpu.memory_space<vmem>>, vector<1x1x3x128xbf16>
    %235 = vector.shape_cast %234 : vector<1x1x3x128xbf16> to vector<3x128xbf16>
    %c5_290 = arith.constant 5 : index
    %c0_291 = arith.constant 0 : index
    %c0_292 = arith.constant 0 : index
    %236 = vector.load %arg2[%c5_290, %c0_291, %c0_292] : memref<16x128x128xbf16, #tpu.memory_space<vmem>>, vector<1x128x128xbf16>
    %237 = vector.shape_cast %236 : vector<1x128x128xbf16> to vector<128x128xbf16>
    %cst_293 = arith.constant dense<0.000000e+00> : vector<3x128xf32>
    %238 = tpu.matmul %235, %237, %cst_293 {dimension_numbers = #tpu.dot_dimension_numbers<[1], [0], [0], [1], [0, 0, 1, 1], [], []>} : vector<3x128xbf16>, vector<128x128xbf16>, vector<3x128xf32> -> vector<3x128xf32>
    %239 = arith.addf %233, %238 : vector<3x128xf32>
    %c0_294 = arith.constant 0 : index
    %c3_295 = arith.constant 3 : index
    %c2_296 = arith.constant 2 : index
    %c0_297 = arith.constant 0 : index
    %240 = vector.load %arg1[%c0_294, %c3_295, %c2_296, %c0_297] : memref<1x6x6x128xbf16, #tpu.memory_space<vmem>>, vector<1x1x3x128xbf16>
    %241 = vector.shape_cast %240 : vector<1x1x3x128xbf16> to vector<3x128xbf16>
    %c6_298 = arith.constant 6 : index
    %c0_299 = arith.constant 0 : index
    %c0_300 = arith.constant 0 : index
    %242 = vector.load %arg2[%c6_298, %c0_299, %c0_300] : memref<16x128x128xbf16, #tpu.memory_space<vmem>>, vector<1x128x128xbf16>
    %243 = vector.shape_cast %242 : vector<1x128x128xbf16> to vector<128x128xbf16>
    %cst_301 = arith.constant dense<0.000000e+00> : vector<3x128xf32>
    %244 = tpu.matmul %241, %243, %cst_301 {dimension_numbers = #tpu.dot_dimension_numbers<[1], [0], [0], [1], [0, 0, 1, 1], [], []>} : vector<3x128xbf16>, vector<128x128xbf16>, vector<3x128xf32> -> vector<3x128xf32>
    %245 = arith.addf %239, %244 : vector<3x128xf32>
    %c0_302 = arith.constant 0 : index
    %c3_303 = arith.constant 3 : index
    %c3_304 = arith.constant 3 : index
    %c0_305 = arith.constant 0 : index
    %246 = vector.load %arg1[%c0_302, %c3_303, %c3_304, %c0_305] : memref<1x6x6x128xbf16, #tpu.memory_space<vmem>>, vector<1x1x3x128xbf16>
    %247 = vector.shape_cast %246 : vector<1x1x3x128xbf16> to vector<3x128xbf16>
    %c7_306 = arith.constant 7 : index
    %c0_307 = arith.constant 0 : index
    %c0_308 = arith.constant 0 : index
    %248 = vector.load %arg2[%c7_306, %c0_307, %c0_308] : memref<16x128x128xbf16, #tpu.memory_space<vmem>>, vector<1x128x128xbf16>
    %249 = vector.shape_cast %248 : vector<1x128x128xbf16> to vector<128x128xbf16>
    %cst_309 = arith.constant dense<0.000000e+00> : vector<3x128xf32>
    %250 = tpu.matmul %247, %249, %cst_309 {dimension_numbers = #tpu.dot_dimension_numbers<[1], [0], [0], [1], [0, 0, 1, 1], [], []>} : vector<3x128xbf16>, vector<128x128xbf16>, vector<3x128xf32> -> vector<3x128xf32>
    %251 = arith.addf %245, %250 : vector<3x128xf32>
    %c0_310 = arith.constant 0 : index
    %c4_311 = arith.constant 4 : index
    %c0_312 = arith.constant 0 : index
    %c0_313 = arith.constant 0 : index
    %252 = vector.load %arg1[%c0_310, %c4_311, %c0_312, %c0_313] : memref<1x6x6x128xbf16, #tpu.memory_space<vmem>>, vector<1x1x3x128xbf16>
    %253 = vector.shape_cast %252 : vector<1x1x3x128xbf16> to vector<3x128xbf16>
    %c8_314 = arith.constant 8 : index
    %c0_315 = arith.constant 0 : index
    %c0_316 = arith.constant 0 : index
    %254 = vector.load %arg2[%c8_314, %c0_315, %c0_316] : memref<16x128x128xbf16, #tpu.memory_space<vmem>>, vector<1x128x128xbf16>
    %255 = vector.shape_cast %254 : vector<1x128x128xbf16> to vector<128x128xbf16>
    %cst_317 = arith.constant dense<0.000000e+00> : vector<3x128xf32>
    %256 = tpu.matmul %253, %255, %cst_317 {dimension_numbers = #tpu.dot_dimension_numbers<[1], [0], [0], [1], [0, 0, 1, 1], [], []>} : vector<3x128xbf16>, vector<128x128xbf16>, vector<3x128xf32> -> vector<3x128xf32>
    %257 = arith.addf %251, %256 : vector<3x128xf32>
    %c0_318 = arith.constant 0 : index
    %c4_319 = arith.constant 4 : index
    %c1_320 = arith.constant 1 : index
    %c0_321 = arith.constant 0 : index
    %258 = vector.load %arg1[%c0_318, %c4_319, %c1_320, %c0_321] : memref<1x6x6x128xbf16, #tpu.memory_space<vmem>>, vector<1x1x3x128xbf16>
    %259 = vector.shape_cast %258 : vector<1x1x3x128xbf16> to vector<3x128xbf16>
    %c9_322 = arith.constant 9 : index
    %c0_323 = arith.constant 0 : index
    %c0_324 = arith.constant 0 : index
    %260 = vector.load %arg2[%c9_322, %c0_323, %c0_324] : memref<16x128x128xbf16, #tpu.memory_space<vmem>>, vector<1x128x128xbf16>
    %261 = vector.shape_cast %260 : vector<1x128x128xbf16> to vector<128x128xbf16>
    %cst_325 = arith.constant dense<0.000000e+00> : vector<3x128xf32>
    %262 = tpu.matmul %259, %261, %cst_325 {dimension_numbers = #tpu.dot_dimension_numbers<[1], [0], [0], [1], [0, 0, 1, 1], [], []>} : vector<3x128xbf16>, vector<128x128xbf16>, vector<3x128xf32> -> vector<3x128xf32>
    %263 = arith.addf %257, %262 : vector<3x128xf32>
    %c0_326 = arith.constant 0 : index
    %c4_327 = arith.constant 4 : index
    %c2_328 = arith.constant 2 : index
    %c0_329 = arith.constant 0 : index
    %264 = vector.load %arg1[%c0_326, %c4_327, %c2_328, %c0_329] : memref<1x6x6x128xbf16, #tpu.memory_space<vmem>>, vector<1x1x3x128xbf16>
    %265 = vector.shape_cast %264 : vector<1x1x3x128xbf16> to vector<3x128xbf16>
    %c10_330 = arith.constant 10 : index
    %c0_331 = arith.constant 0 : index
    %c0_332 = arith.constant 0 : index
    %266 = vector.load %arg2[%c10_330, %c0_331, %c0_332] : memref<16x128x128xbf16, #tpu.memory_space<vmem>>, vector<1x128x128xbf16>
    %267 = vector.shape_cast %266 : vector<1x128x128xbf16> to vector<128x128xbf16>
    %cst_333 = arith.constant dense<0.000000e+00> : vector<3x128xf32>
    %268 = tpu.matmul %265, %267, %cst_333 {dimension_numbers = #tpu.dot_dimension_numbers<[1], [0], [0], [1], [0, 0, 1, 1], [], []>} : vector<3x128xbf16>, vector<128x128xbf16>, vector<3x128xf32> -> vector<3x128xf32>
    %269 = arith.addf %263, %268 : vector<3x128xf32>
    %c0_334 = arith.constant 0 : index
    %c4_335 = arith.constant 4 : index
    %c3_336 = arith.constant 3 : index
    %c0_337 = arith.constant 0 : index
    %270 = vector.load %arg1[%c0_334, %c4_335, %c3_336, %c0_337] : memref<1x6x6x128xbf16, #tpu.memory_space<vmem>>, vector<1x1x3x128xbf16>
    %271 = vector.shape_cast %270 : vector<1x1x3x128xbf16> to vector<3x128xbf16>
    %c11_338 = arith.constant 11 : index
    %c0_339 = arith.constant 0 : index
    %c0_340 = arith.constant 0 : index
    %272 = vector.load %arg2[%c11_338, %c0_339, %c0_340] : memref<16x128x128xbf16, #tpu.memory_space<vmem>>, vector<1x128x128xbf16>
    %273 = vector.shape_cast %272 : vector<1x128x128xbf16> to vector<128x128xbf16>
    %cst_341 = arith.constant dense<0.000000e+00> : vector<3x128xf32>
    %274 = tpu.matmul %271, %273, %cst_341 {dimension_numbers = #tpu.dot_dimension_numbers<[1], [0], [0], [1], [0, 0, 1, 1], [], []>} : vector<3x128xbf16>, vector<128x128xbf16>, vector<3x128xf32> -> vector<3x128xf32>
    %275 = arith.addf %269, %274 : vector<3x128xf32>
    %c0_342 = arith.constant 0 : index
    %c5_343 = arith.constant 5 : index
    %c0_344 = arith.constant 0 : index
    %c0_345 = arith.constant 0 : index
    %276 = vector.load %arg1[%c0_342, %c5_343, %c0_344, %c0_345] : memref<1x6x6x128xbf16, #tpu.memory_space<vmem>>, vector<1x1x3x128xbf16>
    %277 = vector.shape_cast %276 : vector<1x1x3x128xbf16> to vector<3x128xbf16>
    %c12_346 = arith.constant 12 : index
    %c0_347 = arith.constant 0 : index
    %c0_348 = arith.constant 0 : index
    %278 = vector.load %arg2[%c12_346, %c0_347, %c0_348] : memref<16x128x128xbf16, #tpu.memory_space<vmem>>, vector<1x128x128xbf16>
    %279 = vector.shape_cast %278 : vector<1x128x128xbf16> to vector<128x128xbf16>
    %cst_349 = arith.constant dense<0.000000e+00> : vector<3x128xf32>
    %280 = tpu.matmul %277, %279, %cst_349 {dimension_numbers = #tpu.dot_dimension_numbers<[1], [0], [0], [1], [0, 0, 1, 1], [], []>} : vector<3x128xbf16>, vector<128x128xbf16>, vector<3x128xf32> -> vector<3x128xf32>
    %281 = arith.addf %275, %280 : vector<3x128xf32>
    %c0_350 = arith.constant 0 : index
    %c5_351 = arith.constant 5 : index
    %c1_352 = arith.constant 1 : index
    %c0_353 = arith.constant 0 : index
    %282 = vector.load %arg1[%c0_350, %c5_351, %c1_352, %c0_353] : memref<1x6x6x128xbf16, #tpu.memory_space<vmem>>, vector<1x1x3x128xbf16>
    %283 = vector.shape_cast %282 : vector<1x1x3x128xbf16> to vector<3x128xbf16>
    %c13_354 = arith.constant 13 : index
    %c0_355 = arith.constant 0 : index
    %c0_356 = arith.constant 0 : index
    %284 = vector.load %arg2[%c13_354, %c0_355, %c0_356] : memref<16x128x128xbf16, #tpu.memory_space<vmem>>, vector<1x128x128xbf16>
    %285 = vector.shape_cast %284 : vector<1x128x128xbf16> to vector<128x128xbf16>
    %cst_357 = arith.constant dense<0.000000e+00> : vector<3x128xf32>
    %286 = tpu.matmul %283, %285, %cst_357 {dimension_numbers = #tpu.dot_dimension_numbers<[1], [0], [0], [1], [0, 0, 1, 1], [], []>} : vector<3x128xbf16>, vector<128x128xbf16>, vector<3x128xf32> -> vector<3x128xf32>
    %287 = arith.addf %281, %286 : vector<3x128xf32>
    %c0_358 = arith.constant 0 : index
    %c5_359 = arith.constant 5 : index
    %c2_360 = arith.constant 2 : index
    %c0_361 = arith.constant 0 : index
    %288 = vector.load %arg1[%c0_358, %c5_359, %c2_360, %c0_361] : memref<1x6x6x128xbf16, #tpu.memory_space<vmem>>, vector<1x1x3x128xbf16>
    %289 = vector.shape_cast %288 : vector<1x1x3x128xbf16> to vector<3x128xbf16>
    %c14_362 = arith.constant 14 : index
    %c0_363 = arith.constant 0 : index
    %c0_364 = arith.constant 0 : index
    %290 = vector.load %arg2[%c14_362, %c0_363, %c0_364] : memref<16x128x128xbf16, #tpu.memory_space<vmem>>, vector<1x128x128xbf16>
    %291 = vector.shape_cast %290 : vector<1x128x128xbf16> to vector<128x128xbf16>
    %cst_365 = arith.constant dense<0.000000e+00> : vector<3x128xf32>
    %292 = tpu.matmul %289, %291, %cst_365 {dimension_numbers = #tpu.dot_dimension_numbers<[1], [0], [0], [1], [0, 0, 1, 1], [], []>} : vector<3x128xbf16>, vector<128x128xbf16>, vector<3x128xf32> -> vector<3x128xf32>
    %293 = arith.addf %287, %292 : vector<3x128xf32>
    %c0_366 = arith.constant 0 : index
    %c5_367 = arith.constant 5 : index
    %c3_368 = arith.constant 3 : index
    %c0_369 = arith.constant 0 : index
    %294 = vector.load %arg1[%c0_366, %c5_367, %c3_368, %c0_369] : memref<1x6x6x128xbf16, #tpu.memory_space<vmem>>, vector<1x1x3x128xbf16>
    %295 = vector.shape_cast %294 : vector<1x1x3x128xbf16> to vector<3x128xbf16>
    %c15_370 = arith.constant 15 : index
    %c0_371 = arith.constant 0 : index
    %c0_372 = arith.constant 0 : index
    %296 = vector.load %arg2[%c15_370, %c0_371, %c0_372] : memref<16x128x128xbf16, #tpu.memory_space<vmem>>, vector<1x128x128xbf16>
    %297 = vector.shape_cast %296 : vector<1x128x128xbf16> to vector<128x128xbf16>
    %cst_373 = arith.constant dense<0.000000e+00> : vector<3x128xf32>
    %298 = tpu.matmul %295, %297, %cst_373 {dimension_numbers = #tpu.dot_dimension_numbers<[1], [0], [0], [1], [0, 0, 1, 1], [], []>} : vector<3x128xbf16>, vector<128x128xbf16>, vector<3x128xf32> -> vector<3x128xf32>
    %299 = arith.addf %293, %298 : vector<3x128xf32>
    %300 = vector.broadcast %0 : vector<1x128xf32> to vector<3x128xf32>
    %301 = arith.addf %299, %300 : vector<3x128xf32>
    %cst_374 = arith.constant 0.000000e+00 : f32
    %302 = vector.broadcast %cst_374 : f32 to vector<3x128xf32>
    %303 = arith.maximumf %301, %302 : vector<3x128xf32>
    %cst_375 = arith.constant 0.000000e+00 : f32
    %304 = vector.broadcast %cst_375 : f32 to vector<1x128xf32>
    %305 = vector.extract_strided_slice %101 {offsets = [0, 0], sizes = [1, 128], strides = [1, 1]} : vector<3x128xf32> to vector<1x128xf32>
    %306 = vector.extract_strided_slice %101 {offsets = [1, 0], sizes = [1, 128], strides = [1, 1]} : vector<3x128xf32> to vector<1x128xf32>
    %307 = vector.extract_strided_slice %202 {offsets = [0, 0], sizes = [1, 128], strides = [1, 1]} : vector<3x128xf32> to vector<1x128xf32>
    %308 = vector.extract_strided_slice %202 {offsets = [1, 0], sizes = [1, 128], strides = [1, 1]} : vector<3x128xf32> to vector<1x128xf32>
    %309 = arith.maximumf %305, %306 : vector<1x128xf32>
    %310 = arith.maximumf %309, %307 : vector<1x128xf32>
    %311 = arith.maximumf %310, %308 : vector<1x128xf32>
    %312 = arith.addf %304, %311 : vector<1x128xf32>
    %313 = vector.extract_strided_slice %101 {offsets = [1, 0], sizes = [1, 128], strides = [1, 1]} : vector<3x128xf32> to vector<1x128xf32>
    %314 = vector.extract_strided_slice %101 {offsets = [2, 0], sizes = [1, 128], strides = [1, 1]} : vector<3x128xf32> to vector<1x128xf32>
    %315 = vector.extract_strided_slice %202 {offsets = [1, 0], sizes = [1, 128], strides = [1, 1]} : vector<3x128xf32> to vector<1x128xf32>
    %316 = vector.extract_strided_slice %202 {offsets = [2, 0], sizes = [1, 128], strides = [1, 1]} : vector<3x128xf32> to vector<1x128xf32>
    %317 = arith.maximumf %313, %314 : vector<1x128xf32>
    %318 = arith.maximumf %317, %315 : vector<1x128xf32>
    %319 = arith.maximumf %318, %316 : vector<1x128xf32>
    %320 = arith.addf %312, %319 : vector<1x128xf32>
    %321 = vector.extract_strided_slice %202 {offsets = [0, 0], sizes = [1, 128], strides = [1, 1]} : vector<3x128xf32> to vector<1x128xf32>
    %322 = vector.extract_strided_slice %202 {offsets = [1, 0], sizes = [1, 128], strides = [1, 1]} : vector<3x128xf32> to vector<1x128xf32>
    %323 = vector.extract_strided_slice %303 {offsets = [0, 0], sizes = [1, 128], strides = [1, 1]} : vector<3x128xf32> to vector<1x128xf32>
    %324 = vector.extract_strided_slice %303 {offsets = [1, 0], sizes = [1, 128], strides = [1, 1]} : vector<3x128xf32> to vector<1x128xf32>
    %325 = arith.maximumf %321, %322 : vector<1x128xf32>
    %326 = arith.maximumf %325, %323 : vector<1x128xf32>
    %327 = arith.maximumf %326, %324 : vector<1x128xf32>
    %328 = arith.addf %320, %327 : vector<1x128xf32>
    %329 = vector.extract_strided_slice %202 {offsets = [1, 0], sizes = [1, 128], strides = [1, 1]} : vector<3x128xf32> to vector<1x128xf32>
    %330 = vector.extract_strided_slice %202 {offsets = [2, 0], sizes = [1, 128], strides = [1, 1]} : vector<3x128xf32> to vector<1x128xf32>
    %331 = vector.extract_strided_slice %303 {offsets = [1, 0], sizes = [1, 128], strides = [1, 1]} : vector<3x128xf32> to vector<1x128xf32>
    %332 = vector.extract_strided_slice %303 {offsets = [2, 0], sizes = [1, 128], strides = [1, 1]} : vector<3x128xf32> to vector<1x128xf32>
    %333 = arith.maximumf %329, %330 : vector<1x128xf32>
    %334 = arith.maximumf %333, %331 : vector<1x128xf32>
    %335 = arith.maximumf %334, %332 : vector<1x128xf32>
    %336 = arith.addf %328, %335 : vector<1x128xf32>
    %cst_376 = arith.constant 2.500000e-01 : f32
    %337 = vector.broadcast %cst_376 : f32 to vector<1x128xf32>
    %338 = arith.mulf %336, %337 : vector<1x128xf32>
    %339 = arith.truncf %338 : vector<1x128xf32> to vector<1x128xbf16>
    %c0_377 = arith.constant 0 : index
    %c0_378 = arith.constant 0 : index
    %340 = vector.load %arg4[%c0_377, %c0_378] : memref<128x128xbf16, #tpu.memory_space<vmem>>, vector<128x128xbf16>
    %cst_379 = arith.constant dense<0.000000e+00> : vector<1x128xf32>
    %341 = tpu.matmul %339, %340, %cst_379 {dimension_numbers = #tpu.dot_dimension_numbers<[1], [0], [0], [1], [0, 0, 1, 1], [], []>} : vector<1x128xbf16>, vector<128x128xbf16>, vector<1x128xf32> -> vector<1x128xf32>
    %c0_380 = arith.constant 0 : index
    %c0_381 = arith.constant 0 : index
    %342 = vector.load %arg5[%c0_380, %c0_381] : memref<1x128xf32, #tpu.memory_space<vmem>>, vector<1x128xf32>
    %343 = arith.addf %341, %342 : vector<1x128xf32>
    %344 = vector.shape_cast %343 : vector<1x128xf32> to vector<1x1x128xf32>
    %c0_382 = arith.constant 0 : index
    %c0_383 = arith.constant 0 : index
    %c0_384 = arith.constant 0 : index
    %345 = vector.load %arg6[%c0_382, %c0_383, %c0_384] : memref<1x1x128xf32, #tpu.memory_space<vmem>>, vector<1x1x128xf32>
    tpu.vector_store %arg6[%c0_382, %c0_383, %c0_384], %344 {strides = array<i32>} : memref<1x1x128xf32, #tpu.memory_space<vmem>>, vector<1x1x128xf32>,
    return
  }
  func.func @transform_0(%arg0: i32) -> (i32, i32, i32, i32) {
    %c0_i32 = arith.constant 0 : i32
    %c0_i32_0 = arith.constant 0 : i32
    %c0_i32_1 = arith.constant 0 : i32
    %c0_i32_2 = arith.constant 0 : i32
    return %arg0, %c0_i32, %c0_i32_0, %c0_i32_1 : i32, i32, i32, i32
  }
  func.func @transform_1(%arg0: i32) -> (i32, i32, i32) {
    %c0_i32 = arith.constant 0 : i32
    %c0_i32_0 = arith.constant 0 : i32
    %c0_i32_1 = arith.constant 0 : i32
    %c0_i32_2 = arith.constant 0 : i32
    return %c0_i32, %c0_i32_0, %c0_i32_1 : i32, i32, i32
  }
  func.func @transform_2(%arg0: i32) -> (i32, i32) {
    %c0_i32 = arith.constant 0 : i32
    %c0_i32_0 = arith.constant 0 : i32
    %c0_i32_1 = arith.constant 0 : i32
    return %c0_i32, %c0_i32_0 : i32, i32
  }
  func.func @transform_3(%arg0: i32) -> (i32, i32) {
    %c0_i32 = arith.constant 0 : i32
    %c0_i32_0 = arith.constant 0 : i32
    %c0_i32_1 = arith.constant 0 : i32
    return %c0_i32, %c0_i32_0 : i32, i32
  }
  func.func @transform_4(%arg0: i32) -> (i32, i32) {
    %c0_i32 = arith.constant 0 : i32
    %c0_i32_0 = arith.constant 0 : i32
    %c0_i32_1 = arith.constant 0 : i32
    return %c0_i32, %c0_i32_0 : i32, i32
  }
  func.func @transform_5(%arg0: i32) -> (i32, i32, i32) {
    %c0_i32 = arith.constant 0 : i32
    %c0_i32_0 = arith.constant 0 : i32
    %c0_i32_1 = arith.constant 0 : i32
    return %arg0, %c0_i32, %c0_i32_0 : i32, i32, i32
  }
}

</mosaic_0001>

<bundles_post_ra>
// kernel: cnn_3layers_forward.3
= control target key start
LH: loop header
LB: loop body
LE: loop exit
PB: predicated region body
PF: predicated region fallthrough
CT: control target
= control target key end

     0   :  { %s3618_s12 = smov 0   ;;  %s4223_s0 = inlined_call_operand.vmem [shape: bf16[2,32,32,128], index: 0, kind: input, shape index: {}]   ;;  %s4224_s1 = inlined_call_operand.vmem [shape: bf16[16,128,128], index: 1, kind: input, shape index: {}]   ;;  %s4225_s2 = inlined_call_operand.vmem [shape: f32[1,128], index: 2, kind: input, shape index: {}]   ;;  %s4226_s3 = inlined_call_operand.vmem [shape: bf16[2,29,29,128], index: 3, kind: output, shape index: {}]  }
   0x1 LB: > { %s2446_s13 = sadd.s32 4294967295, %s3592_s12   ;;  %p2450_p0 = scmp.ge.s32.totalorder %s3592_s12, 1  ;;  %s3592_s12 = sphi %s3618_s12, %s13_s12  }
   0x2   : > { %p137_p1 = scmp.lt.s32.totalorder %s3592_s12, 3 }
   0x4   : > { %p138_p2 = pnand %p2450_p0, %p137_p1 }
   0x5   : > { %p161_p3 = scmp.lt.s32.totalorder (!%p138_p2), %s2446_s13, 1  ;;  %v3629_v0 = vld [vmem:[%s4225_s2] ss:$0 sm:$0xff] (!%p138_p2)  ;;  %s3641_s24 = smov (!%p138_p2), 0  }
   0x6   : > { %141 = sbr.rel (%p138_p2) target bundleno = 497 (0x1f1), region = 32 }
   0xd   : > { %s4228_s13 = smov (!%p161_p3, %s2446_s13), 1 }
   0xe   : > { %s2869_s16 = sshll.u32 %s4228_s13, 9  ;;  %s3421_s17 = smul.u32 464, %s4228_s13 }
   0xf   : > { %s3634_s20 = scalar_lea.vmem %s4223_s0, %s2869_s16 }
  0x10   : > { %s3639_s23 = scalar_lea.vmem %s4226_s3, %s3421_s17 }
  0x11 LB: >> { %v3438_v1 = vld [vmem:[%s4224_s1 + $0x40] sm:$0xff]   ;;  %v3440_v3 = vld [vmem:[%s4224_s1 + $0x48] sm:$0xff]   ;;  %v3442_v5 = vld [vmem:[%s4224_s1 + $0x50] sm:$0xff]   ;;  %s2870_s15 = sshll.u32 %s3596_s24, 4  ;;  %vm229_vm0 = vsmask.f32 7424  ;;  %s3596_s24 = sphi %s3641_s24, %s178_s24  }
  0x12   : >> { %v3439_v2 = vld [vmem:[%s4224_s1 + $0x200] sm:$0xff]   ;;  %3041 = vmatprep.subr.bf16.mxu1 %v3438_v1  ;;  %v3441_v4 = vld [vmem:[%s4224_s1 + $0x208] sm:$0xff]   ;;  %v3443_v6 = vld [vmem:[%s4224_s1 + $0x210] sm:$0xff]   ;;  %s3680_s21 = scalar_lea.vmem %s3634_s20, %s2870_s15  ;;  %vm468_vm1 = vcmask 1046528   ;;  %vm592_vm2 = vsmask.f32 6400  ;;  %s2363_s26 = scalar_lea.vmem %s3639_s23, %s2870_s15 }
  0x13   : >> { %3201 = vmatprep.subr.bf16.mxu0 %v3439_v2  ;;  %3042 = vmatpush3.bf16.msra.mxu1 %v3438_v1  ;;  %v3444_v7 = vld [vmem:[%s4224_s1 + $0x58] sm:$0xff]   ;;  %v3446_v9 = vld [vmem:[%s4224_s1 + $0x60] sm:$0xff]   ;;  %v3448_v11 = vld [vmem:[%s4224_s1 + $0x68] sm:$0xff]   ;;  %vm2367_vm3 = vcmask 1042432   ;;  %vm2368_vm4 = vsmask.f32 2304 }
  0x14   : >> { %3202 = vmatpush3.bf16.msra.mxu0 %v3439_v2  ;;  %3043 = vmatprep.subr.bf16.mxu1 %v3440_v3  ;;  %v3445_v8 = vld [vmem:[%s4224_s1 + $0x218] sm:$0xff]   ;;  %v3447_v10 = vld [vmem:[%s4224_s1 + $0x220] sm:$0xff]   ;;  %v3690_v14 = vld [vmem:[%s3680_s21 + $0x8] sm:$0xf]  ;;  %s178_s24 = sadd.s32 1, %s3596_s24  }
  0x15   : >> { %3203 = vmatprep.subr.bf16.mxu0 %v3441_v4  ;;  %v182_v12 = vld [vmem:[%s3680_s21] sm:$0xf]  ;;  %v3687_v13 = vld [vmem:[%s3680_s21 + $0x4] sm:$0xf]  ;;  %v3449_v15 = vld [vmem:[%s4224_s1 + $0x228] sm:$0xff]   ;;  %p175_p4 = scmp.ge.s32.totalorder %s178_s24, 29  }
  0x16   : >> { %v185_v16 = vld [vmem:[%s3680_s21 + $0xc] sm:$0x7]  ;;  %v2472_v17 = vcombine.low %v182_v12, %v3687_v13  ;;  %v2648_v19 = vld [vmem:[%s3680_s21 + $0x20] sm:$0xf]  ;;  %v3702_v22 = vld [vmem:[%s3680_s21 + $0x24] sm:$0xf] }
  0x17   : >> { %3044 = vmatpush3.bf16.msra.mxu1 %v3440_v3  ;;  %v3698_v18 = vcombine.low %v3690_v14, %v185_v16  ;;  %v3450_v23 = vld [vmem:[%s4224_s1 + $0x70] sm:$0xff]   ;;  %v2668_v25 = vcombine.low %v2648_v19, %v3702_v22  ;;  %v3713_v28 = vld [vmem:[%s3680_s21 + $0x28] sm:$0xf]  ;;  %v2651_v30 = vld [vmem:[%s3680_s21 + $0x2c] sm:$0x7] }
  0x18   : >> { %3204 = vmatpush3.bf16.msra.mxu0 %v3441_v4  ;;  %3045 = vmatprep.subr.bf16.mxu1 %v3442_v5  ;;  %v231_v20 = vshrl.u32 %v2472_v17, 16  ;;  %v233_v21 = vshll.u32 %v2472_v17, 16  ;;  %v3451_v26 = vld [vmem:[%s4224_s1 + $0x230] sm:$0xff]   ;;  %v3452_v33 = vld [vmem:[%s4224_s1 + $0x78] sm:$0xff]   ;;  %v3724_v36 = vcombine.low %v3713_v28, %v2651_v30  ;;  %v3456_v41 = vld [vmem:[%s4224_s1] sm:$0xff]  }
  0x19   : >> { %3205 = vmatprep.subr.bf16.mxu0 %v3443_v6  ;;  %v238_v24 = vshll.u32 %v3698_v18, 16  ;;  %3217 = vmatprep.mubr.bf16.mxu0 %v2668_v25  ;;  %v1412_v32 = vshll.u32 %v2668_v25, 16  ;;  %v3453_v34 = vld [vmem:[%s4224_s1 + $0x238] sm:$0xff]   ;;  %v242_v37 = vshrl.u32 %v3698_v18, 16  ;;  %v1410_v38 = vshrl.u32 %v2668_v25, 16  ;;  %v3459_v42 = vld [vmem:[%s4224_s1 + $0x240] sm:$0xff]   ;;  %vm2369_vm5 = vmand %vm2367_vm3, %vm2368_vm4 }
  0x1a   : >> { %v235_v27 = vrot.slane %v233_v21, 1  ;;  %v1417_v40 = vshll.u32 %v3724_v36, 16  ;;  %v3462_v46 = vld [vmem:[%s4224_s1 + $0x8] sm:$0xff]   ;;  %v3464_v49 = vld [vmem:[%s4224_s1 + $0x10] sm:$0xff]   ;;  %v3466_v51 = vld [vmem:[%s4224_s1 + $0x18] sm:$0xff]  }
  0x1b   : >> { %3046 = vmatpush3.bf16.msra.mxu1 %v3442_v5  ;;  %v240_v29 = vrot.slane %v238_v24, 1  ;;  %v1414_v39 = vrot.slane %v1412_v32, 1  ;;  %v3463_v47 = vld [vmem:[%s4224_s1 + $0x248] sm:$0xff]   ;;  %v3465_v50 = vld [vmem:[%s4224_s1 + $0x250] sm:$0xff]   ;;  %v3467_v52 = vld [vmem:[%s4224_s1 + $0x258] sm:$0xff]   ;;  %v1421_v5 = vshrl.u32 %v3724_v36, 16 }
  0x1c   : >> { %3206 = vmatpush3.bf16.msra.mxu0 %v3443_v6  ;;  %3047 = vmatprep.subr.bf16.mxu1 %v3444_v7  ;;  %v236_v31 = vor.u32 %v235_v27, %v231_v20  ;;  %v3734_v45 = vrot.slane %v1417_v40, 1  ;;  %v3468_v53 = vld [vmem:[%s4224_s1 + $0x20] sm:$0xff]   ;;  %v3470_v55 = vld [vmem:[%s4224_s1 + $0x28] sm:$0xff]   ;;  %v3472_v57 = vld [vmem:[%s4224_s1 + $0x30] sm:$0xff]  }
  0x1d   : >> { %3207 = vmatprep.subr.bf16.mxu0 %v3445_v8  ;;  %v244_v43 = vor.u32 %v242_v37, %v240_v29  ;;  %v1415_v44 = vor.u32 %v1414_v39, %v1410_v38  ;;  %v3469_v54 = vld [vmem:[%s4224_s1 + $0x260] sm:$0xff]   ;;  %v3471_v56 = vld [vmem:[%s4224_s1 + $0x268] sm:$0xff]   ;;  %v3473_v58 = vld [vmem:[%s4224_s1 + $0x270] sm:$0xff]  }
  0x1e   : >> { %v241_v35 = vsel %vm229_vm0, %v236_v31, %v240_v29  ;;  %v2702_v59 = vld [vmem:[%s3680_s21 + $0x20] sm:$0xe]  ;;  %v2703_v60 = vld [vmem:[%s3680_s21 + $0x2c] sm:$0xf]  ;;  %v3474_v63 = vld [vmem:[%s4224_s1 + $0x38] sm:$0xff]  }
  0x1f   : >> { %3048 = vmatpush3.bf16.msra.mxu1 %v3444_v7  ;;  %3057 = vmatprep.mubr.bf16.mxu1 %v241_v35  ;;  %v1420_v48 = vsel %vm229_vm0, %v1415_v44, %v3734_v45  ;;  %v443_v61 = vld [vmem:[%s3680_s21] sm:$0xe]  ;;  %v444_v62 = vld [vmem:[%s3680_s21 + $0xc] sm:$0xf]  ;;  %v3475_v1 = vld [vmem:[%s4224_s1 + $0x278] sm:$0xff]   ;;  %v3792_v4 = vcombine.low %v2702_v59, %v3702_v22  ;;  %v3796_v6 = vcombine.low %v3713_v28, %v2703_v60 }
  0x20   : >> { %3208 = vmatpush3.bf16.msra.mxu0 %v3445_v8  ;;  %3049 = vmatprep.subr.bf16.mxu1 %v3446_v9  ;;  %v3786_v2 = vcombine.low %v443_v61, %v3687_v13  ;;  %v3789_v3 = vcombine.low %v3690_v14, %v444_v62  ;;  %v3476_v7 = vld [vmem:[%s4224_s1 + $0x80] sm:$0xff]   ;;  %v3478_v14 = vld [vmem:[%s4224_s1 + $0x88] sm:$0xff]   ;;  %v3480_v19 = vld [vmem:[%s4224_s1 + $0x90] sm:$0xff]  }
  0x21   : >> { %3209 = vmatprep.subr.bf16.mxu0 %v3447_v10  ;;  %v3477_v8 = vld [vmem:[%s4224_s1 + $0x280] sm:$0xff]   ;;  %v1552_v12 = vrot.slane %v3792_v4, 1  ;;  %v1553_v13 = vrot.slane %v3796_v6, 1  ;;  %v3482_v20 = vld [vmem:[%s4224_s1 + $0x98] sm:$0xff]   ;;  %v3486_v24 = vld [vmem:[%s4224_s1 + $0xa8] sm:$0xff]   ;;  %v1676_v30 = vshrl.u32 %v3792_v4, 16 }
  0x22   : >> { %v3483_v21 = vld [vmem:[%s4224_s1 + $0x298] sm:$0xff]   ;;  %v3484_v22 = vld [vmem:[%s4224_s1 + $0xa0] sm:$0xff]   ;;  %v3487_v25 = vld [vmem:[%s4224_s1 + $0x2a8] sm:$0xff]   ;;  %v594_v28 = vshrl.u32 %v3786_v2, 16  ;;  %v597_v29 = vshll.u32 %v3786_v2, 16  ;;  %v602_v31 = vshrl.u32 %v3789_v3, 16 }
  0x23   : >> { %3050 = vmatpush3.bf16.msra.mxu1 %v3446_v9  ;;  %v469_v9 = vrot.slane %v3786_v2, 1  ;;  %v3489_v27 = vld [vmem:[%s4224_s1 + $0x2b0] sm:$0xff]   ;;  %v605_v32 = vshll.u32 %v3789_v3, 16  ;;  %v1687_v35 = vshll.u32 %v3796_v6, 16  ;;  %v3491_v37 = vld [vmem:[%s4224_s1 + $0x2b8] sm:$0xff]   ;;  %v1678_v38 = vrot.slane %v1676_v30, 1 }
  0x24   : >> { %3210 = vmatpush3.bf16.msra.mxu0 %v3447_v10  ;;  %3051 = vmatprep.subr.bf16.mxu1 %v3448_v11  ;;  %v470_v10 = vrot.slane %v3789_v3, 1  ;;  %v596_v39 = vrot.slane %v594_v28, 1  ;;  %v599_v40 = vrot.slane %v597_v29, 2  ;;  %v3501_v59 = vld [vmem:[%s4224_s1 + $0x2d8] sm:$0xff]   ;;  %v3502_v60 = vld [vmem:[%s4224_s1 + $0xe0] sm:$0xff]   ;;  %v3504_v62 = vld [vmem:[%s4224_s1 + $0xe8] sm:$0xff]  }
  0x25   : >> { %3211 = vmatprep.subr.bf16.mxu0 %v3449_v15  ;;  %v3503_v61 = vld [vmem:[%s4224_s1 + $0x2e0] sm:$0xff]   ;;  %v3507_v2 = vld [vmem:[%s4224_s1 + $0x2f0] sm:$0xff]   ;;  %v3508_v3 = vld [vmem:[%s4224_s1 + $0xf8] sm:$0xff]  }
  0x26   : >> { %v471_v16 = vsel %vm468_vm1, %v469_v9, %v470_v10  ;;  %v2755_v9 = vld [vmem:[%s3680_s21 + $0x30] sm:$0xf]  ;;  %v3992_v28 = vld [vmem:[%s3680_s21 + $0x38] sm:$0xf]  ;;  %v2758_v29 = vld [vmem:[%s3680_s21 + $0x3c] sm:$0x7] }
  0x27   : >> { %3052 = vmatpush3.bf16.msra.mxu1 %v3448_v11  ;;  %v1423_v11 = vor.u32 %v1421_v5, %v3734_v45  ;;  %v3510_v5 = vld [vmem:[%s4224_s1 + $0x100] sm:$0xff]  }
  0x28   : >> { %3212 = vmatpush3.bf16.msra.mxu0 %v3449_v15  ;;  %3053 = vmatprep.subr.bf16.mxu1 %v3450_v23  ;;  %v3479_v15 = vld [vmem:[%s4224_s1 + $0x288] sm:$0xff]  }
  0x29   : >> { %3213 = vmatprep.subr.bf16.mxu0 %v3451_v26 }
  0x2b   : >> { %3054 = vmatpush3.bf16.msra.mxu1 %v3450_v23  ;;  %v3485_v23 = vld [vmem:[%s4224_s1 + $0x2a0] sm:$0xff]  }
  0x2c   : >> { %3214 = vmatpush3.bf16.msra.mxu0 %v3451_v26  ;;  %3055 = vmatprep.subr.bf16.mxu1 %v3452_v33  ;;  %v3488_v26 = vld [vmem:[%s4224_s1 + $0xb0] sm:$0xff]  }
  0x2d   : >> { %3215 = vmatprep.subr.bf16.mxu0 %v3453_v34 }
  0x2f   : >> { %3056 = vmatpush3.bf16.msra.mxu1 %v3452_v33  ;;  %v1679_v33 = vshll.u32 %v3792_v4, 16  ;;  %v3509_v4 = vld [vmem:[%s4224_s1 + $0x2f8] sm:$0xff]  }
  0x30   : >> { %3216 = vmatpush3.bf16.msra.mxu0 %v3453_v34  ;;  %3061 = vmatprep.subr.bf16.mxu1 %v3456_v41  ;;  %v1684_v34 = vshrl.u32 %v3796_v6, 16  ;;  %v3511_v6 = vld [vmem:[%s4224_s1 + $0x300] sm:$0xff]  }
  0x31   : >> { %3221 = vmatprep.subr.bf16.mxu0 %v3459_v42  ;;  %v1681_v44 = vrot.slane %v1679_v33, 2  ;;  %v3525_v33 = vld [vmem:[%s4224_s1 + $0x338] sm:$0xff]  }
  0x32   : >> { %3058 = vmatmul.mubr.bf16.vlgmr.msra.gmra.mrb[0].mxu1 %v244_v43  ;;  %v3494_v43 = vld [vmem:[%s4224_s1 + $0xc0] sm:$0xff]   ;;  %v1686_v45 = vrot.slane %v1684_v34, 1  ;;  %v4006_v34 = vcombine.low %v3992_v28, %v2758_v29  ;;  %v3561_v29 = vld [vmem:[%s4224_s1 + $0x3a8] sm:$0xff]  }
  0x33   : >> { %3062 = vmatpush3.bf16.msra.mxu1 %v3456_v41  ;;  %3218 = vmatmul.mubr.bf16.vlgmr.msra.gmra.mrb[0].mxu0 %v3724_v36  ;;  %v3490_v36 = vld [vmem:[%s4224_s1 + $0xb8] sm:$0xff]   ;;  %v604_v41 = vrot.slane %v602_v31, 1 }
  0x34   : >> { %3222 = vmatpush3.bf16.msra.mxu0 %v3459_v42  ;;  %3063 = vmatprep.subr.bf16.mxu1 %v3462_v46  ;;  %v607_v42 = vrot.slane %v605_v32, 2  ;;  %v3524_v31 = vld [vmem:[%s4224_s1 + $0x138] sm:$0xff]  }
  0x35   : >> { %3223 = vmatprep.subr.bf16.mxu0 %v3463_v47  ;;  %3077 = vmatprep.mubr.bf16.mxu1 %v2472_v17  ;;  %v1554_v17 = vsel %vm468_vm1, %v1552_v12, %v1553_v13  ;;  %v3513_v12 = vld [vmem:[%s4224_s1 + $0x308] sm:$0xff]  }
  0x36   : >> { %3237 = vmatprep.mubr.bf16.mxu0 %v1420_v48  ;;  %v600_v48 = vor.u32 %v599_v40, %v596_v39  ;;  %v1958_v40 = vshll.u32 %v4006_v34, 16 }
  0x37   : >> { %3064 = vmatpush3.bf16.msra.mxu1 %v3462_v46  ;;  %v1689_v46 = vrot.slane %v1687_v35, 2 }
  0x38   : >> { %3224 = vmatpush3.bf16.msra.mxu0 %v3463_v47  ;;  %3065 = vmatprep.subr.bf16.mxu1 %v3464_v49  ;;  %v3495_v47 = vld [vmem:[%s4224_s1 + $0x2c0] sm:$0xff]  }
  0x39   : >> { %3225 = vmatprep.subr.bf16.mxu0 %v3465_v50 }
  0x3b   : >> { %3066 = vmatpush3.bf16.msra.mxu1 %v3464_v49  ;;  %v3872_v49 = vor.u32 %v607_v42, %v604_v41  ;;  %v3528_v41 = vld [vmem:[%s4224_s1 + $0x140] sm:$0xff]  }
  0x3c   : >> { %3226 = vmatpush3.bf16.msra.mxu0 %v3465_v50  ;;  %3067 = vmatprep.subr.bf16.mxu1 %v3466_v51  ;;  %v1682_v50 = vor.u32 %v1681_v44, %v1678_v38  ;;  %v3531_v42 = vld [vmem:[%s4224_s1 + $0x340] sm:$0xff]  }
  0x3d   : >> { %3227 = vmatprep.subr.bf16.mxu0 %v3467_v52 }
  0x3f   : >> { %3068 = vmatpush3.bf16.msra.mxu1 %v3466_v51  ;;  %v3874_v51 = vor.u32 %v1689_v46, %v1686_v45  ;;  %v4020_v46 = vrot.slane %v1958_v40, 1  ;;  %v3564_v40 = vld [vmem:[%s4224_s1 + $0x1b8] sm:$0xff]  }
  0x40   : >> { %3228 = vmatpush3.bf16.msra.mxu0 %v3467_v52  ;;  %3069 = vmatprep.subr.bf16.mxu1 %v3468_v53  ;;  %v3496_v52 = vld [vmem:[%s4224_s1 + $0xc8] sm:$0xff]  }
  0x41   : >> { %3229 = vmatprep.subr.bf16.mxu0 %v3469_v54 }
  0x43   : >> { %3070 = vmatpush3.bf16.msra.mxu1 %v3468_v53  ;;  %v3497_v53 = vld [vmem:[%s4224_s1 + $0x2c8] sm:$0xff]  }
  0x44   : >> { %3230 = vmatpush3.bf16.msra.mxu0 %v3469_v54  ;;  %3071 = vmatprep.subr.bf16.mxu1 %v3470_v55  ;;  %v609_v54 = vsel %vm592_vm2, %v600_v48, %v3872_v49  ;;  %v3537_v48 = vld [vmem:[%s4224_s1 + $0x348] sm:$0xff]  }
  0x45   : >> { %3231 = vmatprep.subr.bf16.mxu0 %v3471_v56 }
  0x47   : >> { %3072 = vmatpush3.bf16.msra.mxu1 %v3470_v55  ;;  %v1691_v55 = vsel %vm592_vm2, %v1682_v50, %v3874_v51 }
  0x48   : >> { %3232 = vmatpush3.bf16.msra.mxu0 %v3471_v56  ;;  %3073 = vmatprep.subr.bf16.mxu1 %v3472_v57  ;;  %v3498_v56 = vld [vmem:[%s4224_s1 + $0xd0] sm:$0xff]  }
  0x49   : >> { %3233 = vmatprep.subr.bf16.mxu0 %v3473_v58 }
  0x4b   : >> { %3074 = vmatpush3.bf16.msra.mxu1 %v3472_v57  ;;  %v3499_v57 = vld [vmem:[%s4224_s1 + $0x2d0] sm:$0xff]  }
  0x4c   : >> { %3234 = vmatpush3.bf16.msra.mxu0 %v3473_v58  ;;  %3075 = vmatprep.subr.bf16.mxu1 %v3474_v63  ;;  %v3500_v58 = vld [vmem:[%s4224_s1 + $0xd8] sm:$0xff]  }
  0x4d   : >> { %3235 = vmatprep.subr.bf16.mxu0 %v3475_v1 }
  0x4f   : >> { %3076 = vmatpush3.bf16.msra.mxu1 %v3474_v63  ;;  %v3505_v63 = vld [vmem:[%s4224_s1 + $0x2e8] sm:$0xff]  }
  0x50   : >> { %3236 = vmatpush3.bf16.msra.mxu0 %v3475_v1  ;;  %3081 = vmatprep.subr.bf16.mxu1 %v3476_v7  ;;  %v3506_v1 = vld [vmem:[%s4224_s1 + $0xf0] sm:$0xff]  }
  0x51   : >> { %3241 = vmatprep.subr.bf16.mxu0 %v3477_v8 }
  0x52   : >> { %3078 = vmatmul.mubr.bf16.vlgmr.msra.gmra.mrb[0].mxu1 %v3698_v18  ;;  %v3481_v18 = vld [vmem:[%s4224_s1 + $0x290] sm:$0xff]  }
  0x53   : >> { %3082 = vmatpush3.bf16.msra.mxu1 %v3476_v7  ;;  %3238 = vmatmul.mubr.bf16.vlgmr.msra.gmra.mrb[0].mxu0 %v1423_v11  ;;  %v2541_v7 = vld [vmem:[%s3680_s21 + $0x10] sm:$0xf]  ;;  %v3512_v11 = vld [vmem:[%s4224_s1 + $0x108] sm:$0xff]  }
  0x54   : >> { %3242 = vmatpush3.bf16.msra.mxu0 %v3477_v8  ;;  %3083 = vmatprep.subr.bf16.mxu1 %v3478_v14  ;;  %v3934_v8 = vld [vmem:[%s3680_s21 + $0x14] sm:$0xf] }
  0x55   : >> { %3243 = vmatprep.subr.bf16.mxu0 %v3479_v15  ;;  %3097 = vmatprep.mubr.bf16.mxu1 %v471_v16  ;;  %v3515_v16 = vld [vmem:[%s4224_s1 + $0x310] sm:$0xff]  }
  0x56   : >> { %3257 = vmatprep.mubr.bf16.mxu0 %v1554_v17  ;;  %v3516_v17 = vld [vmem:[%s4224_s1 + $0x118] sm:$0xff]  }
  0x57   : >> { %3084 = vmatpush3.bf16.msra.mxu1 %v3478_v14 }
  0x58   : >> { %3244 = vmatpush3.bf16.msra.mxu0 %v3479_v15  ;;  %3085 = vmatprep.subr.bf16.mxu1 %v3480_v19  ;;  %v3514_v15 = vld [vmem:[%s4224_s1 + $0x110] sm:$0xff]  }
  0x59   : >> { %3245 = vmatprep.subr.bf16.mxu0 %v3481_v18 }
  0x5b   : >> { %3086 = vmatpush3.bf16.msra.mxu1 %v3480_v19  ;;  %v3517_v19 = vld [vmem:[%s4224_s1 + $0x318] sm:$0xff]  }
  0x5c   : >> { %3246 = vmatpush3.bf16.msra.mxu0 %v3481_v18  ;;  %3087 = vmatprep.subr.bf16.mxu1 %v3482_v20  ;;  %v3518_v18 = vld [vmem:[%s4224_s1 + $0x120] sm:$0xff]  }
  0x5d   : >> { %3247 = vmatprep.subr.bf16.mxu0 %v3483_v21 }
  0x5f   : >> { %3088 = vmatpush3.bf16.msra.mxu1 %v3482_v20  ;;  %v3519_v20 = vld [vmem:[%s4224_s1 + $0x320] sm:$0xff]  }
  0x60   : >> { %3248 = vmatpush3.bf16.msra.mxu0 %v3483_v21  ;;  %3089 = vmatprep.subr.bf16.mxu1 %v3484_v22  ;;  %v3520_v21 = vld [vmem:[%s4224_s1 + $0x128] sm:$0xff]  }
  0x61   : >> { %3249 = vmatprep.subr.bf16.mxu0 %v3485_v23 }
  0x63   : >> { %3090 = vmatpush3.bf16.msra.mxu1 %v3484_v22  ;;  %v3521_v22 = vld [vmem:[%s4224_s1 + $0x328] sm:$0xff]  }
  0x64   : >> { %3250 = vmatpush3.bf16.msra.mxu0 %v3485_v23  ;;  %3091 = vmatprep.subr.bf16.mxu1 %v3486_v24  ;;  %v3522_v23 = vld [vmem:[%s4224_s1 + $0x130] sm:$0xff]  }
  0x65   : >> { %3251 = vmatprep.subr.bf16.mxu0 %v3487_v25 }
  0x67   : >> { %3092 = vmatpush3.bf16.msra.mxu1 %v3486_v24  ;;  %v3523_v24 = vld [vmem:[%s4224_s1 + $0x330] sm:$0xff]  }
  0x68   : >> { %3252 = vmatpush3.bf16.msra.mxu0 %v3487_v25  ;;  %3093 = vmatprep.subr.bf16.mxu1 %v3488_v26  ;;  %v3987_v25 = vld [vmem:[%s3680_s21 + $0x18] sm:$0xf] }
  0x69   : >> { %3253 = vmatprep.subr.bf16.mxu0 %v3489_v27 }
  0x6b   : >> { %3094 = vmatpush3.bf16.msra.mxu1 %v3488_v26  ;;  %v2544_v26 = vld [vmem:[%s3680_s21 + $0x1c] sm:$0x7] }
  0x6c   : >> { %3254 = vmatpush3.bf16.msra.mxu0 %v3489_v27  ;;  %3095 = vmatprep.subr.bf16.mxu1 %v3490_v36  ;;  %v4000_v32 = vcombine.low %v3987_v25, %v2544_v26  ;;  %v3558_v26 = vld [vmem:[%s4224_s1 + $0x1a0] sm:$0xff]  }
  0x6d   : >> { %3255 = vmatprep.subr.bf16.mxu0 %v3491_v37 }
  0x6f   : >> { %3096 = vmatpush3.bf16.msra.mxu1 %v3490_v36 }
  0x70   : >> { %3256 = vmatpush3.bf16.msra.mxu0 %v3491_v37  ;;  %3101 = vmatprep.subr.bf16.mxu1 %v3494_v43  ;;  %v876_v37 = vshll.u32 %v4000_v32, 16 }
  0x71   : >> { %3261 = vmatprep.subr.bf16.mxu0 %v3495_v47 }
  0x72   : >> { %3098 = vmatmul.mubr.bf16.vlgmr.msra.gmra.mrb[0].mxu1 %v470_v10  ;;  %v3938_v10 = vld [vmem:[%s3680_s21 + $0x34] sm:$0xf]  ;;  %v4018_v44 = vrot.slane %v876_v37, 1 }
  0x73   : >> { %3102 = vmatpush3.bf16.msra.mxu1 %v3494_v43  ;;  %3258 = vmatmul.mubr.bf16.vlgmr.msra.gmra.mrb[0].mxu0 %v1553_v13  ;;  %v3947_v13 = vcombine.low %v2541_v7, %v3934_v8  ;;  %v3951_v14 = vcombine.low %v2755_v9, %v3938_v10 }
  0x74   : >> { %3262 = vmatpush3.bf16.msra.mxu0 %v3495_v47  ;;  %3103 = vmatprep.subr.bf16.mxu1 %v3496_v52  ;;  %v3536_v47 = vld [vmem:[%s4224_s1 + $0x148] sm:$0xff]  }
  0x75   : >> { %3263 = vmatprep.subr.bf16.mxu0 %v3497_v53  ;;  %3117 = vmatprep.mubr.bf16.mxu1 %v609_v54  ;;  %v871_v27 = vshll.u32 %v3947_v13, 16  ;;  %v1953_v30 = vshll.u32 %v3951_v14, 16  ;;  %v869_v35 = vshrl.u32 %v3947_v13, 16  ;;  %v1951_v38 = vshrl.u32 %v3951_v14, 16  ;;  %v3541_v54 = vld [vmem:[%s4224_s1 + $0x358] sm:$0xff]  }
  0x76   : >> { %3277 = vmatprep.mubr.bf16.mxu0 %v1691_v55  ;;  %v3542_v55 = vld [vmem:[%s4224_s1 + $0x160] sm:$0xff]  }
  0x77   : >> { %3104 = vmatpush3.bf16.msra.mxu1 %v3496_v52  ;;  %v873_v36 = vrot.slane %v871_v27, 1  ;;  %v1955_v39 = vrot.slane %v1953_v30, 1  ;;  %v3539_v52 = vld [vmem:[%s4224_s1 + $0x350] sm:$0xff]   ;;  %v3559_v27 = vld [vmem:[%s4224_s1 + $0x3a0] sm:$0xff]  }
  0x78   : >> { %3264 = vmatpush3.bf16.msra.mxu0 %v3497_v53  ;;  %3105 = vmatprep.subr.bf16.mxu1 %v3498_v56  ;;  %v3540_v53 = vld [vmem:[%s4224_s1 + $0x158] sm:$0xff]   ;;  %v3562_v30 = vld [vmem:[%s4224_s1 + $0x1b0] sm:$0xff]  }
  0x79   : >> { %3265 = vmatprep.subr.bf16.mxu0 %v3499_v57  ;;  %v874_v43 = vor.u32 %v873_v36, %v869_v35  ;;  %v1956_v45 = vor.u32 %v1955_v39, %v1951_v38 }
  0x7b   : >> { %3106 = vmatpush3.bf16.msra.mxu1 %v3498_v56  ;;  %v1961_v50 = vsel %vm229_vm0, %v1956_v45, %v4020_v46  ;;  %v3543_v56 = vld [vmem:[%s4224_s1 + $0x360] sm:$0xff]  }
  0x7c   : >> { %3266 = vmatpush3.bf16.msra.mxu0 %v3499_v57  ;;  %3107 = vmatprep.subr.bf16.mxu1 %v3500_v58  ;;  %v3544_v57 = vld [vmem:[%s4224_s1 + $0x168] sm:$0xff]  }
  0x7d   : >> { %3267 = vmatprep.subr.bf16.mxu0 %v3501_v59 }
  0x7f   : >> { %3108 = vmatpush3.bf16.msra.mxu1 %v3500_v58  ;;  %v3545_v58 = vld [vmem:[%s4224_s1 + $0x368] sm:$0xff]  }
  0x80   : >> { %3268 = vmatpush3.bf16.msra.mxu0 %v3501_v59  ;;  %3109 = vmatprep.subr.bf16.mxu1 %v3502_v60  ;;  %v3546_v59 = vld [vmem:[%s4224_s1 + $0x170] sm:$0xff]  }
  0x81   : >> { %3269 = vmatprep.subr.bf16.mxu0 %v3503_v61 }
  0x83   : >> { %3110 = vmatpush3.bf16.msra.mxu1 %v3502_v60  ;;  %v3547_v60 = vld [vmem:[%s4224_s1 + $0x370] sm:$0xff]  }
  0x84   : >> { %3270 = vmatpush3.bf16.msra.mxu0 %v3503_v61  ;;  %3111 = vmatprep.subr.bf16.mxu1 %v3504_v62  ;;  %v2595_v61 = vld [vmem:[%s3680_s21 + $0x10] sm:$0xe] }
  0x85   : >> { %3271 = vmatprep.subr.bf16.mxu0 %v3505_v63 }
  0x87   : >> { %3112 = vmatpush3.bf16.msra.mxu1 %v3504_v62  ;;  %v2596_v62 = vld [vmem:[%s3680_s21 + $0x1c] sm:$0xf] }
  0x88   : >> { %3272 = vmatpush3.bf16.msra.mxu0 %v3505_v63  ;;  %3113 = vmatprep.subr.bf16.mxu1 %v3506_v1  ;;  %v2809_v63 = vld [vmem:[%s3680_s21 + $0x30] sm:$0xe] }
  0x89   : >> { %3273 = vmatprep.subr.bf16.mxu0 %v3507_v2  ;;  %v4082_v7 = vcombine.low %v2809_v63, %v3938_v10  ;;  %v3573_v63 = vld [vmem:[%s4224_s1 + $0x3d8] sm:$0xff]  }
  0x8b   : >> { %3114 = vmatpush3.bf16.msra.mxu1 %v3506_v1  ;;  %v2810_v1 = vld [vmem:[%s3680_s21 + $0x3c] sm:$0xf]  ;;  %v2217_v36 = vshrl.u32 %v4082_v7, 16  ;;  %v2220_v37 = vshll.u32 %v4082_v7, 16 }
  0x8c   : >> { %3274 = vmatpush3.bf16.msra.mxu0 %v3507_v2  ;;  %3115 = vmatprep.subr.bf16.mxu1 %v3508_v3  ;;  %v3548_v2 = vld [vmem:[%s4224_s1 + $0x178] sm:$0xff]   ;;  %v4085_v9 = vcombine.low %v3992_v28, %v2810_v1  ;;  %v3560_v28 = vld [vmem:[%s4224_s1 + $0x1a8] sm:$0xff]   ;;  %v3574_v1 = vld [vmem:[%s4224_s1 + $0x1e0] sm:$0xff]  }
  0x8d   : >> { %3275 = vmatprep.subr.bf16.mxu0 %v3509_v4 }
  0x8e   : >> { %v2225_v38 = vshrl.u32 %v4085_v9, 16  ;;  %v2228_v39 = vshll.u32 %v4085_v9, 16 }
  0x8f   : >> { %3116 = vmatpush3.bf16.msra.mxu1 %v3508_v3  ;;  %v3549_v3 = vld [vmem:[%s4224_s1 + $0x378] sm:$0xff]  }
  0x90   : >> { %3276 = vmatpush3.bf16.msra.mxu0 %v3509_v4  ;;  %3121 = vmatprep.subr.bf16.mxu1 %v3510_v5  ;;  %v4075_v4 = vcombine.low %v2595_v61, %v3934_v8  ;;  %v3550_v8 = vld [vmem:[%s4224_s1 + $0x180] sm:$0xff]   ;;  %v3571_v61 = vld [vmem:[%s4224_s1 + $0x3d0] sm:$0xff]  }
  0x91   : >> { %3281 = vmatprep.subr.bf16.mxu0 %v3511_v6 }
  0x92   : >> { %3118 = vmatmul.mubr.bf16.vlgmr.msra.gmra.mrb[0].mxu1 %v3872_v49  ;;  %v879_v49 = vsel %vm229_vm0, %v874_v43, %v4018_v44 }
  0x93   : >> { %3122 = vmatpush3.bf16.msra.mxu1 %v3510_v5  ;;  %3278 = vmatmul.mubr.bf16.vlgmr.msra.gmra.mrb[0].mxu0 %v3874_v51  ;;  %v3538_v51 = vld [vmem:[%s4224_s1 + $0x150] sm:$0xff]   ;;  %v4078_v5 = vcombine.low %v3987_v25, %v2596_v62  ;;  %v3557_v25 = vld [vmem:[%s4224_s1 + $0x398] sm:$0xff]  }
  0x94   : >> { %3282 = vmatpush3.bf16.msra.mxu0 %v3511_v6  ;;  %3123 = vmatprep.subr.bf16.mxu1 %v3512_v11  ;;  %v880_v6 = vshrl.u32 %v4000_v32, 16  ;;  %v3572_v62 = vld [vmem:[%s4224_s1 + $0x1d8] sm:$0xff]  }
  0x95   : >> { %3283 = vmatprep.subr.bf16.mxu0 %v3513_v12  ;;  %3137 = vmatprep.mubr.bf16.mxu1 %v3947_v13  ;;  %v1011_v13 = vrot.slane %v4075_v4, 1  ;;  %v1146_v35 = vshll.u32 %v4078_v5, 16 }
  0x96   : >> { %3297 = vmatprep.mubr.bf16.mxu0 %v3951_v14  ;;  %v882_v10 = vor.u32 %v880_v6, %v4018_v44  ;;  %v1012_v14 = vrot.slane %v4078_v5, 1  ;;  %v3579_v6 = vld [vmem:[%s4224_s1 + $0x3f0] sm:$0xff]  }
  0x97   : >> { %3124 = vmatpush3.bf16.msra.mxu1 %v3512_v11  ;;  %v1962_v11 = vshrl.u32 %v4006_v34, 16  ;;  %v1148_v45 = vrot.slane %v1146_v35, 2 }
  0x98   : >> { %3284 = vmatpush3.bf16.msra.mxu0 %v3513_v12  ;;  %3125 = vmatprep.subr.bf16.mxu1 %v3514_v15  ;;  %v3551_v12 = vld [vmem:[%s4224_s1 + $0x380] sm:$0xff]  }
  0x99   : >> { %3285 = vmatprep.subr.bf16.mxu0 %v3515_v16 }
  0x9b   : >> { %3126 = vmatpush3.bf16.msra.mxu1 %v3514_v15  ;;  %v1964_v15 = vor.u32 %v1962_v11, %v4020_v46  ;;  %v2219_v46 = vrot.slane %v2217_v36, 1 }
  0x9c   : >> { %3286 = vmatpush3.bf16.msra.mxu0 %v3515_v16  ;;  %3127 = vmatprep.subr.bf16.mxu1 %v3516_v17  ;;  %v2093_v16 = vrot.slane %v4082_v7, 1  ;;  %v3580_v7 = vld [vmem:[%s4224_s1 + $0x1f8] sm:$0xff]  }
  0x9d   : >> { %3287 = vmatprep.subr.bf16.mxu0 %v3517_v19 }
  0x9f   : >> { %3128 = vmatpush3.bf16.msra.mxu1 %v3516_v17  ;;  %v2094_v17 = vrot.slane %v4085_v9, 1  ;;  %v3581_v9 = vld [vmem:[%s4224_s1 + $0x3f8] sm:$0xff]  }
  0xa0   : >> { %3288 = vmatpush3.bf16.msra.mxu0 %v3517_v19  ;;  %3129 = vmatprep.subr.bf16.mxu1 %v3518_v18  ;;  %v3552_v19 = vld [vmem:[%s4224_s1 + $0x188] sm:$0xff]  }
  0xa1   : >> { %3289 = vmatprep.subr.bf16.mxu0 %v3519_v20 }
  0xa3   : >> { %3130 = vmatpush3.bf16.msra.mxu1 %v3518_v18  ;;  %v3553_v18 = vld [vmem:[%s4224_s1 + $0x388] sm:$0xff]  }
  0xa4   : >> { %3290 = vmatpush3.bf16.msra.mxu0 %v3519_v20  ;;  %3131 = vmatprep.subr.bf16.mxu1 %v3520_v21  ;;  %v1013_v20 = vsel %vm468_vm1, %v1011_v13, %v1012_v14 }
  0xa5   : >> { %3291 = vmatprep.subr.bf16.mxu0 %v3521_v22 }
  0xa7   : >> { %3132 = vmatpush3.bf16.msra.mxu1 %v3520_v21  ;;  %v2095_v21 = vsel %vm468_vm1, %v2093_v16, %v2094_v17 }
  0xa8   : >> { %3292 = vmatpush3.bf16.msra.mxu0 %v3521_v22  ;;  %3133 = vmatprep.subr.bf16.mxu1 %v3522_v23  ;;  %v3554_v22 = vld [vmem:[%s4224_s1 + $0x190] sm:$0xff]  }
  0xa9   : >> { %3293 = vmatprep.subr.bf16.mxu0 %v3523_v24 }
  0xab   : >> { %3134 = vmatpush3.bf16.msra.mxu1 %v3522_v23  ;;  %v3555_v23 = vld [vmem:[%s4224_s1 + $0x390] sm:$0xff]  }
  0xac   : >> { %3294 = vmatpush3.bf16.msra.mxu0 %v3523_v24  ;;  %3135 = vmatprep.subr.bf16.mxu1 %v3524_v31  ;;  %v3556_v24 = vld [vmem:[%s4224_s1 + $0x198] sm:$0xff]  }
  0xad   : >> { %3295 = vmatprep.subr.bf16.mxu0 %v3525_v33 }
  0xaf   : >> { %3136 = vmatpush3.bf16.msra.mxu1 %v3524_v31  ;;  %v3563_v31 = vld [vmem:[%s4224_s1 + $0x3b0] sm:$0xff]  }
  0xb0   : >> { %3296 = vmatpush3.bf16.msra.mxu0 %v3525_v33  ;;  %3141 = vmatprep.subr.bf16.mxu1 %v3528_v41  ;;  %v1138_v33 = vshll.u32 %v4075_v4, 16 }
  0xb1   : >> { %3301 = vmatprep.subr.bf16.mxu0 %v3531_v42 }
  0xb2   : >> { %3138 = vmatmul.mubr.bf16.vlgmr.msra.gmra.mrb[0].mxu1 %v4000_v32  ;;  %v1135_v32 = vshrl.u32 %v4075_v4, 16  ;;  %v1140_v43 = vrot.slane %v1138_v33, 2  ;;  %v3577_v4 = vld [vmem:[%s4224_s1 + $0x3e8] sm:$0xff]  }
  0xb3   : >> { %3142 = vmatpush3.bf16.msra.mxu1 %v3528_v41  ;;  %3298 = vmatmul.mubr.bf16.vlgmr.msra.gmra.mrb[0].mxu0 %v4006_v34  ;;  %v1143_v34 = vshrl.u32 %v4078_v5, 16  ;;  %v3565_v41 = vld [vmem:[%s4224_s1 + $0x3b8] sm:$0xff]   ;;  %v3578_v5 = vld [vmem:[%s4224_s1 + $0x1f0] sm:$0xff]  }
  0xb4   : >> { %3302 = vmatpush3.bf16.msra.mxu0 %v3531_v42  ;;  %3143 = vmatprep.subr.bf16.mxu1 %v3536_v47  ;;  %v1137_v42 = vrot.slane %v1135_v32, 1 }
  0xb5   : >> { %3303 = vmatprep.subr.bf16.mxu0 %v3537_v48  ;;  %3157 = vmatprep.mubr.bf16.mxu1 %v879_v49  ;;  %v1145_v44 = vrot.slane %v1143_v34, 1  ;;  %v2230_v49 = vrot.slane %v2228_v39, 2 }
  0xb6   : >> { %3317 = vmatprep.mubr.bf16.mxu0 %v1961_v50  ;;  %v3566_v50 = vld [vmem:[%s4224_s1 + $0x1c0] sm:$0xff]  }
  0xb7   : >> { %3144 = vmatpush3.bf16.msra.mxu1 %v3536_v47  ;;  %v2222_v47 = vrot.slane %v2220_v37, 2 }
  0xb8   : >> { %3304 = vmatpush3.bf16.msra.mxu0 %v3537_v48  ;;  %3145 = vmatprep.subr.bf16.mxu1 %v3538_v51  ;;  %v2227_v48 = vrot.slane %v2225_v38, 1 }
  0xb9   : >> { %3305 = vmatprep.subr.bf16.mxu0 %v3539_v52 }
  0xbb   : >> { %3146 = vmatpush3.bf16.msra.mxu1 %v3538_v51  ;;  %v3567_v51 = vld [vmem:[%s4224_s1 + $0x3c0] sm:$0xff]  }
  0xbc   : >> { %3306 = vmatpush3.bf16.msra.mxu0 %v3539_v52  ;;  %3147 = vmatprep.subr.bf16.mxu1 %v3540_v53  ;;  %v1141_v52 = vor.u32 %v1140_v43, %v1137_v42 }
  0xbd   : >> { %3307 = vmatprep.subr.bf16.mxu0 %v3541_v54 }
  0xbf   : >> { %3148 = vmatpush3.bf16.msra.mxu1 %v3540_v53  ;;  %v1149_v53 = vor.u32 %v1148_v45, %v1145_v44 }
  0xc0   : >> { %3308 = vmatpush3.bf16.msra.mxu0 %v3541_v54  ;;  %3149 = vmatprep.subr.bf16.mxu1 %v3542_v55  ;;  %v2223_v54 = vor.u32 %v2222_v47, %v2219_v46 }
  0xc1   : >> { %3309 = vmatprep.subr.bf16.mxu0 %v3543_v56 }
  0xc3   : >> { %3150 = vmatpush3.bf16.msra.mxu1 %v3542_v55  ;;  %v2231_v55 = vor.u32 %v2230_v49, %v2227_v48 }
  0xc4   : >> { %3310 = vmatpush3.bf16.msra.mxu0 %v3543_v56  ;;  %3151 = vmatprep.subr.bf16.mxu1 %v3544_v57  ;;  %v3568_v56 = vld [vmem:[%s4224_s1 + $0x1c8] sm:$0xff]  }
  0xc5   : >> { %3311 = vmatprep.subr.bf16.mxu0 %v3545_v58 }
  0xc7   : >> { %3152 = vmatpush3.bf16.msra.mxu1 %v3544_v57  ;;  %v3569_v57 = vld [vmem:[%s4224_s1 + $0x3c8] sm:$0xff]  }
  0xc8   : >> { %3312 = vmatpush3.bf16.msra.mxu0 %v3545_v58  ;;  %3153 = vmatprep.subr.bf16.mxu1 %v3546_v59  ;;  %v1150_v58 = vsel %vm592_vm2, %v1141_v52, %v1149_v53 }
  0xc9   : >> { %3313 = vmatprep.subr.bf16.mxu0 %v3547_v60 }
  0xcb   : >> { %3154 = vmatpush3.bf16.msra.mxu1 %v3546_v59  ;;  %v2232_v59 = vsel %vm592_vm2, %v2223_v54, %v2231_v55 }
  0xcc   : >> { %3314 = vmatpush3.bf16.msra.mxu0 %v3547_v60  ;;  %3155 = vmatprep.subr.bf16.mxu1 %v3548_v2  ;;  %v3570_v60 = vld [vmem:[%s4224_s1 + $0x1d0] sm:$0xff]  }
  0xcd   : >> { %3315 = vmatprep.subr.bf16.mxu0 %v3549_v3 }
  0xcf   : >> { %3156 = vmatpush3.bf16.msra.mxu1 %v3548_v2  ;;  %v3575_v2 = vld [vmem:[%s4224_s1 + $0x3e0] sm:$0xff]  }
  0xd0   : >> { %3316 = vmatpush3.bf16.msra.mxu0 %v3549_v3  ;;  %3161 = vmatprep.subr.bf16.mxu1 %v3550_v8  ;;  %v3576_v3 = vld [vmem:[%s4224_s1 + $0x1e8] sm:$0xff]  }
  0xd1   : >> { %3321 = vmatprep.subr.bf16.mxu0 %v3551_v12 }
  0xd2   : >> { %3158 = vmatmul.mubr.bf16.vlgmr.msra.gmra.mrb[0].mxu1 %v882_v10 }
  0xd3   : >> { %3162 = vmatpush3.bf16.msra.mxu1 %v3550_v8  ;;  %3318 = vmatmul.mubr.bf16.vlgmr.msra.gmra.mrb[0].mxu0 %v1964_v15 }
  0xd4   : >> { %3322 = vmatpush3.bf16.msra.mxu0 %v3551_v12  ;;  %3163 = vmatprep.subr.bf16.mxu1 %v3552_v19 }
  0xd5   : >> { %3323 = vmatprep.subr.bf16.mxu0 %v3553_v18  ;;  %3177 = vmatprep.mubr.bf16.mxu1 %v1013_v20 }
  0xd6   : >> { %3337 = vmatprep.mubr.bf16.mxu0 %v2095_v21 }
  0xd7   : >> { %3164 = vmatpush3.bf16.msra.mxu1 %v3552_v19 }
  0xd8   : >> { %3324 = vmatpush3.bf16.msra.mxu0 %v3553_v18  ;;  %3165 = vmatprep.subr.bf16.mxu1 %v3554_v22 }
  0xd9   : >> { %3325 = vmatprep.subr.bf16.mxu0 %v3555_v23 }
  0xdb   : >> { %3166 = vmatpush3.bf16.msra.mxu1 %v3554_v22 }
  0xdc   : >> { %3326 = vmatpush3.bf16.msra.mxu0 %v3555_v23  ;;  %3167 = vmatprep.subr.bf16.mxu1 %v3556_v24 }
  0xdd   : >> { %3327 = vmatprep.subr.bf16.mxu0 %v3557_v25 }
  0xdf   : >> { %3168 = vmatpush3.bf16.msra.mxu1 %v3556_v24 }
  0xe0   : >> { %3328 = vmatpush3.bf16.msra.mxu0 %v3557_v25  ;;  %3169 = vmatprep.subr.bf16.mxu1 %v3558_v26  ;;  %v2370_v25 = vld [vmem:[%s2363_s26 + $0xc] sm:$0x7] }
  0xe1   : >> { %3329 = vmatprep.subr.bf16.mxu0 %v3559_v27 }
  0xe3   : >> { %3170 = vmatpush3.bf16.msra.mxu1 %v3558_v26 }
  0xe4   : >> { %3330 = vmatpush3.bf16.msra.mxu0 %v3559_v27  ;;  %3171 = vmatprep.subr.bf16.mxu1 %v3560_v28 }
  0xe5   : >> { %3331 = vmatprep.subr.bf16.mxu0 %v3561_v29 }
  0xe7   : >> { %3172 = vmatpush3.bf16.msra.mxu1 %v3560_v28 }
  0xe8   : >> { %3332 = vmatpush3.bf16.msra.mxu0 %v3561_v29  ;;  %3173 = vmatprep.subr.bf16.mxu1 %v3562_v30 }
  0xe9   : >> { %3333 = vmatprep.subr.bf16.mxu0 %v3563_v31 }
  0xeb   : >> { %3174 = vmatpush3.bf16.msra.mxu1 %v3562_v30 }
  0xec   : >> { %3334 = vmatpush3.bf16.msra.mxu0 %v3563_v31  ;;  %3175 = vmatprep.subr.bf16.mxu1 %v3564_v40 }
  0xed   : >> { %3335 = vmatprep.subr.bf16.mxu0 %v3565_v41 }
  0xef   : >> { %3176 = vmatpush3.bf16.msra.mxu1 %v3564_v40 }
  0xf0   : >> { %3336 = vmatpush3.bf16.msra.mxu0 %v3565_v41  ;;  %3181 = vmatprep.subr.bf16.mxu1 %v3566_v50 }
  0xf1   : >> { %3341 = vmatprep.subr.bf16.mxu0 %v3567_v51 }
  0xf2   : >> { %3178 = vmatmul.mubr.bf16.vlgmr.msra.gmra.mrb[0].mxu1 %v1012_v14 }
  0xf3   : >> { %3182 = vmatpush3.bf16.msra.mxu1 %v3566_v50  ;;  %3338 = vmatmul.mubr.bf16.vlgmr.msra.gmra.mrb[0].mxu0 %v2094_v17 }
  0xf4   : >> { %3342 = vmatpush3.bf16.msra.mxu0 %v3567_v51  ;;  %3183 = vmatprep.subr.bf16.mxu1 %v3568_v56 }
  0xf5   : >> { %3343 = vmatprep.subr.bf16.mxu0 %v3569_v57  ;;  %3197 = vmatprep.mubr.bf16.mxu1 %v1150_v58 }
  0xf6   : >> { %3357 = vmatprep.mubr.bf16.mxu0 %v2232_v59 }
  0xf7   : >> { %3184 = vmatpush3.bf16.msra.mxu1 %v3568_v56 }
  0xf8   : >> { %3344 = vmatpush3.bf16.msra.mxu0 %v3569_v57  ;;  %3185 = vmatprep.subr.bf16.mxu1 %v3570_v60 }
  0xf9   : >> { %3345 = vmatprep.subr.bf16.mxu0 %v3571_v61 }
  0xfb   : >> { %3186 = vmatpush3.bf16.msra.mxu1 %v3570_v60 }
  0xfc   : >> { %3346 = vmatpush3.bf16.msra.mxu0 %v3571_v61  ;;  %3187 = vmatprep.subr.bf16.mxu1 %v3572_v62 }
  0xfd   : >> { %3347 = vmatprep.subr.bf16.mxu0 %v3573_v63 }
  0xff   : >> { %3188 = vmatpush3.bf16.msra.mxu1 %v3572_v62 }
 0x100   : >> { %3348 = vmatpush3.bf16.msra.mxu0 %v3573_v63  ;;  %3189 = vmatprep.subr.bf16.mxu1 %v3574_v1 }
 0x101   : >> { %3349 = vmatprep.subr.bf16.mxu0 %v3575_v2 }
 0x103   : >> { %3190 = vmatpush3.bf16.msra.mxu1 %v3574_v1 }
 0x104   : >> { %3350 = vmatpush3.bf16.msra.mxu0 %v3575_v2  ;;  %3191 = vmatprep.subr.bf16.mxu1 %v3576_v3 }
 0x105   : >> { %3351 = vmatprep.subr.bf16.mxu0 %v3577_v4 }
 0x107   : >> { %3192 = vmatpush3.bf16.msra.mxu1 %v3576_v3 }
 0x108   : >> { %3352 = vmatpush3.bf16.msra.mxu0 %v3577_v4  ;;  %3193 = vmatprep.subr.bf16.mxu1 %v3578_v5 }
 0x109   : >> { %3353 = vmatprep.subr.bf16.mxu0 %v3579_v6 }
 0x10b   : >> { %3194 = vmatpush3.bf16.msra.mxu1 %v3578_v5 }
 0x10c   : >> { %3354 = vmatpush3.bf16.msra.mxu0 %v3579_v6  ;;  %3195 = vmatprep.subr.bf16.mxu1 %v3580_v7 }
 0x10d   : >> { %3355 = vmatprep.subr.bf16.mxu0 %v3581_v9 }
 0x10f   : >> { %3196 = vmatpush3.bf16.msra.mxu1 %v3580_v7 }
 0x110   : >> { %3356 = vmatpush3.bf16.msra.mxu0 %v3581_v9 }
 0x112   : >> { %3198 = vmatmul.mubr.bf16.vlgmr.msra.gmra.mrb[0].mxu1 %v1149_v53 }
 0x113   : >> { %3358 = vmatmul.mubr.bf16.vlgmr.msra.gmra.mrb[0].mxu0 %v2231_v55 }
 0x1e5   : >> { %v3199_v11 = vpop.f32.mrb[0].mxu1 }
 0x1e6   : >> { %v3359_v8 = vpop.f32.mrb[0].mxu0  ;;  %v1235_v12 = vpop.f32.mrb[1].mxu1 }
 0x1e7   : >> { %v3361_v10 = vadd.f32 %v3359_v8, %v3199_v11  ;;  %v2317_v13 = vpop.f32.mrb[1].mxu0  ;;  %v3200_v14 = vpop.f32.mrb[2].mxu1 }
 0x1e8   : >> { %v3362_v15 = vadd.f32 %v2317_v13, %v1235_v12  ;;  %v3360_v16 = vpop.f32.mrb[2].mxu0  ;;  %v1238_v17 = vpop.f32.mrb[3].mxu1 }
 0x1e9   : >> { %v2344_v19 = vadd.f32 %v3361_v10, %v3629_v0  ;;  %v3363_v18 = vadd.f32 %v3360_v16, %v3200_v14  ;;  %v2320_v20 = vpop.f32.mrb[3].mxu0 }
 0x1ea   : >> { %v3364_v21 = vadd.f32 %v2320_v20, %v1238_v17  ;;  %v2342_v24 = vadd.f32 %v3362_v15, %v3629_v0  ;;  %177 = sbr.rel (!%p175_p4) target bundleno = 17 (0x11), region = 89 }
 0x1eb   : >> { %v2873_v22 = vpack.c.bf16 %v2344_v19, %v2344_v19  ;;  %v2345_v23 = vadd.f32 %v3363_v18, %v3629_v0 }
 0x1ec   : >> { %v2343_v26 = vadd.f32 %v3364_v21, %v3629_v0 }
 0x1ed   : >> { %2366 = vst [vmem:[%s2363_s26 + $0x8] sm:$0xf] %v2873_v22  ;;  %v2874_v27 = vpack.c.bf16 %v2345_v23, %v2345_v23 }
 0x1ee   : >> { %v2879_v28 = vpack.c.bf16 %v2343_v26, %v2342_v24 }
 0x1ef   : >> { %v2371_v29 = vsel %vm2369_vm5, %v2874_v27, %v2370_v25 }
 0x1f0   : >> { %2372 = vst [vmem:[%s2363_s26 + $0xc] sm:$0x7] %v2371_v29  ;;  %2880 = vst [vmem:[%s2363_s26] sm:$0xff] %v2879_v28  }
 0x1f1 PF: > { %s13_s12 = sadd.s32 1, %s3592_s12  }
 0x1f2   : > { %p10_p5 = scmp.ge.s32.totalorder %s13_s12, 4  }
 0x1f4   :  { %12 = sbr.rel (!%p10_p5) target bundleno = 1 (0x1), region = 100 }

// kernel: cnn_3layers_forward.4
= control target key start
LH: loop header
LB: loop body
LE: loop exit
PB: predicated region body
PF: predicated region fallthrough
CT: control target
= control target key end

     0   :  { %s4807_s12 = smov 0   ;;  %s5661_s0 = inlined_call_operand.vmem [shape: bf16[2,15,15,256], index: 0, kind: input, shape index: {}]   ;;  %s5662_s1 = inlined_call_operand.vmem [shape: bf16[16,256,128], index: 1, kind: input, shape index: {}]   ;;  %s5663_s2 = inlined_call_operand.vmem [shape: f32[1,128], index: 2, kind: input, shape index: {}]   ;;  %s5664_s3 = inlined_call_operand.vmem [shape: bf16[2,12,12,128], index: 3, kind: output, shape index: {}]  }
   0x1 LB: > { %s3307_s13 = sadd.s32 4294967295, %s4781_s12   ;;  %p3311_p0 = scmp.ge.s32.totalorder %s4781_s12, 1  ;;  %s4781_s12 = sphi %s4807_s12, %s13_s12  }
   0x2   : > { %p137_p1 = scmp.lt.s32.totalorder %s4781_s12, 3 }
   0x4   : > { %p138_p2 = pnand %p3311_p0, %p137_p1 }
   0x5   : > { %p161_p3 = scmp.lt.s32.totalorder (!%p138_p2), %s3307_s13, 1  ;;  %v4818_v0 = vld [vmem:[%s5663_s2] ss:$0 sm:$0xff] (!%p138_p2)  ;;  %s4830_s24 = smov (!%p138_p2), 0  }
   0x6   : > { %141 = sbr.rel (%p138_p2) target bundleno = 502 (0x1f6), region = 32 }
   0xd   : > { %s5666_s13 = smov (!%p161_p3, %s3307_s13), 1 }
   0xe   : > { %s4465_s16 = smul.u32 240, %s5666_s13 }
   0xf   : > { %s4466_s17 = smul.u32 96, %s5666_s13 }
  0x10   : > { %s4823_s20 = scalar_lea.vmem %s5661_s0, %s4465_s16 }
  0x11   : > { %s4828_s23 = scalar_lea.vmem %s5664_s3, %s4466_s17 }
  0x12 LB: >> { %v4483_v1 = vld [vmem:[%s5662_s1 + $0xc0] sm:$0xff]   ;;  %v4487_v5 = vld [vmem:[%s5662_s1 + $0xc8] sm:$0xff]   ;;  %v4491_v9 = vld [vmem:[%s5662_s1 + $0xd0] sm:$0xff]   ;;  %s4109_s6 = sshll.u32 %s4785_s24, 4  ;;  %s4785_s24 = sphi %s4830_s24, %s178_s24  }
  0x13   : >> { %v4484_v2 = vld [vmem:[%s5662_s1 + $0x40] sm:$0xff]   ;;  %4113 = vmatprep.subr.bf16.mxu0 %v4483_v1  ;;  %v4488_v6 = vld [vmem:[%s5662_s1 + $0x48] sm:$0xff]   ;;  %v4492_v10 = vld [vmem:[%s5662_s1 + $0x50] sm:$0xff]   ;;  %s4927_s14 = scalar_lea.vmem %s4823_s20, %s4109_s6 }
  0x14   : >> { %v4485_v3 = vld [vmem:[%s5662_s1 + $0x80] sm:$0xff]   ;;  %4135 = vmatprep.subr.bf16.mxu1 %v4484_v2  ;;  %v4489_v7 = vld [vmem:[%s5662_s1 + $0x88] sm:$0xff]   ;;  %v4493_v11 = vld [vmem:[%s5662_s1 + $0x90] sm:$0xff]  }
  0x15   : >> { %v4486_v4 = vld [vmem:[%s5662_s1] sm:$0xff]   ;;  %4114 = vmatpush3.bf16.msra.mxu0 %v4485_v3  ;;  %v4490_v8 = vld [vmem:[%s5662_s1 + $0x8] sm:$0xff]   ;;  %v4494_v12 = vld [vmem:[%s5662_s1 + $0x10] sm:$0xff]  }
  0x16   : >> { %4136 = vmatpush3.bf16.msra.mxu1 %v4486_v4  ;;  %4115 = vmatprep.subr.bf16.mxu0 %v4487_v5  ;;  %v4495_v13 = vld [vmem:[%s5662_s1 + $0xd8] sm:$0xff]   ;;  %v4499_v17 = vld [vmem:[%s5662_s1 + $0xe0] sm:$0xff]   ;;  %v4503_v21 = vld [vmem:[%s5662_s1 + $0xe8] sm:$0xff]  }
  0x17   : >> { %4137 = vmatprep.subr.bf16.mxu1 %v4488_v6  ;;  %v4496_v14 = vld [vmem:[%s5662_s1 + $0x58] sm:$0xff]   ;;  %v4500_v18 = vld [vmem:[%s5662_s1 + $0x60] sm:$0xff]   ;;  %v4504_v22 = vld [vmem:[%s5662_s1 + $0x68] sm:$0xff]  }
  0x18   : >> { %v4497_v15 = vld [vmem:[%s5662_s1 + $0x98] sm:$0xff]   ;;  %v4501_v19 = vld [vmem:[%s5662_s1 + $0xa0] sm:$0xff]   ;;  %v4505_v23 = vld [vmem:[%s5662_s1 + $0xa8] sm:$0xff]  }
  0x19   : >> { %4116 = vmatpush3.bf16.msra.mxu0 %v4489_v7  ;;  %v4498_v16 = vld [vmem:[%s5662_s1 + $0x18] sm:$0xff]   ;;  %v4502_v20 = vld [vmem:[%s5662_s1 + $0x20] sm:$0xff]   ;;  %v4506_v24 = vld [vmem:[%s5662_s1 + $0x28] sm:$0xff]  }
  0x1a   : >> { %4138 = vmatpush3.bf16.msra.mxu1 %v4490_v8  ;;  %4117 = vmatprep.subr.bf16.mxu0 %v4491_v9  ;;  %v4507_v25 = vld [vmem:[%s5662_s1 + $0xf0] sm:$0xff]   ;;  %v4511_v29 = vld [vmem:[%s5662_s1 + $0xf8] sm:$0xff]   ;;  %v182_v33 = vld [vmem:[%s4927_s14] sm:$0xff] }
  0x1b   : >> { %4139 = vmatprep.subr.bf16.mxu1 %v4492_v10  ;;  %v4508_v26 = vld [vmem:[%s5662_s1 + $0x70] sm:$0xff]   ;;  %v4512_v30 = vld [vmem:[%s5662_s1 + $0x78] sm:$0xff]   ;;  %v4937_v34 = vld [vmem:[%s4927_s14 + $0x8] sm:$0x77] }
  0x1c   : >> { %v4509_v27 = vld [vmem:[%s5662_s1 + $0xb0] sm:$0xff]   ;;  %v4513_v31 = vld [vmem:[%s5662_s1 + $0xb8] sm:$0xff]   ;;  %v183_v35 = vld [vmem:[%s4927_s14 + $0x8] sm:$0x33]  ;;  %v3349_v36 = vcombine.high %v182_v33, %v4937_v34  ;;  %v3348_v39 = vcombine.low %v182_v33, %v4937_v34 }
  0x1d   : >> { %4118 = vmatpush3.bf16.msra.mxu0 %v4493_v11  ;;  %v4510_v28 = vld [vmem:[%s5662_s1 + $0x30] sm:$0xff]   ;;  %v4514_v32 = vld [vmem:[%s5662_s1 + $0x38] sm:$0xff]   ;;  %v3366_v37 = vcombine.low %v182_v33, %v183_v35  ;;  %v3367_v38 = vcombine.high %v182_v33, %v183_v35  ;;  %v4519_v40 = vld [vmem:[%s5662_s1 + $0x140] sm:$0xff]  }
  0x1e   : >> { %4140 = vmatpush3.bf16.msra.mxu1 %v4494_v12  ;;  %4119 = vmatprep.subr.bf16.mxu0 %v4495_v13  ;;  %v4520_v41 = vld [vmem:[%s5662_s1 + $0x1c0] sm:$0xff]   ;;  %v266_v42 = vshrl.u32 %v3349_v36, 16  ;;  %v268_v43 = vshll.u32 %v3349_v36, 16  ;;  %v259_v44 = vshrl.u32 %v3348_v39, 16  ;;  %v261_v45 = vshll.u32 %v3348_v39, 16  ;;  %v4524_v52 = vld [vmem:[%s5662_s1 + $0x1c8] sm:$0xff]  }
  0x1f   : >> { %4141 = vmatprep.subr.bf16.mxu1 %v4496_v14  ;;  %546 = vmatprep.mubr.bf16.mxu1 %v3367_v38  ;;  %v4521_v48 = vld [vmem:[%s5662_s1 + $0x100] sm:$0xff]   ;;  %v4523_v53 = vld [vmem:[%s5662_s1 + $0x148] sm:$0xff]   ;;  %v4528_v56 = vld [vmem:[%s5662_s1 + $0x1d0] sm:$0xff]  }
  0x20   : >> { %v270_v46 = vrot.slane %v268_v43, 1  ;;  %v263_v47 = vrot.slane %v261_v45, 1  ;;  %v4522_v49 = vld [vmem:[%s5662_s1 + $0x180] sm:$0xff]   ;;  %v4526_v54 = vld [vmem:[%s5662_s1 + $0x188] sm:$0xff]   ;;  %v4527_v57 = vld [vmem:[%s5662_s1 + $0x150] sm:$0xff]  }
  0x21   : >> { %4120 = vmatpush3.bf16.msra.mxu0 %v4497_v15  ;;  %v4525_v55 = vld [vmem:[%s5662_s1 + $0x108] sm:$0xff]   ;;  %v4530_v58 = vld [vmem:[%s5662_s1 + $0x190] sm:$0xff]   ;;  %v4532_v60 = vld [vmem:[%s5662_s1 + $0x1d8] sm:$0xff]  }
  0x22   : >> { %4142 = vmatpush3.bf16.msra.mxu1 %v4498_v16  ;;  %4121 = vmatprep.subr.bf16.mxu0 %v4499_v17  ;;  %v271_v50 = vor.u32 %v270_v46, %v266_v42  ;;  %v264_v51 = vor.u32 %v263_v47, %v259_v44  ;;  %v4529_v59 = vld [vmem:[%s5662_s1 + $0x110] sm:$0xff]   ;;  %v4531_v61 = vld [vmem:[%s5662_s1 + $0x158] sm:$0xff]   ;;  %v4536_v1 = vld [vmem:[%s5662_s1 + $0x1e0] sm:$0xff]  }
  0x23   : >> { %4143 = vmatprep.subr.bf16.mxu1 %v4500_v18  ;;  %v4534_v62 = vld [vmem:[%s5662_s1 + $0x198] sm:$0xff]   ;;  %v4535_v2 = vld [vmem:[%s5662_s1 + $0x160] sm:$0xff]   ;;  %v4540_v5 = vld [vmem:[%s5662_s1 + $0x1e8] sm:$0xff]  }
  0x24   : >> { %402 = vmatprep.mubr.bf16.mxu0 %v271_v50  ;;  %v4533_v63 = vld [vmem:[%s5662_s1 + $0x118] sm:$0xff]   ;;  %v4538_v3 = vld [vmem:[%s5662_s1 + $0x1a0] sm:$0xff]   ;;  %v4539_v6 = vld [vmem:[%s5662_s1 + $0x168] sm:$0xff]  }
  0x25   : >> { %4122 = vmatpush3.bf16.msra.mxu0 %v4501_v19  ;;  %v4537_v4 = vld [vmem:[%s5662_s1 + $0x120] sm:$0xff]   ;;  %v4542_v7 = vld [vmem:[%s5662_s1 + $0x1a8] sm:$0xff]   ;;  %v4544_v9 = vld [vmem:[%s5662_s1 + $0x1f0] sm:$0xff]  }
  0x26   : >> { %4144 = vmatpush3.bf16.msra.mxu1 %v4502_v20  ;;  %4123 = vmatprep.subr.bf16.mxu0 %v4503_v21  ;;  %v4541_v8 = vld [vmem:[%s5662_s1 + $0x128] sm:$0xff]   ;;  %v4543_v10 = vld [vmem:[%s5662_s1 + $0x170] sm:$0xff]   ;;  %v4548_v13 = vld [vmem:[%s5662_s1 + $0x1f8] sm:$0xff]  }
  0x27   : >> { %4145 = vmatprep.subr.bf16.mxu1 %v4504_v22  ;;  %v4546_v11 = vld [vmem:[%s5662_s1 + $0x1b0] sm:$0xff]   ;;  %v4547_v14 = vld [vmem:[%s5662_s1 + $0x178] sm:$0xff]   ;;  %v555_v16 = vld [vmem:[%s4927_s14] sm:$0xee] }
  0x28   : >> { %v4545_v12 = vld [vmem:[%s5662_s1 + $0x130] sm:$0xff]   ;;  %v4550_v15 = vld [vmem:[%s5662_s1 + $0x1b8] sm:$0xff]   ;;  %v3417_v17 = vcombine.high %v555_v16, %v4937_v34  ;;  %v737_v18 = vld [vmem:[%s4927_s14 + $0x8] sm:$0xff]  ;;  %v3416_v19 = vcombine.low %v555_v16, %v4937_v34 }
  0x29   : >> { %4124 = vmatpush3.bf16.msra.mxu0 %v4505_v23  ;;  %v4549_v20 = vld [vmem:[%s5662_s1 + $0x138] sm:$0xff]   ;;  %v3466_v21 = vcombine.low %v555_v16, %v737_v18  ;;  %v3467_v22 = vcombine.high %v555_v16, %v737_v18  ;;  %v4558_v36 = vld [vmem:[%s5662_s1 + $0x280] sm:$0xff]   ;;  %v4562_v42 = vld [vmem:[%s5662_s1 + $0x288] sm:$0xff]  }
  0x2a   : >> { %4146 = vmatpush3.bf16.msra.mxu1 %v4506_v24  ;;  %4125 = vmatprep.subr.bf16.mxu0 %v4507_v25  ;;  %v595_v23 = vrot.slane %v3417_v17, 1  ;;  %v4555_v24 = vld [vmem:[%s5662_s1 + $0x240] sm:$0xff]   ;;  %v4563_v43 = vld [vmem:[%s5662_s1 + $0x250] sm:$0xff]   ;;  %v4567_v47 = vld [vmem:[%s5662_s1 + $0x258] sm:$0xff]  }
  0x2b   : >> { %4147 = vmatprep.subr.bf16.mxu1 %v4508_v26  ;;  %v4556_v25 = vld [vmem:[%s5662_s1 + $0x2c0] sm:$0xff]   ;;  %v785_v26 = vshrl.u32 %v3467_v22, 16  ;;  %v4564_v44 = vld [vmem:[%s5662_s1 + $0x2d0] sm:$0xff]   ;;  %v4570_v50 = vld [vmem:[%s5662_s1 + $0x298] sm:$0xff]  }
  0x2c   : >> { %v4565_v45 = vld [vmem:[%s5662_s1 + $0x210] sm:$0xff]   ;;  %v4593_v17 = vld [vmem:[%s5662_s1 + $0x300] sm:$0xff]  }
  0x2d   : >> { %4126 = vmatpush3.bf16.msra.mxu0 %v4509_v27  ;;  %v788_v27 = vshll.u32 %v3467_v22, 16  ;;  %v4566_v46 = vld [vmem:[%s5662_s1 + $0x290] sm:$0xff]  }
  0x2e   : >> { %4148 = vmatpush3.bf16.msra.mxu1 %v4510_v28  ;;  %4127 = vmatprep.subr.bf16.mxu0 %v4511_v29  ;;  %v777_v28 = vshrl.u32 %v3466_v21, 16  ;;  %v780_v29 = vshll.u32 %v3466_v21, 16  ;;  %v4595_v21 = vld [vmem:[%s5662_s1 + $0x348] sm:$0xff]  }
  0x2f   : >> { %4149 = vmatprep.subr.bf16.mxu1 %v4512_v30  ;;  %v594_v30 = vrot.slane %v3416_v19, 1  ;;  %v790_v33 = vrot.slane %v788_v27, 2  ;;  %v4599_v27 = vld [vmem:[%s5662_s1 + $0x350] sm:$0xff]  }
  0x30   : >> { %v779_v34 = vrot.slane %v777_v28, 1  ;;  %v782_v35 = vrot.slane %v780_v29, 2  ;;  %v4600_v28 = vld [vmem:[%s5662_s1 + $0x3d0] sm:$0xff]  }
  0x31   : >> { %4128 = vmatpush3.bf16.msra.mxu0 %v4513_v31  ;;  %v4557_v31 = vld [vmem:[%s5662_s1 + $0x200] sm:$0xff]   ;;  %v4601_v29 = vld [vmem:[%s5662_s1 + $0x310] sm:$0xff]  }
  0x32   : >> { %4150 = vmatpush3.bf16.msra.mxu1 %v4514_v32  ;;  %4157 = vmatprep.subr.bf16.mxu0 %v4519_v40  ;;  %v787_v32 = vrot.slane %v785_v26, 1  ;;  %v783_v39 = vor.u32 %v782_v35, %v779_v34  ;;  %v4560_v40 = vld [vmem:[%s5662_s1 + $0x2c8] sm:$0xff]   ;;  %v4606_v34 = vld [vmem:[%s5662_s1 + $0x398] sm:$0xff]   ;;  %v4607_v35 = vld [vmem:[%s5662_s1 + $0x360] sm:$0xff]  }
  0x33   : >> { %4179 = vmatprep.subr.bf16.mxu1 %v4520_v41  ;;  %v4561_v41 = vld [vmem:[%s5662_s1 + $0x208] sm:$0xff]  }
  0x34   : >> { %403 = vmatmul.mubr.bf16.vlgmr.msra.gmra.mrb[0].mxu0 %v264_v51  ;;  %v791_v38 = vor.u32 %v790_v33, %v787_v32  ;;  %v4571_v51 = vld [vmem:[%s5662_s1 + $0x260] sm:$0xff]   ;;  %v4598_v26 = vld [vmem:[%s5662_s1 + $0x388] sm:$0xff]   ;;  %v4604_v32 = vld [vmem:[%s5662_s1 + $0x3d8] sm:$0xff]  }
  0x35   : >> { %547 = vmatmul.mubr.bf16.vlgmr.msra.gmra.mrb[0].mxu1 %v3366_v37  ;;  %4158 = vmatpush3.bf16.msra.mxu0 %v4521_v48  ;;  %v4559_v37 = vld [vmem:[%s5662_s1 + $0x248] sm:$0xff]   ;;  %v4568_v48 = vld [vmem:[%s5662_s1 + $0x2d8] sm:$0xff]  }
  0x36   : >> { %4180 = vmatpush3.bf16.msra.mxu1 %v4522_v49  ;;  %4159 = vmatprep.subr.bf16.mxu0 %v4523_v53  ;;  %v4569_v49 = vld [vmem:[%s5662_s1 + $0x218] sm:$0xff]   ;;  %v4573_v53 = vld [vmem:[%s5662_s1 + $0x220] sm:$0xff]  }
  0x37   : >> { %4181 = vmatprep.subr.bf16.mxu1 %v4524_v52  ;;  %726 = vmatprep.mubr.bf16.mxu0 %v595_v23  ;;  %v4572_v52 = vld [vmem:[%s5662_s1 + $0x2e0] sm:$0xff]   ;;  %v4605_v33 = vld [vmem:[%s5662_s1 + $0x318] sm:$0xff]  }
  0x38   : >> { %922 = vmatprep.mubr.bf16.mxu1 %v791_v38  ;;  %v4610_v38 = vld [vmem:[%s5662_s1 + $0x3a0] sm:$0xff]  }
  0x39   : >> { %4160 = vmatpush3.bf16.msra.mxu0 %v4525_v55  ;;  %v4575_v55 = vld [vmem:[%s5662_s1 + $0x268] sm:$0xff]  }
  0x3a   : >> { %4182 = vmatpush3.bf16.msra.mxu1 %v4526_v54  ;;  %4161 = vmatprep.subr.bf16.mxu0 %v4527_v57  ;;  %v4574_v54 = vld [vmem:[%s5662_s1 + $0x2a0] sm:$0xff]   ;;  %v4577_v57 = vld [vmem:[%s5662_s1 + $0x228] sm:$0xff]  }
  0x3b   : >> { %4183 = vmatprep.subr.bf16.mxu1 %v4528_v56  ;;  %v4576_v56 = vld [vmem:[%s5662_s1 + $0x2e8] sm:$0xff]  }
  0x3d   : >> { %4162 = vmatpush3.bf16.msra.mxu0 %v4529_v59  ;;  %v4579_v59 = vld [vmem:[%s5662_s1 + $0x270] sm:$0xff]  }
  0x3e   : >> { %4184 = vmatpush3.bf16.msra.mxu1 %v4530_v58  ;;  %4163 = vmatprep.subr.bf16.mxu0 %v4531_v61  ;;  %v4578_v58 = vld [vmem:[%s5662_s1 + $0x2a8] sm:$0xff]   ;;  %v4581_v61 = vld [vmem:[%s5662_s1 + $0x230] sm:$0xff]  }
  0x3f   : >> { %4185 = vmatprep.subr.bf16.mxu1 %v4532_v60  ;;  %v4580_v60 = vld [vmem:[%s5662_s1 + $0x2f0] sm:$0xff]  }
  0x41   : >> { %4164 = vmatpush3.bf16.msra.mxu0 %v4533_v63  ;;  %v4583_v63 = vld [vmem:[%s5662_s1 + $0x278] sm:$0xff]  }
  0x42   : >> { %4186 = vmatpush3.bf16.msra.mxu1 %v4534_v62  ;;  %4165 = vmatprep.subr.bf16.mxu0 %v4535_v2  ;;  %v4582_v62 = vld [vmem:[%s5662_s1 + $0x2b0] sm:$0xff]   ;;  %v4585_v2 = vld [vmem:[%s5662_s1 + $0x238] sm:$0xff]  }
  0x43   : >> { %4187 = vmatprep.subr.bf16.mxu1 %v4536_v1  ;;  %v4584_v1 = vld [vmem:[%s5662_s1 + $0x2f8] sm:$0xff]  }
  0x45   : >> { %4166 = vmatpush3.bf16.msra.mxu0 %v4537_v4  ;;  %v3485_v4 = vld [vmem:[%s4927_s14 + $0x10] sm:$0xff] }
  0x46   : >> { %4188 = vmatpush3.bf16.msra.mxu1 %v4538_v3  ;;  %4167 = vmatprep.subr.bf16.mxu0 %v4539_v6  ;;  %v4586_v3 = vld [vmem:[%s5662_s1 + $0x2b8] sm:$0xff]  }
  0x47   : >> { %4189 = vmatprep.subr.bf16.mxu1 %v4540_v5  ;;  %v3486_v5 = vld [vmem:[%s4927_s14 + $0x18] sm:$0x33] }
  0x48   : >> { %v5141_v6 = vld [vmem:[%s4927_s14 + $0x18] sm:$0x77] }
  0x49   : >> { %4168 = vmatpush3.bf16.msra.mxu0 %v4541_v8  ;;  %v3571_v8 = vcombine.high %v3485_v4, %v5141_v6 }
  0x4a   : >> { %4190 = vmatpush3.bf16.msra.mxu1 %v4542_v7  ;;  %4169 = vmatprep.subr.bf16.mxu0 %v4543_v10  ;;  %v3520_v7 = vcombine.high %v3485_v4, %v3486_v5  ;;  %v4591_v10 = vld [vmem:[%s5662_s1 + $0x340] sm:$0xff]  }
  0x4b   : >> { %4191 = vmatprep.subr.bf16.mxu1 %v4544_v9  ;;  %v3570_v9 = vcombine.low %v3485_v4, %v5141_v6 }
  0x4d   : >> { %4170 = vmatpush3.bf16.msra.mxu0 %v4545_v12  ;;  %v4592_v12 = vld [vmem:[%s5662_s1 + $0x3c0] sm:$0xff]   ;;  %v1163_v16 = vshll.u32 %v3570_v9, 16 }
  0x4e   : >> { %4192 = vmatpush3.bf16.msra.mxu1 %v4546_v11  ;;  %4171 = vmatprep.subr.bf16.mxu0 %v4547_v14  ;;  %v3519_v11 = vcombine.low %v3485_v4, %v3486_v5  ;;  %v1170_v14 = vshll.u32 %v3571_v8, 16  ;;  %v4630_v5 = vld [vmem:[%s5662_s1 + $0x480] sm:$0xff]  }
  0x4f   : >> { %4193 = vmatprep.subr.bf16.mxu1 %v4548_v13  ;;  %v1168_v13 = vshrl.u32 %v3571_v8, 16  ;;  %v1165_v19 = vrot.slane %v1163_v16, 1  ;;  %v4637_v16 = vld [vmem:[%s5662_s1 + $0x410] sm:$0xff]  }
  0x50   : >> { %v1172_v18 = vrot.slane %v1170_v14, 1  ;;  %v4635_v14 = vld [vmem:[%s5662_s1 + $0x450] sm:$0xff]  }
  0x51   : >> { %4172 = vmatpush3.bf16.msra.mxu0 %v4549_v20  ;;  %v4594_v20 = vld [vmem:[%s5662_s1 + $0x380] sm:$0xff]  }
  0x52   : >> { %4194 = vmatpush3.bf16.msra.mxu1 %v4550_v15  ;;  %4201 = vmatprep.subr.bf16.mxu0 %v4555_v24  ;;  %v1161_v15 = vshrl.u32 %v3570_v9, 16  ;;  %v1173_v22 = vor.u32 %v1172_v18, %v1168_v13  ;;  %v4596_v24 = vld [vmem:[%s5662_s1 + $0x3c8] sm:$0xff]   ;;  %v4639_v18 = vld [vmem:[%s5662_s1 + $0x458] sm:$0xff]  }
  0x53   : >> { %4223 = vmatprep.subr.bf16.mxu1 %v4556_v25  ;;  %v4597_v25 = vld [vmem:[%s5662_s1 + $0x308] sm:$0xff]  }
  0x54   : >> { %727 = vmatmul.mubr.bf16.vlgmr.msra.gmra.mrb[4].mxu0 %v594_v30  ;;  %v1166_v23 = vor.u32 %v1165_v19, %v1161_v15  ;;  %v4602_v30 = vld [vmem:[%s5662_s1 + $0x390] sm:$0xff]   ;;  %v4631_v9 = vld [vmem:[%s5662_s1 + $0x448] sm:$0xff]   ;;  %v4640_v19 = vld [vmem:[%s5662_s1 + $0x4d8] sm:$0xff]  }
  0x55   : >> { %4202 = vmatpush3.bf16.msra.mxu0 %v4557_v31  ;;  %923 = vmatmul.mubr.bf16.vlgmr.msra.gmra.mrb[4].mxu1 %v783_v39  ;;  %v4603_v31 = vld [vmem:[%s5662_s1 + $0x358] sm:$0xff]   ;;  %v4611_v39 = vld [vmem:[%s5662_s1 + $0x368] sm:$0xff]   ;;  %v4636_v15 = vld [vmem:[%s5662_s1 + $0x4d0] sm:$0xff]  }
  0x56   : >> { %4203 = vmatprep.subr.bf16.mxu0 %v4559_v37  ;;  %4224 = vmatpush3.bf16.msra.mxu1 %v4558_v36  ;;  %v4608_v36 = vld [vmem:[%s5662_s1 + $0x3e0] sm:$0xff]   ;;  %v4634_v13 = vld [vmem:[%s5662_s1 + $0x488] sm:$0xff]  }
  0x57   : >> { %4225 = vmatprep.subr.bf16.mxu1 %v4560_v40  ;;  %1110 = vmatprep.mubr.bf16.mxu0 %v3520_v7  ;;  %v4609_v37 = vld [vmem:[%s5662_s1 + $0x320] sm:$0xff]   ;;  %v4612_v40 = vld [vmem:[%s5662_s1 + $0x3e8] sm:$0xff]  }
  0x58   : >> { %1304 = vmatprep.mubr.bf16.mxu1 %v1173_v22  ;;  %v4643_v22 = vld [vmem:[%s5662_s1 + $0x460] sm:$0xff]  }
  0x59   : >> { %4204 = vmatpush3.bf16.msra.mxu0 %v4561_v41  ;;  %v4613_v41 = vld [vmem:[%s5662_s1 + $0x328] sm:$0xff]  }
  0x5a   : >> { %4205 = vmatprep.subr.bf16.mxu0 %v4563_v43  ;;  %4226 = vmatpush3.bf16.msra.mxu1 %v4562_v42  ;;  %v4614_v42 = vld [vmem:[%s5662_s1 + $0x3a8] sm:$0xff]   ;;  %v4615_v43 = vld [vmem:[%s5662_s1 + $0x370] sm:$0xff]  }
  0x5b   : >> { %4227 = vmatprep.subr.bf16.mxu1 %v4564_v44  ;;  %v4616_v44 = vld [vmem:[%s5662_s1 + $0x3f0] sm:$0xff]  }
  0x5d   : >> { %4206 = vmatpush3.bf16.msra.mxu0 %v4565_v45  ;;  %v4617_v45 = vld [vmem:[%s5662_s1 + $0x330] sm:$0xff]  }
  0x5e   : >> { %4207 = vmatprep.subr.bf16.mxu0 %v4567_v47  ;;  %4228 = vmatpush3.bf16.msra.mxu1 %v4566_v46  ;;  %v4618_v46 = vld [vmem:[%s5662_s1 + $0x3b0] sm:$0xff]   ;;  %v4619_v47 = vld [vmem:[%s5662_s1 + $0x378] sm:$0xff]  }
  0x5f   : >> { %4229 = vmatprep.subr.bf16.mxu1 %v4568_v48  ;;  %v4620_v48 = vld [vmem:[%s5662_s1 + $0x3f8] sm:$0xff]  }
  0x61   : >> { %4208 = vmatpush3.bf16.msra.mxu0 %v4569_v49  ;;  %v4621_v49 = vld [vmem:[%s5662_s1 + $0x338] sm:$0xff]  }
  0x62   : >> { %4209 = vmatprep.subr.bf16.mxu0 %v4571_v51  ;;  %4230 = vmatpush3.bf16.msra.mxu1 %v4570_v50  ;;  %v4622_v50 = vld [vmem:[%s5662_s1 + $0x3b8] sm:$0xff]   ;;  %v3588_v51 = vld [vmem:[%s4927_s14 + $0x10] sm:$0xee] }
  0x63   : >> { %4231 = vmatprep.subr.bf16.mxu1 %v4572_v52  ;;  %v3639_v52 = vld [vmem:[%s4927_s14 + $0x18] sm:$0xff] }
  0x65   : >> { %4210 = vmatpush3.bf16.msra.mxu0 %v4573_v53  ;;  %v3622_v53 = vcombine.high %v3588_v51, %v5141_v6 }
  0x66   : >> { %4211 = vmatprep.subr.bf16.mxu0 %v4575_v55  ;;  %4232 = vmatpush3.bf16.msra.mxu1 %v4574_v54  ;;  %v3672_v54 = vcombine.low %v3588_v51, %v3639_v52  ;;  %v3673_v55 = vcombine.high %v3588_v51, %v3639_v52 }
  0x67   : >> { %4233 = vmatprep.subr.bf16.mxu1 %v4576_v56  ;;  %v3621_v56 = vcombine.low %v3588_v51, %v5141_v6  ;;  %v4665_v51 = vld [vmem:[%s5662_s1 + $0x500] sm:$0xff]  }
  0x69   : >> { %4212 = vmatpush3.bf16.msra.mxu0 %v4577_v57  ;;  %v4627_v57 = vld [vmem:[%s5662_s1 + $0x440] sm:$0xff]  }
  0x6a   : >> { %4213 = vmatprep.subr.bf16.mxu0 %v4579_v59  ;;  %4234 = vmatpush3.bf16.msra.mxu1 %v4578_v58  ;;  %v4628_v58 = vld [vmem:[%s5662_s1 + $0x4c0] sm:$0xff]   ;;  %v1355_v59 = vrot.slane %v3622_v53, 1 }
  0x6b   : >> { %4235 = vmatprep.subr.bf16.mxu1 %v4580_v60  ;;  %v1545_v60 = vshrl.u32 %v3673_v55, 16 }
  0x6d   : >> { %4214 = vmatpush3.bf16.msra.mxu0 %v4581_v61  ;;  %v1548_v61 = vshll.u32 %v3673_v55, 16  ;;  %v4667_v55 = vld [vmem:[%s5662_s1 + $0x548] sm:$0xff]  }
  0x6e   : >> { %4215 = vmatprep.subr.bf16.mxu0 %v4583_v63  ;;  %4236 = vmatpush3.bf16.msra.mxu1 %v4582_v62  ;;  %v1354_v62 = vrot.slane %v3621_v56, 1  ;;  %v1537_v63 = vshrl.u32 %v3672_v54, 16 }
  0x6f   : >> { %4237 = vmatprep.subr.bf16.mxu1 %v4584_v1  ;;  %v1540_v1 = vshll.u32 %v3672_v54, 16  ;;  %v1550_v4 = vrot.slane %v1548_v61, 2  ;;  %v4666_v54 = vld [vmem:[%s5662_s1 + $0x580] sm:$0xff]   ;;  %v4670_v61 = vld [vmem:[%s5662_s1 + $0x588] sm:$0xff]  }
  0x70   : >> { %v1539_v6 = vrot.slane %v1537_v63, 1  ;;  %v4672_v63 = vld [vmem:[%s5662_s1 + $0x5d0] sm:$0xff]  }
  0x71   : >> { %4216 = vmatpush3.bf16.msra.mxu0 %v4585_v2  ;;  %v4629_v2 = vld [vmem:[%s5662_s1 + $0x400] sm:$0xff]   ;;  %v1542_v7 = vrot.slane %v1540_v1, 2  ;;  %v4675_v1 = vld [vmem:[%s5662_s1 + $0x558] sm:$0xff]  }
  0x72   : >> { %4245 = vmatprep.subr.bf16.mxu0 %v4591_v10  ;;  %4238 = vmatpush3.bf16.msra.mxu1 %v4586_v3  ;;  %v1547_v3 = vrot.slane %v1545_v60, 1  ;;  %v4671_v60 = vld [vmem:[%s5662_s1 + $0x550] sm:$0xff]  }
  0x73   : >> { %4267 = vmatprep.subr.bf16.mxu1 %v4592_v12  ;;  %v1543_v10 = vor.u32 %v1542_v7, %v1539_v6  ;;  %v4633_v12 = vld [vmem:[%s5662_s1 + $0x408] sm:$0xff]   ;;  %v4678_v6 = vld [vmem:[%s5662_s1 + $0x598] sm:$0xff]   ;;  %v4681_v7 = vld [vmem:[%s5662_s1 + $0x520] sm:$0xff]  }
  0x74   : >> { %1111 = vmatmul.mubr.bf16.vlgmr.msra.gmra.mrb[8].mxu0 %v3519_v11  ;;  %v1551_v8 = vor.u32 %v1550_v4, %v1547_v3  ;;  %v4632_v11 = vld [vmem:[%s5662_s1 + $0x4c8] sm:$0xff]   ;;  %v4677_v3 = vld [vmem:[%s5662_s1 + $0x518] sm:$0xff]  }
  0x75   : >> { %4246 = vmatpush3.bf16.msra.mxu0 %v4593_v17  ;;  %1305 = vmatmul.mubr.bf16.vlgmr.msra.gmra.mrb[8].mxu1 %v1166_v23  ;;  %v4638_v17 = vld [vmem:[%s5662_s1 + $0x490] sm:$0xff]   ;;  %v4644_v23 = vld [vmem:[%s5662_s1 + $0x4e0] sm:$0xff]   ;;  %v4676_v4 = vld [vmem:[%s5662_s1 + $0x5d8] sm:$0xff]  }
  0x76   : >> { %4247 = vmatprep.subr.bf16.mxu0 %v4595_v21  ;;  %4268 = vmatpush3.bf16.msra.mxu1 %v4594_v20  ;;  %v4641_v20 = vld [vmem:[%s5662_s1 + $0x418] sm:$0xff]  }
  0x77   : >> { %4269 = vmatprep.subr.bf16.mxu1 %v4596_v24  ;;  %1486 = vmatprep.mubr.bf16.mxu0 %v1355_v59  ;;  %v4642_v21 = vld [vmem:[%s5662_s1 + $0x498] sm:$0xff]   ;;  %v4645_v24 = vld [vmem:[%s5662_s1 + $0x420] sm:$0xff]   ;;  %v4668_v59 = vld [vmem:[%s5662_s1 + $0x5c8] sm:$0xff]  }
  0x78   : >> { %1682 = vmatprep.mubr.bf16.mxu1 %v1551_v8  ;;  %v4680_v8 = vld [vmem:[%s5662_s1 + $0x5e0] sm:$0xff]  }
  0x79   : >> { %4248 = vmatpush3.bf16.msra.mxu0 %v4597_v25  ;;  %v4646_v25 = vld [vmem:[%s5662_s1 + $0x4a0] sm:$0xff]  }
  0x7a   : >> { %4249 = vmatprep.subr.bf16.mxu0 %v4599_v27  ;;  %4270 = vmatpush3.bf16.msra.mxu1 %v4598_v26  ;;  %v4647_v26 = vld [vmem:[%s5662_s1 + $0x468] sm:$0xff]  }
  0x7b   : >> { %4271 = vmatprep.subr.bf16.mxu1 %v4600_v28  ;;  %v4648_v27 = vld [vmem:[%s5662_s1 + $0x4e8] sm:$0xff]  }
  0x7c   : >> { %v4649_v28 = vld [vmem:[%s5662_s1 + $0x428] sm:$0xff]  }
  0x7d   : >> { %4250 = vmatpush3.bf16.msra.mxu0 %v4601_v29  ;;  %v4650_v29 = vld [vmem:[%s5662_s1 + $0x4a8] sm:$0xff]  }
  0x7e   : >> { %4251 = vmatprep.subr.bf16.mxu0 %v4603_v31  ;;  %4272 = vmatpush3.bf16.msra.mxu1 %v4602_v30  ;;  %v4651_v30 = vld [vmem:[%s5662_s1 + $0x470] sm:$0xff]  }
  0x7f   : >> { %4273 = vmatprep.subr.bf16.mxu1 %v4604_v32  ;;  %v4652_v31 = vld [vmem:[%s5662_s1 + $0x4f0] sm:$0xff]  }
  0x80   : >> { %v4653_v32 = vld [vmem:[%s5662_s1 + $0x430] sm:$0xff]  }
  0x81   : >> { %4252 = vmatpush3.bf16.msra.mxu0 %v4605_v33  ;;  %v4654_v33 = vld [vmem:[%s5662_s1 + $0x4b0] sm:$0xff]  }
  0x82   : >> { %4253 = vmatprep.subr.bf16.mxu0 %v4607_v35  ;;  %4274 = vmatpush3.bf16.msra.mxu1 %v4606_v34  ;;  %v4655_v34 = vld [vmem:[%s5662_s1 + $0x478] sm:$0xff]  }
  0x83   : >> { %4275 = vmatprep.subr.bf16.mxu1 %v4608_v36  ;;  %v4656_v35 = vld [vmem:[%s5662_s1 + $0x4f8] sm:$0xff]  }
  0x84   : >> { %v4657_v36 = vld [vmem:[%s5662_s1 + $0x438] sm:$0xff]  }
  0x85   : >> { %4254 = vmatpush3.bf16.msra.mxu0 %v4609_v37  ;;  %v4658_v37 = vld [vmem:[%s5662_s1 + $0x4b8] sm:$0xff]  }
  0x86   : >> { %4255 = vmatprep.subr.bf16.mxu0 %v4611_v39  ;;  %4276 = vmatpush3.bf16.msra.mxu1 %v4610_v38  ;;  %v3691_v38 = vld [vmem:[%s4927_s14 + $0x20] sm:$0xff]  ;;  %v3692_v39 = vld [vmem:[%s4927_s14 + $0x28] sm:$0x33] }
  0x87   : >> { %4277 = vmatprep.subr.bf16.mxu1 %v4612_v40  ;;  %v3725_v40 = vcombine.low %v3691_v38, %v3692_v39 }
  0x89   : >> { %4256 = vmatpush3.bf16.msra.mxu0 %v4613_v41  ;;  %v3726_v41 = vcombine.high %v3691_v38, %v3692_v39 }
  0x8a   : >> { %4257 = vmatprep.subr.bf16.mxu0 %v4615_v43  ;;  %4278 = vmatpush3.bf16.msra.mxu1 %v4614_v42  ;;  %v5344_v42 = vld [vmem:[%s4927_s14 + $0x28] sm:$0x77] }
  0x8b   : >> { %4279 = vmatprep.subr.bf16.mxu1 %v4616_v44  ;;  %v3777_v43 = vcombine.high %v3691_v38, %v5344_v42  ;;  %v3776_v44 = vcombine.low %v3691_v38, %v5344_v42 }
  0x8d   : >> { %4258 = vmatpush3.bf16.msra.mxu0 %v4617_v45  ;;  %v4663_v45 = vld [vmem:[%s5662_s1 + $0x540] sm:$0xff]  }
  0x8e   : >> { %4259 = vmatprep.subr.bf16.mxu0 %v4619_v47  ;;  %4280 = vmatpush3.bf16.msra.mxu1 %v4618_v46  ;;  %v4664_v46 = vld [vmem:[%s5662_s1 + $0x5c0] sm:$0xff]   ;;  %v1928_v47 = vshrl.u32 %v3777_v43, 16 }
  0x8f   : >> { %4281 = vmatprep.subr.bf16.mxu1 %v4620_v48  ;;  %v1930_v48 = vshll.u32 %v3777_v43, 16 }
  0x91   : >> { %4260 = vmatpush3.bf16.msra.mxu0 %v4621_v49  ;;  %v1921_v49 = vshrl.u32 %v3776_v44, 16  ;;  %v1932_v52 = vrot.slane %v1930_v48, 1  ;;  %v4707_v48 = vld [vmem:[%s5662_s1 + $0x650] sm:$0xff]  }
  0x92   : >> { %4289 = vmatprep.subr.bf16.mxu0 %v4627_v57  ;;  %4282 = vmatpush3.bf16.msra.mxu1 %v4622_v50  ;;  %v1923_v50 = vshll.u32 %v3776_v44, 16 }
  0x93   : >> { %4311 = vmatprep.subr.bf16.mxu1 %v4628_v58  ;;  %v1933_v56 = vor.u32 %v1932_v52, %v1928_v47  ;;  %v4669_v58 = vld [vmem:[%s5662_s1 + $0x508] sm:$0xff]   ;;  %v4711_v52 = vld [vmem:[%s5662_s1 + $0x658] sm:$0xff]  }
  0x94   : >> { %1487 = vmatmul.mubr.bf16.vlgmr.msra.gmra.mrb[12].mxu0 %v1354_v62  ;;  %v1925_v53 = vrot.slane %v1923_v50, 1  ;;  %v4673_v62 = vld [vmem:[%s5662_s1 + $0x510] sm:$0xff]   ;;  %v4706_v47 = vld [vmem:[%s5662_s1 + $0x688] sm:$0xff]  }
  0x95   : >> { %4290 = vmatpush3.bf16.msra.mxu0 %v4629_v2  ;;  %1683 = vmatmul.mubr.bf16.vlgmr.msra.gmra.mrb[12].mxu1 %v1543_v10  ;;  %v4674_v2 = vld [vmem:[%s5662_s1 + $0x590] sm:$0xff]   ;;  %v4682_v10 = vld [vmem:[%s5662_s1 + $0x5a0] sm:$0xff]  }
  0x96   : >> { %4291 = vmatprep.subr.bf16.mxu0 %v4631_v9  ;;  %4312 = vmatpush3.bf16.msra.mxu1 %v4630_v5  ;;  %v1926_v57 = vor.u32 %v1925_v53, %v1921_v49  ;;  %v4679_v5 = vld [vmem:[%s5662_s1 + $0x560] sm:$0xff]   ;;  %v4683_v9 = vld [vmem:[%s5662_s1 + $0x568] sm:$0xff]   ;;  %v4708_v49 = vld [vmem:[%s5662_s1 + $0x6d0] sm:$0xff]  }
  0x97   : >> { %4313 = vmatprep.subr.bf16.mxu1 %v4632_v11  ;;  %1870 = vmatprep.mubr.bf16.mxu0 %v3726_v41  ;;  %v4685_v11 = vld [vmem:[%s5662_s1 + $0x528] sm:$0xff]   ;;  %v4702_v41 = vld [vmem:[%s5662_s1 + $0x680] sm:$0xff]   ;;  %v4709_v50 = vld [vmem:[%s5662_s1 + $0x610] sm:$0xff]  }
  0x98   : >> { %2064 = vmatprep.mubr.bf16.mxu1 %v1933_v56  ;;  %v4712_v53 = vld [vmem:[%s5662_s1 + $0x6d8] sm:$0xff]   ;;  %v4715_v56 = vld [vmem:[%s5662_s1 + $0x660] sm:$0xff]  }
  0x99   : >> { %4292 = vmatpush3.bf16.msra.mxu0 %v4633_v12  ;;  %v4684_v12 = vld [vmem:[%s5662_s1 + $0x5e8] sm:$0xff]  }
  0x9a   : >> { %4293 = vmatprep.subr.bf16.mxu0 %v4635_v14  ;;  %4314 = vmatpush3.bf16.msra.mxu1 %v4634_v13  ;;  %v4687_v13 = vld [vmem:[%s5662_s1 + $0x570] sm:$0xff]   ;;  %v4686_v14 = vld [vmem:[%s5662_s1 + $0x5a8] sm:$0xff]  }
  0x9b   : >> { %4315 = vmatprep.subr.bf16.mxu1 %v4636_v15  ;;  %v4689_v15 = vld [vmem:[%s5662_s1 + $0x530] sm:$0xff]  }
  0x9d   : >> { %4294 = vmatpush3.bf16.msra.mxu0 %v4637_v16  ;;  %v4688_v16 = vld [vmem:[%s5662_s1 + $0x5f0] sm:$0xff]  }
  0x9e   : >> { %4295 = vmatprep.subr.bf16.mxu0 %v4639_v18  ;;  %4316 = vmatpush3.bf16.msra.mxu1 %v4638_v17  ;;  %v4691_v17 = vld [vmem:[%s5662_s1 + $0x578] sm:$0xff]   ;;  %v4690_v18 = vld [vmem:[%s5662_s1 + $0x5b0] sm:$0xff]  }
  0x9f   : >> { %4317 = vmatprep.subr.bf16.mxu1 %v4640_v19  ;;  %v4693_v19 = vld [vmem:[%s5662_s1 + $0x538] sm:$0xff]  }
  0xa1   : >> { %4296 = vmatpush3.bf16.msra.mxu0 %v4641_v20  ;;  %v4692_v20 = vld [vmem:[%s5662_s1 + $0x5f8] sm:$0xff]  }
  0xa2   : >> { %4297 = vmatprep.subr.bf16.mxu0 %v4643_v22  ;;  %4318 = vmatpush3.bf16.msra.mxu1 %v4642_v21  ;;  %v3794_v21 = vld [vmem:[%s4927_s14 + $0x20] sm:$0xee]  ;;  %v4694_v22 = vld [vmem:[%s5662_s1 + $0x5b8] sm:$0xff]  }
  0xa3   : >> { %4319 = vmatprep.subr.bf16.mxu1 %v4644_v23  ;;  %v3828_v23 = vcombine.high %v3794_v21, %v5344_v42 }
  0xa5   : >> { %4298 = vmatpush3.bf16.msra.mxu0 %v4645_v24  ;;  %v3845_v24 = vld [vmem:[%s4927_s14 + $0x28] sm:$0xff] }
  0xa6   : >> { %4299 = vmatprep.subr.bf16.mxu0 %v4647_v26  ;;  %4320 = vmatpush3.bf16.msra.mxu1 %v4646_v25  ;;  %v3827_v25 = vcombine.low %v3794_v21, %v5344_v42  ;;  %v3878_v26 = vcombine.low %v3794_v21, %v3845_v24  ;;  %v4703_v42 = vld [vmem:[%s5662_s1 + $0x648] sm:$0xff]  }
  0xa7   : >> { %4321 = vmatprep.subr.bf16.mxu1 %v4648_v27  ;;  %v3879_v27 = vcombine.high %v3794_v21, %v3845_v24 }
  0xa9   : >> { %4300 = vmatpush3.bf16.msra.mxu0 %v4649_v28  ;;  %v4699_v28 = vld [vmem:[%s5662_s1 + $0x640] sm:$0xff]  }
  0xaa   : >> { %4301 = vmatprep.subr.bf16.mxu0 %v4651_v30  ;;  %4322 = vmatpush3.bf16.msra.mxu1 %v4650_v29  ;;  %v2115_v29 = vrot.slane %v3828_v23, 1  ;;  %v2114_v30 = vrot.slane %v3827_v25, 1  ;;  %v4738_v25 = vld [vmem:[%s5662_s1 + $0x780] sm:$0xff]  }
  0xab   : >> { %4323 = vmatprep.subr.bf16.mxu1 %v4652_v31  ;;  %v4700_v31 = vld [vmem:[%s5662_s1 + $0x6c0] sm:$0xff]  }
  0xad   : >> { %4302 = vmatpush3.bf16.msra.mxu0 %v4653_v32  ;;  %v4701_v32 = vld [vmem:[%s5662_s1 + $0x600] sm:$0xff]  }
  0xae   : >> { %4303 = vmatprep.subr.bf16.mxu0 %v4655_v34  ;;  %4324 = vmatpush3.bf16.msra.mxu1 %v4654_v33  ;;  %v2305_v33 = vshrl.u32 %v3879_v27, 16  ;;  %v2308_v34 = vshll.u32 %v3879_v27, 16 }
  0xaf   : >> { %4325 = vmatprep.subr.bf16.mxu1 %v4656_v35  ;;  %v2297_v35 = vshrl.u32 %v3878_v26, 16 }
  0xb0   : >> { %v2310_v38 = vrot.slane %v2308_v34, 2  ;;  %v4745_v34 = vld [vmem:[%s5662_s1 + $0x710] sm:$0xff]  }
  0xb1   : >> { %4304 = vmatpush3.bf16.msra.mxu0 %v4657_v36  ;;  %v2300_v36 = vshll.u32 %v3878_v26, 16  ;;  %v2299_v39 = vrot.slane %v2297_v35, 1  ;;  %v4739_v26 = vld [vmem:[%s5662_s1 + $0x748] sm:$0xff]  }
  0xb2   : >> { %4333 = vmatprep.subr.bf16.mxu0 %v4663_v45  ;;  %4326 = vmatpush3.bf16.msra.mxu1 %v4658_v37  ;;  %v2307_v37 = vrot.slane %v2305_v33, 1  ;;  %v4704_v45 = vld [vmem:[%s5662_s1 + $0x6c8] sm:$0xff]   ;;  %v4744_v33 = vld [vmem:[%s5662_s1 + $0x7d0] sm:$0xff]  }
  0xb3   : >> { %4355 = vmatprep.subr.bf16.mxu1 %v4664_v46  ;;  %v4705_v46 = vld [vmem:[%s5662_s1 + $0x608] sm:$0xff]  }
  0xb4   : >> { %1871 = vmatmul.mubr.bf16.vlgmr.msra.gmra.mrb[16].mxu0 %v3725_v40  ;;  %v2302_v40 = vrot.slane %v2300_v36, 2  ;;  %v2311_v43 = vor.u32 %v2310_v38, %v2307_v37  ;;  %v4746_v36 = vld [vmem:[%s5662_s1 + $0x790] sm:$0xff]   ;;  %v4747_v38 = vld [vmem:[%s5662_s1 + $0x758] sm:$0xff]  }
  0xb5   : >> { %4334 = vmatpush3.bf16.msra.mxu0 %v4665_v51  ;;  %2065 = vmatmul.mubr.bf16.vlgmr.msra.gmra.mrb[16].mxu1 %v1926_v57  ;;  %v4710_v51 = vld [vmem:[%s5662_s1 + $0x690] sm:$0xff]   ;;  %v4716_v57 = vld [vmem:[%s5662_s1 + $0x6e0] sm:$0xff]  }
  0xb6   : >> { %4335 = vmatprep.subr.bf16.mxu0 %v4667_v55  ;;  %4356 = vmatpush3.bf16.msra.mxu1 %v4666_v54  ;;  %v2303_v44 = vor.u32 %v2302_v40, %v2299_v39  ;;  %v4713_v54 = vld [vmem:[%s5662_s1 + $0x618] sm:$0xff]  }
  0xb7   : >> { %4357 = vmatprep.subr.bf16.mxu1 %v4668_v59  ;;  %2246 = vmatprep.mubr.bf16.mxu0 %v2115_v29  ;;  %v4714_v55 = vld [vmem:[%s5662_s1 + $0x698] sm:$0xff]   ;;  %v4718_v59 = vld [vmem:[%s5662_s1 + $0x6a0] sm:$0xff]   ;;  %v4740_v29 = vld [vmem:[%s5662_s1 + $0x7c8] sm:$0xff]  }
  0xb8   : >> { %2442 = vmatprep.mubr.bf16.mxu1 %v2311_v43  ;;  %v4749_v43 = vld [vmem:[%s5662_s1 + $0x718] sm:$0xff]  }
  0xb9   : >> { %4336 = vmatpush3.bf16.msra.mxu0 %v4669_v58  ;;  %v4717_v58 = vld [vmem:[%s5662_s1 + $0x620] sm:$0xff]  }
  0xba   : >> { %4337 = vmatprep.subr.bf16.mxu0 %v4671_v60  ;;  %4358 = vmatpush3.bf16.msra.mxu1 %v4670_v61  ;;  %v4719_v60 = vld [vmem:[%s5662_s1 + $0x668] sm:$0xff]  }
  0xbb   : >> { %4359 = vmatprep.subr.bf16.mxu1 %v4672_v63  ;;  %v4720_v61 = vld [vmem:[%s5662_s1 + $0x6e8] sm:$0xff]  }
  0xbc   : >> { %v4722_v63 = vld [vmem:[%s5662_s1 + $0x6a8] sm:$0xff]  }
  0xbd   : >> { %4338 = vmatpush3.bf16.msra.mxu0 %v4673_v62  ;;  %v4721_v62 = vld [vmem:[%s5662_s1 + $0x628] sm:$0xff]  }
  0xbe   : >> { %4339 = vmatprep.subr.bf16.mxu0 %v4675_v1  ;;  %4360 = vmatpush3.bf16.msra.mxu1 %v4674_v2  ;;  %v4723_v1 = vld [vmem:[%s5662_s1 + $0x670] sm:$0xff]  }
  0xbf   : >> { %4361 = vmatprep.subr.bf16.mxu1 %v4676_v4  ;;  %v4724_v2 = vld [vmem:[%s5662_s1 + $0x6f0] sm:$0xff]  }
  0xc0   : >> { %v4726_v4 = vld [vmem:[%s5662_s1 + $0x6b0] sm:$0xff]  }
  0xc1   : >> { %4340 = vmatpush3.bf16.msra.mxu0 %v4677_v3  ;;  %v4725_v3 = vld [vmem:[%s5662_s1 + $0x630] sm:$0xff]  }
  0xc2   : >> { %4341 = vmatprep.subr.bf16.mxu0 %v4679_v5  ;;  %4362 = vmatpush3.bf16.msra.mxu1 %v4678_v6  ;;  %v4727_v5 = vld [vmem:[%s5662_s1 + $0x678] sm:$0xff]  }
  0xc3   : >> { %4363 = vmatprep.subr.bf16.mxu1 %v4680_v8  ;;  %v4728_v6 = vld [vmem:[%s5662_s1 + $0x6f8] sm:$0xff]  }
  0xc4   : >> { %v4730_v8 = vld [vmem:[%s5662_s1 + $0x6b8] sm:$0xff]  }
  0xc5   : >> { %4342 = vmatpush3.bf16.msra.mxu0 %v4681_v7  ;;  %v4729_v7 = vld [vmem:[%s5662_s1 + $0x638] sm:$0xff]  }
  0xc6   : >> { %4343 = vmatprep.subr.bf16.mxu0 %v4683_v9  ;;  %4364 = vmatpush3.bf16.msra.mxu1 %v4682_v10  ;;  %v3897_v9 = vld [vmem:[%s4927_s14 + $0x30] sm:$0xff]  ;;  %v3898_v10 = vld [vmem:[%s4927_s14 + $0x38] sm:$0x33] }
  0xc7   : >> { %4365 = vmatprep.subr.bf16.mxu1 %v4684_v12  ;;  %v3931_v12 = vcombine.low %v3897_v9, %v3898_v10 }
  0xc9   : >> { %4344 = vmatpush3.bf16.msra.mxu0 %v4685_v11  ;;  %v5547_v11 = vld [vmem:[%s4927_s14 + $0x38] sm:$0x77] }
  0xca   : >> { %4345 = vmatprep.subr.bf16.mxu0 %v4687_v13  ;;  %4366 = vmatpush3.bf16.msra.mxu1 %v4686_v14  ;;  %v3932_v13 = vcombine.high %v3897_v9, %v3898_v10  ;;  %v3983_v14 = vcombine.high %v3897_v9, %v5547_v11 }
  0xcb   : >> { %4367 = vmatprep.subr.bf16.mxu1 %v4688_v16  ;;  %v4735_v16 = vld [vmem:[%s5662_s1 + $0x740] sm:$0xff]  }
  0xcd   : >> { %4346 = vmatpush3.bf16.msra.mxu0 %v4689_v15  ;;  %v3982_v15 = vcombine.low %v3897_v9, %v5547_v11 }
  0xce   : >> { %4347 = vmatprep.subr.bf16.mxu0 %v4691_v17  ;;  %4368 = vmatpush3.bf16.msra.mxu1 %v4690_v18  ;;  %v4736_v17 = vld [vmem:[%s5662_s1 + $0x7c0] sm:$0xff]   ;;  %v2688_v18 = vshrl.u32 %v3983_v14, 16 }
  0xcf   : >> { %4369 = vmatprep.subr.bf16.mxu1 %v4692_v20  ;;  %v2681_v20 = vshrl.u32 %v3982_v15, 16  ;;  %v2683_v21 = vshll.u32 %v3982_v15, 16 }
  0xd1   : >> { %4348 = vmatpush3.bf16.msra.mxu0 %v4693_v19  ;;  %v2690_v19 = vshll.u32 %v3983_v14, 16  ;;  %v2685_v24 = vrot.slane %v2683_v21, 1 }
  0xd2   : >> { %4377 = vmatprep.subr.bf16.mxu0 %v4699_v28  ;;  %4370 = vmatpush3.bf16.msra.mxu1 %v4694_v22  ;;  %v4737_v22 = vld [vmem:[%s5662_s1 + $0x700] sm:$0xff]  }
  0xd3   : >> { %4399 = vmatprep.subr.bf16.mxu1 %v4700_v31  ;;  %v2692_v23 = vrot.slane %v2690_v19, 1  ;;  %v2686_v28 = vor.u32 %v2685_v24, %v2681_v20  ;;  %v4742_v31 = vld [vmem:[%s5662_s1 + $0x788] sm:$0xff]  }
  0xd4   : >> { %2247 = vmatmul.mubr.bf16.vlgmr.msra.gmra.mrb[20].mxu0 %v2114_v30  ;;  %v4741_v30 = vld [vmem:[%s5662_s1 + $0x708] sm:$0xff]  }
  0xd5   : >> { %4378 = vmatpush3.bf16.msra.mxu0 %v4701_v32  ;;  %2443 = vmatmul.mubr.bf16.vlgmr.msra.gmra.mrb[20].mxu1 %v2303_v44  ;;  %v2693_v27 = vor.u32 %v2692_v23, %v2688_v18  ;;  %v4743_v32 = vld [vmem:[%s5662_s1 + $0x750] sm:$0xff]  }
  0xd6   : >> { %4379 = vmatprep.subr.bf16.mxu0 %v4703_v42  ;;  %4400 = vmatpush3.bf16.msra.mxu1 %v4702_v41  ;;  %v4748_v41 = vld [vmem:[%s5662_s1 + $0x7d8] sm:$0xff]  }
  0xd7   : >> { %4401 = vmatprep.subr.bf16.mxu1 %v4704_v45  ;;  %2630 = vmatprep.mubr.bf16.mxu0 %v3932_v13  ;;  %v4750_v45 = vld [vmem:[%s5662_s1 + $0x798] sm:$0xff]  }
  0xd8   : >> { %2824 = vmatprep.mubr.bf16.mxu1 %v2693_v27  ;;  %v4766_v13 = vld [vmem:[%s5662_s1 + $0x7b8] sm:$0xff]  }
  0xd9   : >> { %4380 = vmatpush3.bf16.msra.mxu0 %v4705_v46  ;;  %v4751_v46 = vld [vmem:[%s5662_s1 + $0x760] sm:$0xff]  }
  0xda   : >> { %4381 = vmatprep.subr.bf16.mxu0 %v4707_v48  ;;  %4402 = vmatpush3.bf16.msra.mxu1 %v4706_v47  ;;  %v4752_v48 = vld [vmem:[%s5662_s1 + $0x7e0] sm:$0xff]  }
  0xdb   : >> { %4403 = vmatprep.subr.bf16.mxu1 %v4708_v49 }
  0xdd   : >> { %4382 = vmatpush3.bf16.msra.mxu0 %v4709_v50  ;;  %v4753_v50 = vld [vmem:[%s5662_s1 + $0x720] sm:$0xff]  }
  0xde   : >> { %4383 = vmatprep.subr.bf16.mxu0 %v4711_v52  ;;  %4404 = vmatpush3.bf16.msra.mxu1 %v4710_v51 }
  0xdf   : >> { %4405 = vmatprep.subr.bf16.mxu1 %v4712_v53  ;;  %v4754_v53 = vld [vmem:[%s5662_s1 + $0x7a0] sm:$0xff]  }
  0xe1   : >> { %4384 = vmatpush3.bf16.msra.mxu0 %v4713_v54 }
  0xe2   : >> { %4385 = vmatprep.subr.bf16.mxu0 %v4715_v56  ;;  %4406 = vmatpush3.bf16.msra.mxu1 %v4714_v55  ;;  %v4755_v56 = vld [vmem:[%s5662_s1 + $0x768] sm:$0xff]  }
  0xe3   : >> { %4407 = vmatprep.subr.bf16.mxu1 %v4716_v57 }
  0xe5   : >> { %4386 = vmatpush3.bf16.msra.mxu0 %v4717_v58  ;;  %v4756_v58 = vld [vmem:[%s5662_s1 + $0x7e8] sm:$0xff]  }
  0xe6   : >> { %4387 = vmatprep.subr.bf16.mxu0 %v4719_v60  ;;  %4408 = vmatpush3.bf16.msra.mxu1 %v4718_v59  ;;  %v4757_v59 = vld [vmem:[%s5662_s1 + $0x728] sm:$0xff]  }
  0xe7   : >> { %4409 = vmatprep.subr.bf16.mxu1 %v4720_v61  ;;  %v4758_v61 = vld [vmem:[%s5662_s1 + $0x7a8] sm:$0xff]  }
  0xe9   : >> { %4388 = vmatpush3.bf16.msra.mxu0 %v4721_v62  ;;  %v4759_v62 = vld [vmem:[%s5662_s1 + $0x770] sm:$0xff]  }
  0xea   : >> { %4389 = vmatprep.subr.bf16.mxu0 %v4723_v1  ;;  %4410 = vmatpush3.bf16.msra.mxu1 %v4722_v63  ;;  %v4760_v63 = vld [vmem:[%s5662_s1 + $0x7f0] sm:$0xff]  }
  0xeb   : >> { %4411 = vmatprep.subr.bf16.mxu1 %v4724_v2  ;;  %v4761_v1 = vld [vmem:[%s5662_s1 + $0x730] sm:$0xff]  }
  0xec   : >> { %v4762_v2 = vld [vmem:[%s5662_s1 + $0x7b0] sm:$0xff]  }
  0xed   : >> { %4390 = vmatpush3.bf16.msra.mxu0 %v4725_v3  ;;  %v4763_v3 = vld [vmem:[%s5662_s1 + $0x778] sm:$0xff]  }
  0xee   : >> { %4391 = vmatprep.subr.bf16.mxu0 %v4727_v5  ;;  %4412 = vmatpush3.bf16.msra.mxu1 %v4726_v4  ;;  %v4764_v4 = vld [vmem:[%s5662_s1 + $0x7f8] sm:$0xff]  }
  0xef   : >> { %4413 = vmatprep.subr.bf16.mxu1 %v4728_v6  ;;  %v4765_v5 = vld [vmem:[%s5662_s1 + $0x738] sm:$0xff]   ;;  %v4000_v6 = vld [vmem:[%s4927_s14 + $0x30] sm:$0xee] }
  0xf1   : >> { %4392 = vmatpush3.bf16.msra.mxu0 %v4729_v7  ;;  %v4051_v7 = vld [vmem:[%s4927_s14 + $0x38] sm:$0xff]  ;;  %s4112_s14 = sshll.u32 %s4785_s24, 3  ;;  %s178_s24 = sadd.s32 1, %s4785_s24  }
  0xf2   : >> { %4421 = vmatprep.subr.bf16.mxu0 %v4735_v16  ;;  %4414 = vmatpush3.bf16.msra.mxu1 %v4730_v8  ;;  %v4034_v8 = vcombine.high %v4000_v6, %v5547_v11  ;;  %v4084_v9 = vcombine.low %v4000_v6, %v4051_v7  ;;  %v4085_v10 = vcombine.high %v4000_v6, %v4051_v7  ;;  %s3231_s30 = scalar_lea.vmem %s4828_s23, %s4112_s14  ;;  %p175_p4 = scmp.ge.s32.totalorder %s178_s24, 12  }
  0xf3   : >> { %4443 = vmatprep.subr.bf16.mxu1 %v4736_v17 }
  0xf4   : >> { %2631 = vmatmul.mubr.bf16.vlgmr.msra.gmra.mrb[24].mxu0 %v3931_v12  ;;  %v4033_v12 = vcombine.low %v4000_v6, %v5547_v11  ;;  %v2875_v14 = vrot.slane %v4034_v8, 1  ;;  %v3065_v15 = vshrl.u32 %v4085_v10, 16  ;;  %v3068_v16 = vshll.u32 %v4085_v10, 16 }
  0xf5   : >> { %4422 = vmatpush3.bf16.msra.mxu0 %v4737_v22  ;;  %2825 = vmatmul.mubr.bf16.vlgmr.msra.gmra.mrb[24].mxu1 %v2686_v28  ;;  %v3057_v18 = vshrl.u32 %v4084_v9, 16  ;;  %v3060_v19 = vshll.u32 %v4084_v9, 16 }
  0xf6   : >> { %4423 = vmatprep.subr.bf16.mxu0 %v4739_v26  ;;  %4444 = vmatpush3.bf16.msra.mxu1 %v4738_v25  ;;  %v2874_v17 = vrot.slane %v4033_v12, 1  ;;  %v3067_v20 = vrot.slane %v3065_v15, 1  ;;  %v3070_v21 = vrot.slane %v3068_v16, 2 }
  0xf7   : >> { %4445 = vmatprep.subr.bf16.mxu1 %v4740_v29  ;;  %3006 = vmatprep.mubr.bf16.mxu0 %v2875_v14  ;;  %v3059_v22 = vrot.slane %v3057_v18, 1  ;;  %v3062_v23 = vrot.slane %v3060_v19, 2 }
  0xf8   : >> { %v3071_v11 = vor.u32 %v3070_v21, %v3067_v20 }
  0xf9   : >> { %4424 = vmatpush3.bf16.msra.mxu0 %v4741_v30  ;;  %v3063_v24 = vor.u32 %v3062_v23, %v3059_v22 }
  0xfa   : >> { %4425 = vmatprep.subr.bf16.mxu0 %v4743_v32  ;;  %4446 = vmatpush3.bf16.msra.mxu1 %v4742_v31 }
  0xfb   : >> { %4447 = vmatprep.subr.bf16.mxu1 %v4744_v33  ;;  %3202 = vmatprep.mubr.bf16.mxu1 %v3071_v11 }
  0xfd   : >> { %4426 = vmatpush3.bf16.msra.mxu0 %v4745_v34 }
  0xfe   : >> { %4427 = vmatprep.subr.bf16.mxu0 %v4747_v38  ;;  %4448 = vmatpush3.bf16.msra.mxu1 %v4746_v36 }
  0xff   : >> { %4449 = vmatprep.subr.bf16.mxu1 %v4748_v41 }
 0x101   : >> { %4428 = vmatpush3.bf16.msra.mxu0 %v4749_v43 }
 0x102   : >> { %4429 = vmatprep.subr.bf16.mxu0 %v4751_v46  ;;  %4450 = vmatpush3.bf16.msra.mxu1 %v4750_v45 }
 0x103   : >> { %4451 = vmatprep.subr.bf16.mxu1 %v4752_v48 }
 0x105   : >> { %4430 = vmatpush3.bf16.msra.mxu0 %v4753_v50 }
 0x106   : >> { %4431 = vmatprep.subr.bf16.mxu0 %v4755_v56  ;;  %4452 = vmatpush3.bf16.msra.mxu1 %v4754_v53 }
 0x107   : >> { %v4129_v47 = vpop.f32.mrb[0].mxu0  ;;  %4453 = vmatprep.subr.bf16.mxu1 %v4756_v58 }
 0x108   : >> { %v4151_v35 = vpop.f32.mrb[0].mxu1  ;;  %v4130_v49 = vpop.f32.mrb[1].mxu0 }
 0x109   : >> { %v4152_v37 = vpop.f32.mrb[1].mxu1  ;;  %v4131_v51 = vadd.f32 %v4130_v49, %v4129_v47  ;;  %v4132_v52 = vpop.f32.mrb[2].mxu0  ;;  %4432 = vmatpush3.bf16.msra.mxu0 %v4757_v59 }
 0x10a   : >> { %v4153_v39 = vadd.f32 %v4152_v37, %v4151_v35  ;;  %v4154_v40 = vpop.f32.mrb[2].mxu1  ;;  %v4133_v54 = vpop.f32.mrb[3].mxu0  ;;  %4433 = vmatprep.subr.bf16.mxu0 %v4759_v62  ;;  %4454 = vmatpush3.bf16.msra.mxu1 %v4758_v61 }
 0x10b   : >> { %v4155_v42 = vpop.f32.mrb[3].mxu1  ;;  %v4134_v57 = vadd.f32 %v4133_v54, %v4132_v52  ;;  %4455 = vmatprep.subr.bf16.mxu1 %v4760_v63 }
 0x10c   : >> { %v4156_v44 = vadd.f32 %v4155_v42, %v4154_v40  ;;  %v549_v55 = vadd.f32 %v4153_v39, %v4131_v51 }
 0x10d   : >> { %4434 = vmatpush3.bf16.msra.mxu0 %v4761_v1 }
 0x10e   : >> { %v552_v60 = vadd.f32 %v4156_v44, %v4134_v57  ;;  %4435 = vmatprep.subr.bf16.mxu0 %v4763_v3  ;;  %4456 = vmatpush3.bf16.msra.mxu1 %v4762_v2 }
 0x10f   : >> { %4457 = vmatprep.subr.bf16.mxu1 %v4764_v4 }
 0x111   : >> { %4436 = vmatpush3.bf16.msra.mxu0 %v4765_v5 }
 0x112   : >> { %4458 = vmatpush3.bf16.msra.mxu1 %v4766_v13 }
 0x114   : >> { %3007 = vmatmul.mubr.bf16.vlgmr.msra.gmra.mrb[28].mxu0 %v2874_v17 }
 0x115   : >> { %3203 = vmatmul.mubr.bf16.vlgmr.msra.gmra.mrb[28].mxu1 %v3063_v24 }
 0x127   : >> { %v4173_v25 = vpop.f32.mrb[4].mxu0 }
 0x128   : >> { %v4174_v26 = vpop.f32.mrb[5].mxu0  ;;  %v4195_v27 = vpop.f32.mrb[4].mxu1 }
 0x129   : >> { %v4175_v28 = vadd.f32 %v4174_v26, %v4173_v25  ;;  %v4176_v29 = vpop.f32.mrb[6].mxu0  ;;  %v4196_v30 = vpop.f32.mrb[5].mxu1 }
 0x12a   : >> { %v4177_v31 = vpop.f32.mrb[7].mxu0  ;;  %v4197_v33 = vadd.f32 %v4196_v30, %v4195_v27  ;;  %v4198_v34 = vpop.f32.mrb[6].mxu1 }
 0x12b   : >> { %v735_v32 = vadd.f32 %v4175_v28, %v549_v55  ;;  %v4178_v35 = vadd.f32 %v4177_v31, %v4176_v29  ;;  %v4199_v36 = vpop.f32.mrb[7].mxu1 }
 0x12c   : >> { %v4200_v39 = vadd.f32 %v4199_v36, %v4198_v34 }
 0x12d   : >> { %v931_v37 = vadd.f32 %v4197_v33, %v735_v32  ;;  %v736_v38 = vadd.f32 %v4178_v35, %v552_v60 }
 0x12f   : >> { %v932_v40 = vadd.f32 %v4200_v39, %v736_v38 }
 0x147   : >> { %v4217_v41 = vpop.f32.mrb[8].mxu0 }
 0x148   : >> { %v4218_v42 = vpop.f32.mrb[9].mxu0  ;;  %v4239_v46 = vpop.f32.mrb[8].mxu1 }
 0x149   : >> { %v4219_v43 = vadd.f32 %v4218_v42, %v4217_v41  ;;  %v4220_v44 = vpop.f32.mrb[10].mxu0  ;;  %v4240_v49 = vpop.f32.mrb[9].mxu1 }
 0x14a   : >> { %v4221_v45 = vpop.f32.mrb[11].mxu0  ;;  %v4241_v50 = vadd.f32 %v4240_v49, %v4239_v46  ;;  %v4242_v51 = vpop.f32.mrb[10].mxu1 }
 0x14b   : >> { %v1119_v47 = vadd.f32 %v4219_v43, %v931_v37  ;;  %v4222_v48 = vadd.f32 %v4221_v45, %v4220_v44  ;;  %v4243_v53 = vpop.f32.mrb[11].mxu1 }
 0x14c   : >> { %v4244_v55 = vadd.f32 %v4243_v53, %v4242_v51 }
 0x14d   : >> { %v1120_v52 = vadd.f32 %v4222_v48, %v932_v40  ;;  %v1313_v54 = vadd.f32 %v4241_v50, %v1119_v47 }
 0x14f   : >> { %v1314_v56 = vadd.f32 %v4244_v55, %v1120_v52 }
 0x167   : >> { %v4261_v57 = vpop.f32.mrb[12].mxu0 }
 0x168   : >> { %v4262_v58 = vpop.f32.mrb[13].mxu0  ;;  %v4283_v62 = vpop.f32.mrb[12].mxu1 }
 0x169   : >> { %v4263_v59 = vadd.f32 %v4262_v58, %v4261_v57  ;;  %v4264_v60 = vpop.f32.mrb[14].mxu0  ;;  %v4284_v2 = vpop.f32.mrb[13].mxu1 }
 0x16a   : >> { %v4265_v61 = vpop.f32.mrb[15].mxu0  ;;  %v4285_v3 = vadd.f32 %v4284_v2, %v4283_v62  ;;  %v4286_v4 = vpop.f32.mrb[14].mxu1 }
 0x16b   : >> { %v1495_v63 = vadd.f32 %v4263_v59, %v1313_v54  ;;  %v4266_v1 = vadd.f32 %v4265_v61, %v4264_v60  ;;  %v4287_v6 = vpop.f32.mrb[15].mxu1 }
 0x16c   : >> { %v4288_v8 = vadd.f32 %v4287_v6, %v4286_v4 }
 0x16d   : >> { %v1496_v5 = vadd.f32 %v4266_v1, %v1314_v56  ;;  %v1691_v7 = vadd.f32 %v4285_v3, %v1495_v63 }
 0x16f   : >> { %v1692_v9 = vadd.f32 %v4288_v8, %v1496_v5 }
 0x187   : >> { %v4305_v10 = vpop.f32.mrb[16].mxu0 }
 0x188   : >> { %v4306_v12 = vpop.f32.mrb[17].mxu0  ;;  %v4327_v19 = vpop.f32.mrb[16].mxu1 }
 0x189   : >> { %v4307_v13 = vadd.f32 %v4306_v12, %v4305_v10  ;;  %v4308_v14 = vpop.f32.mrb[18].mxu0  ;;  %v4328_v20 = vpop.f32.mrb[17].mxu1 }
 0x18a   : >> { %v4309_v15 = vpop.f32.mrb[19].mxu0  ;;  %v4329_v21 = vadd.f32 %v4328_v20, %v4327_v19  ;;  %v4330_v22 = vpop.f32.mrb[18].mxu1 }
 0x18b   : >> { %v1879_v16 = vadd.f32 %v4307_v13, %v1691_v7  ;;  %v4310_v17 = vadd.f32 %v4309_v15, %v4308_v14  ;;  %v4331_v23 = vpop.f32.mrb[19].mxu1 }
 0x18c   : >> { %v4332_v24 = vadd.f32 %v4331_v23, %v4330_v22 }
 0x18d   : >> { %v1880_v18 = vadd.f32 %v4310_v17, %v1692_v9  ;;  %v2073_v11 = vadd.f32 %v4329_v21, %v1879_v16 }
 0x18f   : >> { %v2074_v25 = vadd.f32 %v4332_v24, %v1880_v18 }
 0x1a7   : >> { %v4349_v26 = vpop.f32.mrb[20].mxu0 }
 0x1a8   : >> { %v4350_v27 = vpop.f32.mrb[21].mxu0  ;;  %v4371_v33 = vpop.f32.mrb[20].mxu1 }
 0x1a9   : >> { %v4351_v28 = vadd.f32 %v4350_v27, %v4349_v26  ;;  %v4352_v29 = vpop.f32.mrb[22].mxu0  ;;  %v4372_v34 = vpop.f32.mrb[21].mxu1 }
 0x1aa   : >> { %v4353_v30 = vpop.f32.mrb[23].mxu0  ;;  %v4373_v36 = vadd.f32 %v4372_v34, %v4371_v33  ;;  %v4374_v37 = vpop.f32.mrb[22].mxu1 }
 0x1ab   : >> { %v2255_v31 = vadd.f32 %v4351_v28, %v2073_v11  ;;  %v4354_v32 = vadd.f32 %v4353_v30, %v4352_v29  ;;  %v4375_v38 = vpop.f32.mrb[23].mxu1 }
 0x1ac   : >> { %v4376_v40 = vadd.f32 %v4375_v38, %v4374_v37 }
 0x1ad   : >> { %v2256_v35 = vadd.f32 %v4354_v32, %v2074_v25  ;;  %v2451_v39 = vadd.f32 %v4373_v36, %v2255_v31 }
 0x1af   : >> { %v2452_v41 = vadd.f32 %v4376_v40, %v2256_v35 }
 0x1c7   : >> { %v4393_v42 = vpop.f32.mrb[24].mxu0 }
 0x1c8   : >> { %v4394_v43 = vpop.f32.mrb[25].mxu0  ;;  %v4415_v49 = vpop.f32.mrb[24].mxu1 }
 0x1c9   : >> { %v4395_v44 = vadd.f32 %v4394_v43, %v4393_v42  ;;  %v4396_v45 = vpop.f32.mrb[26].mxu0  ;;  %v4416_v51 = vpop.f32.mrb[25].mxu1 }
 0x1ca   : >> { %v4397_v46 = vpop.f32.mrb[27].mxu0  ;;  %v4417_v52 = vadd.f32 %v4416_v51, %v4415_v49  ;;  %v4418_v53 = vpop.f32.mrb[26].mxu1 }
 0x1cb   : >> { %v2639_v47 = vadd.f32 %v4395_v44, %v2451_v39  ;;  %v4398_v48 = vadd.f32 %v4397_v46, %v4396_v45  ;;  %v4419_v54 = vpop.f32.mrb[27].mxu1 }
 0x1cc   : >> { %v4420_v56 = vadd.f32 %v4419_v54, %v4418_v53 }
 0x1cd   : >> { %v2640_v50 = vadd.f32 %v4398_v48, %v2452_v41  ;;  %v2833_v55 = vadd.f32 %v4417_v52, %v2639_v47 }
 0x1cf   : >> { %v2834_v57 = vadd.f32 %v4420_v56, %v2640_v50 }
 0x1e7   : >> { %v4437_v58 = vpop.f32.mrb[28].mxu0 }
 0x1e8   : >> { %v4438_v59 = vpop.f32.mrb[29].mxu0  ;;  %v4459_v63 = vpop.f32.mrb[28].mxu1 }
 0x1e9   : >> { %v4439_v60 = vadd.f32 %v4438_v59, %v4437_v58  ;;  %v4440_v61 = vpop.f32.mrb[30].mxu0  ;;  %v4460_v3 = vpop.f32.mrb[29].mxu1 }
 0x1ea   : >> { %v4441_v62 = vpop.f32.mrb[31].mxu0  ;;  %v4461_v4 = vadd.f32 %v4460_v3, %v4459_v63  ;;  %v4462_v5 = vpop.f32.mrb[30].mxu1 }
 0x1eb   : >> { %v3015_v1 = vadd.f32 %v4439_v60, %v2833_v55  ;;  %v4442_v2 = vadd.f32 %v4441_v62, %v4440_v61  ;;  %v4463_v7 = vpop.f32.mrb[31].mxu1 }
 0x1ec   : >> { %v4464_v9 = vadd.f32 %v4463_v7, %v4462_v5 }
 0x1ed   : >> { %v3016_v6 = vadd.f32 %v4442_v2, %v2834_v57  ;;  %v3211_v8 = vadd.f32 %v4461_v4, %v3015_v1 }
 0x1ef   : >> { %v3219_v10 = vadd.f32 %v4818_v0, %v3211_v8  ;;  %v3212_v12 = vadd.f32 %v4464_v9, %v3016_v6  ;;  %177 = sbr.rel (!%p175_p4) target bundleno = 18 (0x12), region = 89 }
 0x1f1   : >> { %v4110_v13 = vpack.c.bf16 %v3219_v10, %v3219_v10  ;;  %v3220_v14 = vadd.f32 %v4818_v0, %v3212_v12 }
 0x1f3   : >> { %3232 = vst [vmem:[%s3231_s30] sm:$0xf] %v4110_v13  ;;  %v4111_v15 = vpack.c.bf16 %v3220_v14, %v3220_v14 }
 0x1f5   : >> { %3233 = vst [vmem:[%s3231_s30 + $0x4] sm:$0x3] %v4111_v15 }
 0x1f6 PF: > { %s13_s12 = sadd.s32 1, %s4781_s12  }
 0x1f7   : > { %p10_p5 = scmp.ge.s32.totalorder %s13_s12, 4  }
 0x1f9   :  { %12 = sbr.rel (!%p10_p5) target bundleno = 1 (0x1), region = 100 }

// kernel: cnn_3layers_forward.5
= control target key start
LH: loop header
LB: loop body
LE: loop exit
PB: predicated region body
PF: predicated region fallthrough
CT: control target
= control target key end

     0   :  { %10 = vsyncpa [#allocation3], 0  ;;  %s7878_s0 = inlined_call_operand.vmem [shape: bf16[2,6,6,128], index: 0, kind: input, shape index: {}]   ;;  %s7879_s1 = inlined_call_operand.vmem [shape: bf16[16,128,128], index: 1, kind: input, shape index: {}]   ;;  %s7880_s2 = inlined_call_operand.vmem [shape: f32[1,128], index: 2, kind: input, shape index: {}]   ;;  %s7881_s3 = inlined_call_operand.vmem [shape: bf16[128,128], index: 3, kind: input, shape index: {}]   ;;  %s7882_s4 = inlined_call_operand.vmem [shape: f32[1,128], index: 4, kind: input, shape index: {}]   ;;  %s7883_s5 = inlined_call_operand.hbm [shape: f32[2,1,128], index: 5, kind: output, shape index: {}]  }
   0x1   :  { %12 = vsyncpa [#allocation3 + $0x1], 0  ;;  %s5850_s18 = smov 0   ;;  %s5852_s19 = smov 0  }
   0x2   :  { %s5854_s20 = smov 0   ;;  %s5856_s21 = smov 0  }
   0x3 LB: > { %s5871_s22 = sadd.s32 4294967295, %s5815_s21   ;;  %s3605_s23 = sadd.s32 4294967294, %s5815_s21   ;;  %s5815_s21 = sphi %s5856_s21, %s8131_s21   ;;  %s5811_s20 = sphi %s5854_s20, %s8130_s20   ;;  %s5807_s19 = sphi %s5852_s19, %s8129_s19   ;;  %s5803_s18 = sphi %s5850_s18, %s8128_s18  }
   0x4   : > { %s5875_s24 = sadd.s32 1, %s5815_s21   ;;  %s135_s25 = sadd.s32 1, %s5811_s20 }
   0x5   : > { %s132_s26 = ssub.s32 %s5815_s21, %s5875_s24  ;;  %p145_p0 = scmp.ne.s32.totalorder %s5811_s20, %s5807_s19 }
   0x6   : > { %p133_p1 = scmp.eq.s32.totalorder %s132_s26, 0  ;;  %p146_p2 = scmp.eq.s32.totalorder %s5871_s22, 1 }
   0x7   : > { %p151_p3 = scmp.ne.s32.totalorder %s5807_s19, %s5803_s18  ;;  %p152_p4 = scmp.eq.s32.totalorder %s3605_s23, 1 }
   0x8   : > { %s5886_s27 = scalar_select %p133_p1, %s5811_s20, %s135_s25  }
   0x9   : > { %p5888_p5 = por %p146_p2, %p145_p0  ;;  %p5892_p6 = por %p152_p4, %p151_p3 }
   0xa   : > { %p3608_p7 = scmp.ge.s32.totalorder %s5815_s21, 1  ;;  %p190_p8 = scmp.lt.s32.totalorder %s5815_s21, 3 }
   0xc   : > { %p191_p9 = pnand %p3608_p7, %p190_p8 }
   0xe   : > { %194 = sbr.rel (%p191_p9) target bundleno = 1250 (0x4e2), region = 40 }
  0x15   : > { %v5475_v0 = vld [vmem:[%s7879_s1 + $0x40] sm:$0xff]   ;;  %v5817_v1 = vmov 0.0   ;;  %v5477_v3 = vld [vmem:[%s7879_s1 + $0x48] sm:$0xff]   ;;  %vm5818_vm0 = vmmov 0   ;;  %p217_p10 = scmp.lt.s32.totalorder %s5871_s22, 1  ;;  %v5479_v5 = vld [vmem:[%s7879_s1 + $0x50] sm:$0xff]  }
  0x16   : > { %4453 = vmatprep.subr.bf16.mxu0 %v5817_v1  ;;  %4473 = vmatprep.subr.bf16.mxu1 %v5817_v1  ;;  %v5476_v2 = vld [vmem:[%s7879_s1] sm:$0xff]   ;;  %v5478_v4 = vld [vmem:[%s7879_s1 + $0x8] sm:$0xff]   ;;  %v5480_v6 = vld [vmem:[%s7879_s1 + $0x10] sm:$0xff]   ;;  %s215_s12 = sand.u32 1, %s5807_s19   ;;  %s4009_s15 = sshll.u32 %s5871_s22, 4 }
  0x17   : > { %4454 = vmatpush3.bf16.msra.mxu0 %v5475_v0  ;;  %4469 = vmatprep.mubr.msk.bf16.mxu0 %vm5818_vm0, %v5817_v1  ;;  %s218_s13 = scalar_select %p217_p10, %s5871_s22, 1  ;;  %v5481_v7 = vld [vmem:[%s7879_s1 + $0x58] sm:$0xff]   ;;  %v5483_v9 = vld [vmem:[%s7879_s1 + $0x60] sm:$0xff]   ;;  %v5485_v13 = vld [vmem:[%s7879_s1 + $0x68] sm:$0xff]  }
  0x18   : > { %4474 = vmatpush3.bf16.msra.mxu1 %v5476_v2  ;;  %4455 = vmatprep.subr.bf16.mxu0 %v5817_v1  ;;  %v5482_v8 = vld [vmem:[%s7879_s1 + $0x18] sm:$0xff]   ;;  %v5484_v10 = vld [vmem:[%s7879_s1 + $0x20] sm:$0xff]   ;;  %v5486_v14 = vld [vmem:[%s7879_s1 + $0x28] sm:$0xff]   ;;  %s216_s16 = scalar_lea.vmem [#allocation2], %s215_s12  ;;  %s7836_s25 = scalar_lea.hbm %s7883_s5, %s4009_s15 }
  0x19   : > { %4475 = vmatprep.subr.bf16.mxu1 %v5817_v1  ;;  %4489 = vmatprep.mubr.msk.bf16.mxu1 %vm5818_vm0, %v5817_v1  ;;  %s5433_s23 = smul.u32 24, %s218_s13  ;;  %v5487_v16 = vld [vmem:[%s7879_s1 + $0x70] sm:$0xff]   ;;  %v5489_v20 = vld [vmem:[%s7879_s1 + $0x78] sm:$0xff]   ;;  %v5492_v23 = vld [vmem:[%s7879_s1 + $0x80] sm:$0xff]   ;;  %s3550_s17 = sshll.u32 %s216_s16, 4  ;;  %s7838_s17 = int_to_ptr.vmem [resolvable:$true] %s3550_s17 }
  0x1a   : > { %v5488_v17 = vld [vmem:[%s7879_s1 + $0x30] sm:$0xff]   ;;  %v5490_v21 = vld [vmem:[%s7879_s1 + $0x38] sm:$0xff]   ;;  %v5493_v24 = vld [vmem:[%s7879_s1 + $0xc0] sm:$0xff]   ;;  %s3538_s26 = scalar_lea.sflag [#allocation3], %s215_s12  ;;  %s5753_s22 = scalar_lea.vmem %s7838_s17, 16 }
  0x1b   : > { %4456 = vmatpush3.bf16.msra.mxu0 %v5477_v3  ;;  %s5939_s9 = scalar_lea.vmem %s7878_s0, %s5433_s23  ;;  %v5494_v25 = vld [vmem:[%s7879_s1 + $0x88] sm:$0xff]   ;;  %v5496_v27 = vld [vmem:[%s7879_s1 + $0x90] sm:$0xff]   ;;  %v5498_v29 = vld [vmem:[%s7879_s1 + $0x98] sm:$0xff]   ;;  %p5754_p11 = scmp.ne.s32.totalorder %s7838_s17, %s5753_s22 }
  0x1c   : > { %4476 = vmatpush3.bf16.msra.mxu1 %v5478_v4  ;;  %4457 = vmatprep.subr.bf16.mxu0 %v5817_v1  ;;  %v224_v11 = vld [vmem:[%s5939_s9] sm:$0x3]  ;;  %v5495_v26 = vld [vmem:[%s7879_s1 + $0xc8] sm:$0xff]   ;;  %v5497_v28 = vld [vmem:[%s7879_s1 + $0xd0] sm:$0xff]   ;;  %s5819_s30 = smov [#allocation2]  }
  0x1d   : > { %4477 = vmatprep.subr.bf16.mxu1 %v5817_v1  ;;  %v3626_v12 = vcombine.low %v224_v11, %v224_v11  ;;  %v5499_v30 = vld [vmem:[%s7879_s1 + $0xd8] sm:$0xff]   ;;  %v5500_v31 = vld [vmem:[%s7879_s1 + $0xa0] sm:$0xff]   ;;  %v5502_v34 = vld [vmem:[%s7879_s1 + $0xa8] sm:$0xff]   ;;  %p5755_p12 = pnand %p5754_p11, %p5888_p5  ;;  %s5757_s6 = sshll.u32 %s5819_s30, 4  ;;  %s5758_s6 = int_to_ptr.vmem [resolvable:$false] %s5757_s6 }
  0x1e   : > { %v5501_v32 = vld [vmem:[%s7879_s1 + $0xe0] sm:$0xff]   ;;  %v5503_v35 = vld [vmem:[%s7879_s1 + $0xe8] sm:$0xff]   ;;  %v5504_v36 = vld [vmem:[%s7879_s1 + $0xb0] sm:$0xff]   ;;  %s5759_s7 = scalar_lea.vmem %s5758_s6, 32  ;;  %p5760_p0 = scmp.lt.s32.totalorder %s7838_s17, %s5758_s6 }
  0x1f   : > { %4458 = vmatpush3.bf16.msra.mxu0 %v5479_v5  ;;  %v264_v15 = vshll.u32 %v3626_v12, 16  ;;  %v262_v18 = vshrl.u32 %v3626_v12, 16  ;;  %v5508_v33 = vld [vmem:[%s5939_s9] ss:$0 sps:$4 sm:$0x66]   ;;  %v5505_v39 = vld [vmem:[%s7879_s1 + $0xf0] sm:$0xff]   ;;  %p5756_p13 = pneg %p5755_p12  ;;  %p5761_p1 = scmp.lt.s32.totalorder %s5759_s7, %s5753_s22 }
  0x20   : > { %4478 = vmatpush3.bf16.msra.mxu1 %v5480_v6  ;;  %4459 = vmatprep.subr.bf16.mxu0 %v5817_v1  ;;  %v575_v37 = vshrl.u32 %v5508_v33, 16  ;;  %v578_v38 = vshll.u32 %v5508_v33, 16  ;;  %v5506_v40 = vld [vmem:[%s7879_s1 + $0xb8] sm:$0xff]   ;;  %v466_v44 = vrot.slane %v5508_v33, 1  ;;  %v5509_v46 = vld [vmem:[%s7879_s1 + $0x100] sm:$0xff]   ;;  %v5511_v48 = vld [vmem:[%s7879_s1 + $0x108] sm:$0xff]  }
  0x21   : > { %4479 = vmatprep.subr.bf16.mxu1 %v5817_v1  ;;  %v266_v19 = vrot.slane %v264_v15, 1  ;;  %v5507_v43 = vld [vmem:[%s7879_s1 + $0xf8] sm:$0xff]   ;;  %v5510_v47 = vld [vmem:[%s7879_s1 + $0x140] sm:$0xff]   ;;  %v5512_v49 = vld [vmem:[%s7879_s1 + $0x148] sm:$0xff]   ;;  %p5762_p2 = por %p5761_p1, %p5760_p0 }
  0x22   : > { %v577_v41 = vrot.slane %v575_v37, 1  ;;  %v580_v42 = vrot.slane %v578_v38, 2  ;;  %v5513_v50 = vld [vmem:[%s7879_s1 + $0x110] sm:$0xff]   ;;  %v5515_v52 = vld [vmem:[%s7879_s1 + $0x118] sm:$0xff]   ;;  %v5517_v54 = vld [vmem:[%s7879_s1 + $0x120] sm:$0xff]  }
  0x23   : > { %4460 = vmatpush3.bf16.msra.mxu0 %v5481_v7  ;;  %v267_v22 = vor.u32 %v266_v19, %v262_v18  ;;  %v5514_v51 = vld [vmem:[%s7879_s1 + $0x150] sm:$0xff]   ;;  %v5516_v53 = vld [vmem:[%s7879_s1 + $0x158] sm:$0xff]   ;;  %v5518_v55 = vld [vmem:[%s7879_s1 + $0x160] sm:$0xff]   ;;  %p5763_p3 = pnand %p5762_p2, %p5756_p13 }
  0x24   : > { %4480 = vmatpush3.bf16.msra.mxu1 %v5482_v8  ;;  %4461 = vmatprep.subr.bf16.mxu0 %v5817_v1  ;;  %v581_v45 = vor.u32 %v580_v42, %v577_v41  ;;  %v6087_v56 = vld [vmem:[%s5939_s9 + $0x4] sm:$0x3]  ;;  %v5519_v57 = vld [vmem:[%s7879_s1 + $0x128] sm:$0xff]   ;;  %v5521_v60 = vld [vmem:[%s7879_s1 + $0x130] sm:$0xff]  }
  0x25   : > { %4481 = vmatprep.subr.bf16.mxu1 %v5817_v1  ;;  %v3733_v58 = vcombine.low %v6087_v56, %v6087_v56  ;;  %v5520_v59 = vld [vmem:[%s7879_s1 + $0x168] sm:$0xff]   ;;  %v5522_v62 = vld [vmem:[%s7879_s1 + $0x170] sm:$0xff]   ;;  %v5523_v63 = vld [vmem:[%s7879_s1 + $0x138] sm:$0xff]  }
  0x26   : > { %v5524_v3 = vld [vmem:[%s7879_s1 + $0x178] sm:$0xff]   ;;  %v5526_v5 = vld [vmem:[%s7879_s1 + $0x180] sm:$0xff]   ;;  %v5528_v7 = vld [vmem:[%s7879_s1 + $0x188] sm:$0xff]  }
  0x27   : > { %4462 = vmatpush3.bf16.msra.mxu0 %v5483_v9  ;;  %v803_v61 = vshll.u32 %v3733_v58, 16  ;;  %v801_v0 = vshrl.u32 %v3733_v58, 16  ;;  %v5527_v6 = vld [vmem:[%s7879_s1 + $0x1c0] sm:$0xff]   ;;  %v5529_v8 = vld [vmem:[%s7879_s1 + $0x1c8] sm:$0xff]   ;;  %v5530_v9 = vld [vmem:[%s7879_s1 + $0x190] sm:$0xff]  }
  0x28   : > { %4482 = vmatpush3.bf16.msra.mxu1 %v5484_v10  ;;  %4463 = vmatprep.subr.bf16.mxu0 %v5817_v1  ;;  %v5531_v10 = vld [vmem:[%s7879_s1 + $0x1d0] sm:$0xff]   ;;  %v6157_v12 = vld [vmem:[%s7879_s1 + $0x1d8] sm:$0xff]   ;;  %v6175_v15 = vld [vmem:[%s5939_s9 + $0x4] ss:$0 sps:$4 sm:$0x66]  }
  0x29   : > { %4483 = vmatprep.subr.bf16.mxu1 %v5817_v1  ;;  %v805_v2 = vrot.slane %v803_v61, 1  ;;  %v6194_v18 = vld [vmem:[%s7879_s1 + $0x1b0] sm:$0xff]   ;;  %v1027_v19 = vshrl.u32 %v6175_v15, 16  ;;  %v6298_v37 = vld [vmem:[%s7879_s1 + $0x260] sm:$0xff]   ;;  %v6301_v38 = vld [vmem:[%s5939_s9 + $0x8] sm:$0x3] }
  0x2a   : > { %v6270_v33 = vld [vmem:[%s7879_s1 + $0x250] sm:$0xff]   ;;  %v6317_v41 = vld [vmem:[%s7879_s1 + $0x268] sm:$0xff]   ;;  %v6409_v58 = vld [vmem:[%s7879_s1 + $0x2d8] sm:$0xff]  }
  0x2b   : > { %4464 = vmatpush3.bf16.msra.mxu0 %v5485_v13  ;;  %v6116_v4 = vor.u32 %v805_v2, %v801_v0  ;;  %v6164_v13 = vld [vmem:[%s7879_s1 + $0x1a0] sm:$0xff]   ;;  %v6324_v42 = vld [vmem:[%s7879_s1 + $0x230] sm:$0xff]   ;;  %v6430_v61 = vld [vmem:[%s7879_s1 + $0x2a8] sm:$0xff]  }
  0x2c   : > { %4484 = vmatpush3.bf16.msra.mxu1 %v5486_v14  ;;  %4465 = vmatprep.subr.bf16.mxu0 %v5817_v1  ;;  %v6171_v14 = vld [vmem:[%s7879_s1 + $0x1e0] sm:$0xff]   ;;  %v6445_v0 = vld [vmem:[%s7879_s1 + $0x2b0] sm:$0xff]  }
  0x2d   : > { %4485 = vmatprep.subr.bf16.mxu1 %v5817_v1 }
  0x2f   : > { %4466 = vmatpush3.bf16.msra.mxu0 %v5487_v16  ;;  %v6181_v16 = vld [vmem:[%s7879_s1 + $0x1a8] sm:$0xff]  }
  0x30   : > { %4486 = vmatpush3.bf16.msra.mxu1 %v5488_v17  ;;  %4467 = vmatprep.subr.bf16.mxu0 %v5817_v1  ;;  %v6188_v17 = vld [vmem:[%s7879_s1 + $0x1e8] sm:$0xff]  }
  0x31   : > { %4487 = vmatprep.subr.bf16.mxu1 %v5817_v1 }
  0x33   : > { %4468 = vmatpush3.bf16.msra.mxu0 %v5489_v20  ;;  %v1030_v20 = vshll.u32 %v6175_v15, 16 }
  0x34   : > { %4488 = vmatpush3.bf16.msra.mxu1 %v5490_v21  ;;  %4493 = vmatprep.subr.bf16.mxu0 %v5817_v1  ;;  %v6204_v21 = vld [vmem:[%s7879_s1 + $0x1f0] sm:$0xff]  }
  0x35   : > { %4513 = vmatprep.subr.bf16.mxu1 %v5817_v1 }
  0x36   : > { %4470 = vmatmul.mubr.bf16.vlgmr.msra.gmra.mrb[0].mxu0 %v267_v22  ;;  %v6210_v22 = vld [vmem:[%s7879_s1 + $0x1b8] sm:$0xff]  }
  0x37   : > { %4490 = vmatmul.mubr.bf16.vlgmr.msra.gmra.mrb[0].mxu1 %v224_v11  ;;  %4494 = vmatpush3.bf16.msra.mxu0 %v5492_v23  ;;  %v6151_v11 = vld [vmem:[%s7879_s1 + $0x198] sm:$0xff]   ;;  %v1029_v23 = vrot.slane %v1027_v19, 1 }
  0x38   : > { %4514 = vmatpush3.bf16.msra.mxu1 %v5493_v24  ;;  %4495 = vmatprep.subr.bf16.mxu0 %v5817_v1  ;;  %v1032_v24 = vrot.slane %v1030_v20, 2  ;;  %v6477_v20 = vld [vmem:[%s7879_s1 + $0x300] sm:$0xff]  }
  0x39   : > { %4515 = vmatprep.subr.bf16.mxu1 %v5817_v1  ;;  %4509 = vmatprep.mubr.msk.bf16.mxu0 %vm5818_vm0, %v5817_v1  ;;  %7970 = vst [vmem:[#allocation8_spill] sm:$0xff] %v6477_v20 }
  0x3a   : > { %4529 = vmatprep.mubr.msk.bf16.mxu1 %vm5818_vm0, %v5817_v1 }
  0x3b   : > { %4496 = vmatpush3.bf16.msra.mxu0 %v5494_v25  ;;  %v6218_v25 = vld [vmem:[%s7879_s1 + $0x1f8] sm:$0xff]  }
  0x3c   : > { %4516 = vmatpush3.bf16.msra.mxu1 %v5495_v26  ;;  %4497 = vmatprep.subr.bf16.mxu0 %v5817_v1  ;;  %v7884_v26 = vrot.slane %v6175_v15, 1 }
  0x3d   : > { %4517 = vmatprep.subr.bf16.mxu1 %v5817_v1 }
  0x3f   : > { %4498 = vmatpush3.bf16.msra.mxu0 %v5496_v27  ;;  %v6223_v27 = vor.u32 %v1032_v24, %v1029_v23  ;;  %v6484_v23 = vld [vmem:[%s7879_s1 + $0x340] sm:$0xff]   ;;  %v6493_v24 = vld [vmem:[%s7879_s1 + $0x308] sm:$0xff]  }
  0x40   : > { %4518 = vmatpush3.bf16.msra.mxu1 %v5497_v28  ;;  %4499 = vmatprep.subr.bf16.mxu0 %v5817_v1  ;;  %v6228_v28 = vld [vmem:[%s7879_s1 + $0x200] sm:$0xff]   ;;  %7971 = vst [vmem:[#allocation9_spill] sm:$0xff] %v6484_v23  ;;  %7972 = vst [vmem:[#allocation10_spill] sm:$0xff] %v6493_v24 }
  0x41   : > { %4519 = vmatprep.subr.bf16.mxu1 %v5817_v1 }
  0x43   : > { %4500 = vmatpush3.bf16.msra.mxu0 %v5498_v29  ;;  %v6235_v29 = vld [vmem:[%s7879_s1 + $0x240] sm:$0xff]  }
  0x44   : > { %4520 = vmatpush3.bf16.msra.mxu1 %v5499_v30  ;;  %4501 = vmatprep.subr.bf16.mxu0 %v5817_v1  ;;  %v6245_v30 = vld [vmem:[%s7879_s1 + $0x208] sm:$0xff]  }
  0x45   : > { %4521 = vmatprep.subr.bf16.mxu1 %v5817_v1 }
  0x47   : > { %4502 = vmatpush3.bf16.msra.mxu0 %v5500_v31  ;;  %v6252_v31 = vld [vmem:[%s7879_s1 + $0x248] sm:$0xff]  }
  0x48   : > { %4522 = vmatpush3.bf16.msra.mxu1 %v5501_v32  ;;  %4503 = vmatprep.subr.bf16.mxu0 %v5817_v1  ;;  %v6260_v32 = vld [vmem:[%s7879_s1 + $0x210] sm:$0xff]  }
  0x49   : > { %4523 = vmatprep.subr.bf16.mxu1 %v5817_v1 }
  0x4b   : > { %4504 = vmatpush3.bf16.msra.mxu0 %v5502_v34  ;;  %v6276_v34 = vld [vmem:[%s7879_s1 + $0x218] sm:$0xff]  }
  0x4c   : > { %4524 = vmatpush3.bf16.msra.mxu1 %v5503_v35  ;;  %4505 = vmatprep.subr.bf16.mxu0 %v5817_v1  ;;  %v6281_v35 = vld [vmem:[%s7879_s1 + $0x258] sm:$0xff]  }
  0x4d   : > { %4525 = vmatprep.subr.bf16.mxu1 %v5817_v1 }
  0x4f   : > { %4506 = vmatpush3.bf16.msra.mxu0 %v5504_v36  ;;  %v6291_v36 = vld [vmem:[%s7879_s1 + $0x220] sm:$0xff]  }
  0x50   : > { %4526 = vmatpush3.bf16.msra.mxu1 %v5505_v39  ;;  %4507 = vmatprep.subr.bf16.mxu0 %v5817_v1  ;;  %v6308_v39 = vld [vmem:[%s7879_s1 + $0x228] sm:$0xff]  }
  0x51   : > { %4527 = vmatprep.subr.bf16.mxu1 %v5817_v1 }
  0x53   : > { %4508 = vmatpush3.bf16.msra.mxu0 %v5506_v40  ;;  %v3833_v40 = vcombine.low %v6301_v38, %v6301_v38 }
  0x54   : > { %4528 = vmatpush3.bf16.msra.mxu1 %v5507_v43  ;;  %4533 = vmatprep.subr.bf16.mxu0 %v5817_v1 }
  0x55   : > { %4553 = vmatprep.subr.bf16.mxu1 %v5817_v1  ;;  %v1255_v43 = vshll.u32 %v3833_v40, 16 }
  0x56   : > { %4510 = vmatmul.mubr.bf16.vlgmr.msra.gmra.mrb[4].mxu0 %v466_v44  ;;  %v6331_v44 = vld [vmem:[%s7879_s1 + $0x270] sm:$0xff]  }
  0x57   : > { %4530 = vmatmul.mubr.bf16.vlgmr.msra.gmra.mrb[4].mxu1 %v581_v45  ;;  %4534 = vmatpush3.bf16.msra.mxu0 %v5509_v46  ;;  %v6338_v45 = vld [vmem:[%s7879_s1 + $0x238] sm:$0xff]   ;;  %v1253_v46 = vshrl.u32 %v3833_v40, 16  ;;  %v6500_v40 = vld [vmem:[%s7879_s1 + $0x348] sm:$0xff]  }
  0x58   : > { %4554 = vmatpush3.bf16.msra.mxu1 %v5510_v47  ;;  %4535 = vmatprep.subr.bf16.mxu0 %v5817_v1  ;;  %v1257_v47 = vrot.slane %v1255_v43, 1  ;;  %7973 = vst [vmem:[#allocation11_spill] sm:$0xff] %v6500_v40  ;;  %v6511_v43 = vld [vmem:[%s7879_s1 + $0x310] sm:$0xff]  }
  0x59   : > { %4555 = vmatprep.subr.bf16.mxu1 %v5817_v1  ;;  %4549 = vmatprep.mubr.msk.bf16.mxu0 %vm5818_vm0, %v5817_v1  ;;  %7974 = vst [vmem:[#allocation12_spill] sm:$0xff] %v6511_v43 }
  0x5a   : > { %4569 = vmatprep.mubr.msk.bf16.mxu1 %vm5818_vm0, %v5817_v1 }
  0x5b   : > { %4536 = vmatpush3.bf16.msra.mxu0 %v5511_v48  ;;  %v6345_v48 = vld [vmem:[%s7879_s1 + $0x278] sm:$0xff]  }
  0x5c   : > { %4556 = vmatpush3.bf16.msra.mxu1 %v5512_v49  ;;  %4537 = vmatprep.subr.bf16.mxu0 %v5817_v1  ;;  %v6349_v49 = vor.u32 %v1257_v47, %v1253_v46  ;;  %v6518_v46 = vld [vmem:[%s7879_s1 + $0x350] sm:$0xff]   ;;  %v6525_v47 = vld [vmem:[%s7879_s1 + $0x318] sm:$0xff]  }
  0x5d   : > { %4557 = vmatprep.subr.bf16.mxu1 %v5817_v1  ;;  %7975 = vst [vmem:[#allocation13_spill] sm:$0xff] %v6518_v46  ;;  %7976 = vst [vmem:[#allocation14_spill] sm:$0xff] %v6525_v47 }
  0x5f   : > { %4538 = vmatpush3.bf16.msra.mxu0 %v5513_v50  ;;  %v6354_v50 = vld [vmem:[%s7879_s1 + $0x280] sm:$0xff]  }
  0x60   : > { %4558 = vmatpush3.bf16.msra.mxu1 %v5514_v51  ;;  %4539 = vmatprep.subr.bf16.mxu0 %v5817_v1  ;;  %v6361_v51 = vld [vmem:[%s7879_s1 + $0x2c0] sm:$0xff]  }
  0x61   : > { %4559 = vmatprep.subr.bf16.mxu1 %v5817_v1 }
  0x63   : > { %4540 = vmatpush3.bf16.msra.mxu0 %v5515_v52  ;;  %v6370_v52 = vld [vmem:[%s7879_s1 + $0x288] sm:$0xff]  }
  0x64   : > { %4560 = vmatpush3.bf16.msra.mxu1 %v5516_v53  ;;  %4541 = vmatprep.subr.bf16.mxu0 %v5817_v1  ;;  %v6377_v53 = vld [vmem:[%s7879_s1 + $0x2c8] sm:$0xff]  }
  0x65   : > { %4561 = vmatprep.subr.bf16.mxu1 %v5817_v1 }
  0x67   : > { %4542 = vmatpush3.bf16.msra.mxu0 %v5517_v54  ;;  %v6388_v54 = vld [vmem:[%s7879_s1 + $0x290] sm:$0xff]  }
  0x68   : > { %4562 = vmatpush3.bf16.msra.mxu1 %v5518_v55  ;;  %4543 = vmatprep.subr.bf16.mxu0 %v5817_v1  ;;  %v6395_v55 = vld [vmem:[%s7879_s1 + $0x2d0] sm:$0xff]  }
  0x69   : > { %4563 = vmatprep.subr.bf16.mxu1 %v5817_v1 }
  0x6b   : > { %4544 = vmatpush3.bf16.msra.mxu0 %v5519_v57  ;;  %v6402_v57 = vld [vmem:[%s7879_s1 + $0x298] sm:$0xff]  }
  0x6c   : > { %4564 = vmatpush3.bf16.msra.mxu1 %v5520_v59  ;;  %4545 = vmatprep.subr.bf16.mxu0 %v5817_v1  ;;  %v6416_v59 = vld [vmem:[%s7879_s1 + $0x2a0] sm:$0xff]  }
  0x6d   : > { %4565 = vmatprep.subr.bf16.mxu1 %v5817_v1 }
  0x6f   : > { %4546 = vmatpush3.bf16.msra.mxu0 %v5521_v60  ;;  %v6423_v60 = vld [vmem:[%s7879_s1 + $0x2e0] sm:$0xff]  }
  0x70   : > { %4566 = vmatpush3.bf16.msra.mxu1 %v5522_v62  ;;  %4547 = vmatprep.subr.bf16.mxu0 %v5817_v1  ;;  %v5576_v62 = vld [vmem:[%s5939_s9 + $0x8] ss:$0 sps:$4 sm:$0x66]  }
  0x71   : > { %4567 = vmatprep.subr.bf16.mxu1 %v5817_v1  ;;  %v1479_v2 = vshrl.u32 %v5576_v62, 16 }
  0x73   : > { %4548 = vmatpush3.bf16.msra.mxu0 %v5523_v63  ;;  %v6438_v63 = vld [vmem:[%s7879_s1 + $0x2e8] sm:$0xff]  }
  0x74   : > { %4568 = vmatpush3.bf16.msra.mxu1 %v5524_v3  ;;  %4573 = vmatprep.subr.bf16.mxu0 %v5817_v1  ;;  %v1482_v3 = vshll.u32 %v5576_v62, 16 }
  0x75   : > { %4593 = vmatprep.subr.bf16.mxu1 %v5817_v1 }
  0x76   : > { %4550 = vmatmul.mubr.bf16.vlgmr.msra.gmra.mrb[8].mxu0 %v6087_v56 }
  0x77   : > { %4570 = vmatmul.mubr.bf16.vlgmr.msra.gmra.mrb[8].mxu1 %v6116_v4  ;;  %4574 = vmatpush3.bf16.msra.mxu0 %v5526_v5  ;;  %v6452_v5 = vld [vmem:[%s7879_s1 + $0x2f0] sm:$0xff]  }
  0x78   : > { %4594 = vmatpush3.bf16.msra.mxu1 %v5527_v6  ;;  %4575 = vmatprep.subr.bf16.mxu0 %v5817_v1  ;;  %7967 = vst [vmem:[#allocation5_spill] sm:$0xff] %v6452_v5  ;;  %v6459_v6 = vld [vmem:[%s7879_s1 + $0x2b8] sm:$0xff]  }
  0x79   : > { %4595 = vmatprep.subr.bf16.mxu1 %v5817_v1  ;;  %4589 = vmatprep.mubr.msk.bf16.mxu0 %vm5818_vm0, %v5817_v1  ;;  %7968 = vst [vmem:[#allocation6_spill] sm:$0xff] %v6459_v6 }
  0x7a   : > { %4609 = vmatprep.mubr.msk.bf16.mxu1 %vm5818_vm0, %v5817_v1 }
  0x7b   : > { %4576 = vmatpush3.bf16.msra.mxu0 %v5528_v7  ;;  %v1481_v7 = vrot.slane %v1479_v2, 1  ;;  %v6539_v2 = vld [vmem:[%s7879_s1 + $0x320] sm:$0xff]  }
  0x7c   : > { %4596 = vmatpush3.bf16.msra.mxu1 %v5529_v8  ;;  %4577 = vmatprep.subr.bf16.mxu0 %v5817_v1  ;;  %v1484_v8 = vrot.slane %v1482_v3, 2  ;;  %7978 = vst [vmem:[#allocation16_spill] sm:$0xff] %v6539_v2  ;;  %v6546_v3 = vld [vmem:[%s7879_s1 + $0x360] sm:$0xff]  }
  0x7d   : > { %4597 = vmatprep.subr.bf16.mxu1 %v5817_v1  ;;  %7979 = vst [vmem:[#allocation17_spill] sm:$0xff] %v6546_v3 }
  0x7e   : > { %v6472_v19 = vor.u32 %v1484_v8, %v1481_v7  ;;  %v6549_v7 = vld [vmem:[%s5939_s9 + $0xc] sm:$0x3] }
  0x7f   : > { %4578 = vmatpush3.bf16.msra.mxu0 %v5530_v9  ;;  %v6466_v9 = vld [vmem:[%s7879_s1 + $0x2f8] sm:$0xff]   ;;  %v6556_v8 = vld [vmem:[%s7879_s1 + $0x328] sm:$0xff]  }
  0x80   : > { %4598 = vmatpush3.bf16.msra.mxu1 %v5531_v10  ;;  %4579 = vmatprep.subr.bf16.mxu0 %v5817_v1  ;;  %7969 = vst [vmem:[#allocation7_spill] sm:$0xff] %v6466_v9  ;;  %v6469_v10 = vrot.slane %v5576_v62, 1  ;;  %v6532_v62 = vld [vmem:[%s7879_s1 + $0x358] sm:$0xff]   ;;  %7980 = vst [vmem:[#allocation18_spill] sm:$0xff] %v6556_v8 }
  0x81   : > { %4599 = vmatprep.subr.bf16.mxu1 %v5817_v1  ;;  %7977 = vst [vmem:[#allocation15_spill] sm:$0xff] %v6532_v62 }
  0x83   : > { %4580 = vmatpush3.bf16.msra.mxu0 %v6151_v11 }
  0x84   : > { %4600 = vmatpush3.bf16.msra.mxu1 %v6157_v12  ;;  %4581 = vmatprep.subr.bf16.mxu0 %v5817_v1 }
  0x85   : > { %4601 = vmatprep.subr.bf16.mxu1 %v5817_v1 }
  0x87   : > { %4582 = vmatpush3.bf16.msra.mxu0 %v6164_v13 }
  0x88   : > { %4602 = vmatpush3.bf16.msra.mxu1 %v6171_v14  ;;  %4583 = vmatprep.subr.bf16.mxu0 %v5817_v1 }
  0x89   : > { %4603 = vmatprep.subr.bf16.mxu1 %v5817_v1 }
  0x8b   : > { %4584 = vmatpush3.bf16.msra.mxu0 %v6181_v16 }
  0x8c   : > { %4604 = vmatpush3.bf16.msra.mxu1 %v6188_v17  ;;  %4585 = vmatprep.subr.bf16.mxu0 %v5817_v1 }
  0x8d   : > { %4605 = vmatprep.subr.bf16.mxu1 %v5817_v1 }
  0x8f   : > { %4586 = vmatpush3.bf16.msra.mxu0 %v6194_v18 }
  0x90   : > { %4606 = vmatpush3.bf16.msra.mxu1 %v6204_v21  ;;  %4587 = vmatprep.subr.bf16.mxu0 %v5817_v1 }
  0x91   : > { %4607 = vmatprep.subr.bf16.mxu1 %v5817_v1 }
  0x93   : > { %4588 = vmatpush3.bf16.msra.mxu0 %v6210_v22 }
  0x94   : > { %4608 = vmatpush3.bf16.msra.mxu1 %v6218_v25  ;;  %4613 = vmatprep.subr.bf16.mxu0 %v5817_v1 }
  0x95   : > { %4633 = vmatprep.subr.bf16.mxu1 %v5817_v1 }
  0x96   : > { %4590 = vmatmul.mubr.bf16.vlgmr.msra.gmra.mrb[12].mxu0 %v7884_v26  ;;  %v3933_v26 = vcombine.low %v6549_v7, %v6549_v7 }
  0x97   : > { %4610 = vmatmul.mubr.bf16.vlgmr.msra.gmra.mrb[12].mxu1 %v6223_v27  ;;  %4614 = vmatpush3.bf16.msra.mxu0 %v6228_v28 }
  0x98   : > { %4634 = vmatpush3.bf16.msra.mxu1 %v6235_v29  ;;  %4615 = vmatprep.subr.bf16.mxu0 %v5817_v1 }
  0x99   : > { %4635 = vmatprep.subr.bf16.mxu1 %v5817_v1  ;;  %4629 = vmatprep.mubr.msk.bf16.mxu0 %vm5818_vm0, %v5817_v1 }
  0x9a   : > { %4649 = vmatprep.mubr.msk.bf16.mxu1 %vm5818_vm0, %v5817_v1 }
  0x9b   : > { %4616 = vmatpush3.bf16.msra.mxu0 %v6245_v30 }
  0x9c   : > { %4636 = vmatpush3.bf16.msra.mxu1 %v6252_v31  ;;  %4617 = vmatprep.subr.bf16.mxu0 %v5817_v1 }
  0x9d   : > { %4637 = vmatprep.subr.bf16.mxu1 %v5817_v1 }
  0x9f   : > { %4618 = vmatpush3.bf16.msra.mxu0 %v6260_v32 }
  0xa0   : > { %4638 = vmatpush3.bf16.msra.mxu1 %v6270_v33  ;;  %4619 = vmatprep.subr.bf16.mxu0 %v5817_v1 }
  0xa1   : > { %4639 = vmatprep.subr.bf16.mxu1 %v5817_v1 }
  0xa3   : > { %4620 = vmatpush3.bf16.msra.mxu0 %v6276_v34 }
  0xa4   : > { %4640 = vmatpush3.bf16.msra.mxu1 %v6281_v35  ;;  %4621 = vmatprep.subr.bf16.mxu0 %v5817_v1 }
  0xa5   : > { %4641 = vmatprep.subr.bf16.mxu1 %v5817_v1 }
  0xa7   : > { %4622 = vmatpush3.bf16.msra.mxu0 %v6291_v36 }
  0xa8   : > { %4642 = vmatpush3.bf16.msra.mxu1 %v6298_v37  ;;  %4623 = vmatprep.subr.bf16.mxu0 %v5817_v1 }
  0xa9   : > { %4643 = vmatprep.subr.bf16.mxu1 %v5817_v1 }
  0xab   : > { %4624 = vmatpush3.bf16.msra.mxu0 %v6308_v39 }
  0xac   : > { %4644 = vmatpush3.bf16.msra.mxu1 %v6317_v41  ;;  %4625 = vmatprep.subr.bf16.mxu0 %v5817_v1 }
  0xad   : > { %4645 = vmatprep.subr.bf16.mxu1 %v5817_v1 }
  0xaf   : > { %4626 = vmatpush3.bf16.msra.mxu0 %v6324_v42 }
  0xb0   : > { %4646 = vmatpush3.bf16.msra.mxu1 %v6331_v44  ;;  %4627 = vmatprep.subr.bf16.mxu0 %v5817_v1 }
  0xb1   : > { %4647 = vmatprep.subr.bf16.mxu1 %v5817_v1 }
  0xb3   : > { %4628 = vmatpush3.bf16.msra.mxu0 %v6338_v45 }
  0xb4   : > { %4648 = vmatpush3.bf16.msra.mxu1 %v6345_v48  ;;  %4653 = vmatprep.subr.bf16.mxu0 %v5817_v1 }
  0xb5   : > { %4673 = vmatprep.subr.bf16.mxu1 %v5817_v1 }
  0xb6   : > { %4630 = vmatmul.mubr.bf16.vlgmr.msra.gmra.mrb[16].mxu0 %v6301_v38 }
  0xb7   : > { %4650 = vmatmul.mubr.bf16.vlgmr.msra.gmra.mrb[16].mxu1 %v6349_v49  ;;  %4654 = vmatpush3.bf16.msra.mxu0 %v6354_v50 }
  0xb8   : > { %4674 = vmatpush3.bf16.msra.mxu1 %v6361_v51  ;;  %4655 = vmatprep.subr.bf16.mxu0 %v5817_v1 }
  0xb9   : > { %4675 = vmatprep.subr.bf16.mxu1 %v5817_v1  ;;  %4669 = vmatprep.mubr.msk.bf16.mxu0 %vm5818_vm0, %v5817_v1 }
  0xba   : > { %4689 = vmatprep.mubr.msk.bf16.mxu1 %vm5818_vm0, %v5817_v1 }
  0xbb   : > { %4656 = vmatpush3.bf16.msra.mxu0 %v6370_v52 }
  0xbc   : > { %4676 = vmatpush3.bf16.msra.mxu1 %v6377_v53  ;;  %4657 = vmatprep.subr.bf16.mxu0 %v5817_v1 }
  0xbd   : > { %4677 = vmatprep.subr.bf16.mxu1 %v5817_v1 }
  0xbf   : > { %4658 = vmatpush3.bf16.msra.mxu0 %v6388_v54 }
  0xc0   : > { %4678 = vmatpush3.bf16.msra.mxu1 %v6395_v55  ;;  %4659 = vmatprep.subr.bf16.mxu0 %v5817_v1 }
  0xc1   : > { %4679 = vmatprep.subr.bf16.mxu1 %v5817_v1 }
  0xc3   : > { %4660 = vmatpush3.bf16.msra.mxu0 %v6402_v57 }
  0xc4   : > { %4680 = vmatpush3.bf16.msra.mxu1 %v6409_v58  ;;  %4661 = vmatprep.subr.bf16.mxu0 %v5817_v1 }
  0xc5   : > { %4681 = vmatprep.subr.bf16.mxu1 %v5817_v1 }
  0xc7   : > { %4662 = vmatpush3.bf16.msra.mxu0 %v6416_v59 }
  0xc8   : > { %4682 = vmatpush3.bf16.msra.mxu1 %v6423_v60  ;;  %4663 = vmatprep.subr.bf16.mxu0 %v5817_v1 }
  0xc9   : > { %4683 = vmatprep.subr.bf16.mxu1 %v5817_v1 }
  0xcb   : > { %4664 = vmatpush3.bf16.msra.mxu0 %v6430_v61 }
  0xcc   : > { %4684 = vmatpush3.bf16.msra.mxu1 %v6438_v63  ;;  %4665 = vmatprep.subr.bf16.mxu0 %v5817_v1 }
  0xcd   : > { %4685 = vmatprep.subr.bf16.mxu1 %v5817_v1 }
  0xcf   : > { %4666 = vmatpush3.bf16.msra.mxu0 %v6445_v0 }
  0xd0   : > { %4686 = vmatpush3.bf16.msra.mxu1 %v6452_v5  ;;  %4667 = vmatprep.subr.bf16.mxu0 %v5817_v1 }
  0xd1   : > { %4687 = vmatprep.subr.bf16.mxu1 %v5817_v1 }
  0xd3   : > { %4668 = vmatpush3.bf16.msra.mxu0 %v6459_v6 }
  0xd4   : > { %4688 = vmatpush3.bf16.msra.mxu1 %v6466_v9  ;;  %4693 = vmatprep.subr.bf16.mxu0 %v5817_v1 }
  0xd5   : > { %4713 = vmatprep.subr.bf16.mxu1 %v5817_v1 }
  0xd6   : > { %4670 = vmatmul.mubr.bf16.vlgmr.msra.gmra.mrb[20].mxu0 %v6469_v10 }
  0xd7   : > { %4690 = vmatmul.mubr.bf16.vlgmr.msra.gmra.mrb[20].mxu1 %v6472_v19  ;;  %4694 = vmatpush3.bf16.msra.mxu0 %v6477_v20 }
  0xd8   : > { %4714 = vmatpush3.bf16.msra.mxu1 %v6484_v23  ;;  %4695 = vmatprep.subr.bf16.mxu0 %v5817_v1 }
  0xd9   : > { %4715 = vmatprep.subr.bf16.mxu1 %v5817_v1  ;;  %4709 = vmatprep.mubr.msk.bf16.mxu0 %vm5818_vm0, %v5817_v1 }
  0xda   : > { %4729 = vmatprep.mubr.msk.bf16.mxu1 %vm5818_vm0, %v5817_v1 }
  0xdb   : > { %4696 = vmatpush3.bf16.msra.mxu0 %v6493_v24 }
  0xdc   : > { %4716 = vmatpush3.bf16.msra.mxu1 %v6500_v40  ;;  %4697 = vmatprep.subr.bf16.mxu0 %v5817_v1 }
  0xdd   : > { %4717 = vmatprep.subr.bf16.mxu1 %v5817_v1 }
  0xdf   : > { %4698 = vmatpush3.bf16.msra.mxu0 %v6511_v43 }
  0xe0   : > { %4718 = vmatpush3.bf16.msra.mxu1 %v6518_v46  ;;  %4699 = vmatprep.subr.bf16.mxu0 %v5817_v1  ;;  %v1705_v46 = vshrl.u32 %v3933_v26, 16 }
  0xe1   : > { %4719 = vmatprep.subr.bf16.mxu1 %v5817_v1 }
  0xe3   : > { %4700 = vmatpush3.bf16.msra.mxu0 %v6525_v47  ;;  %v1707_v47 = vshll.u32 %v3933_v26, 16  ;;  %v6602_v26 = vld [vmem:[%s7879_s1 + $0x380] sm:$0xff]  }
  0xe4   : > { %4720 = vmatpush3.bf16.msra.mxu1 %v6532_v62  ;;  %4701 = vmatprep.subr.bf16.mxu0 %v5817_v1  ;;  %v6565_v62 = vld [vmem:[%s7879_s1 + $0x368] sm:$0xff]   ;;  %7986 = vst [vmem:[#allocation24_spill] sm:$0xff] %v6602_v26 }
  0xe5   : > { %4721 = vmatprep.subr.bf16.mxu1 %v5817_v1  ;;  %7981 = vst [vmem:[#allocation19_spill] sm:$0xff] %v6565_v62  ;;  %v1709_v43 = vrot.slane %v1707_v47, 1  ;;  %v6609_v47 = vld [vmem:[%s7879_s1 + $0x3c0] sm:$0xff]  }
  0xe6   : > { %7987 = vst [vmem:[#allocation25_spill] sm:$0xff] %v6609_v47 }
  0xe7   : > { %4702 = vmatpush3.bf16.msra.mxu0 %v6539_v2  ;;  %v6572_v2 = vld [vmem:[%s7879_s1 + $0x330] sm:$0xff]  }
  0xe8   : > { %4722 = vmatpush3.bf16.msra.mxu1 %v6546_v3  ;;  %4703 = vmatprep.subr.bf16.mxu0 %v5817_v1  ;;  %7982 = vst [vmem:[#allocation20_spill] sm:$0xff] %v6572_v2  ;;  %v6579_v3 = vld [vmem:[%s7879_s1 + $0x370] sm:$0xff]  }
  0xe9   : > { %4723 = vmatprep.subr.bf16.mxu1 %v5817_v1  ;;  %7983 = vst [vmem:[#allocation21_spill] sm:$0xff] %v6579_v3 }
  0xeb   : > { %4704 = vmatpush3.bf16.msra.mxu0 %v6556_v8  ;;  %v6586_v8 = vld [vmem:[%s7879_s1 + $0x338] sm:$0xff]  }
  0xec   : > { %4724 = vmatpush3.bf16.msra.mxu1 %v6565_v62  ;;  %4705 = vmatprep.subr.bf16.mxu0 %v5817_v1  ;;  %7984 = vst [vmem:[#allocation22_spill] sm:$0xff] %v6586_v8  ;;  %v6593_v62 = vld [vmem:[%s7879_s1 + $0x378] sm:$0xff]  }
  0xed   : > { %4725 = vmatprep.subr.bf16.mxu1 %v5817_v1  ;;  %7985 = vst [vmem:[#allocation23_spill] sm:$0xff] %v6593_v62 }
  0xef   : > { %4706 = vmatpush3.bf16.msra.mxu0 %v6572_v2  ;;  %v6597_v2 = vor.u32 %v1709_v43, %v1705_v46  ;;  %v6618_v43 = vld [vmem:[%s7879_s1 + $0x388] sm:$0xff]  }
  0xf0   : > { %4726 = vmatpush3.bf16.msra.mxu1 %v6579_v3  ;;  %4707 = vmatprep.subr.bf16.mxu0 %v5817_v1  ;;  %7988 = vst [vmem:[#allocation26_spill] sm:$0xff] %v6618_v43  ;;  %v6625_v46 = vld [vmem:[%s7879_s1 + $0x3c8] sm:$0xff]  }
  0xf1   : > { %4727 = vmatprep.subr.bf16.mxu1 %v5817_v1  ;;  %7989 = vst [vmem:[#allocation27_spill] sm:$0xff] %v6625_v46 }
  0xf3   : > { %4708 = vmatpush3.bf16.msra.mxu0 %v6586_v8 }
  0xf4   : > { %4728 = vmatpush3.bf16.msra.mxu1 %v6593_v62  ;;  %4733 = vmatprep.subr.bf16.mxu0 %v5817_v1  ;;  %v5610_v62 = vld [vmem:[%s5939_s9 + $0xc] ss:$0 sps:$4 sm:$0x66]  }
  0xf5   : > { %4753 = vmatprep.subr.bf16.mxu1 %v5817_v1  ;;  %v1931_v20 = vshrl.u32 %v5610_v62, 16  ;;  %v1934_v9 = vshll.u32 %v5610_v62, 16 }
  0xf6   : > { %4710 = vmatmul.mubr.bf16.vlgmr.msra.gmra.mrb[24].mxu0 %v6549_v7 }
  0xf7   : > { %4730 = vmatmul.mubr.bf16.vlgmr.msra.gmra.mrb[24].mxu1 %v6597_v2  ;;  %4734 = vmatpush3.bf16.msra.mxu0 %v6602_v26  ;;  %v6643_v26 = vld [vmem:[%s7879_s1 + $0x3d0] sm:$0xff]  }
  0xf8   : > { %4754 = vmatpush3.bf16.msra.mxu1 %v6609_v47  ;;  %4735 = vmatprep.subr.bf16.mxu0 %v5817_v1  ;;  %v6636_v47 = vld [vmem:[%s7879_s1 + $0x390] sm:$0xff]   ;;  %7991 = vst [vmem:[#allocation29_spill] sm:$0xff] %v6643_v26 }
  0xf9   : > { %4755 = vmatprep.subr.bf16.mxu1 %v5817_v1  ;;  %4749 = vmatprep.mubr.msk.bf16.mxu0 %vm5818_vm0, %v5817_v1  ;;  %7990 = vst [vmem:[#allocation28_spill] sm:$0xff] %v6636_v47 }
  0xfa   : > { %4769 = vmatprep.mubr.msk.bf16.mxu1 %vm5818_vm0, %v5817_v1 }
  0xfb   : > { %4736 = vmatpush3.bf16.msra.mxu0 %v6618_v43  ;;  %v6650_v43 = vld [vmem:[%s7879_s1 + $0x398] sm:$0xff]  }
  0xfc   : > { %4756 = vmatpush3.bf16.msra.mxu1 %v6625_v46  ;;  %4737 = vmatprep.subr.bf16.mxu0 %v5817_v1  ;;  %7992 = vst [vmem:[#allocation30_spill] sm:$0xff] %v6650_v43  ;;  %v6657_v46 = vld [vmem:[%s7879_s1 + $0x3d8] sm:$0xff]  }
  0xfd   : > { %4757 = vmatprep.subr.bf16.mxu1 %v5817_v1  ;;  %7993 = vst [vmem:[#allocation31_spill] sm:$0xff] %v6657_v46 }
  0xff   : > { %4738 = vmatpush3.bf16.msra.mxu0 %v6636_v47  ;;  %v6664_v47 = vld [vmem:[%s7879_s1 + $0x3a0] sm:$0xff]  }
 0x100   : > { %4758 = vmatpush3.bf16.msra.mxu1 %v6643_v26  ;;  %4739 = vmatprep.subr.bf16.mxu0 %v5817_v1  ;;  %7994 = vst [vmem:[#allocation32_spill] sm:$0xff] %v6664_v47  ;;  %v6671_v26 = vld [vmem:[%s7879_s1 + $0x3e0] sm:$0xff]  }
 0x101   : > { %4759 = vmatprep.subr.bf16.mxu1 %v5817_v1  ;;  %7995 = vst [vmem:[#allocation33_spill] sm:$0xff] %v6671_v26 }
 0x103   : > { %4740 = vmatpush3.bf16.msra.mxu0 %v6650_v43  ;;  %v6678_v43 = vld [vmem:[%s7879_s1 + $0x3a8] sm:$0xff]  }
 0x104   : > { %4760 = vmatpush3.bf16.msra.mxu1 %v6657_v46  ;;  %4741 = vmatprep.subr.bf16.mxu0 %v5817_v1  ;;  %v6686_v46 = vld [vmem:[%s7879_s1 + $0x3e8] sm:$0xff]  }
 0x105   : > { %4761 = vmatprep.subr.bf16.mxu1 %v5817_v1  ;;  %7996 = vst [vmem:[#allocation34_spill] sm:$0xff] %v6686_v46 }
 0x107   : > { %4742 = vmatpush3.bf16.msra.mxu0 %v6664_v47 }
 0x108   : > { %4762 = vmatpush3.bf16.msra.mxu1 %v6671_v26  ;;  %4743 = vmatprep.subr.bf16.mxu0 %v5817_v1  ;;  %v6695_v26 = vld [vmem:[%s7879_s1 + $0x3b0] sm:$0xff]  }
 0x109   : > { %v351_v8 = vpop.f32.mrb[0].mxu0  ;;  %4763 = vmatprep.subr.bf16.mxu1 %v5817_v1  ;;  %7997 = vst [vmem:[#allocation35_spill] sm:$0xff] %v6695_v26 }
 0x10a   : > { %v439_v3 = vpop.f32.mrb[0].mxu1  ;;  %v4471_v47 = vpop.f32.mrb[1].mxu0 }
 0x10b   : > { %v6689_v40 = vadd.f32 %v439_v3, %v351_v8  ;;  %v4491_v24 = vpop.f32.mrb[1].mxu1  ;;  %v354_v23 = vpop.f32.mrb[2].mxu0  ;;  %4744 = vmatpush3.bf16.msra.mxu0 %v6678_v43  ;;  %v6709_v3 = vld [vmem:[%s7879_s1 + $0x3b8] sm:$0xff]   ;;  %v1936_v8 = vrot.slane %v1934_v9, 2  ;;  %v6719_v47 = vrot.slane %v5610_v62, 1  ;;  %v6732_v9 = vld [vmem:[%s7879_s1 + $0x40] sm:$0xff]  }
 0x10c   : > { %v442_v6 = vpop.f32.mrb[2].mxu1  ;;  %4764 = vmatpush3.bf16.msra.mxu1 %v6686_v46  ;;  %v4472_v5 = vpop.f32.mrb[3].mxu0  ;;  %4745 = vmatprep.subr.bf16.mxu0 %v5817_v1  ;;  %v6702_v24 = vld [vmem:[%s7879_s1 + $0x3f0] sm:$0xff]   ;;  %7999 = vst [vmem:[#allocation37_spill] sm:$0xff] %v6709_v3  ;;  %8001 = vst [vmem:[#allocation39_spill] sm:$0xff] %v6732_v9  ;;  %v6750_v62 = vld [vmem:[%s7879_s1 + $0x48] sm:$0xff]  }
 0x10d   : > { %7998 = vst [vmem:[#allocation36_spill] sm:$0xff] %v6702_v24  ;;  %v4492_v23 = vpop.f32.mrb[3].mxu1  ;;  %4765 = vmatprep.subr.bf16.mxu1 %v5817_v1  ;;  %v1933_v6 = vrot.slane %v1931_v20, 1  ;;  %v6716_v5 = vld [vmem:[%s7879_s1 + $0x3f8] sm:$0xff]   ;;  %v6738_v20 = vld [vmem:[%s7879_s1] sm:$0xff]   ;;  %8003 = vst [vmem:[#allocation41_spill] sm:$0xff] %v6750_v62 }
 0x10e   : > { %8000 = vst [vmem:[#allocation38_spill] sm:$0xff] %v6716_v5  ;;  %8002 = vst [vmem:[#allocation40_spill] sm:$0xff] %v6738_v20  ;;  %v6813_v46 = vld [vmem:[%s7879_s1 + $0x28] sm:$0xff]  }
 0x10f   : > { %4746 = vmatpush3.bf16.msra.mxu0 %v6695_v26  ;;  %v6722_v23 = vor.u32 %v1936_v8, %v1933_v6  ;;  %v6756_v6 = vld [vmem:[%s7879_s1 + $0x8] sm:$0xff]   ;;  %v6764_v8 = vld [vmem:[%s7879_s1 + $0x50] sm:$0xff]  }
 0x110   : > { %4766 = vmatpush3.bf16.msra.mxu1 %v6702_v24  ;;  %4747 = vmatprep.subr.bf16.mxu0 %v5817_v1  ;;  %8004 = vst [vmem:[#allocation42_spill] sm:$0xff] %v6756_v6  ;;  %8005 = vst [vmem:[#allocation43_spill] sm:$0xff] %v6764_v8 }
 0x111   : > { %4767 = vmatprep.subr.bf16.mxu1 %v5817_v1 }
 0x113   : > { %4748 = vmatpush3.bf16.msra.mxu0 %v6709_v3 }
 0x114   : > { %4768 = vmatpush3.bf16.msra.mxu1 %v6716_v5  ;;  %4773 = vmatprep.subr.bf16.mxu0 %v5817_v1 }
 0x115   : > { %4793 = vmatprep.subr.bf16.mxu1 %v5817_v1 }
 0x116   : > { %4750 = vmatmul.mubr.bf16.vlgmr.msra.gmra.mrb[28].mxu0 %v6719_v47 }
 0x117   : > { %4770 = vmatmul.mubr.bf16.vlgmr.msra.gmra.mrb[28].mxu1 %v6722_v23  ;;  %4774 = vmatpush3.bf16.msra.mxu0 %v6732_v9 }
 0x118   : > { %4794 = vmatpush3.bf16.msra.mxu1 %v6738_v20  ;;  %4775 = vmatprep.subr.bf16.mxu0 %v5817_v1 }
 0x119   : > { %4795 = vmatprep.subr.bf16.mxu1 %v5817_v1  ;;  %4789 = vmatprep.mubr.msk.bf16.mxu0 %vm5818_vm0, %v5817_v1 }
 0x11a   : > { %4809 = vmatprep.mubr.msk.bf16.mxu1 %vm5818_vm0, %v5817_v1 }
 0x11b   : > { %4776 = vmatpush3.bf16.msra.mxu0 %v6750_v62  ;;  %v6770_v62 = vld [vmem:[%s7879_s1 + $0x10] sm:$0xff]  }
 0x11c   : > { %4796 = vmatpush3.bf16.msra.mxu1 %v6756_v6  ;;  %4777 = vmatprep.subr.bf16.mxu0 %v5817_v1  ;;  %8006 = vst [vmem:[#allocation44_spill] sm:$0xff] %v6770_v62  ;;  %v6778_v6 = vld [vmem:[%s7879_s1 + $0x58] sm:$0xff]  }
 0x11d   : > { %4797 = vmatprep.subr.bf16.mxu1 %v5817_v1  ;;  %8007 = vst [vmem:[#allocation45_spill] sm:$0xff] %v6778_v6 }
 0x11f   : > { %4778 = vmatpush3.bf16.msra.mxu0 %v6764_v8  ;;  %v6784_v8 = vld [vmem:[%s7879_s1 + $0x18] sm:$0xff]  }
 0x120   : > { %4798 = vmatpush3.bf16.msra.mxu1 %v6770_v62  ;;  %4779 = vmatprep.subr.bf16.mxu0 %v5817_v1  ;;  %8008 = vst [vmem:[#allocation46_spill] sm:$0xff] %v6784_v8  ;;  %v6792_v62 = vld [vmem:[%s7879_s1 + $0x60] sm:$0xff]  }
 0x121   : > { %4799 = vmatprep.subr.bf16.mxu1 %v5817_v1  ;;  %8009 = vst [vmem:[#allocation47_spill] sm:$0xff] %v6792_v62 }
 0x123   : > { %4780 = vmatpush3.bf16.msra.mxu0 %v6778_v6  ;;  %v6798_v6 = vld [vmem:[%s7879_s1 + $0x20] sm:$0xff]  }
 0x124   : > { %4800 = vmatpush3.bf16.msra.mxu1 %v6784_v8  ;;  %4781 = vmatprep.subr.bf16.mxu0 %v5817_v1  ;;  %8010 = vst [vmem:[#allocation48_spill] sm:$0xff] %v6798_v6 }
 0x125   : > { %4801 = vmatprep.subr.bf16.mxu1 %v5817_v1 }
 0x127   : > { %4782 = vmatpush3.bf16.msra.mxu0 %v6792_v62  ;;  %v6807_v62 = vld [vmem:[%s7879_s1 + $0x68] sm:$0xff]  }
 0x128   : > { %4802 = vmatpush3.bf16.msra.mxu1 %v6798_v6  ;;  %4783 = vmatprep.subr.bf16.mxu0 %v5817_v1 }
 0x129   : > { %v550_v8 = vpop.f32.mrb[4].mxu0  ;;  %4803 = vmatprep.subr.bf16.mxu1 %v5817_v1 }
 0x12a   : > { %v556_v20 = vadd.f32 %v550_v8, %v6689_v40  ;;  %v665_v9 = vpop.f32.mrb[4].mxu1  ;;  %v4511_v5 = vpop.f32.mrb[5].mxu0  ;;  %v6857_v8 = vld [vmem:[%s7879_s1 + $0xc0] sm:$0xff]  }
 0x12b   : > { %v4531_v3 = vpop.f32.mrb[5].mxu1  ;;  %v553_v24 = vpop.f32.mrb[6].mxu0  ;;  %4784 = vmatpush3.bf16.msra.mxu0 %v6807_v62  ;;  %v6827_v5 = vld [vmem:[%s7879_s1 + $0x30] sm:$0xff]   ;;  %8016 = vst [vmem:[#allocation54_spill] sm:$0xff] %v6857_v8 }
 0x12c   : > { %v671_v26 = vadd.f32 %v665_v9, %v556_v20  ;;  %v668_v6 = vpop.f32.mrb[6].mxu1  ;;  %4804 = vmatpush3.bf16.msra.mxu1 %v6813_v46  ;;  %v4512_v40 = vpop.f32.mrb[7].mxu0  ;;  %4785 = vmatprep.subr.bf16.mxu0 %v5817_v1  ;;  %v6821_v3 = vld [vmem:[%s7879_s1 + $0x70] sm:$0xff]   ;;  %8012 = vst [vmem:[#allocation50_spill] sm:$0xff] %v6827_v5  ;;  %v6835_v9 = vld [vmem:[%s7879_s1 + $0x78] sm:$0xff]  }
 0x12d   : > { %v4532_v24 = vpop.f32.mrb[7].mxu1  ;;  %4805 = vmatprep.subr.bf16.mxu1 %v5817_v1  ;;  %8011 = vst [vmem:[#allocation49_spill] sm:$0xff] %v6821_v3  ;;  %8013 = vst [vmem:[#allocation51_spill] sm:$0xff] %v6835_v9  ;;  %v6841_v20 = vld [vmem:[%s7879_s1 + $0x38] sm:$0xff]   ;;  %v6851_v6 = vld [vmem:[%s7879_s1 + $0x80] sm:$0xff]  }
 0x12e   : > { %8014 = vst [vmem:[#allocation52_spill] sm:$0xff] %v6841_v20  ;;  %8015 = vst [vmem:[#allocation53_spill] sm:$0xff] %v6851_v6  ;;  %v6883_v40 = vld [vmem:[%s7879_s1 + $0x90] sm:$0xff]  }
 0x12f   : > { %4786 = vmatpush3.bf16.msra.mxu0 %v6821_v3  ;;  %8019 = vst [vmem:[#allocation57_spill] sm:$0xff] %v6883_v40  ;;  %v6889_v24 = vld [vmem:[%s7879_s1 + $0xd0] sm:$0xff]  }
 0x130   : > { %4806 = vmatpush3.bf16.msra.mxu1 %v6827_v5  ;;  %4787 = vmatprep.subr.bf16.mxu0 %v5817_v1  ;;  %8020 = vst [vmem:[#allocation58_spill] sm:$0xff] %v6889_v24 }
 0x131   : > { %4807 = vmatprep.subr.bf16.mxu1 %v5817_v1 }
 0x133   : > { %4788 = vmatpush3.bf16.msra.mxu0 %v6835_v9 }
 0x134   : > { %4808 = vmatpush3.bf16.msra.mxu1 %v6841_v20  ;;  %4813 = vmatprep.subr.bf16.mxu0 %v5817_v1 }
 0x135   : > { %4833 = vmatprep.subr.bf16.mxu1 %v5817_v1 }
 0x136   : > { %4790 = vmatmul.mubr.bf16.vlgmr.msra.gmra.mrb[32].mxu0 %v6116_v4  ;;  %v6875_v4 = vld [vmem:[%s7879_s1 + $0xc8] sm:$0xff]  }
 0x137   : > { %4810 = vmatmul.mubr.bf16.vlgmr.msra.gmra.mrb[32].mxu1 %v6087_v56  ;;  %4814 = vmatpush3.bf16.msra.mxu0 %v6851_v6  ;;  %v6869_v56 = vld [vmem:[%s7879_s1 + $0x88] sm:$0xff]   ;;  %8018 = vst [vmem:[#allocation56_spill] sm:$0xff] %v6875_v4 }
 0x138   : > { %4834 = vmatpush3.bf16.msra.mxu1 %v6857_v8  ;;  %4815 = vmatprep.subr.bf16.mxu0 %v5817_v1  ;;  %8017 = vst [vmem:[#allocation55_spill] sm:$0xff] %v6869_v56 }
 0x139   : > { %4835 = vmatprep.subr.bf16.mxu1 %v5817_v1  ;;  %4829 = vmatprep.mubr.msk.bf16.mxu0 %vm5818_vm0, %v5817_v1 }
 0x13a   : > { %4849 = vmatprep.mubr.msk.bf16.mxu1 %vm5818_vm0, %v5817_v1 }
 0x13b   : > { %4816 = vmatpush3.bf16.msra.mxu0 %v6869_v56 }
 0x13c   : > { %4836 = vmatpush3.bf16.msra.mxu1 %v6875_v4  ;;  %4817 = vmatprep.subr.bf16.mxu0 %v5817_v1  ;;  %v6897_v4 = vld [vmem:[%s7879_s1 + $0x98] sm:$0xff]  }
 0x13d   : > { %4837 = vmatprep.subr.bf16.mxu1 %v5817_v1  ;;  %8021 = vst [vmem:[#allocation59_spill] sm:$0xff] %v6897_v4 }
 0x13f   : > { %4818 = vmatpush3.bf16.msra.mxu0 %v6883_v40  ;;  %v6903_v40 = vld [vmem:[%s7879_s1 + $0xd8] sm:$0xff]  }
 0x140   : > { %4838 = vmatpush3.bf16.msra.mxu1 %v6889_v24  ;;  %4819 = vmatprep.subr.bf16.mxu0 %v5817_v1  ;;  %8022 = vst [vmem:[#allocation60_spill] sm:$0xff] %v6903_v40  ;;  %v6911_v24 = vld [vmem:[%s7879_s1 + $0xa0] sm:$0xff]  }
 0x141   : > { %4839 = vmatprep.subr.bf16.mxu1 %v5817_v1  ;;  %8023 = vst [vmem:[#allocation61_spill] sm:$0xff] %v6911_v24 }
 0x143   : > { %4820 = vmatpush3.bf16.msra.mxu0 %v6897_v4  ;;  %v6917_v4 = vld [vmem:[%s7879_s1 + $0xe0] sm:$0xff]  }
 0x144   : > { %4840 = vmatpush3.bf16.msra.mxu1 %v6903_v40  ;;  %4821 = vmatprep.subr.bf16.mxu0 %v5817_v1  ;;  %8024 = vst [vmem:[#allocation62_spill] sm:$0xff] %v6917_v4 }
 0x145   : > { %4841 = vmatprep.subr.bf16.mxu1 %v5817_v1 }
 0x147   : > { %4822 = vmatpush3.bf16.msra.mxu0 %v6911_v24  ;;  %v6925_v24 = vld [vmem:[%s7879_s1 + $0xa8] sm:$0xff]  }
 0x148   : > { %4842 = vmatpush3.bf16.msra.mxu1 %v6917_v4  ;;  %4823 = vmatprep.subr.bf16.mxu0 %v5817_v1  ;;  %v6931_v4 = vld [vmem:[%s7879_s1 + $0xe8] sm:$0xff]  }
 0x149   : > { %v773_v40 = vpop.f32.mrb[8].mxu0  ;;  %4843 = vmatprep.subr.bf16.mxu1 %v5817_v1 }
 0x14a   : > { %v779_v56 = vadd.f32 %v773_v40, %v671_v26  ;;  %v890_v8 = vpop.f32.mrb[8].mxu1  ;;  %v4551_v6 = vpop.f32.mrb[9].mxu0  ;;  %v6970_v40 = vld [vmem:[%s7879_s1 + $0x100] sm:$0xff]  }
 0x14b   : > { %v4571_v20 = vpop.f32.mrb[9].mxu1  ;;  %v776_v9 = vpop.f32.mrb[10].mxu0  ;;  %4824 = vmatpush3.bf16.msra.mxu0 %v6925_v24  ;;  %v6953_v6 = vld [vmem:[%s7879_s1 + $0xb8] sm:$0xff]   ;;  %8030 = vst [vmem:[#allocation67_spill] sm:$0xff] %v6970_v40 }
 0x14c   : > { %v896_v5 = vadd.f32 %v890_v8, %v779_v56  ;;  %v893_v3 = vpop.f32.mrb[10].mxu1  ;;  %4844 = vmatpush3.bf16.msra.mxu1 %v6931_v4  ;;  %v4552_v26 = vpop.f32.mrb[11].mxu0  ;;  %4825 = vmatprep.subr.bf16.mxu0 %v5817_v1  ;;  %v6939_v20 = vld [vmem:[%s7879_s1 + $0xb0] sm:$0xff]   ;;  %8027 = vst [vmem:[#allocation65_spill] sm:$0xff] %v6953_v6  ;;  %v6959_v8 = vld [vmem:[%s7879_s1 + $0xf8] sm:$0xff]   ;;  %v8029_v56 = vrot.slane %v6175_v15, 1 }
 0x14d   : > { %v4572_v9 = vpop.f32.mrb[11].mxu1  ;;  %4845 = vmatprep.subr.bf16.mxu1 %v5817_v1  ;;  %8025 = vst [vmem:[#allocation63_spill] sm:$0xff] %v6939_v20  ;;  %v6945_v3 = vld [vmem:[%s7879_s1 + $0xf0] sm:$0xff]   ;;  %8028 = vst [vmem:[#allocation66_spill] sm:$0xff] %v6959_v8  ;;  %v6976_v26 = vld [vmem:[%s7879_s1 + $0x140] sm:$0xff]  }
 0x14e   : > { %8026 = vst [vmem:[#allocation64_spill] sm:$0xff] %v6945_v3  ;;  %8031 = vst [vmem:[#allocation68_spill] sm:$0xff] %v6976_v26  ;;  %v6988_v15 = vld [vmem:[%s7879_s1 + $0x108] sm:$0xff]   ;;  %v7002_v9 = vld [vmem:[%s7879_s1 + $0x110] sm:$0xff]  }
 0x14f   : > { %4826 = vmatpush3.bf16.msra.mxu0 %v6939_v20  ;;  %8032 = vst [vmem:[#allocation69_spill] sm:$0xff] %v6988_v15  ;;  %8034 = vst [vmem:[#allocation71_spill] sm:$0xff] %v7002_v9 }
 0x150   : > { %4846 = vmatpush3.bf16.msra.mxu1 %v6945_v3  ;;  %4827 = vmatprep.subr.bf16.mxu0 %v5817_v1 }
 0x151   : > { %4847 = vmatprep.subr.bf16.mxu1 %v5817_v1 }
 0x153   : > { %4828 = vmatpush3.bf16.msra.mxu0 %v6953_v6 }
 0x154   : > { %4848 = vmatpush3.bf16.msra.mxu1 %v6959_v8  ;;  %4853 = vmatprep.subr.bf16.mxu0 %v5817_v1 }
 0x155   : > { %4873 = vmatprep.subr.bf16.mxu1 %v5817_v1 }
 0x156   : > { %4830 = vmatmul.mubr.bf16.vlgmr.msra.gmra.mrb[36].mxu0 %v8029_v56  ;;  %v7008_v56 = vld [vmem:[%s7879_s1 + $0x150] sm:$0xff]  }
 0x157   : > { %4850 = vmatmul.mubr.bf16.vlgmr.msra.gmra.mrb[36].mxu1 %v6223_v27  ;;  %4854 = vmatpush3.bf16.msra.mxu0 %v6970_v40  ;;  %v6994_v27 = vld [vmem:[%s7879_s1 + $0x148] sm:$0xff]   ;;  %8035 = vst [vmem:[#allocation72_spill] sm:$0xff] %v7008_v56 }
 0x158   : > { %4874 = vmatpush3.bf16.msra.mxu1 %v6976_v26  ;;  %4855 = vmatprep.subr.bf16.mxu0 %v5817_v1  ;;  %8033 = vst [vmem:[#allocation70_spill] sm:$0xff] %v6994_v27 }
 0x159   : > { %4875 = vmatprep.subr.bf16.mxu1 %v5817_v1  ;;  %4869 = vmatprep.mubr.msk.bf16.mxu0 %vm5818_vm0, %v5817_v1 }
 0x15a   : > { %4889 = vmatprep.mubr.msk.bf16.mxu1 %vm5818_vm0, %v5817_v1 }
 0x15b   : > { %4856 = vmatpush3.bf16.msra.mxu0 %v6988_v15 }
 0x15c   : > { %4876 = vmatpush3.bf16.msra.mxu1 %v6994_v27  ;;  %4857 = vmatprep.subr.bf16.mxu0 %v5817_v1  ;;  %v7016_v27 = vld [vmem:[%s7879_s1 + $0x118] sm:$0xff]  }
 0x15d   : > { %4877 = vmatprep.subr.bf16.mxu1 %v5817_v1  ;;  %8036 = vst [vmem:[#allocation73_spill] sm:$0xff] %v7016_v27 }
 0x15f   : > { %4858 = vmatpush3.bf16.msra.mxu0 %v7002_v9  ;;  %v7022_v9 = vld [vmem:[%s7879_s1 + $0x158] sm:$0xff]  }
 0x160   : > { %4878 = vmatpush3.bf16.msra.mxu1 %v7008_v56  ;;  %4859 = vmatprep.subr.bf16.mxu0 %v5817_v1  ;;  %8037 = vst [vmem:[#allocation74_spill] sm:$0xff] %v7022_v9  ;;  %v7030_v56 = vld [vmem:[%s7879_s1 + $0x120] sm:$0xff]  }
 0x161   : > { %4879 = vmatprep.subr.bf16.mxu1 %v5817_v1  ;;  %8038 = vst [vmem:[#allocation75_spill] sm:$0xff] %v7030_v56 }
 0x163   : > { %4860 = vmatpush3.bf16.msra.mxu0 %v7016_v27  ;;  %v7036_v27 = vld [vmem:[%s7879_s1 + $0x160] sm:$0xff]  }
 0x164   : > { %4880 = vmatpush3.bf16.msra.mxu1 %v7022_v9  ;;  %4861 = vmatprep.subr.bf16.mxu0 %v5817_v1  ;;  %8039 = vst [vmem:[#allocation76_spill] sm:$0xff] %v7036_v27 }
 0x165   : > { %4881 = vmatprep.subr.bf16.mxu1 %v5817_v1 }
 0x167   : > { %4862 = vmatpush3.bf16.msra.mxu0 %v7030_v56  ;;  %v7044_v56 = vld [vmem:[%s7879_s1 + $0x128] sm:$0xff]  }
 0x168   : > { %4882 = vmatpush3.bf16.msra.mxu1 %v7036_v27  ;;  %4863 = vmatprep.subr.bf16.mxu0 %v5817_v1  ;;  %v7050_v27 = vld [vmem:[%s7879_s1 + $0x168] sm:$0xff]  }
 0x169   : > { %v1002_v9 = vpop.f32.mrb[12].mxu0  ;;  %4883 = vmatprep.subr.bf16.mxu1 %v5817_v1 }
 0x16a   : > { %v1008_v15 = vadd.f32 %v1002_v9, %v896_v5  ;;  %v1117_v26 = vpop.f32.mrb[12].mxu1  ;;  %v4591_v40 = vpop.f32.mrb[13].mxu0  ;;  %v7094_v9 = vld [vmem:[%s7879_s1 + $0x1c0] sm:$0xff]  }
 0x16b   : > { %v4611_v8 = vpop.f32.mrb[13].mxu1  ;;  %v1005_v6 = vpop.f32.mrb[14].mxu0  ;;  %4864 = vmatpush3.bf16.msra.mxu0 %v7044_v56  ;;  %v7072_v40 = vld [vmem:[%s7879_s1 + $0x138] sm:$0xff]   ;;  %8043 = vst [vmem:[#allocation80_spill] sm:$0xff] %v7094_v9 }
 0x16c   : > { %v1123_v3 = vadd.f32 %v1117_v26, %v1008_v15  ;;  %v1120_v20 = vpop.f32.mrb[14].mxu1  ;;  %4884 = vmatpush3.bf16.msra.mxu1 %v7050_v27  ;;  %v4592_v5 = vpop.f32.mrb[15].mxu0  ;;  %4865 = vmatprep.subr.bf16.mxu0 %v5817_v1  ;;  %v7058_v8 = vld [vmem:[%s7879_s1 + $0x130] sm:$0xff]   ;;  %8040 = vst [vmem:[#allocation77_spill] sm:$0xff] %v7072_v40  ;;  %v7078_v26 = vld [vmem:[%s7879_s1 + $0x178] sm:$0xff]   ;;  %v7088_v15 = vld [vmem:[%s7879_s1 + $0x180] sm:$0xff]  }
 0x16d   : > { %v4612_v6 = vpop.f32.mrb[15].mxu1  ;;  %4885 = vmatprep.subr.bf16.mxu1 %v5817_v1  ;;  %v7064_v20 = vld [vmem:[%s7879_s1 + $0x170] sm:$0xff]   ;;  %8041 = vst [vmem:[#allocation78_spill] sm:$0xff] %v7078_v26  ;;  %8042 = vst [vmem:[#allocation79_spill] sm:$0xff] %v7088_v15  ;;  %v7112_v5 = vld [vmem:[%s7879_s1 + $0x1c8] sm:$0xff]  }
 0x16e   : > { %8045 = vst [vmem:[#allocation82_spill] sm:$0xff] %v7112_v5  ;;  %v7120_v6 = vld [vmem:[%s7879_s1 + $0x190] sm:$0xff]  }
 0x16f   : > { %4866 = vmatpush3.bf16.msra.mxu0 %v7058_v8  ;;  %8046 = vst [vmem:[#allocation83_spill] sm:$0xff] %v7120_v6 }
 0x170   : > { %4886 = vmatpush3.bf16.msra.mxu1 %v7064_v20  ;;  %4867 = vmatprep.subr.bf16.mxu0 %v5817_v1 }
 0x171   : > { %4887 = vmatprep.subr.bf16.mxu1 %v5817_v1 }
 0x173   : > { %4868 = vmatpush3.bf16.msra.mxu0 %v7072_v40 }
 0x174   : > { %4888 = vmatpush3.bf16.msra.mxu1 %v7078_v26  ;;  %4893 = vmatprep.subr.bf16.mxu0 %v5817_v1 }
 0x175   : > { %4913 = vmatprep.subr.bf16.mxu1 %v5817_v1 }
 0x176   : > { %4870 = vmatmul.mubr.bf16.vlgmr.msra.gmra.mrb[40].mxu0 %v6301_v38  ;;  %v7106_v38 = vld [vmem:[%s7879_s1 + $0x188] sm:$0xff]  }
 0x177   : > { %4890 = vmatmul.mubr.bf16.vlgmr.msra.gmra.mrb[40].mxu1 %v6349_v49  ;;  %4894 = vmatpush3.bf16.msra.mxu0 %v7088_v15  ;;  %8044 = vst [vmem:[#allocation81_spill] sm:$0xff] %v7106_v38 }
 0x178   : > { %4914 = vmatpush3.bf16.msra.mxu1 %v7094_v9  ;;  %4895 = vmatprep.subr.bf16.mxu0 %v5817_v1 }
 0x179   : > { %4915 = vmatprep.subr.bf16.mxu1 %v5817_v1  ;;  %4909 = vmatprep.mubr.msk.bf16.mxu0 %vm5818_vm0, %v5817_v1 }
 0x17a   : > { %4929 = vmatprep.mubr.msk.bf16.mxu1 %vm5818_vm0, %v5817_v1 }
 0x17b   : > { %4896 = vmatpush3.bf16.msra.mxu0 %v7106_v38  ;;  %v7126_v38 = vld [vmem:[%s7879_s1 + $0x1d0] sm:$0xff]  }
 0x17c   : > { %4916 = vmatpush3.bf16.msra.mxu1 %v7112_v5  ;;  %4897 = vmatprep.subr.bf16.mxu0 %v5817_v1  ;;  %8047 = vst [vmem:[#allocation84_spill] sm:$0xff] %v7126_v38 }
 0x17d   : > { %4917 = vmatprep.subr.bf16.mxu1 %v5817_v1 }
 0x17f   : > { %4898 = vmatpush3.bf16.msra.mxu0 %v7120_v6 }
 0x180   : > { %4918 = vmatpush3.bf16.msra.mxu1 %v7126_v38  ;;  %4899 = vmatprep.subr.bf16.mxu0 %v5817_v1 }
 0x181   : > { %4919 = vmatprep.subr.bf16.mxu1 %v5817_v1 }
 0x183   : > { %4900 = vmatpush3.bf16.msra.mxu0 %v6151_v11 }
 0x184   : > { %4920 = vmatpush3.bf16.msra.mxu1 %v6157_v12  ;;  %4901 = vmatprep.subr.bf16.mxu0 %v5817_v1 }
 0x185   : > { %4921 = vmatprep.subr.bf16.mxu1 %v5817_v1 }
 0x187   : > { %4902 = vmatpush3.bf16.msra.mxu0 %v6164_v13 }
 0x188   : > { %4922 = vmatpush3.bf16.msra.mxu1 %v6171_v14  ;;  %4903 = vmatprep.subr.bf16.mxu0 %v5817_v1 }
 0x189   : > { %v1225_v6 = vpop.f32.mrb[16].mxu0  ;;  %4923 = vmatprep.subr.bf16.mxu1 %v5817_v1 }
 0x18a   : > { %v1231_v38 = vadd.f32 %v1225_v6, %v1123_v3  ;;  %v1342_v5 = vpop.f32.mrb[16].mxu1  ;;  %v4631_v9 = vpop.f32.mrb[17].mxu0 }
 0x18b   : > { %v4651_v15 = vpop.f32.mrb[17].mxu1  ;;  %v1228_v11 = vpop.f32.mrb[18].mxu0  ;;  %4904 = vmatpush3.bf16.msra.mxu0 %v6181_v16  ;;  %v8061_v9 = vld [vmem:[#allocation18_spill] sm:$0xff] }
 0x18c   : > { %v1348_v12 = vadd.f32 %v1342_v5, %v1231_v38  ;;  %v1345_v26 = vpop.f32.mrb[18].mxu1  ;;  %4924 = vmatpush3.bf16.msra.mxu1 %v6188_v17  ;;  %v4632_v40 = vpop.f32.mrb[19].mxu0  ;;  %4905 = vmatprep.subr.bf16.mxu0 %v5817_v1  ;;  %v8062_v11 = vld [vmem:[#allocation19_spill] sm:$0xff] }
 0x18d   : > { %v4652_v13 = vpop.f32.mrb[19].mxu1  ;;  %4925 = vmatprep.subr.bf16.mxu1 %v5817_v1 }
 0x18f   : > { %4906 = vmatpush3.bf16.msra.mxu0 %v6194_v18 }
 0x190   : > { %4926 = vmatpush3.bf16.msra.mxu1 %v6204_v21  ;;  %4907 = vmatprep.subr.bf16.mxu0 %v5817_v1 }
 0x191   : > { %4927 = vmatprep.subr.bf16.mxu1 %v5817_v1 }
 0x193   : > { %4908 = vmatpush3.bf16.msra.mxu0 %v6210_v22 }
 0x194   : > { %4928 = vmatpush3.bf16.msra.mxu1 %v6218_v25  ;;  %4933 = vmatprep.subr.bf16.mxu0 %v5817_v1 }
 0x195   : > { %4953 = vmatprep.subr.bf16.mxu1 %v5817_v1 }
 0x196   : > { %4910 = vmatmul.mubr.bf16.vlgmr.msra.gmra.mrb[44].mxu0 %v6469_v10 }
 0x197   : > { %4930 = vmatmul.mubr.bf16.vlgmr.msra.gmra.mrb[44].mxu1 %v6472_v19  ;;  %4934 = vmatpush3.bf16.msra.mxu0 %v6228_v28 }
 0x198   : > { %4954 = vmatpush3.bf16.msra.mxu1 %v6235_v29  ;;  %4935 = vmatprep.subr.bf16.mxu0 %v5817_v1 }
 0x199   : > { %4955 = vmatprep.subr.bf16.mxu1 %v5817_v1  ;;  %4949 = vmatprep.mubr.msk.bf16.mxu0 %vm5818_vm0, %v5817_v1 }
 0x19a   : > { %4969 = vmatprep.mubr.msk.bf16.mxu1 %vm5818_vm0, %v5817_v1 }
 0x19b   : > { %4936 = vmatpush3.bf16.msra.mxu0 %v6245_v30 }
 0x19c   : > { %4956 = vmatpush3.bf16.msra.mxu1 %v6252_v31  ;;  %4937 = vmatprep.subr.bf16.mxu0 %v5817_v1 }
 0x19d   : > { %4957 = vmatprep.subr.bf16.mxu1 %v5817_v1 }
 0x19f   : > { %4938 = vmatpush3.bf16.msra.mxu0 %v6260_v32 }
 0x1a0   : > { %4958 = vmatpush3.bf16.msra.mxu1 %v6270_v33  ;;  %4939 = vmatprep.subr.bf16.mxu0 %v5817_v1 }
 0x1a1   : > { %4959 = vmatprep.subr.bf16.mxu1 %v5817_v1 }
 0x1a3   : > { %4940 = vmatpush3.bf16.msra.mxu0 %v6276_v34 }
 0x1a4   : > { %4960 = vmatpush3.bf16.msra.mxu1 %v6281_v35  ;;  %4941 = vmatprep.subr.bf16.mxu0 %v5817_v1 }
 0x1a5   : > { %4961 = vmatprep.subr.bf16.mxu1 %v5817_v1 }
 0x1a7   : > { %4942 = vmatpush3.bf16.msra.mxu0 %v6291_v36 }
 0x1a8   : > { %4962 = vmatpush3.bf16.msra.mxu1 %v6298_v37  ;;  %4943 = vmatprep.subr.bf16.mxu0 %v5817_v1 }
 0x1a9   : > { %v1454_v14 = vpop.f32.mrb[20].mxu0  ;;  %4963 = vmatprep.subr.bf16.mxu1 %v5817_v1 }
 0x1aa   : > { %v1460_v16 = vadd.f32 %v1454_v14, %v1348_v12  ;;  %v1569_v17 = vpop.f32.mrb[20].mxu1  ;;  %v4671_v18 = vpop.f32.mrb[21].mxu0  ;;  %v8063_v14 = vld [vmem:[#allocation20_spill] sm:$0xff] }
 0x1ab   : > { %v4691_v21 = vpop.f32.mrb[21].mxu1  ;;  %v1457_v22 = vpop.f32.mrb[22].mxu0  ;;  %4944 = vmatpush3.bf16.msra.mxu0 %v6308_v39  ;;  %v8064_v18 = vld [vmem:[#allocation21_spill] sm:$0xff] }
 0x1ac   : > { %v1575_v25 = vadd.f32 %v1569_v17, %v1460_v16  ;;  %v1572_v28 = vpop.f32.mrb[22].mxu1  ;;  %4964 = vmatpush3.bf16.msra.mxu1 %v6317_v41  ;;  %v4672_v29 = vpop.f32.mrb[23].mxu0  ;;  %4945 = vmatprep.subr.bf16.mxu0 %v5817_v1  ;;  %v8065_v21 = vld [vmem:[#allocation22_spill] sm:$0xff] }
 0x1ad   : > { %v4692_v30 = vpop.f32.mrb[23].mxu1  ;;  %4965 = vmatprep.subr.bf16.mxu1 %v5817_v1  ;;  %v8067_v28 = vld [vmem:[#allocation24_spill] sm:$0xff]  ;;  %v8068_v29 = vld [vmem:[#allocation25_spill] sm:$0xff] }
 0x1ae   : > { %v8069_v30 = vld [vmem:[#allocation26_spill] sm:$0xff] }
 0x1af   : > { %4946 = vmatpush3.bf16.msra.mxu0 %v6324_v42 }
 0x1b0   : > { %4966 = vmatpush3.bf16.msra.mxu1 %v6331_v44  ;;  %4947 = vmatprep.subr.bf16.mxu0 %v5817_v1  ;;  %v8048_v44 = vld [vmem:[#allocation5_spill] sm:$0xff] }
 0x1b1   : > { %4967 = vmatprep.subr.bf16.mxu1 %v5817_v1 }
 0x1b3   : > { %4948 = vmatpush3.bf16.msra.mxu0 %v6338_v45  ;;  %v8049_v45 = vld [vmem:[#allocation6_spill] sm:$0xff] }
 0x1b4   : > { %4968 = vmatpush3.bf16.msra.mxu1 %v6345_v48  ;;  %4973 = vmatprep.subr.bf16.mxu0 %v5817_v1  ;;  %v8050_v48 = vld [vmem:[#allocation7_spill] sm:$0xff] }
 0x1b5   : > { %4993 = vmatprep.subr.bf16.mxu1 %v5817_v1 }
 0x1b6   : > { %4950 = vmatmul.mubr.bf16.vlgmr.msra.gmra.mrb[48].mxu0 %v6549_v7 }
 0x1b7   : > { %4970 = vmatmul.mubr.bf16.vlgmr.msra.gmra.mrb[48].mxu1 %v6597_v2  ;;  %4974 = vmatpush3.bf16.msra.mxu0 %v6354_v50  ;;  %v8051_v50 = vld [vmem:[#allocation8_spill] sm:$0xff] }
 0x1b8   : > { %4994 = vmatpush3.bf16.msra.mxu1 %v6361_v51  ;;  %4975 = vmatprep.subr.bf16.mxu0 %v5817_v1  ;;  %v8052_v51 = vld [vmem:[#allocation9_spill] sm:$0xff] }
 0x1b9   : > { %4995 = vmatprep.subr.bf16.mxu1 %v5817_v1  ;;  %4989 = vmatprep.mubr.msk.bf16.mxu0 %vm5818_vm0, %v5817_v1 }
 0x1ba   : > { %5009 = vmatprep.mubr.msk.bf16.mxu1 %vm5818_vm0, %v5817_v1 }
 0x1bb   : > { %4976 = vmatpush3.bf16.msra.mxu0 %v6370_v52  ;;  %v8053_v52 = vld [vmem:[#allocation10_spill] sm:$0xff] }
 0x1bc   : > { %4996 = vmatpush3.bf16.msra.mxu1 %v6377_v53  ;;  %4977 = vmatprep.subr.bf16.mxu0 %v5817_v1  ;;  %v8054_v53 = vld [vmem:[#allocation11_spill] sm:$0xff] }
 0x1bd   : > { %4997 = vmatprep.subr.bf16.mxu1 %v5817_v1 }
 0x1bf   : > { %4978 = vmatpush3.bf16.msra.mxu0 %v6388_v54  ;;  %v8055_v54 = vld [vmem:[#allocation12_spill] sm:$0xff] }
 0x1c0   : > { %4998 = vmatpush3.bf16.msra.mxu1 %v6395_v55  ;;  %4979 = vmatprep.subr.bf16.mxu0 %v5817_v1  ;;  %v8056_v55 = vld [vmem:[#allocation13_spill] sm:$0xff] }
 0x1c1   : > { %4999 = vmatprep.subr.bf16.mxu1 %v5817_v1 }
 0x1c3   : > { %4980 = vmatpush3.bf16.msra.mxu0 %v6402_v57  ;;  %v8057_v57 = vld [vmem:[#allocation14_spill] sm:$0xff] }
 0x1c4   : > { %5000 = vmatpush3.bf16.msra.mxu1 %v6409_v58  ;;  %4981 = vmatprep.subr.bf16.mxu0 %v5817_v1  ;;  %v8058_v58 = vld [vmem:[#allocation15_spill] sm:$0xff] }
 0x1c5   : > { %5001 = vmatprep.subr.bf16.mxu1 %v5817_v1 }
 0x1c7   : > { %4982 = vmatpush3.bf16.msra.mxu0 %v6416_v59  ;;  %v7249_v59 = vld [vmem:[%s5939_s9 + $0x10] sm:$0x3] }
 0x1c8   : > { %5002 = vmatpush3.bf16.msra.mxu1 %v6423_v60  ;;  %4983 = vmatprep.subr.bf16.mxu0 %v5817_v1  ;;  %v8059_v60 = vld [vmem:[#allocation16_spill] sm:$0xff] }
 0x1c9   : > { %v1677_v31 = vpop.f32.mrb[24].mxu0  ;;  %5003 = vmatprep.subr.bf16.mxu1 %v5817_v1 }
 0x1ca   : > { %v1683_v32 = vadd.f32 %v1677_v31, %v1575_v25  ;;  %v1794_v33 = vpop.f32.mrb[24].mxu1  ;;  %v4711_v34 = vpop.f32.mrb[25].mxu0  ;;  %v8066_v25 = vld [vmem:[#allocation23_spill] sm:$0xff] }
 0x1cb   : > { %v4731_v35 = vpop.f32.mrb[25].mxu1  ;;  %v1680_v36 = vpop.f32.mrb[26].mxu0  ;;  %4984 = vmatpush3.bf16.msra.mxu0 %v6430_v61  ;;  %v3994_v61 = vcombine.low %v7249_v59, %v7249_v59  ;;  %v8070_v31 = vld [vmem:[#allocation27_spill] sm:$0xff]  ;;  %v8073_v34 = vld [vmem:[#allocation30_spill] sm:$0xff] }
 0x1cc   : > { %v1800_v37 = vadd.f32 %v1794_v33, %v1683_v32  ;;  %v1797_v39 = vpop.f32.mrb[26].mxu1  ;;  %5004 = vmatpush3.bf16.msra.mxu1 %v6438_v63  ;;  %v4712_v41 = vpop.f32.mrb[27].mxu0  ;;  %4985 = vmatprep.subr.bf16.mxu0 %v5817_v1  ;;  %v8060_v63 = vld [vmem:[#allocation17_spill] sm:$0xff]  ;;  %v8071_v32 = vld [vmem:[#allocation28_spill] sm:$0xff]  ;;  %v8074_v35 = vld [vmem:[#allocation31_spill] sm:$0xff] }
 0x1cd   : > { %v4732_v42 = vpop.f32.mrb[27].mxu1  ;;  %5005 = vmatprep.subr.bf16.mxu1 %v5817_v1  ;;  %v2575_v38 = vshll.u32 %v3994_v61, 16  ;;  %v2573_v16 = vshrl.u32 %v3994_v61, 16  ;;  %v8072_v33 = vld [vmem:[#allocation29_spill] sm:$0xff]  ;;  %v8075_v36 = vld [vmem:[#allocation32_spill] sm:$0xff] }
 0x1ce   : > { %v8076_v39 = vld [vmem:[#allocation33_spill] sm:$0xff] }
 0x1cf   : > { %4986 = vmatpush3.bf16.msra.mxu0 %v6445_v0  ;;  %v2577_v17 = vrot.slane %v2575_v38, 1  ;;  %v8086_v38 = vld [vmem:[#allocation43_spill] sm:$0xff] }
 0x1d0   : > { %5006 = vmatpush3.bf16.msra.mxu1 %v8048_v44  ;;  %4987 = vmatprep.subr.bf16.mxu0 %v5817_v1 }
 0x1d1   : > { %5007 = vmatprep.subr.bf16.mxu1 %v5817_v1  ;;  %v7269_v22 = vor.u32 %v2577_v17, %v2573_v16 }
 0x1d3   : > { %4988 = vmatpush3.bf16.msra.mxu0 %v8049_v45 }
 0x1d4   : > { %5008 = vmatpush3.bf16.msra.mxu1 %v8050_v48  ;;  %5013 = vmatprep.subr.bf16.mxu0 %v5817_v1 }
 0x1d5   : > { %5033 = vmatprep.subr.bf16.mxu1 %v5817_v1 }
 0x1d6   : > { %4990 = vmatmul.mubr.bf16.vlgmr.msra.gmra.mrb[52].mxu0 %v6719_v47 }
 0x1d7   : > { %5010 = vmatmul.mubr.bf16.vlgmr.msra.gmra.mrb[52].mxu1 %v6722_v23  ;;  %5014 = vmatpush3.bf16.msra.mxu0 %v8051_v50 }
 0x1d8   : > { %5034 = vmatpush3.bf16.msra.mxu1 %v8052_v51  ;;  %5015 = vmatprep.subr.bf16.mxu0 %v5817_v1 }
 0x1d9   : > { %5035 = vmatprep.subr.bf16.mxu1 %v5817_v1  ;;  %5029 = vmatprep.mubr.msk.bf16.mxu0 %vm5818_vm0, %v5817_v1 }
 0x1da   : > { %5049 = vmatprep.mubr.msk.bf16.mxu1 %vm5818_vm0, %v5817_v1 }
 0x1db   : > { %5016 = vmatpush3.bf16.msra.mxu0 %v8053_v52 }
 0x1dc   : > { %5036 = vmatpush3.bf16.msra.mxu1 %v8054_v53  ;;  %5017 = vmatprep.subr.bf16.mxu0 %v5817_v1 }
 0x1dd   : > { %5037 = vmatprep.subr.bf16.mxu1 %v5817_v1 }
 0x1df   : > { %5018 = vmatpush3.bf16.msra.mxu0 %v8055_v54  ;;  %v8077_v54 = vld [vmem:[#allocation34_spill] sm:$0xff] }
 0x1e0   : > { %5038 = vmatpush3.bf16.msra.mxu1 %v8056_v55  ;;  %5019 = vmatprep.subr.bf16.mxu0 %v5817_v1 }
 0x1e1   : > { %5039 = vmatprep.subr.bf16.mxu1 %v5817_v1 }
 0x1e3   : > { %5020 = vmatpush3.bf16.msra.mxu0 %v8057_v57 }
 0x1e4   : > { %5040 = vmatpush3.bf16.msra.mxu1 %v8058_v58  ;;  %5021 = vmatprep.subr.bf16.mxu0 %v5817_v1  ;;  %v8078_v58 = vld [vmem:[#allocation35_spill] sm:$0xff] }
 0x1e5   : > { %5041 = vmatprep.subr.bf16.mxu1 %v5817_v1 }
 0x1e7   : > { %5022 = vmatpush3.bf16.msra.mxu0 %v8059_v60 }
 0x1e8   : > { %5042 = vmatpush3.bf16.msra.mxu1 %v8060_v63  ;;  %5023 = vmatprep.subr.bf16.mxu0 %v5817_v1  ;;  %v8079_v63 = vld [vmem:[#allocation36_spill] sm:$0xff] }
 0x1e9   : > { %v1906_v0 = vpop.f32.mrb[28].mxu0  ;;  %5043 = vmatprep.subr.bf16.mxu1 %v5817_v1 }
 0x1ea   : > { %v1912_v7 = vadd.f32 %v1906_v0, %v1800_v37  ;;  %v2021_v3 = vpop.f32.mrb[28].mxu1  ;;  %v4751_v40 = vpop.f32.mrb[29].mxu0  ;;  %v7298_v37 = vld [vmem:[%s5939_s9 + $0x10] ss:$0 sps:$4 sm:$0x66]   ;;  %v8080_v0 = vld [vmem:[#allocation37_spill] sm:$0xff] }
 0x1eb   : > { %v4771_v26 = vpop.f32.mrb[29].mxu1  ;;  %v1909_v15 = vpop.f32.mrb[30].mxu0  ;;  %5024 = vmatpush3.bf16.msra.mxu0 %v8061_v9  ;;  %v2669_v51 = vshrl.u32 %v7298_v37, 16  ;;  %v2672_v52 = vshll.u32 %v7298_v37, 16  ;;  %v8082_v40 = vld [vmem:[#allocation39_spill] sm:$0xff]  ;;  %v8085_v9 = vld [vmem:[#allocation42_spill] sm:$0xff] }
 0x1ec   : > { %v7259_v5 = vadd.f32 %v2021_v3, %v1912_v7  ;;  %v2024_v6 = vpop.f32.mrb[30].mxu1  ;;  %5044 = vmatpush3.bf16.msra.mxu1 %v8062_v11  ;;  %v4752_v12 = vpop.f32.mrb[31].mxu0  ;;  %5025 = vmatprep.subr.bf16.mxu0 %v5817_v1  ;;  %v8081_v3 = vld [vmem:[#allocation38_spill] sm:$0xff]  ;;  %v8083_v26 = vld [vmem:[#allocation40_spill] sm:$0xff]  ;;  %v8084_v15 = vld [vmem:[#allocation41_spill] sm:$0xff] }
 0x1ed   : > { %v4772_v13 = vpop.f32.mrb[31].mxu1  ;;  %5045 = vmatprep.subr.bf16.mxu1 %v5817_v1  ;;  %v2671_v60 = vrot.slane %v2669_v51, 1  ;;  %v2674_v61 = vrot.slane %v2672_v52, 2  ;;  %v8087_v6 = vld [vmem:[#allocation44_spill] sm:$0xff]  ;;  %v8088_v11 = vld [vmem:[#allocation45_spill] sm:$0xff]  ;;  %v8089_v12 = vld [vmem:[#allocation46_spill] sm:$0xff] }
 0x1ee   : > { %v8090_v13 = vld [vmem:[#allocation47_spill] sm:$0xff]  ;;  %v8105_v51 = vld [vmem:[#allocation62_spill] sm:$0xff] }
 0x1ef   : > { %5026 = vmatpush3.bf16.msra.mxu0 %v8063_v14  ;;  %v7315_v7 = vor.u32 %v2674_v61, %v2671_v60  ;;  %v8091_v14 = vld [vmem:[#allocation48_spill] sm:$0xff] }
 0x1f0   : > { %5046 = vmatpush3.bf16.msra.mxu1 %v8064_v18  ;;  %5027 = vmatprep.subr.bf16.mxu0 %v5817_v1 }
 0x1f1   : > { %5047 = vmatprep.subr.bf16.mxu1 %v5817_v1 }
 0x1f3   : > { %5028 = vmatpush3.bf16.msra.mxu0 %v8065_v21 }
 0x1f4   : > { %5048 = vmatpush3.bf16.msra.mxu1 %v8066_v25  ;;  %5053 = vmatprep.subr.bf16.mxu0 %v5817_v1 }
 0x1f5   : > { %5073 = vmatprep.subr.bf16.mxu1 %v5817_v1 }
 0x1f6   : > { %5030 = vmatmul.mubr.bf16.vlgmr.msra.gmra.mrb[56].mxu0 %v7249_v59 }
 0x1f7   : > { %5050 = vmatmul.mubr.bf16.vlgmr.msra.gmra.mrb[56].mxu1 %v7269_v22  ;;  %5054 = vmatpush3.bf16.msra.mxu0 %v8067_v28 }
 0x1f8   : > { %5074 = vmatpush3.bf16.msra.mxu1 %v8068_v29  ;;  %5055 = vmatprep.subr.bf16.mxu0 %v5817_v1 }
 0x1f9   : > { %5075 = vmatprep.subr.bf16.mxu1 %v5817_v1  ;;  %5069 = vmatprep.mubr.msk.bf16.mxu0 %vm5818_vm0, %v5817_v1 }
 0x1fa   : > { %5089 = vmatprep.mubr.msk.bf16.mxu1 %vm5818_vm0, %v5817_v1 }
 0x1fb   : > { %5056 = vmatpush3.bf16.msra.mxu0 %v8069_v30 }
 0x1fc   : > { %5076 = vmatpush3.bf16.msra.mxu1 %v8070_v31  ;;  %5057 = vmatprep.subr.bf16.mxu0 %v5817_v1 }
 0x1fd   : > { %5077 = vmatprep.subr.bf16.mxu1 %v5817_v1 }
 0x1ff   : > { %5058 = vmatpush3.bf16.msra.mxu0 %v8071_v32 }
 0x200   : > { %5078 = vmatpush3.bf16.msra.mxu1 %v8072_v33  ;;  %5059 = vmatprep.subr.bf16.mxu0 %v5817_v1  ;;  %v8092_v33 = vld [vmem:[#allocation49_spill] sm:$0xff] }
 0x201   : > { %5079 = vmatprep.subr.bf16.mxu1 %v5817_v1 }
 0x203   : > { %5060 = vmatpush3.bf16.msra.mxu0 %v8073_v34  ;;  %v8093_v34 = vld [vmem:[#allocation50_spill] sm:$0xff] }
 0x204   : > { %5080 = vmatpush3.bf16.msra.mxu1 %v8074_v35  ;;  %5061 = vmatprep.subr.bf16.mxu0 %v5817_v1  ;;  %v8095_v35 = vld [vmem:[#allocation52_spill] sm:$0xff] }
 0x205   : > { %5081 = vmatprep.subr.bf16.mxu1 %v5817_v1 }
 0x207   : > { %5062 = vmatpush3.bf16.msra.mxu0 %v8075_v36  ;;  %v8096_v36 = vld [vmem:[#allocation53_spill] sm:$0xff] }
 0x208   : > { %5082 = vmatpush3.bf16.msra.mxu1 %v8076_v39  ;;  %5063 = vmatprep.subr.bf16.mxu0 %v5817_v1  ;;  %v8097_v39 = vld [vmem:[#allocation54_spill] sm:$0xff] }
 0x209   : > { %v2070_v41 = vpop.f32.mrb[32].mxu0  ;;  %5083 = vmatprep.subr.bf16.mxu1 %v5817_v1 }
 0x20a   : > { %v2110_v42 = vpop.f32.mrb[32].mxu1  ;;  %v4791_v44 = vpop.f32.mrb[33].mxu0 }
 0x20b   : > { %v2111_v45 = vadd.f32 %v2110_v42, %v2070_v41  ;;  %v4811_v48 = vpop.f32.mrb[33].mxu1  ;;  %v2073_v50 = vpop.f32.mrb[34].mxu0  ;;  %5064 = vmatpush3.bf16.msra.mxu0 %v6678_v43  ;;  %v2625_v43 = vrot.slane %v7298_v37, 1  ;;  %v8098_v41 = vld [vmem:[#allocation55_spill] sm:$0xff]  ;;  %v8099_v42 = vld [vmem:[#allocation56_spill] sm:$0xff]  ;;  %v8101_v44 = vld [vmem:[#allocation58_spill] sm:$0xff] }
 0x20c   : > { %v2113_v53 = vpop.f32.mrb[34].mxu1  ;;  %5084 = vmatpush3.bf16.msra.mxu1 %v8077_v54  ;;  %v4792_v55 = vpop.f32.mrb[35].mxu0  ;;  %5065 = vmatprep.subr.bf16.mxu0 %v5817_v1  ;;  %v8103_v48 = vld [vmem:[#allocation60_spill] sm:$0xff]  ;;  %v8104_v50 = vld [vmem:[#allocation61_spill] sm:$0xff] }
 0x20d   : > { %v4812_v57 = vpop.f32.mrb[35].mxu1  ;;  %5085 = vmatprep.subr.bf16.mxu1 %v5817_v1  ;;  %v5723_v37 = vld [vmem:[%s7879_s1 + $0x308] sm:$0xff]  }
 0x20f   : > { %5066 = vmatpush3.bf16.msra.mxu0 %v8078_v58 }
 0x210   : > { %5086 = vmatpush3.bf16.msra.mxu1 %v8079_v63  ;;  %5067 = vmatprep.subr.bf16.mxu0 %v5817_v1 }
 0x211   : > { %5087 = vmatprep.subr.bf16.mxu1 %v5817_v1 }
 0x213   : > { %5068 = vmatpush3.bf16.msra.mxu0 %v8080_v0 }
 0x214   : > { %5088 = vmatpush3.bf16.msra.mxu1 %v8081_v3  ;;  %5093 = vmatprep.subr.bf16.mxu0 %v5817_v1  ;;  %v8106_v3 = vld [vmem:[#allocation63_spill] sm:$0xff] }
 0x215   : > { %5113 = vmatprep.subr.bf16.mxu1 %v5817_v1 }
 0x216   : > { %5070 = vmatmul.mubr.bf16.vlgmr.msra.gmra.mrb[60].mxu0 %v2625_v43 }
 0x217   : > { %5090 = vmatmul.mubr.bf16.vlgmr.msra.gmra.mrb[60].mxu1 %v7315_v7  ;;  %5094 = vmatpush3.bf16.msra.mxu0 %v8082_v40  ;;  %v8107_v40 = vld [vmem:[#allocation64_spill] sm:$0xff] }
 0x218   : > { %5114 = vmatpush3.bf16.msra.mxu1 %v8083_v26  ;;  %5095 = vmatprep.subr.bf16.mxu0 %v5817_v1  ;;  %v8108_v26 = vld [vmem:[#allocation65_spill] sm:$0xff] }
 0x219   : > { %5115 = vmatprep.subr.bf16.mxu1 %v5817_v1  ;;  %5109 = vmatprep.mubr.msk.bf16.mxu0 %vm5818_vm0, %v5817_v1 }
 0x21a   : > { %5129 = vmatprep.mubr.msk.bf16.mxu1 %vm5818_vm0, %v5817_v1 }
 0x21b   : > { %5096 = vmatpush3.bf16.msra.mxu0 %v8084_v15  ;;  %v8111_v15 = vld [vmem:[#allocation68_spill] sm:$0xff] }
 0x21c   : > { %5116 = vmatpush3.bf16.msra.mxu1 %v8085_v9  ;;  %5097 = vmatprep.subr.bf16.mxu0 %v5817_v1  ;;  %v8112_v9 = vld [vmem:[#allocation69_spill] sm:$0xff] }
 0x21d   : > { %5117 = vmatprep.subr.bf16.mxu1 %v5817_v1 }
 0x21f   : > { %5098 = vmatpush3.bf16.msra.mxu0 %v8086_v38  ;;  %v8113_v38 = vld [vmem:[#allocation70_spill] sm:$0xff] }
 0x220   : > { %5118 = vmatpush3.bf16.msra.mxu1 %v8087_v6  ;;  %5099 = vmatprep.subr.bf16.mxu0 %v5817_v1  ;;  %v8116_v6 = vld [vmem:[#allocation73_spill] sm:$0xff] }
 0x221   : > { %5119 = vmatprep.subr.bf16.mxu1 %v5817_v1 }
 0x223   : > { %5100 = vmatpush3.bf16.msra.mxu0 %v8088_v11  ;;  %v8117_v11 = vld [vmem:[#allocation74_spill] sm:$0xff] }
 0x224   : > { %5120 = vmatpush3.bf16.msra.mxu1 %v8089_v12  ;;  %5101 = vmatprep.subr.bf16.mxu0 %v5817_v1  ;;  %v8118_v12 = vld [vmem:[#allocation75_spill] sm:$0xff] }
 0x225   : > { %5121 = vmatprep.subr.bf16.mxu1 %v5817_v1 }
 0x227   : > { %5102 = vmatpush3.bf16.msra.mxu0 %v8090_v13  ;;  %v8119_v13 = vld [vmem:[#allocation76_spill] sm:$0xff] }
 0x228   : > { %5122 = vmatpush3.bf16.msra.mxu1 %v8091_v14  ;;  %5103 = vmatprep.subr.bf16.mxu0 %v5817_v1 }
 0x229   : > { %v2150_v16 = vpop.f32.mrb[36].mxu0  ;;  %5123 = vmatprep.subr.bf16.mxu1 %v5817_v1 }
 0x22a   : > { %v2156_v17 = vadd.f32 %v2150_v16, %v2111_v45  ;;  %v2191_v18 = vpop.f32.mrb[36].mxu1  ;;  %v4831_v21 = vpop.f32.mrb[37].mxu0  ;;  %v8102_v45 = vld [vmem:[#allocation59_spill] sm:$0xff] }
 0x22b   : > { %v4851_v25 = vpop.f32.mrb[37].mxu1  ;;  %v2153_v28 = vpop.f32.mrb[38].mxu0  ;;  %5104 = vmatpush3.bf16.msra.mxu0 %v6807_v62  ;;  %v8094_v62 = vld [vmem:[#allocation51_spill] sm:$0xff] }
 0x22c   : > { %v2197_v29 = vadd.f32 %v2191_v18, %v2156_v17  ;;  %v2194_v30 = vpop.f32.mrb[38].mxu1  ;;  %5124 = vmatpush3.bf16.msra.mxu1 %v6813_v46  ;;  %v4832_v31 = vpop.f32.mrb[39].mxu0  ;;  %5105 = vmatprep.subr.bf16.mxu0 %v5817_v1  ;;  %v5677_v46 = vld [vmem:[%s5939_s9 + $0x8] sm:$0x3] }
 0x22d   : > { %v4852_v32 = vpop.f32.mrb[39].mxu1  ;;  %5125 = vmatprep.subr.bf16.mxu1 %v5817_v1 }
 0x22e   : > { %v8121_v32 = vld [vmem:[#allocation78_spill] sm:$0xff] }
 0x22f   : > { %5106 = vmatpush3.bf16.msra.mxu0 %v8092_v33  ;;  %v8122_v33 = vld [vmem:[#allocation79_spill] sm:$0xff] }
 0x230   : > { %5126 = vmatpush3.bf16.msra.mxu1 %v8093_v34  ;;  %5107 = vmatprep.subr.bf16.mxu0 %v5817_v1  ;;  %v8125_v34 = vld [vmem:[#allocation82_spill] sm:$0xff] }
 0x231   : > { %5127 = vmatprep.subr.bf16.mxu1 %v5817_v1 }
 0x233   : > { %5108 = vmatpush3.bf16.msra.mxu0 %v8094_v62  ;;  %v8127_v62 = vld [vmem:[#allocation84_spill] sm:$0xff] }
 0x234   : > { %5128 = vmatpush3.bf16.msra.mxu1 %v8095_v35  ;;  %5133 = vmatprep.subr.bf16.mxu0 %v5817_v1  ;;  %v5679_v35 = vld [vmem:[%s7879_s1 + $0x198] sm:$0xff]  }
 0x235   : > { %5153 = vmatprep.subr.bf16.mxu1 %v5817_v1 }
 0x236   : > { %5110 = vmatmul.mubr.bf16.vlgmr.msra.gmra.mrb[64].mxu0 %v6349_v49  ;;  %v8100_v49 = vld [vmem:[#allocation57_spill] sm:$0xff] }
 0x237   : > { %5130 = vmatmul.mubr.bf16.vlgmr.msra.gmra.mrb[64].mxu1 %v5677_v46  ;;  %5134 = vmatpush3.bf16.msra.mxu0 %v8096_v36  ;;  %v5680_v46 = vld [vmem:[%s7879_s1 + $0x1d8] sm:$0xff]   ;;  %v5681_v36 = vld [vmem:[%s7879_s1 + $0x1a0] sm:$0xff]  }
 0x238   : > { %5154 = vmatpush3.bf16.msra.mxu1 %v8097_v39  ;;  %5135 = vmatprep.subr.bf16.mxu0 %v5817_v1  ;;  %v5682_v39 = vld [vmem:[%s7879_s1 + $0x1e0] sm:$0xff]  }
 0x239   : > { %5155 = vmatprep.subr.bf16.mxu1 %v5817_v1  ;;  %5149 = vmatprep.mubr.msk.bf16.mxu0 %vm5818_vm0, %v5817_v1 }
 0x23a   : > { %5169 = vmatprep.mubr.msk.bf16.mxu1 %vm5818_vm0, %v5817_v1 }
 0x23b   : > { %5136 = vmatpush3.bf16.msra.mxu0 %v8098_v41 }
 0x23c   : > { %5156 = vmatpush3.bf16.msra.mxu1 %v8099_v42  ;;  %5137 = vmatprep.subr.bf16.mxu0 %v5817_v1 }
 0x23d   : > { %5157 = vmatprep.subr.bf16.mxu1 %v5817_v1 }
 0x23f   : > { %5138 = vmatpush3.bf16.msra.mxu0 %v8100_v49 }
 0x240   : > { %5158 = vmatpush3.bf16.msra.mxu1 %v8101_v44  ;;  %5139 = vmatprep.subr.bf16.mxu0 %v5817_v1 }
 0x241   : > { %5159 = vmatprep.subr.bf16.mxu1 %v5817_v1 }
 0x243   : > { %5140 = vmatpush3.bf16.msra.mxu0 %v8102_v45 }
 0x244   : > { %5160 = vmatpush3.bf16.msra.mxu1 %v8103_v48  ;;  %5141 = vmatprep.subr.bf16.mxu0 %v5817_v1 }
 0x245   : > { %5161 = vmatprep.subr.bf16.mxu1 %v5817_v1 }
 0x247   : > { %5142 = vmatpush3.bf16.msra.mxu0 %v8104_v50  ;;  %v5683_v50 = vld [vmem:[%s7879_s1 + $0x1a8] sm:$0xff]  }
 0x248   : > { %5162 = vmatpush3.bf16.msra.mxu1 %v8105_v51  ;;  %5143 = vmatprep.subr.bf16.mxu0 %v5817_v1 }
 0x249   : > { %v2232_v52 = vpop.f32.mrb[40].mxu0  ;;  %5163 = vmatprep.subr.bf16.mxu1 %v5817_v1 }
 0x24a   : > { %v2238_v53 = vadd.f32 %v2232_v52, %v2197_v29  ;;  %v2273_v54 = vpop.f32.mrb[40].mxu1  ;;  %v4871_v55 = vpop.f32.mrb[41].mxu0 }
 0x24b   : > { %v4891_v57 = vpop.f32.mrb[41].mxu1  ;;  %v2235_v58 = vpop.f32.mrb[42].mxu0  ;;  %5144 = vmatpush3.bf16.msra.mxu0 %v6925_v24  ;;  %v8109_v24 = vld [vmem:[#allocation66_spill] sm:$0xff] }
 0x24c   : > { %v2279_v60 = vadd.f32 %v2273_v54, %v2238_v53  ;;  %v2276_v61 = vpop.f32.mrb[42].mxu1  ;;  %5164 = vmatpush3.bf16.msra.mxu1 %v6931_v4  ;;  %v4872_v63 = vpop.f32.mrb[43].mxu0  ;;  %5145 = vmatprep.subr.bf16.mxu0 %v5817_v1  ;;  %v8110_v4 = vld [vmem:[#allocation67_spill] sm:$0xff]  ;;  %v5684_v53 = vld [vmem:[%s7879_s1 + $0x1e8] sm:$0xff]  }
 0x24d   : > { %v4892_v0 = vpop.f32.mrb[43].mxu1  ;;  %5165 = vmatprep.subr.bf16.mxu1 %v5817_v1  ;;  %v5685_v57 = vld [vmem:[%s7879_s1 + $0x1b0] sm:$0xff]   ;;  %v5688_v61 = vld [vmem:[%s7879_s1 + $0x1f8] sm:$0xff]   ;;  %v5689_v63 = vld [vmem:[%s7879_s1 + $0x200] sm:$0xff]  }
 0x24e   : > { %v5686_v58 = vld [vmem:[%s7879_s1 + $0x1f0] sm:$0xff]   ;;  %v5690_v0 = vld [vmem:[%s7879_s1 + $0x240] sm:$0xff]  }
 0x24f   : > { %5146 = vmatpush3.bf16.msra.mxu0 %v8106_v3  ;;  %v5693_v3 = vld [vmem:[%s7879_s1 + $0x210] sm:$0xff]  }
 0x250   : > { %5166 = vmatpush3.bf16.msra.mxu1 %v8107_v40  ;;  %5147 = vmatprep.subr.bf16.mxu0 %v5817_v1  ;;  %v5694_v40 = vld [vmem:[%s7879_s1 + $0x250] sm:$0xff]  }
 0x251   : > { %5167 = vmatprep.subr.bf16.mxu1 %v5817_v1 }
 0x253   : > { %5148 = vmatpush3.bf16.msra.mxu0 %v8108_v26  ;;  %v5695_v26 = vld [vmem:[%s7879_s1 + $0x218] sm:$0xff]  }
 0x254   : > { %5168 = vmatpush3.bf16.msra.mxu1 %v8109_v24  ;;  %5173 = vmatprep.subr.bf16.mxu0 %v5817_v1  ;;  %v5696_v24 = vld [vmem:[%s7879_s1 + $0x258] sm:$0xff]  }
 0x255   : > { %5193 = vmatprep.subr.bf16.mxu1 %v5817_v1 }
 0x256   : > { %5150 = vmatmul.mubr.bf16.vlgmr.msra.gmra.mrb[68].mxu0 %v6469_v10  ;;  %v8114_v10 = vld [vmem:[#allocation71_spill] sm:$0xff] }
 0x257   : > { %5170 = vmatmul.mubr.bf16.vlgmr.msra.gmra.mrb[68].mxu1 %v6472_v19  ;;  %5174 = vmatpush3.bf16.msra.mxu0 %v8110_v4  ;;  %v8115_v19 = vld [vmem:[#allocation72_spill] sm:$0xff] }
 0x258   : > { %5194 = vmatpush3.bf16.msra.mxu1 %v8111_v15  ;;  %5175 = vmatprep.subr.bf16.mxu0 %v5817_v1  ;;  %v5697_v4 = vld [vmem:[%s7879_s1 + $0x220] sm:$0xff]  }
 0x259   : > { %5195 = vmatprep.subr.bf16.mxu1 %v5817_v1  ;;  %5189 = vmatprep.mubr.msk.bf16.mxu0 %vm5818_vm0, %v5817_v1  ;;  %v5698_v15 = vld [vmem:[%s7879_s1 + $0x260] sm:$0xff]  }
 0x25a   : > { %5209 = vmatprep.mubr.msk.bf16.mxu1 %vm5818_vm0, %v5817_v1 }
 0x25b   : > { %5176 = vmatpush3.bf16.msra.mxu0 %v8112_v9 }
 0x25c   : > { %5196 = vmatpush3.bf16.msra.mxu1 %v8113_v38  ;;  %5177 = vmatprep.subr.bf16.mxu0 %v5817_v1 }
 0x25d   : > { %5197 = vmatprep.subr.bf16.mxu1 %v5817_v1 }
 0x25f   : > { %5178 = vmatpush3.bf16.msra.mxu0 %v8114_v10 }
 0x260   : > { %5198 = vmatpush3.bf16.msra.mxu1 %v8115_v19  ;;  %5179 = vmatprep.subr.bf16.mxu0 %v5817_v1 }
 0x261   : > { %5199 = vmatprep.subr.bf16.mxu1 %v5817_v1 }
 0x263   : > { %5180 = vmatpush3.bf16.msra.mxu0 %v8116_v6 }
 0x264   : > { %5200 = vmatpush3.bf16.msra.mxu1 %v8117_v11  ;;  %5181 = vmatprep.subr.bf16.mxu0 %v5817_v1 }
 0x265   : > { %5201 = vmatprep.subr.bf16.mxu1 %v5817_v1 }
 0x267   : > { %5182 = vmatpush3.bf16.msra.mxu0 %v8118_v12  ;;  %v5699_v12 = vld [vmem:[%s7879_s1 + $0x228] sm:$0xff]  }
 0x268   : > { %5202 = vmatpush3.bf16.msra.mxu1 %v8119_v13  ;;  %5183 = vmatprep.subr.bf16.mxu0 %v5817_v1 }
 0x269   : > { %v2314_v14 = vpop.f32.mrb[44].mxu0  ;;  %5203 = vmatprep.subr.bf16.mxu1 %v5817_v1 }
 0x26a   : > { %v2320_v16 = vadd.f32 %v2314_v14, %v2279_v60  ;;  %v2355_v17 = vpop.f32.mrb[44].mxu1  ;;  %v4911_v18 = vpop.f32.mrb[45].mxu0  ;;  %v5687_v60 = vld [vmem:[%s7879_s1 + $0x1b8] sm:$0xff]  }
 0x26b   : > { %v4931_v21 = vpop.f32.mrb[45].mxu1  ;;  %v2317_v25 = vpop.f32.mrb[46].mxu0  ;;  %5184 = vmatpush3.bf16.msra.mxu0 %v7044_v56  ;;  %v8120_v56 = vld [vmem:[#allocation77_spill] sm:$0xff] }
 0x26c   : > { %v2361_v28 = vadd.f32 %v2355_v17, %v2320_v16  ;;  %v2358_v29 = vpop.f32.mrb[46].mxu1  ;;  %5204 = vmatpush3.bf16.msra.mxu1 %v7050_v27  ;;  %v4912_v30 = vpop.f32.mrb[47].mxu0  ;;  %5185 = vmatprep.subr.bf16.mxu0 %v5817_v1  ;;  %v5678_v27 = vld [vmem:[%s5939_s9 + $0xc] sm:$0x3]  ;;  %v5701_v21 = vld [vmem:[%s7879_s1 + $0x230] sm:$0xff]  }
 0x26d   : > { %v4932_v31 = vpop.f32.mrb[47].mxu1  ;;  %5205 = vmatprep.subr.bf16.mxu1 %v5817_v1  ;;  %v5700_v16 = vld [vmem:[%s7879_s1 + $0x268] sm:$0xff]   ;;  %v5702_v25 = vld [vmem:[%s7879_s1 + $0x270] sm:$0xff]   ;;  %v5704_v29 = vld [vmem:[%s7879_s1 + $0x278] sm:$0xff]  }
 0x26e   : > { %v5705_v30 = vld [vmem:[%s7879_s1 + $0x280] sm:$0xff]  }
 0x26f   : > { %5186 = vmatpush3.bf16.msra.mxu0 %v7058_v8  ;;  %v8123_v8 = vld [vmem:[#allocation80_spill] sm:$0xff] }
 0x270   : > { %5206 = vmatpush3.bf16.msra.mxu1 %v7064_v20  ;;  %5187 = vmatprep.subr.bf16.mxu0 %v5817_v1  ;;  %v8124_v20 = vld [vmem:[#allocation81_spill] sm:$0xff] }
 0x271   : > { %5207 = vmatprep.subr.bf16.mxu1 %v5817_v1  ;;  %v5706_v31 = vld [vmem:[%s7879_s1 + $0x2c0] sm:$0xff]  }
 0x273   : > { %5188 = vmatpush3.bf16.msra.mxu0 %v8120_v56  ;;  %v5709_v56 = vld [vmem:[%s7879_s1 + $0x290] sm:$0xff]  }
 0x274   : > { %5208 = vmatpush3.bf16.msra.mxu1 %v8121_v32  ;;  %5213 = vmatprep.subr.bf16.mxu0 %v5817_v1  ;;  %v5710_v32 = vld [vmem:[%s7879_s1 + $0x2d0] sm:$0xff]  }
 0x275   : > { %5233 = vmatprep.subr.bf16.mxu1 %v5817_v1 }
 0x276   : > { %5190 = vmatmul.mubr.bf16.vlgmr.msra.gmra.mrb[72].mxu0 %v5678_v27  ;;  %v5711_v27 = vld [vmem:[%s7879_s1 + $0x298] sm:$0xff]  }
 0x277   : > { %5210 = vmatmul.mubr.bf16.vlgmr.msra.gmra.mrb[72].mxu1 %v6597_v2  ;;  %5214 = vmatpush3.bf16.msra.mxu0 %v8122_v33  ;;  %v8126_v2 = vld [vmem:[#allocation83_spill] sm:$0xff] }
 0x278   : > { %5234 = vmatpush3.bf16.msra.mxu1 %v8123_v8  ;;  %5215 = vmatprep.subr.bf16.mxu0 %v5817_v1  ;;  %v5712_v33 = vld [vmem:[%s7879_s1 + $0x2d8] sm:$0xff]   ;;  %v5713_v8 = vld [vmem:[%s7879_s1 + $0x2a0] sm:$0xff]  }
 0x279   : > { %5235 = vmatprep.subr.bf16.mxu1 %v5817_v1  ;;  %5229 = vmatprep.mubr.msk.bf16.mxu0 %vm5818_vm0, %v5817_v1 }
 0x27a   : > { %5249 = vmatprep.mubr.msk.bf16.mxu1 %vm5818_vm0, %v5817_v1 }
 0x27b   : > { %5216 = vmatpush3.bf16.msra.mxu0 %v8124_v20  ;;  %v5714_v20 = vld [vmem:[%s7879_s1 + $0x2e0] sm:$0xff]  }
 0x27c   : > { %5236 = vmatpush3.bf16.msra.mxu1 %v8125_v34  ;;  %5217 = vmatprep.subr.bf16.mxu0 %v5817_v1 }
 0x27d   : > { %5237 = vmatprep.subr.bf16.mxu1 %v5817_v1 }
 0x27f   : > { %5218 = vmatpush3.bf16.msra.mxu0 %v8126_v2 }
 0x280   : > { %5238 = vmatpush3.bf16.msra.mxu1 %v8127_v62  ;;  %5219 = vmatprep.subr.bf16.mxu0 %v5817_v1 }
 0x281   : > { %5239 = vmatprep.subr.bf16.mxu1 %v5817_v1 }
 0x283   : > { %5220 = vmatpush3.bf16.msra.mxu0 %v5679_v35 }
 0x284   : > { %5240 = vmatpush3.bf16.msra.mxu1 %v5680_v46  ;;  %5221 = vmatprep.subr.bf16.mxu0 %v5817_v1 }
 0x285   : > { %5241 = vmatprep.subr.bf16.mxu1 %v5817_v1 }
 0x287   : > { %5222 = vmatpush3.bf16.msra.mxu0 %v5681_v36 }
 0x288   : > { %5242 = vmatpush3.bf16.msra.mxu1 %v5682_v39  ;;  %5223 = vmatprep.subr.bf16.mxu0 %v5817_v1  ;;  %v5715_v39 = vld [vmem:[%s7879_s1 + $0x2a8] sm:$0xff]  }
 0x289   : > { %v2396_v41 = vpop.f32.mrb[48].mxu0  ;;  %5243 = vmatprep.subr.bf16.mxu1 %v5817_v1 }
 0x28a   : > { %v2402_v42 = vadd.f32 %v2396_v41, %v2361_v28  ;;  %v2437_v49 = vpop.f32.mrb[48].mxu1  ;;  %v4951_v44 = vpop.f32.mrb[49].mxu0  ;;  %v5703_v28 = vld [vmem:[%s7879_s1 + $0x238] sm:$0xff]  }
 0x28b   : > { %v4971_v45 = vpop.f32.mrb[49].mxu1  ;;  %v2399_v48 = vpop.f32.mrb[50].mxu0  ;;  %5224 = vmatpush3.bf16.msra.mxu0 %v5683_v50  ;;  %v5718_v50 = vld [vmem:[%s7879_s1 + $0x2f0] sm:$0xff]  }
 0x28c   : > { %v2443_v51 = vadd.f32 %v2437_v49, %v2402_v42  ;;  %v2440_v52 = vpop.f32.mrb[50].mxu1  ;;  %5244 = vmatpush3.bf16.msra.mxu1 %v5684_v53  ;;  %v4952_v54 = vpop.f32.mrb[51].mxu0  ;;  %5225 = vmatprep.subr.bf16.mxu0 %v5817_v1  ;;  %v5716_v49 = vld [vmem:[%s7879_s1 + $0x2e8] sm:$0xff]   ;;  %v5717_v48 = vld [vmem:[%s7879_s1 + $0x2b0] sm:$0xff]   ;;  %v5721_v53 = vld [vmem:[%s7879_s1 + $0x300] sm:$0xff]  }
 0x28d   : > { %v4972_v55 = vpop.f32.mrb[51].mxu1  ;;  %5245 = vmatprep.subr.bf16.mxu1 %v5817_v1  ;;  %v5720_v52 = vld [vmem:[%s7879_s1 + $0x2f8] sm:$0xff]   ;;  %v5722_v54 = vld [vmem:[%s7879_s1 + $0x340] sm:$0xff]  }
 0x28e   : > { %v5726_v55 = vld [vmem:[%s7879_s1 + $0x350] sm:$0xff]  }
 0x28f   : > { %5226 = vmatpush3.bf16.msra.mxu0 %v5685_v57  ;;  %v7666_v57 = vld [vmem:[%s7880_s2] ss:$0 sm:$0xff] }
 0x290   : > { %5246 = vmatpush3.bf16.msra.mxu1 %v5686_v58  ;;  %5227 = vmatprep.subr.bf16.mxu0 %v5817_v1  ;;  %v5727_v58 = vld [vmem:[%s7879_s1 + $0x318] sm:$0xff]  }
 0x291   : > { %5247 = vmatprep.subr.bf16.mxu1 %v5817_v1 }
 0x293   : > { %5228 = vmatpush3.bf16.msra.mxu0 %v5687_v60  ;;  %v2034_v60 = vadd.f32 %v7666_v57, %v7259_v5  ;;  %v5730_v5 = vld [vmem:[%s7879_s1 + $0x360] sm:$0xff]  }
 0x294   : > { %5248 = vmatpush3.bf16.msra.mxu1 %v5688_v61  ;;  %5253 = vmatprep.subr.bf16.mxu0 %v5817_v1  ;;  %v5728_v61 = vld [vmem:[%s7879_s1 + $0x358] sm:$0xff]  }
 0x295   : > { %5273 = vmatprep.subr.bf16.mxu1 %v5817_v1 }
 0x296   : > { %5230 = vmatmul.mubr.bf16.vlgmr.msra.gmra.mrb[76].mxu0 %v6719_v47  ;;  %v5691_v47 = vld [vmem:[%s7879_s1 + $0x208] sm:$0xff]  }
 0x297   : > { %5250 = vmatmul.mubr.bf16.vlgmr.msra.gmra.mrb[76].mxu1 %v6722_v23  ;;  %5254 = vmatpush3.bf16.msra.mxu0 %v5689_v63  ;;  %v5692_v23 = vld [vmem:[%s7879_s1 + $0x248] sm:$0xff]   ;;  %v3997_v63 = vld [vmem:[%s5939_s9 + $0x14] sm:$0x3] }
 0x298   : > { %5274 = vmatpush3.bf16.msra.mxu1 %v5690_v0  ;;  %5255 = vmatprep.subr.bf16.mxu0 %v5817_v1  ;;  %v5729_v0 = vld [vmem:[%s7879_s1 + $0x320] sm:$0xff]  }
 0x299   : > { %5275 = vmatprep.subr.bf16.mxu1 %v5817_v1  ;;  %5269 = vmatprep.mubr.msk.bf16.mxu0 %vm5818_vm0, %v5817_v1 }
 0x29a   : > { %5289 = vmatprep.mubr.msk.bf16.mxu1 %vm5818_vm0, %v5817_v1 }
 0x29b   : > { %5256 = vmatpush3.bf16.msra.mxu0 %v5691_v47  ;;  %v3998_v47 = vcombine.low %v3997_v63, %v3997_v63 }
 0x29c   : > { %5276 = vmatpush3.bf16.msra.mxu1 %v5692_v23  ;;  %5257 = vmatprep.subr.bf16.mxu0 %v5817_v1  ;;  %v2035_v23 = vmax.f32 %v2034_v60, 0.0 }
 0x29d   : > { %5277 = vmatprep.subr.bf16.mxu1 %v5817_v1 }
 0x29f   : > { %5258 = vmatpush3.bf16.msra.mxu0 %v5693_v3 }
 0x2a0   : > { %5278 = vmatpush3.bf16.msra.mxu1 %v5694_v40  ;;  %5259 = vmatprep.subr.bf16.mxu0 %v5817_v1 }
 0x2a1   : > { %5279 = vmatprep.subr.bf16.mxu1 %v5817_v1 }
 0x2a3   : > { %5260 = vmatpush3.bf16.msra.mxu0 %v5695_v26 }
 0x2a4   : > { %5280 = vmatpush3.bf16.msra.mxu1 %v5696_v24  ;;  %5261 = vmatprep.subr.bf16.mxu0 %v5817_v1 }
 0x2a5   : > { %5281 = vmatprep.subr.bf16.mxu1 %v5817_v1 }
 0x2a7   : > { %5262 = vmatpush3.bf16.msra.mxu0 %v5697_v4 }
 0x2a8   : > { %5282 = vmatpush3.bf16.msra.mxu1 %v5698_v15  ;;  %5263 = vmatprep.subr.bf16.mxu0 %v5817_v1 }
 0x2a9   : > { %v2478_v9 = vpop.f32.mrb[52].mxu0  ;;  %5283 = vmatprep.subr.bf16.mxu1 %v5817_v1 }
 0x2aa   : > { %v2484_v38 = vadd.f32 %v2478_v9, %v2443_v51  ;;  %v2519_v10 = vpop.f32.mrb[52].mxu1  ;;  %v4991_v19 = vpop.f32.mrb[53].mxu0  ;;  %v5719_v51 = vld [vmem:[%s7879_s1 + $0x2b8] sm:$0xff]   ;;  %v5731_v9 = vld [vmem:[%s7879_s1 + $0x328] sm:$0xff]  }
 0x2ab   : > { %v5011_v6 = vpop.f32.mrb[53].mxu1  ;;  %v2481_v11 = vpop.f32.mrb[54].mxu0  ;;  %5264 = vmatpush3.bf16.msra.mxu0 %v5699_v12 }
 0x2ac   : > { %v2525_v13 = vadd.f32 %v2519_v10, %v2484_v38  ;;  %v2522_v14 = vpop.f32.mrb[54].mxu1  ;;  %5284 = vmatpush3.bf16.msra.mxu1 %v5700_v16  ;;  %v4992_v17 = vpop.f32.mrb[55].mxu0  ;;  %5265 = vmatprep.subr.bf16.mxu0 %v5817_v1  ;;  %v3259_v38 = vshll.u32 %v3998_v47, 16  ;;  %v3405_v10 = vrot.slane %v2035_v23, 1  ;;  %v5732_v11 = vld [vmem:[%s7879_s1 + $0x368] sm:$0xff]   ;;  %v5733_v16 = vld [vmem:[%s7879_s1 + $0x330] sm:$0xff]  }
 0x2ad   : > { %v5012_v18 = vpop.f32.mrb[55].mxu1  ;;  %5285 = vmatprep.subr.bf16.mxu1 %v5817_v1  ;;  %v3257_v17 = vshrl.u32 %v3998_v47, 16 }
 0x2ae   : > { %v3261_v18 = vrot.slane %v3259_v38, 1 }
 0x2af   : > { %5266 = vmatpush3.bf16.msra.mxu0 %v5701_v21  ;;  %v3407_v21 = vmax.f32 %v2035_v23, %v3405_v10 }
 0x2b0   : > { %5286 = vmatpush3.bf16.msra.mxu1 %v5702_v25  ;;  %5267 = vmatprep.subr.bf16.mxu0 %v5817_v1 }
 0x2b1   : > { %5287 = vmatprep.subr.bf16.mxu1 %v5817_v1 }
 0x2b3   : > { %5268 = vmatpush3.bf16.msra.mxu0 %v5703_v28  ;;  %v5734_v28 = vld [vmem:[%s7879_s1 + $0x370] sm:$0xff]  }
 0x2b4   : > { %5288 = vmatpush3.bf16.msra.mxu1 %v5704_v29  ;;  %5293 = vmatprep.subr.bf16.mxu0 %v5817_v1 }
 0x2b5   : > { %5313 = vmatprep.subr.bf16.mxu1 %v5817_v1 }
 0x2b6   : > { %5270 = vmatmul.mubr.bf16.vlgmr.msra.gmra.mrb[80].mxu0 %v7249_v59  ;;  %v5707_v59 = vld [vmem:[%s7879_s1 + $0x288] sm:$0xff]  }
 0x2b7   : > { %5290 = vmatmul.mubr.bf16.vlgmr.msra.gmra.mrb[80].mxu1 %v7269_v22  ;;  %5294 = vmatpush3.bf16.msra.mxu0 %v5705_v30  ;;  %v5708_v22 = vld [vmem:[%s7879_s1 + $0x2c8] sm:$0xff]  }
 0x2b8   : > { %5314 = vmatpush3.bf16.msra.mxu1 %v5706_v31  ;;  %5295 = vmatprep.subr.bf16.mxu0 %v5817_v1  ;;  %v5735_v31 = vld [vmem:[%s7879_s1 + $0x338] sm:$0xff]  }
 0x2b9   : > { %5315 = vmatprep.subr.bf16.mxu1 %v5817_v1  ;;  %5309 = vmatprep.mubr.msk.bf16.mxu0 %vm5818_vm0, %v5817_v1 }
 0x2ba   : > { %5329 = vmatprep.mubr.msk.bf16.mxu1 %vm5818_vm0, %v5817_v1 }
 0x2bb   : > { %5296 = vmatpush3.bf16.msra.mxu0 %v5707_v59  ;;  %v3262_v59 = vor.u32 %v3261_v18, %v3257_v17  ;;  %v5615_v18 = vld [vmem:[%s7881_s3] sm:$0xff]  }
 0x2bc   : > { %5316 = vmatpush3.bf16.msra.mxu1 %v5708_v22  ;;  %5297 = vmatprep.subr.bf16.mxu0 %v5817_v1 }
 0x2bd   : > { %5317 = vmatprep.subr.bf16.mxu1 %v5817_v1 }
 0x2bf   : > { %5298 = vmatpush3.bf16.msra.mxu0 %v5709_v56  ;;  %v5736_v56 = vld [vmem:[%s7879_s1 + $0x378] sm:$0xff]  }
 0x2c0   : > { %5318 = vmatpush3.bf16.msra.mxu1 %v5710_v32  ;;  %5299 = vmatprep.subr.bf16.mxu0 %v5817_v1  ;;  %v5737_v32 = vld [vmem:[%s7879_s1 + $0x380] sm:$0xff]  }
 0x2c1   : > { %5319 = vmatprep.subr.bf16.mxu1 %v5817_v1 }
 0x2c3   : > { %5300 = vmatpush3.bf16.msra.mxu0 %v5711_v27  ;;  %v5738_v27 = vld [vmem:[%s7879_s1 + $0x3c0] sm:$0xff]  }
 0x2c4   : > { %5320 = vmatpush3.bf16.msra.mxu1 %v5712_v33  ;;  %5301 = vmatprep.subr.bf16.mxu0 %v5817_v1  ;;  %v5739_v33 = vld [vmem:[%s7879_s1 + $0x388] sm:$0xff]  }
 0x2c5   : > { %5321 = vmatprep.subr.bf16.mxu1 %v5817_v1 }
 0x2c7   : > { %5302 = vmatpush3.bf16.msra.mxu0 %v5713_v8  ;;  %v5740_v8 = vld [vmem:[%s7879_s1 + $0x3c8] sm:$0xff]  }
 0x2c8   : > { %5322 = vmatpush3.bf16.msra.mxu1 %v5714_v20  ;;  %5303 = vmatprep.subr.bf16.mxu0 %v5817_v1  ;;  %v5741_v20 = vld [vmem:[%s7879_s1 + $0x390] sm:$0xff]  }
 0x2c9   : > { %v2562_v34 = vpop.f32.mrb[56].mxu0  ;;  %5323 = vmatprep.subr.bf16.mxu1 %v5817_v1 }
 0x2ca   : > { %v2568_v2 = vadd.f32 %v2562_v34, %v2525_v13  ;;  %v2614_v62 = vpop.f32.mrb[56].mxu1  ;;  %v5031_v35 = vpop.f32.mrb[57].mxu0  ;;  %v5742_v34 = vld [vmem:[%s7879_s1 + $0x3d0] sm:$0xff]  }
 0x2cb   : > { %v5051_v46 = vpop.f32.mrb[57].mxu1  ;;  %v2565_v36 = vpop.f32.mrb[58].mxu0  ;;  %5304 = vmatpush3.bf16.msra.mxu0 %v5715_v39  ;;  %v5745_v35 = vld [vmem:[%s7879_s1 + $0x3a0] sm:$0xff]  }
 0x2cc   : > { %v2620_v41 = vadd.f32 %v2614_v62, %v2568_v2  ;;  %v2617_v42 = vpop.f32.mrb[58].mxu1  ;;  %5324 = vmatpush3.bf16.msra.mxu1 %v5716_v49  ;;  %v5032_v44 = vpop.f32.mrb[59].mxu0  ;;  %5305 = vmatprep.subr.bf16.mxu0 %v5817_v1  ;;  %v5743_v2 = vld [vmem:[%s7879_s1 + $0x398] sm:$0xff]   ;;  %v5614_v46 = vld [vmem:[%s5939_s9 + $0x14] ss:$0 sps:$4 sm:$0x66]  }
 0x2cd   : > { %v5052_v45 = vpop.f32.mrb[59].mxu1  ;;  %5325 = vmatprep.subr.bf16.mxu1 %v5817_v1  ;;  %v5744_v62 = vld [vmem:[%s7879_s1 + $0x3d8] sm:$0xff]   ;;  %v5746_v36 = vld [vmem:[%s7879_s1 + $0x3e0] sm:$0xff]   ;;  %v3309_v60 = vrot.slane %v5614_v46, 1 }
 0x2cf   : > { %5306 = vmatpush3.bf16.msra.mxu0 %v5717_v48  ;;  %v5747_v48 = vld [vmem:[%s7879_s1 + $0x3a8] sm:$0xff]  }
 0x2d0   : > { %5326 = vmatpush3.bf16.msra.mxu1 %v5718_v50  ;;  %5307 = vmatprep.subr.bf16.mxu0 %v5817_v1  ;;  %v3353_v50 = vshrl.u32 %v5614_v46, 16 }
 0x2d1   : > { %5327 = vmatprep.subr.bf16.mxu1 %v5817_v1 }
 0x2d3   : > { %5308 = vmatpush3.bf16.msra.mxu0 %v5719_v51  ;;  %v3356_v51 = vshll.u32 %v5614_v46, 16  ;;  %v5621_v46 = vld [vmem:[%s7881_s3 + $0x30] sm:$0xff]  }
 0x2d4   : > { %5328 = vmatpush3.bf16.msra.mxu1 %v5720_v52  ;;  %5333 = vmatprep.subr.bf16.mxu0 %v5817_v1 }
 0x2d5   : > { %5353 = vmatprep.subr.bf16.mxu1 %v5817_v1 }
 0x2d6   : > { %5310 = vmatmul.mubr.bf16.vlgmr.msra.gmra.mrb[84].mxu0 %v2625_v43  ;;  %v5724_v43 = vld [vmem:[%s7879_s1 + $0x348] sm:$0xff]  }
 0x2d7   : > { %5330 = vmatmul.mubr.bf16.vlgmr.msra.gmra.mrb[84].mxu1 %v7315_v7  ;;  %5334 = vmatpush3.bf16.msra.mxu0 %v5721_v53  ;;  %v5725_v7 = vld [vmem:[%s7879_s1 + $0x310] sm:$0xff]   ;;  %v5748_v53 = vld [vmem:[%s7879_s1 + $0x3e8] sm:$0xff]  }
 0x2d8   : > { %5354 = vmatpush3.bf16.msra.mxu1 %v5722_v54  ;;  %5335 = vmatprep.subr.bf16.mxu0 %v5817_v1 }
 0x2d9   : > { %5355 = vmatprep.subr.bf16.mxu1 %v5817_v1  ;;  %5349 = vmatprep.mubr.msk.bf16.mxu0 %vm5818_vm0, %v5817_v1 }
 0x2da   : > { %5369 = vmatprep.mubr.msk.bf16.mxu1 %vm5818_vm0, %v5817_v1 }
 0x2db   : > { %5336 = vmatpush3.bf16.msra.mxu0 %v5723_v37 }
 0x2dc   : > { %5356 = vmatpush3.bf16.msra.mxu1 %v5724_v43  ;;  %5337 = vmatprep.subr.bf16.mxu0 %v5817_v1  ;;  %v5749_v43 = vld [vmem:[%s7879_s1 + $0x3b0] sm:$0xff]  }
 0x2dd   : > { %5357 = vmatprep.subr.bf16.mxu1 %v5817_v1 }
 0x2df   : > { %5338 = vmatpush3.bf16.msra.mxu0 %v5725_v7  ;;  %v3355_v7 = vrot.slane %v3353_v50, 1 }
 0x2e0   : > { %5358 = vmatpush3.bf16.msra.mxu1 %v5726_v55  ;;  %5339 = vmatprep.subr.bf16.mxu0 %v5817_v1  ;;  %v3358_v55 = vrot.slane %v3356_v51, 2 }
 0x2e1   : > { %5359 = vmatprep.subr.bf16.mxu1 %v5817_v1 }
 0x2e3   : > { %5340 = vmatpush3.bf16.msra.mxu0 %v5727_v58  ;;  %v5750_v58 = vld [vmem:[%s7879_s1 + $0x3f0] sm:$0xff]  }
 0x2e4   : > { %5360 = vmatpush3.bf16.msra.mxu1 %v5728_v61  ;;  %5341 = vmatprep.subr.bf16.mxu0 %v5817_v1  ;;  %v5751_v61 = vld [vmem:[%s7879_s1 + $0x3b8] sm:$0xff]  }
 0x2e5   : > { %5361 = vmatprep.subr.bf16.mxu1 %v5817_v1 }
 0x2e7   : > { %5342 = vmatpush3.bf16.msra.mxu0 %v5729_v0  ;;  %v5752_v0 = vld [vmem:[%s7879_s1 + $0x3f8] sm:$0xff]  }
 0x2e8   : > { %5362 = vmatpush3.bf16.msra.mxu1 %v5730_v5  ;;  %5343 = vmatprep.subr.bf16.mxu0 %v5817_v1 }
 0x2e9   : > { %v2661_v3 = vpop.f32.mrb[60].mxu0  ;;  %5363 = vmatprep.subr.bf16.mxu1 %v5817_v1 }
 0x2ea   : > { %v2667_v40 = vadd.f32 %v2661_v3, %v2620_v41  ;;  %v2711_v26 = vpop.f32.mrb[60].mxu1  ;;  %v5071_v24 = vpop.f32.mrb[61].mxu0 }
 0x2eb   : > { %v5091_v4 = vpop.f32.mrb[61].mxu1  ;;  %v2664_v15 = vpop.f32.mrb[62].mxu0  ;;  %5344 = vmatpush3.bf16.msra.mxu0 %v5731_v9 }
 0x2ec   : > { %v2717_v19 = vadd.f32 %v2711_v26, %v2667_v40  ;;  %v2714_v6 = vpop.f32.mrb[62].mxu1  ;;  %5364 = vmatpush3.bf16.msra.mxu1 %v5732_v11  ;;  %v5072_v12 = vpop.f32.mrb[63].mxu0  ;;  %5345 = vmatprep.subr.bf16.mxu0 %v5817_v1 }
 0x2ed   : > { %v5092_v13 = vpop.f32.mrb[63].mxu1  ;;  %5365 = vmatprep.subr.bf16.mxu1 %v5817_v1 }
 0x2ee   : > { %v2718_v14 = vadd.f32 %v7666_v57, %v2717_v19 }
 0x2ef   : > { %5346 = vmatpush3.bf16.msra.mxu0 %v5733_v16 }
 0x2f0   : > { %v7700_v25 = vmax.f32 %v2718_v14, 0.0  ;;  %5366 = vmatpush3.bf16.msra.mxu1 %v5734_v28  ;;  %5347 = vmatprep.subr.bf16.mxu0 %v5817_v1  ;;  %v5617_v28 = vld [vmem:[%s7881_s3 + $0x10] sm:$0xff]  }
 0x2f1   : > { %5367 = vmatprep.subr.bf16.mxu1 %v5817_v1 }
 0x2f2   : > { %v3408_v29 = vmax.f32 %v3407_v21, %v7700_v25  ;;  %v3410_v30 = vrot.slane %v7700_v25, 1  ;;  %v5616_v21 = vld [vmem:[%s7881_s3 + $0x8] sm:$0xff]  }
 0x2f3   : > { %5348 = vmatpush3.bf16.msra.mxu0 %v5735_v31 }
 0x2f4   : > { %v7714_v22 = vmax.f32 %v3408_v29, %v3410_v30  ;;  %5368 = vmatpush3.bf16.msra.mxu1 %v5736_v56  ;;  %5373 = vmatprep.subr.bf16.mxu0 %v5817_v1 }
 0x2f5   : > { %5393 = vmatprep.subr.bf16.mxu1 %v5817_v1 }
 0x2f6   : > { %5350 = vmatmul.mubr.bf16.vlgmr.msra.gmra.mrb[88].mxu0 %v3997_v63  ;;  %v3359_v63 = vor.u32 %v3358_v55, %v3355_v7 }
 0x2f7   : > { %5370 = vmatmul.mubr.bf16.vlgmr.msra.gmra.mrb[88].mxu1 %v3262_v59  ;;  %5374 = vmatpush3.bf16.msra.mxu0 %v5737_v32  ;;  %v5618_v32 = vld [vmem:[%s7881_s3 + $0x18] sm:$0xff]  }
 0x2f8   : > { %5394 = vmatpush3.bf16.msra.mxu1 %v5738_v27  ;;  %5375 = vmatprep.subr.bf16.mxu0 %v5817_v1 }
 0x2f9   : > { %5395 = vmatprep.subr.bf16.mxu1 %v5817_v1  ;;  %5389 = vmatprep.mubr.msk.bf16.mxu0 %vm5818_vm0, %v5817_v1 }
 0x2fa   : > { %5409 = vmatprep.mubr.msk.bf16.mxu1 %vm5818_vm0, %v5817_v1 }
 0x2fb   : > { %5376 = vmatpush3.bf16.msra.mxu0 %v5739_v33 }
 0x2fc   : > { %5396 = vmatpush3.bf16.msra.mxu1 %v5740_v8  ;;  %5377 = vmatprep.subr.bf16.mxu0 %v5817_v1 }
 0x2fd   : > { %5397 = vmatprep.subr.bf16.mxu1 %v5817_v1 }
 0x2ff   : > { %5378 = vmatpush3.bf16.msra.mxu0 %v5741_v20 }
 0x300   : > { %5398 = vmatpush3.bf16.msra.mxu1 %v5742_v34  ;;  %5379 = vmatprep.subr.bf16.mxu0 %v5817_v1 }
 0x301   : > { %5399 = vmatprep.subr.bf16.mxu1 %v5817_v1 }
 0x303   : > { %5380 = vmatpush3.bf16.msra.mxu0 %v5743_v2 }
 0x304   : > { %5400 = vmatpush3.bf16.msra.mxu1 %v5744_v62  ;;  %5381 = vmatprep.subr.bf16.mxu0 %v5817_v1  ;;  %v5619_v62 = vld [vmem:[%s7881_s3 + $0x20] sm:$0xff]  }
 0x305   : > { %5401 = vmatprep.subr.bf16.mxu1 %v5817_v1 }
 0x307   : > { %5382 = vmatpush3.bf16.msra.mxu0 %v5745_v35  ;;  %v5620_v35 = vld [vmem:[%s7881_s3 + $0x28] sm:$0xff]  }
 0x308   : > { %5402 = vmatpush3.bf16.msra.mxu1 %v5746_v36  ;;  %5383 = vmatprep.subr.bf16.mxu0 %v5817_v1  ;;  %v5622_v36 = vld [vmem:[%s7881_s3 + $0x38] sm:$0xff]  }
 0x309   : > { %v2754_v39 = vpop.f32.mrb[64].mxu0  ;;  %5403 = vmatprep.subr.bf16.mxu1 %v5817_v1 }
 0x30a   : > { %v2794_v41 = vpop.f32.mrb[64].mxu1  ;;  %v5111_v42 = vpop.f32.mrb[65].mxu0 }
 0x30b   : > { %v2795_v49 = vadd.f32 %v2794_v41, %v2754_v39  ;;  %v5131_v44 = vpop.f32.mrb[65].mxu1  ;;  %v2757_v45 = vpop.f32.mrb[66].mxu0  ;;  %5384 = vmatpush3.bf16.msra.mxu0 %v5747_v48 }
 0x30c   : > { %v2797_v52 = vpop.f32.mrb[66].mxu1  ;;  %5404 = vmatpush3.bf16.msra.mxu1 %v5748_v53  ;;  %v5112_v54 = vpop.f32.mrb[67].mxu0  ;;  %5385 = vmatprep.subr.bf16.mxu0 %v5817_v1 }
 0x30d   : > { %v5132_v37 = vpop.f32.mrb[67].mxu1  ;;  %5405 = vmatprep.subr.bf16.mxu1 %v5817_v1 }
 0x30f   : > { %5386 = vmatpush3.bf16.msra.mxu0 %v5749_v43 }
 0x310   : > { %5406 = vmatpush3.bf16.msra.mxu1 %v5750_v58  ;;  %5387 = vmatprep.subr.bf16.mxu0 %v5817_v1 }
 0x311   : > { %5407 = vmatprep.subr.bf16.mxu1 %v5817_v1 }
 0x313   : > { %5388 = vmatpush3.bf16.msra.mxu0 %v5751_v61 }
 0x314   : > { %5408 = vmatpush3.bf16.msra.mxu1 %v5752_v0  ;;  %5413 = vmatprep.subr.bf16.mxu0 %v5817_v1 }
 0x316   : > { %5390 = vmatmul.mubr.bf16.vlgmr.msra.gmra.mrb[92].mxu0 %v3309_v60 }
 0x317   : > { %5410 = vmatmul.mubr.bf16.vlgmr.msra.gmra.mrb[92].mxu1 %v3359_v63  ;;  %5429 = vmatprep.mubr.msk.bf16.mxu0 %vm5818_vm0, %v5817_v1 }
 0x318   : > { %5414 = vmatpush3.bf16.msra.mxu0 %v5615_v18 }
 0x319   : > { %5415 = vmatprep.subr.bf16.mxu0 %v5817_v1 }
 0x31c   : > { %5416 = vmatpush3.bf16.msra.mxu0 %v5616_v21  ;;  %v3418_v21 = vmax.f32 %v7700_v25, %v3410_v30 }
 0x31d   : > { %5417 = vmatprep.subr.bf16.mxu0 %v5817_v1 }
 0x320   : > { %5418 = vmatpush3.bf16.msra.mxu0 %v5617_v28 }
 0x321   : > { %5419 = vmatprep.subr.bf16.mxu0 %v5817_v1 }
 0x324   : > { %5420 = vmatpush3.bf16.msra.mxu0 %v5618_v32 }
 0x325   : > { %5421 = vmatprep.subr.bf16.mxu0 %v5817_v1 }
 0x328   : > { %5422 = vmatpush3.bf16.msra.mxu0 %v5619_v62 }
 0x329   : > { %v2834_v47 = vpop.f32.mrb[68].mxu0  ;;  %5423 = vmatprep.subr.bf16.mxu0 %v5817_v1 }
 0x32a   : > { %v2840_v23 = vadd.f32 %v2834_v47, %v2795_v49  ;;  %v2875_v5 = vpop.f32.mrb[68].mxu1  ;;  %v5151_v3 = vpop.f32.mrb[69].mxu0 }
 0x32b   : > { %v5171_v40 = vpop.f32.mrb[69].mxu1  ;;  %v2837_v26 = vpop.f32.mrb[70].mxu0 }
 0x32c   : > { %v2881_v24 = vadd.f32 %v2875_v5, %v2840_v23  ;;  %v2878_v4 = vpop.f32.mrb[70].mxu1  ;;  %v5152_v15 = vpop.f32.mrb[71].mxu0  ;;  %5424 = vmatpush3.bf16.msra.mxu0 %v5620_v35 }
 0x32d   : > { %v5172_v9 = vpop.f32.mrb[71].mxu1  ;;  %5425 = vmatprep.subr.bf16.mxu0 %v5817_v1 }
 0x330   : > { %5426 = vmatpush3.bf16.msra.mxu0 %v5621_v46 }
 0x331   : > { %5427 = vmatprep.subr.bf16.mxu0 %v5817_v1 }
 0x334   : > { %5428 = vmatpush3.bf16.msra.mxu0 %v5622_v36 }
 0x349   : > { %v2916_v38 = vpop.f32.mrb[72].mxu0 }
 0x34a   : > { %v2922_v10 = vadd.f32 %v2916_v38, %v2881_v24  ;;  %v2957_v19 = vpop.f32.mrb[72].mxu1  ;;  %v5191_v6 = vpop.f32.mrb[73].mxu0 }
 0x34b   : > { %v5211_v11 = vpop.f32.mrb[73].mxu1  ;;  %v2919_v12 = vpop.f32.mrb[74].mxu0 }
 0x34c   : > { %v2963_v13 = vadd.f32 %v2957_v19, %v2922_v10  ;;  %v2960_v14 = vpop.f32.mrb[74].mxu1  ;;  %v5192_v16 = vpop.f32.mrb[75].mxu0 }
 0x34d   : > { %v5212_v17 = vpop.f32.mrb[75].mxu1 }
 0x34e   : > { %v3415_v17 = vrot.slane %v7714_v22, 1 }
 0x369   : > { %v2998_v29 = vpop.f32.mrb[76].mxu0 }
 0x36a   : > { %v3004_v31 = vadd.f32 %v2998_v29, %v2963_v13  ;;  %v3039_v59 = vpop.f32.mrb[76].mxu1  ;;  %v5231_v56 = vpop.f32.mrb[77].mxu0 }
 0x36b   : > { %v5251_v27 = vpop.f32.mrb[77].mxu1  ;;  %v3001_v33 = vpop.f32.mrb[78].mxu0 }
 0x36c   : > { %v3045_v8 = vadd.f32 %v3039_v59, %v3004_v31  ;;  %v3042_v20 = vpop.f32.mrb[78].mxu1  ;;  %v5232_v34 = vpop.f32.mrb[79].mxu0  ;;  %v3417_v31 = vadd.f32 %v3415_v17, %v7714_v22 }
 0x36d   : > { %v5252_v2 = vpop.f32.mrb[79].mxu1 }
 0x389   : > { %v3080_v39 = vpop.f32.mrb[80].mxu0 }
 0x38a   : > { %v3086_v41 = vadd.f32 %v3080_v39, %v3045_v8  ;;  %v3121_v42 = vpop.f32.mrb[80].mxu1  ;;  %v5271_v49 = vpop.f32.mrb[81].mxu0 }
 0x38b   : > { %v5291_v44 = vpop.f32.mrb[81].mxu1  ;;  %v3083_v45 = vpop.f32.mrb[82].mxu0 }
 0x38c   : > { %v3127_v48 = vadd.f32 %v3121_v42, %v3086_v41  ;;  %v3124_v50 = vpop.f32.mrb[82].mxu1  ;;  %v5272_v51 = vpop.f32.mrb[83].mxu0 }
 0x38d   : > { %v5292_v52 = vpop.f32.mrb[83].mxu1 }
 0x3a9   : > { %v3162_v53 = vpop.f32.mrb[84].mxu0 }
 0x3aa   : > { %v3168_v54 = vadd.f32 %v3162_v53, %v3127_v48  ;;  %v3203_v37 = vpop.f32.mrb[84].mxu1  ;;  %v5311_v43 = vpop.f32.mrb[85].mxu0 }
 0x3ab   : > { %v5331_v7 = vpop.f32.mrb[85].mxu1  ;;  %v3165_v55 = vpop.f32.mrb[86].mxu0 }
 0x3ac   : > { %v3209_v58 = vadd.f32 %v3203_v37, %v3168_v54  ;;  %v3206_v60 = vpop.f32.mrb[86].mxu1  ;;  %v5312_v1 = vpop.f32.mrb[87].mxu0 }
 0x3ad   : > { %v5332_v61 = vpop.f32.mrb[87].mxu1 }
 0x3c9   : > { %v3246_v63 = vpop.f32.mrb[88].mxu0 }
 0x3ca   : > { %v3252_v0 = vadd.f32 %v3246_v63, %v3209_v58  ;;  %v3298_v47 = vpop.f32.mrb[88].mxu1  ;;  %v5351_v23 = vpop.f32.mrb[89].mxu0 }
 0x3cb   : > { %v5371_v5 = vpop.f32.mrb[89].mxu1  ;;  %v3249_v3 = vpop.f32.mrb[90].mxu0 }
 0x3cc   : > { %v3304_v40 = vadd.f32 %v3298_v47, %v3252_v0  ;;  %v3301_v26 = vpop.f32.mrb[90].mxu1  ;;  %v5352_v24 = vpop.f32.mrb[91].mxu0 }
 0x3cd   : > { %v5372_v4 = vpop.f32.mrb[91].mxu1 }
 0x3e9   : > { %v3345_v15 = vpop.f32.mrb[92].mxu0 }
 0x3ea   : > { %v3351_v9 = vadd.f32 %v3345_v15, %v3304_v40  ;;  %v3395_v38 = vpop.f32.mrb[92].mxu1  ;;  %v5391_v10 = vpop.f32.mrb[93].mxu0 }
 0x3eb   : > { %v5411_v19 = vpop.f32.mrb[93].mxu1  ;;  %v3348_v6 = vpop.f32.mrb[94].mxu0 }
 0x3ec   : > { %v3401_v11 = vadd.f32 %v3395_v38, %v3351_v9  ;;  %v3398_v12 = vpop.f32.mrb[94].mxu1  ;;  %v5392_v13 = vpop.f32.mrb[95].mxu0 }
 0x3ed   : > { %v5412_v14 = vpop.f32.mrb[95].mxu1 }
 0x3ee   : > { %v3402_v16 = vadd.f32 %v7666_v57, %v3401_v11  ;;  %v3447_v57 = vld [vmem:[%s7882_s4] sm:$0x1] }
 0x3f0   : > { %v3403_v18 = vmax.f32 %v3402_v16, 0.0 }
 0x3f2   : > { %v3419_v28 = vmax.f32 %v3418_v21, %v3403_v18  ;;  %v3421_v29 = vrot.slane %v3403_v18, 1 }
 0x3f4   : > { %v3423_v59 = vmax.f32 %v3419_v28, %v3421_v29 }
 0x3f6   : > { %v3424_v56 = vadd.f32 %v3423_v59, %v3417_v31  ;;  %v3426_v32 = vrot.slane %v3423_v59, 1 }
 0x3f8   : > { %v3428_v27 = vadd.f32 %v3426_v32, %v3424_v56 }
 0x3fa   : > { %v3429_v33 = vmul.f32 0.25, %v3428_v27 }
 0x3fc   : > { %v3430_v8 = vpack.c.bf16 %v3429_v33, %v3429_v33 }
 0x3fe   : > { %5430 = vmatmul.mubr.bf16.vlgmr.msra.gmra.mrb[96].mxu0 %v3430_v8 }
 0x4d1   : > { %v3530_v25 = vpop.f32.mrb[96].mxu0 }
 0x4d2   : > { %v3531_v30 = vadd.f32 %v3530_v25, %v3447_v57  ;;  %v5431_v20 = vpop.f32.mrb[97].mxu0 }
 0x4d3   : > { %v3533_v22 = vpop.f32.mrb[98].mxu0 }
 0x4d4   : > { %3536 = vst [vmem:[%s216_s16] sm:$0x1] %v3531_v30  ;;  %v5432_v34 = vpop.f32.mrb[99].mxu0 }
 0x4d5   : > { %5766 = shalt.err (!%p5763_p3)
}
 0x4d6   : > { %s5767_s8 = scalar_lea.hbm %s7836_s25, 16  ;;  %s5771_s12 = scalar_lea.hbm %s7883_s5, 32 }
 0x4d7   : > { %p5768_p4 = scmp.ne.s32.totalorder %s7836_s25, %s5767_s8  ;;  %p5772_p9 = scmp.lt.u32.totalorder %s7836_s25, %s7883_s5 }
 0x4d8   : > { %p5773_p10 = scmp.lt.u32.totalorder %s5771_s12, %s5767_s8  ;;  %p5775_p12 = scmp.lt.u32.totalorder %s5767_s8, %s7836_s25 }
 0x4d9   : > { %p5769_p7 = pnand %p5768_p4, %p5888_p5 }
 0x4da   : > { %p5774_p11 = por %p5773_p10, %p5772_p9 }
 0x4db   : > { %p5770_p8 = pneg %p5769_p7 }
 0x4dc   : > { %p5776_p13 = por %p5775_p12, %p5774_p11 }
 0x4de   : > { %p5777_p0 = pnand %p5776_p13, %p5770_p8 }
 0x4e0   : > { %5780 = shalt.err (!%p5777_p0)
}
 0x4e1   : > { %5434 = dma.vmem_to_hbm [thread:$0]  (%p5888_p5), %s7838_s17, 16, %s7836_s25, %s3538_s26  }
 0x4e2 PF: > { %p5440_p1 = scmp.ge.s32.totalorder %s5815_s21, 2  ;;  %s3562_s15 = sand.u32 1, %s5803_s18  }
 0x4e3   : > { %s3563_s16 = scalar_lea.sflag [#allocation3], %s3562_s15 }
 0x4e4   : > { %p5437_p2 = pnand %p5440_p1, %p5892_p6 }
 0x4e6   : > { %5798 = dma.done.wait (!%p5437_p2), %s3563_s16, 16  }
 0x4e7   : > { %5800 = vsyncadd (!%p5437_p2), %s3563_s16, 4294967280  ;;  %p15_p3 = scmp.ge.s32.totalorder %s5875_s24, 4   ;;  %s8128_s18 = smov %s5807_s19 }
 0x4e8   : > { %s8129_s19 = smov %s5811_s20  ;;  %s8130_s20 = smov %s5886_s27 }
 0x4e9   : > { %s8131_s21 = smov %s5875_s24  ;;  %17 = sbr.rel (!%p15_p3) target bundleno = 3 (0x3), region = 95 }
 0x4f0   :  { %3567 = vsyncpa [#allocation3], 1 }
 0x4f1   :  { %3569 = vsyncpa [#allocation3 + $0x1], 1 }

</bundles_post_ra>
